<compile_context>
chip_gen: v7x
topology: tpu7x:2x2x1
jax: 0.10.0
libtpu: 0.0.40
codegen_flags: <defaults>
</compile_context>

<pallas_src>
import jax
import jax.numpy as jnp
from jax import lax
from jax.experimental import pallas as pl
from jax.experimental.pallas import tpu as pltpu


# ---------------------------------------------------------------------------
# Kernel 1: row-tiled matmul + bias.
# Used for ConvTranspose2d(k=2, s=2) expressed as a per-pixel matmul, and for
# the 1x1 "reduce" conv.
# ---------------------------------------------------------------------------
def _matmul_bias_kernel(x_ref, w_ref, b_ref, o_ref):
    acc = jnp.dot(x_ref[...], w_ref[...], preferred_element_type=jnp.float32)
    o_ref[...] = (acc + b_ref[...]).astype(o_ref.dtype)


def matmul_bias(x, w, b, *, out_dtype):
    """x:(M,K) @ w:(K,N) + b.  bf16 MXU inputs, f32 accumulate, f32 bias add."""
    M, K = x.shape
    N = w.shape[1]
    # Row tiling gives the standard prefetch-(i+1)/compute-(i) overlap, bounds
    # VMEM per step, and exposes a parallel grid axis (v7x megacore).  256 rows
    # is enough for the demo; 512-1024 is better for very large M.
    tm = M if M <= 256 else 256
    grid = (pl.cdiv(M, tm),)
    return pl.pallas_call(
        _matmul_bias_kernel,
        out_shape=jax.ShapeDtypeStruct((M, N), out_dtype),
        grid_spec=pl.GridSpec(
            grid=grid,
            in_specs=[
                pl.BlockSpec((tm, K), lambda i: (i, 0)),
                pl.BlockSpec((K, N), lambda i: (0, 0)),   # resident weights
                pl.BlockSpec((1, N), lambda i: (0, 0)),   # resident bias
            ],
            out_specs=pl.BlockSpec((tm, N), lambda i: (i, 0)),
        ),
        compiler_params=pltpu.CompilerParams(
            dimension_semantics=("parallel",)),
    )(x.astype(jnp.bfloat16), w.astype(jnp.bfloat16),
      b.reshape(1, N).astype(jnp.float32))


# ---------------------------------------------------------------------------
# Kernel 2: 3x3 conv (pad already applied) + folded inference-BatchNorm + ReLU,
# fused, with the channel-concat of multiple inputs fused in as well.
# The padded images stay resident in VMEM; the 9 shifted tap windows are
# sliced in-kernel (no 9x im2col tensor in HBM).
# ---------------------------------------------------------------------------
def _pick_row_tile(h, w):
    # Row-tile the output so each grid step is a >=512-row matmul slab
    # (amortizes the ~0.35us per-step overhead) while keeping the live f32
    # accumulator modest.
    if w % 8 != 0:
        return h
    for t in range(1, h + 1):
        if h % t == 0 and t * w >= 512:
            return t
    return h


def _make_conv3x3_kernel(n_groups, group_channels, th, w_out):
    def kernel(*refs):
        x_refs = refs[:n_groups]                       # (Hp, Wp, C_g) padded images
        w_refs = refs[n_groups:2 * n_groups]           # (9, C_g, Cout)
        scale_ref, shift_ref, o_ref = refs[2 * n_groups:]
        r = pl.program_id(1)
        row0 = pl.multiple_of(r * th, th)
        cout = o_ref.shape[-1]
        acc = jnp.zeros((th * w_out, cout), jnp.float32)
        # TODO(synk): a single K = 9*Cin MXU contraction (im2col tile assembled
        # in VMEM via a minor-dim concatenate) would fill the MXU K dimension
        # better than these per-tap dots; kept per-tap for lowering robustness.
        for ky in range(3):
            for kx in range(3):
                t = ky * 3 + kx
                for g in range(n_groups):
                    win = x_refs[g][pl.ds(row0 + ky, th), pl.ds(kx, w_out), :]
                    acc = acc + jnp.dot(
                        win.reshape(th * w_out, group_channels[g]),
                        w_refs[g][t],
                        preferred_element_type=jnp.float32)
        # f32 epilogue (v5e has no bf16 VPU); cast only at the store.
        y = acc * scale_ref[...] + shift_ref[...]
        o_ref[...] = jnp.maximum(y, 0.0).astype(o_ref.dtype)
    return kernel


def conv3x3_bn_relu(xs_padded, w_oihw, conv_b, gamma, beta, mean, var,
                    *, eps=1e-5, out_dtype=jnp.bfloat16):
    """Fused 3x3 conv (padding=1 already applied) + inference BN + ReLU.

    xs_padded: tuple of NHWC bf16 arrays (B, H+2, W+2, C_g) whose channel
    concatenation is the conv input -- the concat itself never materializes.
    Returns (B, H, W, Cout) in `out_dtype`.
    """
    n = len(xs_padded)
    B, Hp, Wp = xs_padded[0].shape[:3]
    H, W = Hp - 2, Wp - 2
    cs = tuple(int(x.shape[-1]) for x in xs_padded)
    Cout, Cin = w_oihw.shape[0], w_oihw.shape[1]
    assert Cin == sum(cs)

    # OIHW -> (tap, Cin, Cout); split Cin into the per-input channel groups
    # (the PyTorch graph concatenates [x2_reduced, x1_upsampled] channel-first).
    w_t = jnp.transpose(w_oihw, (2, 3, 1, 0)).reshape(9, Cin, Cout)
    w_groups, off = [], 0
    for c in cs:
        w_groups.append(w_t[:, off:off + c, :].astype(jnp.bfloat16))
        off += c

    # Fold inference BatchNorm (and the conv bias) into one per-channel affine.
    scale = (gamma / jnp.sqrt(var + eps)).astype(jnp.float32)
    shift = (beta - mean * scale + conv_b * scale).astype(jnp.float32)

    th = _pick_row_tile(H, W)
    grid = (B, H // th)    # row axis last: padded inputs stay VMEM-resident per b

    kernel = _make_conv3x3_kernel(n, cs, th, W)
    in_specs = (
        [pl.BlockSpec((None, Hp, Wp, c), lambda b, r: (b, 0, 0, 0)) for c in cs]
        + [pl.BlockSpec((9, c, Cout), lambda b, r: (0, 0, 0)) for c in cs]
        + [pl.BlockSpec((1, Cout), lambda b, r: (0, 0)),
           pl.BlockSpec((1, Cout), lambda b, r: (0, 0))]
    )
    # TODO(synk): for large images (v7x 64 MiB VMEM) switch the input blocks to
    # halo'd row tiles (manual DMA) and set vmem_limit_bytes accordingly; the
    # small Cout here also leaves the output stores lane-sparse (see review).
    out = pl.pallas_call(
        kernel,
        out_shape=jax.ShapeDtypeStruct((B, H * W, Cout), out_dtype),
        grid_spec=pl.GridSpec(
            grid=grid,
            in_specs=in_specs,
            out_specs=pl.BlockSpec((None, th * W, Cout), lambda b, r: (b, r, 0)),
        ),
        compiler_params=pltpu.CompilerParams(
            dimension_semantics=("parallel", "parallel")),
    )(*xs_padded, *w_groups, scale.reshape(1, Cout), shift.reshape(1, Cout))
    return out.reshape(B, H, W, Cout)


# ---------------------------------------------------------------------------
# Module pieces built on the kernels
# ---------------------------------------------------------------------------
def conv_transpose_2x2(x_nhwc, w_t, b):
    """PyTorch ConvTranspose2d(kernel_size=2, stride=2). w_t: (Cin, Cout, 2, 2)."""
    B, H, W, Cin = x_nhwc.shape
    Cout = w_t.shape[1]
    # out[b, 2i+di, 2j+dj, co] = sum_ci x[b,i,j,ci] * w[ci,co,di,dj] + b[co]
    w2 = jnp.transpose(w_t, (0, 2, 3, 1)).reshape(Cin, 4 * Cout)   # (ci ; di,dj,co)
    b2 = jnp.tile(b, 4)
    y = matmul_bias(x_nhwc.reshape(B * H * W, Cin), w2, b2, out_dtype=jnp.bfloat16)
    y = y.reshape(B, H, W, 2, 2, Cout)
    # TODO(synk): this pixel interleave is one extra XLA copy pass (it fuses
    # with the following pad); removing it requires consuming the blocked
    # (B,H,W,2,2,C) layout directly inside the first conv kernel.
    y = jnp.transpose(y, (0, 1, 3, 2, 4, 5)).reshape(B, 2 * H, 2 * W, Cout)
    return y


def conv_1x1(x_nhwc, w, b):
    """1x1 conv. w: (Cout, Cin, 1, 1)."""
    B, H, W, Cin = x_nhwc.shape
    Cout = w.shape[0]
    y = matmul_bias(x_nhwc.reshape(B * H * W, Cin), w.reshape(Cout, Cin).T, b,
                    out_dtype=jnp.bfloat16)
    return y.reshape(B, H, W, Cout)


def init_re_up_params(key, in_ch, out_ch):
    ks = jax.random.split(key, 16)
    up_out = in_ch // 4 * 3
    f32 = jnp.float32
    return {
        "up_w":  0.2 * jax.random.normal(ks[0], (in_ch, up_out, 2, 2), f32),
        "up_b":  0.1 * jax.random.normal(ks[1], (up_out,), f32),
        "red_w": 0.2 * jax.random.normal(ks[2], (in_ch // 4, in_ch // 2, 1, 1), f32),
        "red_b": 0.1 * jax.random.normal(ks[3], (in_ch // 4,), f32),
        "c1_w":  0.2 * jax.random.normal(ks[4], (out_ch, in_ch, 3, 3), f32),
        "c1_b":  0.1 * jax.random.normal(ks[5], (out_ch,), f32),
        "c2_w":  0.2 * jax.random.normal(ks[6], (out_ch, out_ch, 3, 3), f32),
        "c2_b":  0.1 * jax.random.normal(ks[7], (out_ch,), f32),
        # BatchNorm2d affine params + running stats (inference mode)
        "bn1_gamma": 1.0 + 0.1 * jax.random.normal(ks[8], (out_ch,), f32),
        "bn1_beta":  0.1 * jax.random.normal(ks[9], (out_ch,), f32),
        "bn1_mean":  0.1 * jax.random.normal(ks[10], (out_ch,), f32),
        "bn1_var":   1.0 + 0.1 * jax.nn.softplus(jax.random.normal(ks[11], (out_ch,), f32)),
        "bn2_gamma": 1.0 + 0.1 * jax.random.normal(ks[12], (out_ch,), f32),
        "bn2_beta":  0.1 * jax.random.normal(ks[13], (out_ch,), f32),
        "bn2_mean":  0.1 * jax.random.normal(ks[14], (out_ch,), f32),
        "bn2_var":   1.0 + 0.1 * jax.nn.softplus(jax.random.normal(ks[15], (out_ch,), f32)),
    }


def re_up_forward(p, x1_nchw, x2_nchw):
    """re_up.forward(x1, x2) with SE_mode=False (module default), inference BN."""
    x1 = jnp.transpose(x1_nchw, (0, 2, 3, 1)).astype(jnp.bfloat16)   # NCHW -> NHWC
    x2 = jnp.transpose(x2_nchw, (0, 2, 3, 1)).astype(jnp.bfloat16)

    x1u = conv_transpose_2x2(x1, p["up_w"], p["up_b"])   # (B, 2H, 2W, 3*in_ch/4)
    x2r = conv_1x1(x2, p["red_w"], p["red_b"])           # (B, H2, W2, in_ch/4)

    # PyTorch quirk: diffX comes from dim2 (H) but F.pad applies it to W, and
    # vice versa.  Replicated as-is.  The first conv's padding=1 is folded into
    # the same pad, and the channel concat [x2r, x1u] is fused into that conv.
    diffX = x1u.shape[1] - x2r.shape[1]
    diffY = x1u.shape[2] - x2r.shape[2]
    # TODO(synk): negative diffX/diffY (F.pad cropping) is not supported here.
    x2p = jnp.pad(x2r, ((0, 0),
                        (1 + diffY // 2, 1 + int(diffY / 2)),
                        (1 + diffX // 2, 1 + int(diffX / 2)),
                        (0, 0)))
    x1p = jnp.pad(x1u, ((0, 0), (1, 1), (1, 1), (0, 0)))

    # double_conv: (conv3x3 -> BN -> ReLU) x2, each one fused Pallas kernel.
    # TODO(synk): BatchNorm2d is evaluated in inference mode (folded running
    # stats); train-mode batch statistics are not reproduced.
    y = conv3x3_bn_relu((x2p, x1p), p["c1_w"], p["c1_b"], p["bn1_gamma"],
                        p["bn1_beta"], p["bn1_mean"], p["bn1_var"],
                        out_dtype=jnp.bfloat16)
    yp = jnp.pad(y, ((0, 0), (1, 1), (1, 1), (0, 0)))
    z = conv3x3_bn_relu((yp,), p["c2_w"], p["c2_b"], p["bn2_gamma"],
                        p["bn2_beta"], p["bn2_mean"], p["bn2_var"],
                        out_dtype=jnp.float32)
    return jnp.transpose(z, (0, 3, 1, 2))                # back to NCHW, f32


# ---------------------------------------------------------------------------
# Pure-XLA reference in NCHW, mirroring the PyTorch module.
#   compute_dtype=float32  -> exact f32 math (HIGHEST precision)
#   compute_dtype=bfloat16 -> mirrors the kernels' bf16-input / f32-accumulate
#                             numerics (for a tight correctness check)
# ---------------------------------------------------------------------------
def reference_forward(p, x1, x2, *, compute_dtype=jnp.float32, eps=1e-5):
    hp = lax.Precision.HIGHEST

    def c(t):
        return t.astype(compute_dtype).astype(jnp.float32)

    def _up(x, w, b):
        y = jnp.einsum('bchw,codk->bohdwk', c(x), c(w), precision=hp)
        B, Co, H, _, W, _ = y.shape
        return c(y.reshape(B, Co, 2 * H, 2 * W) + b[None, :, None, None])

    def _c1x1(x, w, b):
        y = jnp.einsum('bchw,oc->bohw', c(x), c(w[:, :, 0, 0]), precision=hp)
        return c(y + b[None, :, None, None])

    def _c3x3_bn_relu(x, w, b, g, bt, m, v, final):
        y = lax.conv_general_dilated(c(x), c(w), (1, 1), ((1, 1), (1, 1)),
                                     dimension_numbers=('NCHW', 'OIHW', 'NCHW'),
                                     precision=hp)
        y = y + b[None, :, None, None]
        y = (y - m[None, :, None, None]) / jnp.sqrt(v[None, :, None, None] + eps)
        y = y * g[None, :, None, None] + bt[None, :, None, None]
        y = jnp.maximum(y, 0.0)
        return y if final else c(y)

    x1u = _up(x1, p["up_w"], p["up_b"])
    x2r = _c1x1(x2, p["red_w"], p["red_b"])
    diffX = x1u.shape[2] - x2r.shape[2]
    diffY = x1u.shape[3] - x2r.shape[3]
    x2r = jnp.pad(x2r, ((0, 0), (0, 0),
                        (diffY // 2, int(diffY / 2)),
                        (diffX // 2, int(diffX / 2))))
    x = jnp.concatenate([x2r, x1u], axis=1)
    x = _c3x3_bn_relu(x, p["c1_w"], p["c1_b"], p["bn1_gamma"], p["bn1_beta"],
                      p["bn1_mean"], p["bn1_var"], final=False)
    x = _c3x3_bn_relu(x, p["c2_w"], p["c2_b"], p["bn2_gamma"], p["bn2_beta"],
                      p["bn2_mean"], p["bn2_var"], final=True)
    return x


if __name__ == "__main__":
    in_ch, out_ch = 16, 8
    B, H, W = 2, 8, 8
    key = jax.random.PRNGKey(0)
    kp, k1, k2 = jax.random.split(key, 3)
    params = init_re_up_params(kp, in_ch, out_ch)
    x1 = jax.random.normal(k1, (B, in_ch, H, W), jnp.float32)                # NCHW
    x2 = jax.random.normal(k2, (B, in_ch // 2, 2 * H, 2 * W), jnp.float32)   # NCHW

    fwd = jax.jit(re_up_forward)
    out = jax.block_until_ready(fwd(params, x1, x2))
    assert out.shape == (B, out_ch, 2 * H, 2 * W), out.shape
    assert out.dtype == jnp.float32

    # Tight check vs. an XLA reference with matched bf16-input numerics.
    ref_b = jax.block_until_ready(
        reference_forward(params, x1, x2, compute_dtype=jnp.bfloat16))
    err_b = float(jnp.max(jnp.abs(out - ref_b)))
    assert jnp.allclose(out, ref_b, atol=2e-2, rtol=2e-2), f"bf16-matched err {err_b}"

    # Sanity check vs. exact f32 math (bf16 MXU inputs => looser tolerance).
    ref_f = jax.block_until_ready(
        reference_forward(params, x1, x2, compute_dtype=jnp.float32))
    err_f = float(jnp.max(jnp.abs(out - ref_f)))
    assert jnp.allclose(out, ref_f, atol=2.5e-1, rtol=1e-1), f"f32 err {err_f}"

    print("KERNEL_OK")
</pallas_src>

<mosaic_0001>
module attributes {stable_mosaic.version = 11 : i64} {
  func.func @_matmul_bias_kernel(%arg0: i32, %arg1: memref<128x16xbf16, #tpu.memory_space<vmem>>, %arg2: memref<16x48xbf16, #tpu.memory_space<vmem>>, %arg3: memref<1x48xf32, #tpu.memory_space<vmem>>, %arg4: memref<128x48xbf16, #tpu.memory_space<vmem>>) attributes {dimension_semantics = [#tpu.dimension_semantics<parallel>], iteration_bounds = array<i64: 1>, scalar_prefetch = 0 : i64, scratch_operands = 0 : i64, tpu.core_type = #tpu.core_type<tc>, window_params = [{transform_indices = @transform_0, window_bounds = array<i64: 128, 16>}, {pipeline_mode = #tpu.pipeline_mode<synchronous>, transform_indices = @transform_1, window_bounds = array<i64: 16, 48>}, {pipeline_mode = #tpu.pipeline_mode<synchronous>, transform_indices = @transform_2, window_bounds = array<i64: 1, 48>}, {transform_indices = @transform_3, window_bounds = array<i64: 128, 48>}]} {
    %c0 = arith.constant 0 : index
    %c0_0 = arith.constant 0 : index
    %0 = vector.load %arg1[%c0, %c0_0] : memref<128x16xbf16, #tpu.memory_space<vmem>>, vector<128x16xbf16>
    %c0_1 = arith.constant 0 : index
    %c0_2 = arith.constant 0 : index
    %1 = vector.load %arg2[%c0_1, %c0_2] : memref<16x48xbf16, #tpu.memory_space<vmem>>, vector<16x48xbf16>
    %cst = arith.constant dense<0.000000e+00> : vector<128x48xf32>
    %2 = tpu.matmul %0, %1, %cst {dimension_numbers = #tpu.dot_dimension_numbers<[1], [0], [0], [1], [0, 0, 1, 1], [], []>} : vector<128x16xbf16>, vector<16x48xbf16>, vector<128x48xf32> -> vector<128x48xf32>
    %c0_3 = arith.constant 0 : index
    %c0_4 = arith.constant 0 : index
    %3 = vector.load %arg3[%c0_3, %c0_4] : memref<1x48xf32, #tpu.memory_space<vmem>>, vector<1x48xf32>
    %4 = vector.broadcast %3 : vector<1x48xf32> to vector<128x48xf32>
    %5 = arith.addf %2, %4 : vector<128x48xf32>
    %6 = arith.truncf %5 : vector<128x48xf32> to vector<128x48xbf16>
    %c0_5 = arith.constant 0 : index
    %c0_6 = arith.constant 0 : index
    %7 = vector.load %arg4[%c0_5, %c0_6] : memref<128x48xbf16, #tpu.memory_space<vmem>>, vector<128x48xbf16>
    tpu.vector_store %arg4[%c0_5, %c0_6], %6 {strides = array<i32>} : memref<128x48xbf16, #tpu.memory_space<vmem>>, vector<128x48xbf16>,
    return
  }
  func.func @transform_0(%arg0: i32) -> (i32, i32) {
    %c0_i32 = arith.constant 0 : i32
    %c0_i32_0 = arith.constant 0 : i32
    return %arg0, %c0_i32 : i32, i32
  }
  func.func @transform_1(%arg0: i32) -> (i32, i32) {
    %c0_i32 = arith.constant 0 : i32
    %c0_i32_0 = arith.constant 0 : i32
    %c0_i32_1 = arith.constant 0 : i32
    return %c0_i32, %c0_i32_0 : i32, i32
  }
  func.func @transform_2(%arg0: i32) -> (i32, i32) {
    %c0_i32 = arith.constant 0 : i32
    %c0_i32_0 = arith.constant 0 : i32
    %c0_i32_1 = arith.constant 0 : i32
    return %c0_i32, %c0_i32_0 : i32, i32
  }
  func.func @transform_3(%arg0: i32) -> (i32, i32) {
    %c0_i32 = arith.constant 0 : i32
    %c0_i32_0 = arith.constant 0 : i32
    return %arg0, %c0_i32 : i32, i32
  }
}

module attributes {stable_mosaic.version = 11 : i64} {
  func.func @_matmul_bias_kernel(%arg0: i32, %arg1: memref<256x8xbf16, #tpu.memory_space<vmem>>, %arg2: memref<8x4xbf16, #tpu.memory_space<vmem>>, %arg3: memref<1x4xf32, #tpu.memory_space<vmem>>, %arg4: memref<256x4xbf16, #tpu.memory_space<vmem>>) attributes {dimension_semantics = [#tpu.dimension_semantics<parallel>], iteration_bounds = array<i64: 2>, scalar_prefetch = 0 : i64, scratch_operands = 0 : i64, tpu.core_type = #tpu.core_type<tc>, window_params = [{transform_indices = @transform_0, window_bounds = array<i64: 256, 8>}, {pipeline_mode = #tpu.pipeline_mode<synchronous>, transform_indices = @transform_1, window_bounds = array<i64: 8, 4>}, {pipeline_mode = #tpu.pipeline_mode<synchronous>, transform_indices = @transform_2, window_bounds = array<i64: 1, 4>}, {transform_indices = @transform_3, window_bounds = array<i64: 256, 4>}]} {
    %c0 = arith.constant 0 : index
    %c0_0 = arith.constant 0 : index
    %0 = vector.load %arg1[%c0, %c0_0] : memref<256x8xbf16, #tpu.memory_space<vmem>>, vector<256x8xbf16>
    %c0_1 = arith.constant 0 : index
    %c0_2 = arith.constant 0 : index
    %1 = vector.load %arg2[%c0_1, %c0_2] : memref<8x4xbf16, #tpu.memory_space<vmem>>, vector<8x4xbf16>
    %cst = arith.constant dense<0.000000e+00> : vector<256x4xf32>
    %2 = tpu.matmul %0, %1, %cst {dimension_numbers = #tpu.dot_dimension_numbers<[1], [0], [0], [1], [0, 0, 1, 1], [], []>} : vector<256x8xbf16>, vector<8x4xbf16>, vector<256x4xf32> -> vector<256x4xf32>
    %c0_3 = arith.constant 0 : index
    %c0_4 = arith.constant 0 : index
    %3 = vector.load %arg3[%c0_3, %c0_4] : memref<1x4xf32, #tpu.memory_space<vmem>>, vector<1x4xf32>
    %4 = vector.broadcast %3 : vector<1x4xf32> to vector<256x4xf32>
    %5 = arith.addf %2, %4 : vector<256x4xf32>
    %6 = arith.truncf %5 : vector<256x4xf32> to vector<256x4xbf16>
    %c0_5 = arith.constant 0 : index
    %c0_6 = arith.constant 0 : index
    %7 = vector.load %arg4[%c0_5, %c0_6] : memref<256x4xbf16, #tpu.memory_space<vmem>>, vector<256x4xbf16>
    tpu.vector_store %arg4[%c0_5, %c0_6], %6 {strides = array<i32>} : memref<256x4xbf16, #tpu.memory_space<vmem>>, vector<256x4xbf16>,
    return
  }
  func.func @transform_0(%arg0: i32) -> (i32, i32) {
    %c0_i32 = arith.constant 0 : i32
    %c0_i32_0 = arith.constant 0 : i32
    return %arg0, %c0_i32 : i32, i32
  }
  func.func @transform_1(%arg0: i32) -> (i32, i32) {
    %c0_i32 = arith.constant 0 : i32
    %c0_i32_0 = arith.constant 0 : i32
    %c0_i32_1 = arith.constant 0 : i32
    return %c0_i32, %c0_i32_0 : i32, i32
  }
  func.func @transform_2(%arg0: i32) -> (i32, i32) {
    %c0_i32 = arith.constant 0 : i32
    %c0_i32_0 = arith.constant 0 : i32
    %c0_i32_1 = arith.constant 0 : i32
    return %c0_i32, %c0_i32_0 : i32, i32
  }
  func.func @transform_3(%arg0: i32) -> (i32, i32) {
    %c0_i32 = arith.constant 0 : i32
    %c0_i32_0 = arith.constant 0 : i32
    return %arg0, %c0_i32 : i32, i32
  }
}

module attributes {stable_mosaic.version = 11 : i64} {
  func.func @kernel(%arg0: i32, %arg1: i32, %arg2: memref<1x18x18x4xbf16, #tpu.memory_space<vmem>>, %arg3: memref<1x18x18x12xbf16, #tpu.memory_space<vmem>>, %arg4: memref<9x4x8xbf16, #tpu.memory_space<vmem>>, %arg5: memref<9x12x8xbf16, #tpu.memory_space<vmem>>, %arg6: memref<1x8xf32, #tpu.memory_space<vmem>>, %arg7: memref<1x8xf32, #tpu.memory_space<vmem>>, %arg8: memref<1x256x8xbf16, #tpu.memory_space<vmem>>) attributes {dimension_semantics = [#tpu.dimension_semantics<parallel>, #tpu.dimension_semantics<parallel>], iteration_bounds = array<i64: 2, 1>, scalar_prefetch = 0 : i64, scratch_operands = 0 : i64, tpu.core_type = #tpu.core_type<tc>, window_params = [{transform_indices = @transform_0, window_bounds = array<i64: 1, 18, 18, 4>}, {transform_indices = @transform_1, window_bounds = array<i64: 1, 18, 18, 12>}, {pipeline_mode = #tpu.pipeline_mode<synchronous>, transform_indices = @transform_2, window_bounds = array<i64: 9, 4, 8>}, {pipeline_mode = #tpu.pipeline_mode<synchronous>, transform_indices = @transform_3, window_bounds = array<i64: 9, 12, 8>}, {pipeline_mode = #tpu.pipeline_mode<synchronous>, transform_indices = @transform_4, window_bounds = array<i64: 1, 8>}, {pipeline_mode = #tpu.pipeline_mode<synchronous>, transform_indices = @transform_5, window_bounds = array<i64: 1, 8>}, {transform_indices = @transform_6, window_bounds = array<i64: 1, 256, 8>}]} {
    %c16_i32 = arith.constant 16 : i32
    %0 = arith.muli %arg1, %c16_i32 : i32
    %1 = tpu.assume_multiple %0, 16 : i32
    %cst = arith.constant 0.000000e+00 : f32
    %2 = vector.broadcast %cst : f32 to vector<256x8xf32>
    %c0_i32 = arith.constant 0 : i32
    %3 = arith.addi %1, %c0_i32 : i32
    %c0 = arith.constant 0 : index
    %4 = arith.index_cast %3 : i32 to index
    %c0_0 = arith.constant 0 : index
    %c0_1 = arith.constant 0 : index
    %5 = vector.load %arg2[%c0, %4, %c0_0, %c0_1] : memref<1x18x18x4xbf16, #tpu.memory_space<vmem>>, vector<1x16x16x4xbf16>
    %6 = vector.shape_cast %5 : vector<1x16x16x4xbf16> to vector<16x16x4xbf16>
    %7 = vector.shape_cast %6 : vector<16x16x4xbf16> to vector<256x4xbf16>
    %c0_2 = arith.constant 0 : index
    %c0_3 = arith.constant 0 : index
    %c0_4 = arith.constant 0 : index
    %8 = vector.load %arg4[%c0_2, %c0_3, %c0_4] : memref<9x4x8xbf16, #tpu.memory_space<vmem>>, vector<1x4x8xbf16>
    %9 = vector.shape_cast %8 : vector<1x4x8xbf16> to vector<4x8xbf16>
    %cst_5 = arith.constant dense<0.000000e+00> : vector<256x8xf32>
    %10 = tpu.matmul %7, %9, %cst_5 {dimension_numbers = #tpu.dot_dimension_numbers<[1], [0], [0], [1], [0, 0, 1, 1], [], []>} : vector<256x4xbf16>, vector<4x8xbf16>, vector<256x8xf32> -> vector<256x8xf32>
    %11 = arith.addf %2, %10 : vector<256x8xf32>
    %c0_i32_6 = arith.constant 0 : i32
    %12 = arith.addi %1, %c0_i32_6 : i32
    %c0_7 = arith.constant 0 : index
    %13 = arith.index_cast %12 : i32 to index
    %c0_8 = arith.constant 0 : index
    %c0_9 = arith.constant 0 : index
    %14 = vector.load %arg3[%c0_7, %13, %c0_8, %c0_9] : memref<1x18x18x12xbf16, #tpu.memory_space<vmem>>, vector<1x16x16x12xbf16>
    %15 = vector.shape_cast %14 : vector<1x16x16x12xbf16> to vector<16x16x12xbf16>
    %16 = vector.shape_cast %15 : vector<16x16x12xbf16> to vector<256x12xbf16>
    %c0_10 = arith.constant 0 : index
    %c0_11 = arith.constant 0 : index
    %c0_12 = arith.constant 0 : index
    %17 = vector.load %arg5[%c0_10, %c0_11, %c0_12] : memref<9x12x8xbf16, #tpu.memory_space<vmem>>, vector<1x12x8xbf16>
    %18 = vector.shape_cast %17 : vector<1x12x8xbf16> to vector<12x8xbf16>
    %cst_13 = arith.constant dense<0.000000e+00> : vector<256x8xf32>
    %19 = tpu.matmul %16, %18, %cst_13 {dimension_numbers = #tpu.dot_dimension_numbers<[1], [0], [0], [1], [0, 0, 1, 1], [], []>} : vector<256x12xbf16>, vector<12x8xbf16>, vector<256x8xf32> -> vector<256x8xf32>
    %20 = arith.addf %11, %19 : vector<256x8xf32>
    %c0_i32_14 = arith.constant 0 : i32
    %21 = arith.addi %1, %c0_i32_14 : i32
    %c0_15 = arith.constant 0 : index
    %22 = arith.index_cast %21 : i32 to index
    %c1 = arith.constant 1 : index
    %c0_16 = arith.constant 0 : index
    %23 = vector.load %arg2[%c0_15, %22, %c1, %c0_16] : memref<1x18x18x4xbf16, #tpu.memory_space<vmem>>, vector<1x16x16x4xbf16>
    %24 = vector.shape_cast %23 : vector<1x16x16x4xbf16> to vector<16x16x4xbf16>
    %25 = vector.shape_cast %24 : vector<16x16x4xbf16> to vector<256x4xbf16>
    %c1_17 = arith.constant 1 : index
    %c0_18 = arith.constant 0 : index
    %c0_19 = arith.constant 0 : index
    %26 = vector.load %arg4[%c1_17, %c0_18, %c0_19] : memref<9x4x8xbf16, #tpu.memory_space<vmem>>, vector<1x4x8xbf16>
    %27 = vector.shape_cast %26 : vector<1x4x8xbf16> to vector<4x8xbf16>
    %cst_20 = arith.constant dense<0.000000e+00> : vector<256x8xf32>
    %28 = tpu.matmul %25, %27, %cst_20 {dimension_numbers = #tpu.dot_dimension_numbers<[1], [0], [0], [1], [0, 0, 1, 1], [], []>} : vector<256x4xbf16>, vector<4x8xbf16>, vector<256x8xf32> -> vector<256x8xf32>
    %29 = arith.addf %20, %28 : vector<256x8xf32>
    %c0_i32_21 = arith.constant 0 : i32
    %30 = arith.addi %1, %c0_i32_21 : i32
    %c0_22 = arith.constant 0 : index
    %31 = arith.index_cast %30 : i32 to index
    %c1_23 = arith.constant 1 : index
    %c0_24 = arith.constant 0 : index
    %32 = vector.load %arg3[%c0_22, %31, %c1_23, %c0_24] : memref<1x18x18x12xbf16, #tpu.memory_space<vmem>>, vector<1x16x16x12xbf16>
    %33 = vector.shape_cast %32 : vector<1x16x16x12xbf16> to vector<16x16x12xbf16>
    %34 = vector.shape_cast %33 : vector<16x16x12xbf16> to vector<256x12xbf16>
    %c1_25 = arith.constant 1 : index
    %c0_26 = arith.constant 0 : index
    %c0_27 = arith.constant 0 : index
    %35 = vector.load %arg5[%c1_25, %c0_26, %c0_27] : memref<9x12x8xbf16, #tpu.memory_space<vmem>>, vector<1x12x8xbf16>
    %36 = vector.shape_cast %35 : vector<1x12x8xbf16> to vector<12x8xbf16>
    %cst_28 = arith.constant dense<0.000000e+00> : vector<256x8xf32>
    %37 = tpu.matmul %34, %36, %cst_28 {dimension_numbers = #tpu.dot_dimension_numbers<[1], [0], [0], [1], [0, 0, 1, 1], [], []>} : vector<256x12xbf16>, vector<12x8xbf16>, vector<256x8xf32> -> vector<256x8xf32>
    %38 = arith.addf %29, %37 : vector<256x8xf32>
    %c0_i32_29 = arith.constant 0 : i32
    %39 = arith.addi %1, %c0_i32_29 : i32
    %c0_30 = arith.constant 0 : index
    %40 = arith.index_cast %39 : i32 to index
    %c2 = arith.constant 2 : index
    %c0_31 = arith.constant 0 : index
    %41 = vector.load %arg2[%c0_30, %40, %c2, %c0_31] : memref<1x18x18x4xbf16, #tpu.memory_space<vmem>>, vector<1x16x16x4xbf16>
    %42 = vector.shape_cast %41 : vector<1x16x16x4xbf16> to vector<16x16x4xbf16>
    %43 = vector.shape_cast %42 : vector<16x16x4xbf16> to vector<256x4xbf16>
    %c2_32 = arith.constant 2 : index
    %c0_33 = arith.constant 0 : index
    %c0_34 = arith.constant 0 : index
    %44 = vector.load %arg4[%c2_32, %c0_33, %c0_34] : memref<9x4x8xbf16, #tpu.memory_space<vmem>>, vector<1x4x8xbf16>
    %45 = vector.shape_cast %44 : vector<1x4x8xbf16> to vector<4x8xbf16>
    %cst_35 = arith.constant dense<0.000000e+00> : vector<256x8xf32>
    %46 = tpu.matmul %43, %45, %cst_35 {dimension_numbers = #tpu.dot_dimension_numbers<[1], [0], [0], [1], [0, 0, 1, 1], [], []>} : vector<256x4xbf16>, vector<4x8xbf16>, vector<256x8xf32> -> vector<256x8xf32>
    %47 = arith.addf %38, %46 : vector<256x8xf32>
    %c0_i32_36 = arith.constant 0 : i32
    %48 = arith.addi %1, %c0_i32_36 : i32
    %c0_37 = arith.constant 0 : index
    %49 = arith.index_cast %48 : i32 to index
    %c2_38 = arith.constant 2 : index
    %c0_39 = arith.constant 0 : index
    %50 = vector.load %arg3[%c0_37, %49, %c2_38, %c0_39] : memref<1x18x18x12xbf16, #tpu.memory_space<vmem>>, vector<1x16x16x12xbf16>
    %51 = vector.shape_cast %50 : vector<1x16x16x12xbf16> to vector<16x16x12xbf16>
    %52 = vector.shape_cast %51 : vector<16x16x12xbf16> to vector<256x12xbf16>
    %c2_40 = arith.constant 2 : index
    %c0_41 = arith.constant 0 : index
    %c0_42 = arith.constant 0 : index
    %53 = vector.load %arg5[%c2_40, %c0_41, %c0_42] : memref<9x12x8xbf16, #tpu.memory_space<vmem>>, vector<1x12x8xbf16>
    %54 = vector.shape_cast %53 : vector<1x12x8xbf16> to vector<12x8xbf16>
    %cst_43 = arith.constant dense<0.000000e+00> : vector<256x8xf32>
    %55 = tpu.matmul %52, %54, %cst_43 {dimension_numbers = #tpu.dot_dimension_numbers<[1], [0], [0], [1], [0, 0, 1, 1], [], []>} : vector<256x12xbf16>, vector<12x8xbf16>, vector<256x8xf32> -> vector<256x8xf32>
    %56 = arith.addf %47, %55 : vector<256x8xf32>
    %c1_i32 = arith.constant 1 : i32
    %57 = arith.addi %1, %c1_i32 : i32
    %c0_44 = arith.constant 0 : index
    %58 = arith.index_cast %57 : i32 to index
    %c0_45 = arith.constant 0 : index
    %c0_46 = arith.constant 0 : index
    %59 = vector.load %arg2[%c0_44, %58, %c0_45, %c0_46] : memref<1x18x18x4xbf16, #tpu.memory_space<vmem>>, vector<1x16x16x4xbf16>
    %60 = vector.shape_cast %59 : vector<1x16x16x4xbf16> to vector<16x16x4xbf16>
    %61 = vector.shape_cast %60 : vector<16x16x4xbf16> to vector<256x4xbf16>
    %c3 = arith.constant 3 : index
    %c0_47 = arith.constant 0 : index
    %c0_48 = arith.constant 0 : index
    %62 = vector.load %arg4[%c3, %c0_47, %c0_48] : memref<9x4x8xbf16, #tpu.memory_space<vmem>>, vector<1x4x8xbf16>
    %63 = vector.shape_cast %62 : vector<1x4x8xbf16> to vector<4x8xbf16>
    %cst_49 = arith.constant dense<0.000000e+00> : vector<256x8xf32>
    %64 = tpu.matmul %61, %63, %cst_49 {dimension_numbers = #tpu.dot_dimension_numbers<[1], [0], [0], [1], [0, 0, 1, 1], [], []>} : vector<256x4xbf16>, vector<4x8xbf16>, vector<256x8xf32> -> vector<256x8xf32>
    %65 = arith.addf %56, %64 : vector<256x8xf32>
    %c1_i32_50 = arith.constant 1 : i32
    %66 = arith.addi %1, %c1_i32_50 : i32
    %c0_51 = arith.constant 0 : index
    %67 = arith.index_cast %66 : i32 to index
    %c0_52 = arith.constant 0 : index
    %c0_53 = arith.constant 0 : index
    %68 = vector.load %arg3[%c0_51, %67, %c0_52, %c0_53] : memref<1x18x18x12xbf16, #tpu.memory_space<vmem>>, vector<1x16x16x12xbf16>
    %69 = vector.shape_cast %68 : vector<1x16x16x12xbf16> to vector<16x16x12xbf16>
    %70 = vector.shape_cast %69 : vector<16x16x12xbf16> to vector<256x12xbf16>
    %c3_54 = arith.constant 3 : index
    %c0_55 = arith.constant 0 : index
    %c0_56 = arith.constant 0 : index
    %71 = vector.load %arg5[%c3_54, %c0_55, %c0_56] : memref<9x12x8xbf16, #tpu.memory_space<vmem>>, vector<1x12x8xbf16>
    %72 = vector.shape_cast %71 : vector<1x12x8xbf16> to vector<12x8xbf16>
    %cst_57 = arith.constant dense<0.000000e+00> : vector<256x8xf32>
    %73 = tpu.matmul %70, %72, %cst_57 {dimension_numbers = #tpu.dot_dimension_numbers<[1], [0], [0], [1], [0, 0, 1, 1], [], []>} : vector<256x12xbf16>, vector<12x8xbf16>, vector<256x8xf32> -> vector<256x8xf32>
    %74 = arith.addf %65, %73 : vector<256x8xf32>
    %c1_i32_58 = arith.constant 1 : i32
    %75 = arith.addi %1, %c1_i32_58 : i32
    %c0_59 = arith.constant 0 : index
    %76 = arith.index_cast %75 : i32 to index
    %c1_60 = arith.constant 1 : index
    %c0_61 = arith.constant 0 : index
    %77 = vector.load %arg2[%c0_59, %76, %c1_60, %c0_61] : memref<1x18x18x4xbf16, #tpu.memory_space<vmem>>, vector<1x16x16x4xbf16>
    %78 = vector.shape_cast %77 : vector<1x16x16x4xbf16> to vector<16x16x4xbf16>
    %79 = vector.shape_cast %78 : vector<16x16x4xbf16> to vector<256x4xbf16>
    %c4 = arith.constant 4 : index
    %c0_62 = arith.constant 0 : index
    %c0_63 = arith.constant 0 : index
    %80 = vector.load %arg4[%c4, %c0_62, %c0_63] : memref<9x4x8xbf16, #tpu.memory_space<vmem>>, vector<1x4x8xbf16>
    %81 = vector.shape_cast %80 : vector<1x4x8xbf16> to vector<4x8xbf16>
    %cst_64 = arith.constant dense<0.000000e+00> : vector<256x8xf32>
    %82 = tpu.matmul %79, %81, %cst_64 {dimension_numbers = #tpu.dot_dimension_numbers<[1], [0], [0], [1], [0, 0, 1, 1], [], []>} : vector<256x4xbf16>, vector<4x8xbf16>, vector<256x8xf32> -> vector<256x8xf32>
    %83 = arith.addf %74, %82 : vector<256x8xf32>
    %c1_i32_65 = arith.constant 1 : i32
    %84 = arith.addi %1, %c1_i32_65 : i32
    %c0_66 = arith.constant 0 : index
    %85 = arith.index_cast %84 : i32 to index
    %c1_67 = arith.constant 1 : index
    %c0_68 = arith.constant 0 : index
    %86 = vector.load %arg3[%c0_66, %85, %c1_67, %c0_68] : memref<1x18x18x12xbf16, #tpu.memory_space<vmem>>, vector<1x16x16x12xbf16>
    %87 = vector.shape_cast %86 : vector<1x16x16x12xbf16> to vector<16x16x12xbf16>
    %88 = vector.shape_cast %87 : vector<16x16x12xbf16> to vector<256x12xbf16>
    %c4_69 = arith.constant 4 : index
    %c0_70 = arith.constant 0 : index
    %c0_71 = arith.constant 0 : index
    %89 = vector.load %arg5[%c4_69, %c0_70, %c0_71] : memref<9x12x8xbf16, #tpu.memory_space<vmem>>, vector<1x12x8xbf16>
    %90 = vector.shape_cast %89 : vector<1x12x8xbf16> to vector<12x8xbf16>
    %cst_72 = arith.constant dense<0.000000e+00> : vector<256x8xf32>
    %91 = tpu.matmul %88, %90, %cst_72 {dimension_numbers = #tpu.dot_dimension_numbers<[1], [0], [0], [1], [0, 0, 1, 1], [], []>} : vector<256x12xbf16>, vector<12x8xbf16>, vector<256x8xf32> -> vector<256x8xf32>
    %92 = arith.addf %83, %91 : vector<256x8xf32>
    %c1_i32_73 = arith.constant 1 : i32
    %93 = arith.addi %1, %c1_i32_73 : i32
    %c0_74 = arith.constant 0 : index
    %94 = arith.index_cast %93 : i32 to index
    %c2_75 = arith.constant 2 : index
    %c0_76 = arith.constant 0 : index
    %95 = vector.load %arg2[%c0_74, %94, %c2_75, %c0_76] : memref<1x18x18x4xbf16, #tpu.memory_space<vmem>>, vector<1x16x16x4xbf16>
    %96 = vector.shape_cast %95 : vector<1x16x16x4xbf16> to vector<16x16x4xbf16>
    %97 = vector.shape_cast %96 : vector<16x16x4xbf16> to vector<256x4xbf16>
    %c5 = arith.constant 5 : index
    %c0_77 = arith.constant 0 : index
    %c0_78 = arith.constant 0 : index
    %98 = vector.load %arg4[%c5, %c0_77, %c0_78] : memref<9x4x8xbf16, #tpu.memory_space<vmem>>, vector<1x4x8xbf16>
    %99 = vector.shape_cast %98 : vector<1x4x8xbf16> to vector<4x8xbf16>
    %cst_79 = arith.constant dense<0.000000e+00> : vector<256x8xf32>
    %100 = tpu.matmul %97, %99, %cst_79 {dimension_numbers = #tpu.dot_dimension_numbers<[1], [0], [0], [1], [0, 0, 1, 1], [], []>} : vector<256x4xbf16>, vector<4x8xbf16>, vector<256x8xf32> -> vector<256x8xf32>
    %101 = arith.addf %92, %100 : vector<256x8xf32>
    %c1_i32_80 = arith.constant 1 : i32
    %102 = arith.addi %1, %c1_i32_80 : i32
    %c0_81 = arith.constant 0 : index
    %103 = arith.index_cast %102 : i32 to index
    %c2_82 = arith.constant 2 : index
    %c0_83 = arith.constant 0 : index
    %104 = vector.load %arg3[%c0_81, %103, %c2_82, %c0_83] : memref<1x18x18x12xbf16, #tpu.memory_space<vmem>>, vector<1x16x16x12xbf16>
    %105 = vector.shape_cast %104 : vector<1x16x16x12xbf16> to vector<16x16x12xbf16>
    %106 = vector.shape_cast %105 : vector<16x16x12xbf16> to vector<256x12xbf16>
    %c5_84 = arith.constant 5 : index
    %c0_85 = arith.constant 0 : index
    %c0_86 = arith.constant 0 : index
    %107 = vector.load %arg5[%c5_84, %c0_85, %c0_86] : memref<9x12x8xbf16, #tpu.memory_space<vmem>>, vector<1x12x8xbf16>
    %108 = vector.shape_cast %107 : vector<1x12x8xbf16> to vector<12x8xbf16>
    %cst_87 = arith.constant dense<0.000000e+00> : vector<256x8xf32>
    %109 = tpu.matmul %106, %108, %cst_87 {dimension_numbers = #tpu.dot_dimension_numbers<[1], [0], [0], [1], [0, 0, 1, 1], [], []>} : vector<256x12xbf16>, vector<12x8xbf16>, vector<256x8xf32> -> vector<256x8xf32>
    %110 = arith.addf %101, %109 : vector<256x8xf32>
    %c2_i32 = arith.constant 2 : i32
    %111 = arith.addi %1, %c2_i32 : i32
    %c0_88 = arith.constant 0 : index
    %112 = arith.index_cast %111 : i32 to index
    %c0_89 = arith.constant 0 : index
    %c0_90 = arith.constant 0 : index
    %113 = vector.load %arg2[%c0_88, %112, %c0_89, %c0_90] : memref<1x18x18x4xbf16, #tpu.memory_space<vmem>>, vector<1x16x16x4xbf16>
    %114 = vector.shape_cast %113 : vector<1x16x16x4xbf16> to vector<16x16x4xbf16>
    %115 = vector.shape_cast %114 : vector<16x16x4xbf16> to vector<256x4xbf16>
    %c6 = arith.constant 6 : index
    %c0_91 = arith.constant 0 : index
    %c0_92 = arith.constant 0 : index
    %116 = vector.load %arg4[%c6, %c0_91, %c0_92] : memref<9x4x8xbf16, #tpu.memory_space<vmem>>, vector<1x4x8xbf16>
    %117 = vector.shape_cast %116 : vector<1x4x8xbf16> to vector<4x8xbf16>
    %cst_93 = arith.constant dense<0.000000e+00> : vector<256x8xf32>
    %118 = tpu.matmul %115, %117, %cst_93 {dimension_numbers = #tpu.dot_dimension_numbers<[1], [0], [0], [1], [0, 0, 1, 1], [], []>} : vector<256x4xbf16>, vector<4x8xbf16>, vector<256x8xf32> -> vector<256x8xf32>
    %119 = arith.addf %110, %118 : vector<256x8xf32>
    %c2_i32_94 = arith.constant 2 : i32
    %120 = arith.addi %1, %c2_i32_94 : i32
    %c0_95 = arith.constant 0 : index
    %121 = arith.index_cast %120 : i32 to index
    %c0_96 = arith.constant 0 : index
    %c0_97 = arith.constant 0 : index
    %122 = vector.load %arg3[%c0_95, %121, %c0_96, %c0_97] : memref<1x18x18x12xbf16, #tpu.memory_space<vmem>>, vector<1x16x16x12xbf16>
    %123 = vector.shape_cast %122 : vector<1x16x16x12xbf16> to vector<16x16x12xbf16>
    %124 = vector.shape_cast %123 : vector<16x16x12xbf16> to vector<256x12xbf16>
    %c6_98 = arith.constant 6 : index
    %c0_99 = arith.constant 0 : index
    %c0_100 = arith.constant 0 : index
    %125 = vector.load %arg5[%c6_98, %c0_99, %c0_100] : memref<9x12x8xbf16, #tpu.memory_space<vmem>>, vector<1x12x8xbf16>
    %126 = vector.shape_cast %125 : vector<1x12x8xbf16> to vector<12x8xbf16>
    %cst_101 = arith.constant dense<0.000000e+00> : vector<256x8xf32>
    %127 = tpu.matmul %124, %126, %cst_101 {dimension_numbers = #tpu.dot_dimension_numbers<[1], [0], [0], [1], [0, 0, 1, 1], [], []>} : vector<256x12xbf16>, vector<12x8xbf16>, vector<256x8xf32> -> vector<256x8xf32>
    %128 = arith.addf %119, %127 : vector<256x8xf32>
    %c2_i32_102 = arith.constant 2 : i32
    %129 = arith.addi %1, %c2_i32_102 : i32
    %c0_103 = arith.constant 0 : index
    %130 = arith.index_cast %129 : i32 to index
    %c1_104 = arith.constant 1 : index
    %c0_105 = arith.constant 0 : index
    %131 = vector.load %arg2[%c0_103, %130, %c1_104, %c0_105] : memref<1x18x18x4xbf16, #tpu.memory_space<vmem>>, vector<1x16x16x4xbf16>
    %132 = vector.shape_cast %131 : vector<1x16x16x4xbf16> to vector<16x16x4xbf16>
    %133 = vector.shape_cast %132 : vector<16x16x4xbf16> to vector<256x4xbf16>
    %c7 = arith.constant 7 : index
    %c0_106 = arith.constant 0 : index
    %c0_107 = arith.constant 0 : index
    %134 = vector.load %arg4[%c7, %c0_106, %c0_107] : memref<9x4x8xbf16, #tpu.memory_space<vmem>>, vector<1x4x8xbf16>
    %135 = vector.shape_cast %134 : vector<1x4x8xbf16> to vector<4x8xbf16>
    %cst_108 = arith.constant dense<0.000000e+00> : vector<256x8xf32>
    %136 = tpu.matmul %133, %135, %cst_108 {dimension_numbers = #tpu.dot_dimension_numbers<[1], [0], [0], [1], [0, 0, 1, 1], [], []>} : vector<256x4xbf16>, vector<4x8xbf16>, vector<256x8xf32> -> vector<256x8xf32>
    %137 = arith.addf %128, %136 : vector<256x8xf32>
    %c2_i32_109 = arith.constant 2 : i32
    %138 = arith.addi %1, %c2_i32_109 : i32
    %c0_110 = arith.constant 0 : index
    %139 = arith.index_cast %138 : i32 to index
    %c1_111 = arith.constant 1 : index
    %c0_112 = arith.constant 0 : index
    %140 = vector.load %arg3[%c0_110, %139, %c1_111, %c0_112] : memref<1x18x18x12xbf16, #tpu.memory_space<vmem>>, vector<1x16x16x12xbf16>
    %141 = vector.shape_cast %140 : vector<1x16x16x12xbf16> to vector<16x16x12xbf16>
    %142 = vector.shape_cast %141 : vector<16x16x12xbf16> to vector<256x12xbf16>
    %c7_113 = arith.constant 7 : index
    %c0_114 = arith.constant 0 : index
    %c0_115 = arith.constant 0 : index
    %143 = vector.load %arg5[%c7_113, %c0_114, %c0_115] : memref<9x12x8xbf16, #tpu.memory_space<vmem>>, vector<1x12x8xbf16>
    %144 = vector.shape_cast %143 : vector<1x12x8xbf16> to vector<12x8xbf16>
    %cst_116 = arith.constant dense<0.000000e+00> : vector<256x8xf32>
    %145 = tpu.matmul %142, %144, %cst_116 {dimension_numbers = #tpu.dot_dimension_numbers<[1], [0], [0], [1], [0, 0, 1, 1], [], []>} : vector<256x12xbf16>, vector<12x8xbf16>, vector<256x8xf32> -> vector<256x8xf32>
    %146 = arith.addf %137, %145 : vector<256x8xf32>
    %c2_i32_117 = arith.constant 2 : i32
    %147 = arith.addi %1, %c2_i32_117 : i32
    %c0_118 = arith.constant 0 : index
    %148 = arith.index_cast %147 : i32 to index
    %c2_119 = arith.constant 2 : index
    %c0_120 = arith.constant 0 : index
    %149 = vector.load %arg2[%c0_118, %148, %c2_119, %c0_120] : memref<1x18x18x4xbf16, #tpu.memory_space<vmem>>, vector<1x16x16x4xbf16>
    %150 = vector.shape_cast %149 : vector<1x16x16x4xbf16> to vector<16x16x4xbf16>
    %151 = vector.shape_cast %150 : vector<16x16x4xbf16> to vector<256x4xbf16>
    %c8 = arith.constant 8 : index
    %c0_121 = arith.constant 0 : index
    %c0_122 = arith.constant 0 : index
    %152 = vector.load %arg4[%c8, %c0_121, %c0_122] : memref<9x4x8xbf16, #tpu.memory_space<vmem>>, vector<1x4x8xbf16>
    %153 = vector.shape_cast %152 : vector<1x4x8xbf16> to vector<4x8xbf16>
    %cst_123 = arith.constant dense<0.000000e+00> : vector<256x8xf32>
    %154 = tpu.matmul %151, %153, %cst_123 {dimension_numbers = #tpu.dot_dimension_numbers<[1], [0], [0], [1], [0, 0, 1, 1], [], []>} : vector<256x4xbf16>, vector<4x8xbf16>, vector<256x8xf32> -> vector<256x8xf32>
    %155 = arith.addf %146, %154 : vector<256x8xf32>
    %c2_i32_124 = arith.constant 2 : i32
    %156 = arith.addi %1, %c2_i32_124 : i32
    %c0_125 = arith.constant 0 : index
    %157 = arith.index_cast %156 : i32 to index
    %c2_126 = arith.constant 2 : index
    %c0_127 = arith.constant 0 : index
    %158 = vector.load %arg3[%c0_125, %157, %c2_126, %c0_127] : memref<1x18x18x12xbf16, #tpu.memory_space<vmem>>, vector<1x16x16x12xbf16>
    %159 = vector.shape_cast %158 : vector<1x16x16x12xbf16> to vector<16x16x12xbf16>
    %160 = vector.shape_cast %159 : vector<16x16x12xbf16> to vector<256x12xbf16>
    %c8_128 = arith.constant 8 : index
    %c0_129 = arith.constant 0 : index
    %c0_130 = arith.constant 0 : index
    %161 = vector.load %arg5[%c8_128, %c0_129, %c0_130] : memref<9x12x8xbf16, #tpu.memory_space<vmem>>, vector<1x12x8xbf16>
    %162 = vector.shape_cast %161 : vector<1x12x8xbf16> to vector<12x8xbf16>
    %cst_131 = arith.constant dense<0.000000e+00> : vector<256x8xf32>
    %163 = tpu.matmul %160, %162, %cst_131 {dimension_numbers = #tpu.dot_dimension_numbers<[1], [0], [0], [1], [0, 0, 1, 1], [], []>} : vector<256x12xbf16>, vector<12x8xbf16>, vector<256x8xf32> -> vector<256x8xf32>
    %164 = arith.addf %155, %163 : vector<256x8xf32>
    %c0_132 = arith.constant 0 : index
    %c0_133 = arith.constant 0 : index
    %165 = vector.load %arg6[%c0_132, %c0_133] : memref<1x8xf32, #tpu.memory_space<vmem>>, vector<1x8xf32>
    %166 = vector.broadcast %165 : vector<1x8xf32> to vector<256x8xf32>
    %167 = arith.mulf %164, %166 : vector<256x8xf32>
    %c0_134 = arith.constant 0 : index
    %c0_135 = arith.constant 0 : index
    %168 = vector.load %arg7[%c0_134, %c0_135] : memref<1x8xf32, #tpu.memory_space<vmem>>, vector<1x8xf32>
    %169 = vector.broadcast %168 : vector<1x8xf32> to vector<256x8xf32>
    %170 = arith.addf %167, %169 : vector<256x8xf32>
    %cst_136 = arith.constant 0.000000e+00 : f32
    %171 = vector.broadcast %cst_136 : f32 to vector<256x8xf32>
    %172 = arith.maximumf %170, %171 : vector<256x8xf32>
    %173 = arith.truncf %172 : vector<256x8xf32> to vector<256x8xbf16>
    %c0_137 = arith.constant 0 : index
    %c0_138 = arith.constant 0 : index
    %c0_139 = arith.constant 0 : index
    %174 = vector.load %arg8[%c0_137, %c0_138, %c0_139] : memref<1x256x8xbf16, #tpu.memory_space<vmem>>, vector<1x256x8xbf16>
    %175 = vector.shape_cast %174 : vector<1x256x8xbf16> to vector<256x8xbf16>
    %176 = vector.shape_cast %173 : vector<256x8xbf16> to vector<1x256x8xbf16>
    tpu.vector_store %arg8[%c0_137, %c0_138, %c0_139], %176 {strides = array<i32>} : memref<1x256x8xbf16, #tpu.memory_space<vmem>>, vector<1x256x8xbf16>,
    return
  }
  func.func @transform_0(%arg0: i32, %arg1: i32) -> (i32, i32, i32, i32) {
    %c0_i32 = arith.constant 0 : i32
    %c0_i32_0 = arith.constant 0 : i32
    %c0_i32_1 = arith.constant 0 : i32
    %c0_i32_2 = arith.constant 0 : i32
    return %arg0, %c0_i32, %c0_i32_0, %c0_i32_1 : i32, i32, i32, i32
  }
  func.func @transform_1(%arg0: i32, %arg1: i32) -> (i32, i32, i32, i32) {
    %c0_i32 = arith.constant 0 : i32
    %c0_i32_0 = arith.constant 0 : i32
    %c0_i32_1 = arith.constant 0 : i32
    %c0_i32_2 = arith.constant 0 : i32
    return %arg0, %c0_i32, %c0_i32_0, %c0_i32_1 : i32, i32, i32, i32
  }
  func.func @transform_2(%arg0: i32, %arg1: i32) -> (i32, i32, i32) {
    %c0_i32 = arith.constant 0 : i32
    %c0_i32_0 = arith.constant 0 : i32
    %c0_i32_1 = arith.constant 0 : i32
    %c0_i32_2 = arith.constant 0 : i32
    return %c0_i32, %c0_i32_0, %c0_i32_1 : i32, i32, i32
  }
  func.func @transform_3(%arg0: i32, %arg1: i32) -> (i32, i32, i32) {
    %c0_i32 = arith.constant 0 : i32
    %c0_i32_0 = arith.constant 0 : i32
    %c0_i32_1 = arith.constant 0 : i32
    %c0_i32_2 = arith.constant 0 : i32
    return %c0_i32, %c0_i32_0, %c0_i32_1 : i32, i32, i32
  }
  func.func @transform_4(%arg0: i32, %arg1: i32) -> (i32, i32) {
    %c0_i32 = arith.constant 0 : i32
    %c0_i32_0 = arith.constant 0 : i32
    %c0_i32_1 = arith.constant 0 : i32
    return %c0_i32, %c0_i32_0 : i32, i32
  }
  func.func @transform_5(%arg0: i32, %arg1: i32) -> (i32, i32) {
    %c0_i32 = arith.constant 0 : i32
    %c0_i32_0 = arith.constant 0 : i32
    %c0_i32_1 = arith.constant 0 : i32
    return %c0_i32, %c0_i32_0 : i32, i32
  }
  func.func @transform_6(%arg0: i32, %arg1: i32) -> (i32, i32, i32) {
    %c0_i32 = arith.constant 0 : i32
    %c0_i32_0 = arith.constant 0 : i32
    return %arg0, %arg1, %c0_i32 : i32, i32, i32
  }
}

module attributes {stable_mosaic.version = 11 : i64} {
  func.func @kernel(%arg0: i32, %arg1: i32, %arg2: memref<1x18x18x8xbf16, #tpu.memory_space<vmem>>, %arg3: memref<9x8x8xbf16, #tpu.memory_space<vmem>>, %arg4: memref<1x8xf32, #tpu.memory_space<vmem>>, %arg5: memref<1x8xf32, #tpu.memory_space<vmem>>, %arg6: memref<1x256x8xf32, #tpu.memory_space<vmem>>) attributes {dimension_semantics = [#tpu.dimension_semantics<parallel>, #tpu.dimension_semantics<parallel>], iteration_bounds = array<i64: 2, 1>, scalar_prefetch = 0 : i64, scratch_operands = 0 : i64, tpu.core_type = #tpu.core_type<tc>, window_params = [{transform_indices = @transform_0, window_bounds = array<i64: 1, 18, 18, 8>}, {pipeline_mode = #tpu.pipeline_mode<synchronous>, transform_indices = @transform_1, window_bounds = array<i64: 9, 8, 8>}, {pipeline_mode = #tpu.pipeline_mode<synchronous>, transform_indices = @transform_2, window_bounds = array<i64: 1, 8>}, {pipeline_mode = #tpu.pipeline_mode<synchronous>, transform_indices = @transform_3, window_bounds = array<i64: 1, 8>}, {transform_indices = @transform_4, window_bounds = array<i64: 1, 256, 8>}]} {
    %c16_i32 = arith.constant 16 : i32
    %0 = arith.muli %arg1, %c16_i32 : i32
    %1 = tpu.assume_multiple %0, 16 : i32
    %cst = arith.constant 0.000000e+00 : f32
    %2 = vector.broadcast %cst : f32 to vector<256x8xf32>
    %c0_i32 = arith.constant 0 : i32
    %3 = arith.addi %1, %c0_i32 : i32
    %c0 = arith.constant 0 : index
    %4 = arith.index_cast %3 : i32 to index
    %c0_0 = arith.constant 0 : index
    %c0_1 = arith.constant 0 : index
    %5 = vector.load %arg2[%c0, %4, %c0_0, %c0_1] : memref<1x18x18x8xbf16, #tpu.memory_space<vmem>>, vector<1x16x16x8xbf16>
    %6 = vector.shape_cast %5 : vector<1x16x16x8xbf16> to vector<16x16x8xbf16>
    %7 = vector.shape_cast %6 : vector<16x16x8xbf16> to vector<256x8xbf16>
    %c0_2 = arith.constant 0 : index
    %c0_3 = arith.constant 0 : index
    %c0_4 = arith.constant 0 : index
    %8 = vector.load %arg3[%c0_2, %c0_3, %c0_4] : memref<9x8x8xbf16, #tpu.memory_space<vmem>>, vector<1x8x8xbf16>
    %9 = vector.shape_cast %8 : vector<1x8x8xbf16> to vector<8x8xbf16>
    %cst_5 = arith.constant dense<0.000000e+00> : vector<256x8xf32>
    %10 = tpu.matmul %7, %9, %cst_5 {dimension_numbers = #tpu.dot_dimension_numbers<[1], [0], [0], [1], [0, 0, 1, 1], [], []>} : vector<256x8xbf16>, vector<8x8xbf16>, vector<256x8xf32> -> vector<256x8xf32>
    %11 = arith.addf %2, %10 : vector<256x8xf32>
    %c0_i32_6 = arith.constant 0 : i32
    %12 = arith.addi %1, %c0_i32_6 : i32
    %c0_7 = arith.constant 0 : index
    %13 = arith.index_cast %12 : i32 to index
    %c1 = arith.constant 1 : index
    %c0_8 = arith.constant 0 : index
    %14 = vector.load %arg2[%c0_7, %13, %c1, %c0_8] : memref<1x18x18x8xbf16, #tpu.memory_space<vmem>>, vector<1x16x16x8xbf16>
    %15 = vector.shape_cast %14 : vector<1x16x16x8xbf16> to vector<16x16x8xbf16>
    %16 = vector.shape_cast %15 : vector<16x16x8xbf16> to vector<256x8xbf16>
    %c1_9 = arith.constant 1 : index
    %c0_10 = arith.constant 0 : index
    %c0_11 = arith.constant 0 : index
    %17 = vector.load %arg3[%c1_9, %c0_10, %c0_11] : memref<9x8x8xbf16, #tpu.memory_space<vmem>>, vector<1x8x8xbf16>
    %18 = vector.shape_cast %17 : vector<1x8x8xbf16> to vector<8x8xbf16>
    %cst_12 = arith.constant dense<0.000000e+00> : vector<256x8xf32>
    %19 = tpu.matmul %16, %18, %cst_12 {dimension_numbers = #tpu.dot_dimension_numbers<[1], [0], [0], [1], [0, 0, 1, 1], [], []>} : vector<256x8xbf16>, vector<8x8xbf16>, vector<256x8xf32> -> vector<256x8xf32>
    %20 = arith.addf %11, %19 : vector<256x8xf32>
    %c0_i32_13 = arith.constant 0 : i32
    %21 = arith.addi %1, %c0_i32_13 : i32
    %c0_14 = arith.constant 0 : index
    %22 = arith.index_cast %21 : i32 to index
    %c2 = arith.constant 2 : index
    %c0_15 = arith.constant 0 : index
    %23 = vector.load %arg2[%c0_14, %22, %c2, %c0_15] : memref<1x18x18x8xbf16, #tpu.memory_space<vmem>>, vector<1x16x16x8xbf16>
    %24 = vector.shape_cast %23 : vector<1x16x16x8xbf16> to vector<16x16x8xbf16>
    %25 = vector.shape_cast %24 : vector<16x16x8xbf16> to vector<256x8xbf16>
    %c2_16 = arith.constant 2 : index
    %c0_17 = arith.constant 0 : index
    %c0_18 = arith.constant 0 : index
    %26 = vector.load %arg3[%c2_16, %c0_17, %c0_18] : memref<9x8x8xbf16, #tpu.memory_space<vmem>>, vector<1x8x8xbf16>
    %27 = vector.shape_cast %26 : vector<1x8x8xbf16> to vector<8x8xbf16>
    %cst_19 = arith.constant dense<0.000000e+00> : vector<256x8xf32>
    %28 = tpu.matmul %25, %27, %cst_19 {dimension_numbers = #tpu.dot_dimension_numbers<[1], [0], [0], [1], [0, 0, 1, 1], [], []>} : vector<256x8xbf16>, vector<8x8xbf16>, vector<256x8xf32> -> vector<256x8xf32>
    %29 = arith.addf %20, %28 : vector<256x8xf32>
    %c1_i32 = arith.constant 1 : i32
    %30 = arith.addi %1, %c1_i32 : i32
    %c0_20 = arith.constant 0 : index
    %31 = arith.index_cast %30 : i32 to index
    %c0_21 = arith.constant 0 : index
    %c0_22 = arith.constant 0 : index
    %32 = vector.load %arg2[%c0_20, %31, %c0_21, %c0_22] : memref<1x18x18x8xbf16, #tpu.memory_space<vmem>>, vector<1x16x16x8xbf16>
    %33 = vector.shape_cast %32 : vector<1x16x16x8xbf16> to vector<16x16x8xbf16>
    %34 = vector.shape_cast %33 : vector<16x16x8xbf16> to vector<256x8xbf16>
    %c3 = arith.constant 3 : index
    %c0_23 = arith.constant 0 : index
    %c0_24 = arith.constant 0 : index
    %35 = vector.load %arg3[%c3, %c0_23, %c0_24] : memref<9x8x8xbf16, #tpu.memory_space<vmem>>, vector<1x8x8xbf16>
    %36 = vector.shape_cast %35 : vector<1x8x8xbf16> to vector<8x8xbf16>
    %cst_25 = arith.constant dense<0.000000e+00> : vector<256x8xf32>
    %37 = tpu.matmul %34, %36, %cst_25 {dimension_numbers = #tpu.dot_dimension_numbers<[1], [0], [0], [1], [0, 0, 1, 1], [], []>} : vector<256x8xbf16>, vector<8x8xbf16>, vector<256x8xf32> -> vector<256x8xf32>
    %38 = arith.addf %29, %37 : vector<256x8xf32>
    %c1_i32_26 = arith.constant 1 : i32
    %39 = arith.addi %1, %c1_i32_26 : i32
    %c0_27 = arith.constant 0 : index
    %40 = arith.index_cast %39 : i32 to index
    %c1_28 = arith.constant 1 : index
    %c0_29 = arith.constant 0 : index
    %41 = vector.load %arg2[%c0_27, %40, %c1_28, %c0_29] : memref<1x18x18x8xbf16, #tpu.memory_space<vmem>>, vector<1x16x16x8xbf16>
    %42 = vector.shape_cast %41 : vector<1x16x16x8xbf16> to vector<16x16x8xbf16>
    %43 = vector.shape_cast %42 : vector<16x16x8xbf16> to vector<256x8xbf16>
    %c4 = arith.constant 4 : index
    %c0_30 = arith.constant 0 : index
    %c0_31 = arith.constant 0 : index
    %44 = vector.load %arg3[%c4, %c0_30, %c0_31] : memref<9x8x8xbf16, #tpu.memory_space<vmem>>, vector<1x8x8xbf16>
    %45 = vector.shape_cast %44 : vector<1x8x8xbf16> to vector<8x8xbf16>
    %cst_32 = arith.constant dense<0.000000e+00> : vector<256x8xf32>
    %46 = tpu.matmul %43, %45, %cst_32 {dimension_numbers = #tpu.dot_dimension_numbers<[1], [0], [0], [1], [0, 0, 1, 1], [], []>} : vector<256x8xbf16>, vector<8x8xbf16>, vector<256x8xf32> -> vector<256x8xf32>
    %47 = arith.addf %38, %46 : vector<256x8xf32>
    %c1_i32_33 = arith.constant 1 : i32
    %48 = arith.addi %1, %c1_i32_33 : i32
    %c0_34 = arith.constant 0 : index
    %49 = arith.index_cast %48 : i32 to index
    %c2_35 = arith.constant 2 : index
    %c0_36 = arith.constant 0 : index
    %50 = vector.load %arg2[%c0_34, %49, %c2_35, %c0_36] : memref<1x18x18x8xbf16, #tpu.memory_space<vmem>>, vector<1x16x16x8xbf16>
    %51 = vector.shape_cast %50 : vector<1x16x16x8xbf16> to vector<16x16x8xbf16>
    %52 = vector.shape_cast %51 : vector<16x16x8xbf16> to vector<256x8xbf16>
    %c5 = arith.constant 5 : index
    %c0_37 = arith.constant 0 : index
    %c0_38 = arith.constant 0 : index
    %53 = vector.load %arg3[%c5, %c0_37, %c0_38] : memref<9x8x8xbf16, #tpu.memory_space<vmem>>, vector<1x8x8xbf16>
    %54 = vector.shape_cast %53 : vector<1x8x8xbf16> to vector<8x8xbf16>
    %cst_39 = arith.constant dense<0.000000e+00> : vector<256x8xf32>
    %55 = tpu.matmul %52, %54, %cst_39 {dimension_numbers = #tpu.dot_dimension_numbers<[1], [0], [0], [1], [0, 0, 1, 1], [], []>} : vector<256x8xbf16>, vector<8x8xbf16>, vector<256x8xf32> -> vector<256x8xf32>
    %56 = arith.addf %47, %55 : vector<256x8xf32>
    %c2_i32 = arith.constant 2 : i32
    %57 = arith.addi %1, %c2_i32 : i32
    %c0_40 = arith.constant 0 : index
    %58 = arith.index_cast %57 : i32 to index
    %c0_41 = arith.constant 0 : index
    %c0_42 = arith.constant 0 : index
    %59 = vector.load %arg2[%c0_40, %58, %c0_41, %c0_42] : memref<1x18x18x8xbf16, #tpu.memory_space<vmem>>, vector<1x16x16x8xbf16>
    %60 = vector.shape_cast %59 : vector<1x16x16x8xbf16> to vector<16x16x8xbf16>
    %61 = vector.shape_cast %60 : vector<16x16x8xbf16> to vector<256x8xbf16>
    %c6 = arith.constant 6 : index
    %c0_43 = arith.constant 0 : index
    %c0_44 = arith.constant 0 : index
    %62 = vector.load %arg3[%c6, %c0_43, %c0_44] : memref<9x8x8xbf16, #tpu.memory_space<vmem>>, vector<1x8x8xbf16>
    %63 = vector.shape_cast %62 : vector<1x8x8xbf16> to vector<8x8xbf16>
    %cst_45 = arith.constant dense<0.000000e+00> : vector<256x8xf32>
    %64 = tpu.matmul %61, %63, %cst_45 {dimension_numbers = #tpu.dot_dimension_numbers<[1], [0], [0], [1], [0, 0, 1, 1], [], []>} : vector<256x8xbf16>, vector<8x8xbf16>, vector<256x8xf32> -> vector<256x8xf32>
    %65 = arith.addf %56, %64 : vector<256x8xf32>
    %c2_i32_46 = arith.constant 2 : i32
    %66 = arith.addi %1, %c2_i32_46 : i32
    %c0_47 = arith.constant 0 : index
    %67 = arith.index_cast %66 : i32 to index
    %c1_48 = arith.constant 1 : index
    %c0_49 = arith.constant 0 : index
    %68 = vector.load %arg2[%c0_47, %67, %c1_48, %c0_49] : memref<1x18x18x8xbf16, #tpu.memory_space<vmem>>, vector<1x16x16x8xbf16>
    %69 = vector.shape_cast %68 : vector<1x16x16x8xbf16> to vector<16x16x8xbf16>
    %70 = vector.shape_cast %69 : vector<16x16x8xbf16> to vector<256x8xbf16>
    %c7 = arith.constant 7 : index
    %c0_50 = arith.constant 0 : index
    %c0_51 = arith.constant 0 : index
    %71 = vector.load %arg3[%c7, %c0_50, %c0_51] : memref<9x8x8xbf16, #tpu.memory_space<vmem>>, vector<1x8x8xbf16>
    %72 = vector.shape_cast %71 : vector<1x8x8xbf16> to vector<8x8xbf16>
    %cst_52 = arith.constant dense<0.000000e+00> : vector<256x8xf32>
    %73 = tpu.matmul %70, %72, %cst_52 {dimension_numbers = #tpu.dot_dimension_numbers<[1], [0], [0], [1], [0, 0, 1, 1], [], []>} : vector<256x8xbf16>, vector<8x8xbf16>, vector<256x8xf32> -> vector<256x8xf32>
    %74 = arith.addf %65, %73 : vector<256x8xf32>
    %c2_i32_53 = arith.constant 2 : i32
    %75 = arith.addi %1, %c2_i32_53 : i32
    %c0_54 = arith.constant 0 : index
    %76 = arith.index_cast %75 : i32 to index
    %c2_55 = arith.constant 2 : index
    %c0_56 = arith.constant 0 : index
    %77 = vector.load %arg2[%c0_54, %76, %c2_55, %c0_56] : memref<1x18x18x8xbf16, #tpu.memory_space<vmem>>, vector<1x16x16x8xbf16>
    %78 = vector.shape_cast %77 : vector<1x16x16x8xbf16> to vector<16x16x8xbf16>
    %79 = vector.shape_cast %78 : vector<16x16x8xbf16> to vector<256x8xbf16>
    %c8 = arith.constant 8 : index
    %c0_57 = arith.constant 0 : index
    %c0_58 = arith.constant 0 : index
    %80 = vector.load %arg3[%c8, %c0_57, %c0_58] : memref<9x8x8xbf16, #tpu.memory_space<vmem>>, vector<1x8x8xbf16>
    %81 = vector.shape_cast %80 : vector<1x8x8xbf16> to vector<8x8xbf16>
    %cst_59 = arith.constant dense<0.000000e+00> : vector<256x8xf32>
    %82 = tpu.matmul %79, %81, %cst_59 {dimension_numbers = #tpu.dot_dimension_numbers<[1], [0], [0], [1], [0, 0, 1, 1], [], []>} : vector<256x8xbf16>, vector<8x8xbf16>, vector<256x8xf32> -> vector<256x8xf32>
    %83 = arith.addf %74, %82 : vector<256x8xf32>
    %c0_60 = arith.constant 0 : index
    %c0_61 = arith.constant 0 : index
    %84 = vector.load %arg4[%c0_60, %c0_61] : memref<1x8xf32, #tpu.memory_space<vmem>>, vector<1x8xf32>
    %85 = vector.broadcast %84 : vector<1x8xf32> to vector<256x8xf32>
    %86 = arith.mulf %83, %85 : vector<256x8xf32>
    %c0_62 = arith.constant 0 : index
    %c0_63 = arith.constant 0 : index
    %87 = vector.load %arg5[%c0_62, %c0_63] : memref<1x8xf32, #tpu.memory_space<vmem>>, vector<1x8xf32>
    %88 = vector.broadcast %87 : vector<1x8xf32> to vector<256x8xf32>
    %89 = arith.addf %86, %88 : vector<256x8xf32>
    %cst_64 = arith.constant 0.000000e+00 : f32
    %90 = vector.broadcast %cst_64 : f32 to vector<256x8xf32>
    %91 = arith.maximumf %89, %90 : vector<256x8xf32>
    %c0_65 = arith.constant 0 : index
    %c0_66 = arith.constant 0 : index
    %c0_67 = arith.constant 0 : index
    %92 = vector.load %arg6[%c0_65, %c0_66, %c0_67] : memref<1x256x8xf32, #tpu.memory_space<vmem>>, vector<1x256x8xf32>
    %93 = vector.shape_cast %92 : vector<1x256x8xf32> to vector<256x8xf32>
    %94 = vector.shape_cast %91 : vector<256x8xf32> to vector<1x256x8xf32>
    tpu.vector_store %arg6[%c0_65, %c0_66, %c0_67], %94 {strides = array<i32>} : memref<1x256x8xf32, #tpu.memory_space<vmem>>, vector<1x256x8xf32>,
    return
  }
  func.func @transform_0(%arg0: i32, %arg1: i32) -> (i32, i32, i32, i32) {
    %c0_i32 = arith.constant 0 : i32
    %c0_i32_0 = arith.constant 0 : i32
    %c0_i32_1 = arith.constant 0 : i32
    %c0_i32_2 = arith.constant 0 : i32
    return %arg0, %c0_i32, %c0_i32_0, %c0_i32_1 : i32, i32, i32, i32
  }
  func.func @transform_1(%arg0: i32, %arg1: i32) -> (i32, i32, i32) {
    %c0_i32 = arith.constant 0 : i32
    %c0_i32_0 = arith.constant 0 : i32
    %c0_i32_1 = arith.constant 0 : i32
    %c0_i32_2 = arith.constant 0 : i32
    return %c0_i32, %c0_i32_0, %c0_i32_1 : i32, i32, i32
  }
  func.func @transform_2(%arg0: i32, %arg1: i32) -> (i32, i32) {
    %c0_i32 = arith.constant 0 : i32
    %c0_i32_0 = arith.constant 0 : i32
    %c0_i32_1 = arith.constant 0 : i32
    return %c0_i32, %c0_i32_0 : i32, i32
  }
  func.func @transform_3(%arg0: i32, %arg1: i32) -> (i32, i32) {
    %c0_i32 = arith.constant 0 : i32
    %c0_i32_0 = arith.constant 0 : i32
    %c0_i32_1 = arith.constant 0 : i32
    return %c0_i32, %c0_i32_0 : i32, i32
  }
  func.func @transform_4(%arg0: i32, %arg1: i32) -> (i32, i32, i32) {
    %c0_i32 = arith.constant 0 : i32
    %c0_i32_0 = arith.constant 0 : i32
    return %arg0, %arg1, %c0_i32 : i32, i32, i32
  }
}

</mosaic_0001>

<bundles_post_ra>
// kernel: tile.8
= control target key start
LH: loop header
LB: loop body
LE: loop exit
PB: predicated region body
PF: predicated region fallthrough
CT: control target
= control target key end

     0   :  { %s22_s0 = inlined_call_operand.vmem [shape: f32[12], index: 0, kind: input, shape index: {}]   ;;  %s23_s1 = inlined_call_operand.vmem [shape: f32[4,12], index: 1, kind: output, shape index: {}]  }
   0x1   :  { %v4_v0 = vld [vmem:[%s22_s0] ss:$0 sm:$0xff] }
   0x2   :  { %5 = vst [vmem:[%s23_s1] sm:$0xf] %v4_v0 }

// kernel: tile.9
= control target key start
LH: loop header
LB: loop body
LE: loop exit
PB: predicated region body
PF: predicated region fallthrough
CT: control target
= control target key end

     0   :  { %vm7_vm0 = vcmask 97280   ;;  %s37_s8 = smov 12   ;;  %s38_s9 = smov 24   ;;  %vm13_vm1 = vcmask 392480   ;;  %vm19_vm2 = vcmask 294080   ;;  %vm25_vm3 = vcmask 195680   ;;  %s55_s0 = inlined_call_operand.vmem [shape: f32[4,12], index: 0, kind: input, shape index: {}]   ;;  %s56_s1 = inlined_call_operand.vmem [shape: f32[1,48], index: 1, kind: output, shape index: {}]  }
   0x1   :  { %v4_v0 = vld [vmem:[%s55_s0] sm:$0xf]  ;;  %s36_s0 = smov 36  }
   0x2   :  { %5 = vst [vmem:[#allocation1] sm:$0xf] %v4_v0 }
   0x9   :  { %v10_v1 = vld [vmem:[#allocation1 + $0x3] sm:$0x1]   ;;  %v22_v2 = vld [vmem:[#allocation1 + $0x1] sm:$0x1]   ;;  %v6_v3 = vld [vmem:[#allocation1] sm:$0x1]  }
   0xa   :  { %11 = vrot.lane.b32.xlu0 %v10_v1, %s36_s0  ;;  %23 = vrot.lane.b32.xlu1 %v22_v2, %s37_s8  ;;  %v16_v4 = vld [vmem:[#allocation1 + $0x2] sm:$0x1]   ;;  %8 = vst.msk [vmem:[#allocation0] sm:$0x1] %vm7_vm0, %v6_v3  }
   0xe   :  { %17 = vrot.lane.b32.xlu0 %v16_v4, %s38_s9 }
  0x7c   :  { %v12_v5 = vpop.permute.xlu0 %11   ;;  %v24_v6 = vpop.permute.xlu1 %23  }
  0x7d   :  { %14 = vst.msk [vmem:[#allocation0] sm:$0x1] %vm13_vm1, %v12_v5  }
  0x80   :  { %v18_v7 = vpop.permute.xlu0 %17  }
  0x81   :  { %20 = vst.msk [vmem:[#allocation0] sm:$0x1] %vm19_vm2, %v18_v7  }
  0x82   :  { %26 = vst.msk [vmem:[#allocation0] sm:$0x1] %vm25_vm3, %v24_v6  }
  0x89   :  { %v30_v8 = vld [vmem:[#allocation0] sm:$0x1] }
  0x8a   :  { %32 = vst [vmem:[%s56_s1] sm:$0x1] %v30_v8 }

// kernel: re_up_forward.4
= control target key start
LH: loop header
LB: loop body
LE: loop exit
PB: predicated region body
PF: predicated region fallthrough
CT: control target
= control target key end

     0   :  { %vm86_vm0 = vcmask 130048   ;;  %vm272_vm1 = vcmask 388096   ;;  %s503_s1 = inlined_call_operand.vmem [shape: bf16[16,48], index: 1, kind: input, shape index: {}]   ;;  %s504_s0 = inlined_call_operand.vmem [shape: bf16[128,16], index: 0, kind: input, shape index: {}]   ;;  %s505_s2 = inlined_call_operand.vmem [shape: f32[1,48], index: 2, kind: input, shape index: {}]   ;;  %s506_s3 = inlined_call_operand.vmem [shape: bf16[128,48], index: 3, kind: output, shape index: {}]  }
   0x1   :  { %v372_v0 = vld [vmem:[%s503_s1] sm:$0xff]   ;;  %v375_v3 = vld [vmem:[%s504_s0 + $0x8] sm:$0xff]   ;;  %v377_v5 = vld [vmem:[%s504_s0 + $0x10] sm:$0xff]  }
   0x2   :  { %v373_v1 = vld [vmem:[%s504_s0] sm:$0xff]   ;;  %352 = vmatprep.subr.bf16.mxu0 %v372_v0  ;;  %370 = vmatprep.subr.bf16.mxu1 %v372_v0  ;;  %v376_v4 = vld [vmem:[%s504_s0 + $0x28] sm:$0xff]   ;;  %v378_v6 = vld [vmem:[%s504_s0 + $0x30] sm:$0xff]  }
   0x3   :  { %v374_v2 = vld [vmem:[%s504_s0 + $0x20] sm:$0xff]   ;;  %353 = vmatpush3.bf16.msra.mxu0 %v372_v0  ;;  %371 = vmatpush3.bf16.msra.mxu1 %v372_v0  ;;  %v379_v7 = vld [vmem:[%s504_s0 + $0x18] sm:$0xff]  }
   0x4   :  { %354 = vmatprep.mubr.msk.bf16.mxu0 %vm86_vm0, %v373_v1  ;;  %362 = vmatprep.mubr.msk.bf16.mxu1 %vm86_vm0, %v374_v2  ;;  %v380_v8 = vld [vmem:[%s504_s0 + $0x38] sm:$0xff]   ;;  %v293_v9 = vld [vmem:[%s505_s2] ss:$0 sm:$0xff] }
   0x6   :  { %355 = vmatmul.mubr.msk.bf16.vlgmr.msra.gmra.mrb[0].mxu0 %vm86_vm0, %v375_v3  ;;  %363 = vmatmul.mubr.msk.bf16.vlgmr.msra.gmra.mrb[0].mxu1 %vm86_vm0, %v376_v4 }
   0x7   :  { %358 = vmatprep.mubr.msk.bf16.mxu0 %vm86_vm0, %v377_v5  ;;  %366 = vmatprep.mubr.msk.bf16.mxu1 %vm86_vm0, %v378_v6 }
   0xe   :  { %359 = vmatmul.mubr.msk.bf16.gmra.mrb[4].mxu0 %vm86_vm0, %v379_v7  ;;  %367 = vmatmul.mubr.msk.bf16.gmra.mrb[4].mxu1 %vm86_vm0, %v380_v8 }
  0xd9   :  { %v356_v10 = vpop.f32.mrb[0].mxu0  ;;  %v364_v11 = vpop.f32.mrb[0].mxu1 }
  0xda   :  { %v154_v12 = vadd.f32 %v356_v10, %v293_v9  ;;  %v186_v13 = vadd.f32 %v364_v11, %v293_v9  ;;  %v145_v14 = vpop.f32.mrb[1].mxu0  ;;  %v177_v15 = vpop.f32.mrb[1].mxu1 }
  0xdb   :  { %v146_v16 = vadd.f32 %v293_v9, %v145_v14  ;;  %v178_v17 = vadd.f32 %v293_v9, %v177_v15  ;;  %v357_v18 = vpop.f32.mrb[2].mxu0  ;;  %v365_v19 = vpop.f32.mrb[2].mxu1 }
  0xdc   :  { %v329_v20 = vpack.c.bf16 %v154_v12, %v154_v12  ;;  %v337_v21 = vpack.c.bf16 %v186_v13, %v186_v13  ;;  %v157_v22 = vadd.f32 %v357_v18, %v293_v9  ;;  %v189_v23 = vadd.f32 %v365_v19, %v293_v9  ;;  %v148_v24 = vpop.f32.mrb[3].mxu0  ;;  %v180_v25 = vpop.f32.mrb[3].mxu1 }
  0xdd   :  { %v327_v26 = vpack.c.bf16 %v146_v16, %v146_v16  ;;  %v335_v27 = vpack.c.bf16 %v178_v17, %v178_v17  ;;  %v149_v28 = vadd.f32 %v293_v9, %v148_v24  ;;  %v181_v29 = vadd.f32 %v293_v9, %v180_v25 }
  0xde   :  { %275 = vst.msk [vmem:[%s506_s3 + $0x8] sm:$0xf] %vm272_vm1, %v329_v20  ;;  %283 = vst.msk [vmem:[%s506_s3 + $0x28] sm:$0xf] %vm272_vm1, %v337_v21  ;;  %v330_v30 = vpack.c.bf16 %v157_v22, %v157_v22  ;;  %v338_v31 = vpack.c.bf16 %v189_v23, %v189_v23 }
  0xdf   :  { %273 = vst.msk [vmem:[%s506_s3] sm:$0xf] %vm272_vm1, %v327_v26  ;;  %281 = vst.msk [vmem:[%s506_s3 + $0x20] sm:$0xf] %vm272_vm1, %v335_v27  ;;  %v328_v32 = vpack.c.bf16 %v149_v28, %v149_v28  ;;  %v336_v33 = vpack.c.bf16 %v181_v29, %v181_v29 }
  0xe0   :  { %276 = vst.msk [vmem:[%s506_s3 + $0xc] sm:$0xf] %vm272_vm1, %v330_v30  ;;  %284 = vst.msk [vmem:[%s506_s3 + $0x2c] sm:$0xf] %vm272_vm1, %v338_v31 }
  0xe1   :  { %274 = vst.msk [vmem:[%s506_s3 + $0x4] sm:$0xf] %vm272_vm1, %v328_v32  ;;  %282 = vst.msk [vmem:[%s506_s3 + $0x24] sm:$0xf] %vm272_vm1, %v336_v33  ;;  %v360_v34 = vpop.f32.mrb[4].mxu0  ;;  %v368_v35 = vpop.f32.mrb[4].mxu1 }
  0xe2   :  { %v170_v36 = vadd.f32 %v360_v34, %v293_v9  ;;  %v202_v37 = vadd.f32 %v368_v35, %v293_v9  ;;  %v161_v38 = vpop.f32.mrb[5].mxu0  ;;  %v193_v39 = vpop.f32.mrb[5].mxu1 }
  0xe3   :  { %v162_v40 = vadd.f32 %v293_v9, %v161_v38  ;;  %v194_v41 = vadd.f32 %v293_v9, %v193_v39  ;;  %v361_v42 = vpop.f32.mrb[6].mxu0  ;;  %v369_v43 = vpop.f32.mrb[6].mxu1 }
  0xe4   :  { %v333_v44 = vpack.c.bf16 %v170_v36, %v170_v36  ;;  %v341_v45 = vpack.c.bf16 %v202_v37, %v202_v37  ;;  %v173_v46 = vadd.f32 %v361_v42, %v293_v9  ;;  %v205_v47 = vadd.f32 %v369_v43, %v293_v9  ;;  %v164_v48 = vpop.f32.mrb[7].mxu0  ;;  %v196_v49 = vpop.f32.mrb[7].mxu1 }
  0xe5   :  { %v331_v50 = vpack.c.bf16 %v162_v40, %v162_v40  ;;  %v339_v51 = vpack.c.bf16 %v194_v41, %v194_v41  ;;  %v165_v52 = vadd.f32 %v293_v9, %v164_v48  ;;  %v197_v53 = vadd.f32 %v293_v9, %v196_v49 }
  0xe6   :  { %279 = vst.msk [vmem:[%s506_s3 + $0x18] sm:$0xf] %vm272_vm1, %v333_v44  ;;  %287 = vst.msk [vmem:[%s506_s3 + $0x38] sm:$0xf] %vm272_vm1, %v341_v45  ;;  %v334_v54 = vpack.c.bf16 %v173_v46, %v173_v46  ;;  %v342_v55 = vpack.c.bf16 %v205_v47, %v205_v47 }
  0xe7   :  { %277 = vst.msk [vmem:[%s506_s3 + $0x10] sm:$0xf] %vm272_vm1, %v331_v50  ;;  %285 = vst.msk [vmem:[%s506_s3 + $0x30] sm:$0xf] %vm272_vm1, %v339_v51  ;;  %v332_v56 = vpack.c.bf16 %v165_v52, %v165_v52  ;;  %v340_v57 = vpack.c.bf16 %v197_v53, %v197_v53 }
  0xe8   :  { %280 = vst.msk [vmem:[%s506_s3 + $0x1c] sm:$0xf] %vm272_vm1, %v334_v54  ;;  %288 = vst.msk [vmem:[%s506_s3 + $0x3c] sm:$0xf] %vm272_vm1, %v342_v55 }
  0xe9   :  { %278 = vst.msk [vmem:[%s506_s3 + $0x14] sm:$0xf] %vm272_vm1, %v332_v56  ;;  %286 = vst.msk [vmem:[%s506_s3 + $0x34] sm:$0xf] %vm272_vm1, %v340_v57 }

// kernel: re_up_forward.5
= control target key start
LH: loop header
LB: loop body
LE: loop exit
PB: predicated region body
PF: predicated region fallthrough
CT: control target
= control target key end

     0   :  { %s941_s12 = smov 0   ;;  %s1105_s0 = inlined_call_operand.vmem [shape: bf16[512,8], index: 0, kind: input, shape index: {}]   ;;  %s1106_s1 = inlined_call_operand.vmem [shape: bf16[8,4], index: 1, kind: input, shape index: {}]   ;;  %s1107_s2 = inlined_call_operand.vmem [shape: f32[1,4], index: 2, kind: input, shape index: {}]   ;;  %s1108_s3 = inlined_call_operand.vmem [shape: bf16[512,4], index: 3, kind: output, shape index: {}]  }
   0x1 LB: > { %s726_s13 = sadd.s32 4294967295, %s919_s12   ;;  %p730_p0 = scmp.ge.s32.totalorder %s919_s12, 1  ;;  %s919_s12 = sphi %s941_s12, %s13_s12  }
   0x2   : > { %p138_p1 = scmp.lt.s32.totalorder %s919_s12, 3 }
   0x4   : > { %p139_p2 = pnand %p730_p0, %p138_p1 }
   0x5   : > { %v207_v0 = vld [vmem:[%s1106_s1] sm:$0xf] (!%p139_p2)  ;;  %vm344_vm0 = vcmask (!%p139_p2), 1043456   ;;  %s731_s16 = sshll.u32 (!%p139_p2), %s726_s13, 5  ;;  %vm295_vm1 = vcmask (!%p139_p2), 64512   ;;  %vm637_vm2 = vcmask (!%p139_p2), 27648  }
   0x6   : > { %142 = sbr.rel (%p139_p2) target bundleno = 263 (0x107), region = 32  ;;  %887 = vmatprep.subr.msk.bf16.mxu0 (!%p139_p2), %vm344_vm0, %v207_v0  ;;  %888 = vmatprep.subr.msk.bf16.mxu1 (!%p139_p2), %vm344_vm0, %v207_v0  ;;  %v346_v1 = vsel (!%p139_p2), %vm344_vm0, %v207_v0, 0  ;;  %p163_p3 = scmp.lt.s32.totalorder (!%p139_p2), %s731_s16, 63  ;;  %v997_v18 = vld [vmem:[%s1107_s2] ss:$0 sm:$0xff] (!%p139_p2) }
   0x7   : > { %852 = vmatpush3.bf16.msra.mxu0 (!%p139_p2), %v346_v1  ;;  %886 = vmatpush3.bf16.msra.mxu1 (!%p139_p2), %v346_v1 }
   0xd   : > { %s1110_s16 = smov (!%p163_p3, %s731_s16), 63 }
   0xe   : > { %s732_s17 = sshll.u32 %s1110_s16, 2 }
   0xf   : > { %s960_s20 = scalar_lea.vmem %s1105_s0, %s732_s17  ;;  %s1005_s25 = scalar_lea.vmem %s1108_s3, %s732_s17 }
  0x10   : > { %v897_v2 = vld [vmem:[%s960_s20] sm:$0xff]   ;;  %v899_v4 = vld [vmem:[%s960_s20 + $0x8] sm:$0xff]   ;;  %v901_v6 = vld [vmem:[%s960_s20 + $0x10] sm:$0xff]  }
  0x11   : > { %v898_v3 = vld [vmem:[%s960_s20 + $0x40] sm:$0xff]   ;;  %853 = vmatprep.mubr.msk.bf16.mxu0 %vm295_vm1, %v897_v2  ;;  %v900_v5 = vld [vmem:[%s960_s20 + $0x48] sm:$0xff]   ;;  %v902_v7 = vld [vmem:[%s960_s20 + $0x50] sm:$0xff]  }
  0x12   : > { %869 = vmatprep.mubr.msk.bf16.mxu1 %vm295_vm1, %v898_v3  ;;  %854 = vmatmul.mubr.msk.bf16.vlgmr.msra.gmra.mrb[0].mxu0 %vm295_vm1, %v899_v4  ;;  %v903_v8 = vld [vmem:[%s960_s20 + $0x18] sm:$0xff]   ;;  %v905_v10 = vld [vmem:[%s960_s20 + $0x20] sm:$0xff]   ;;  %v907_v12 = vld [vmem:[%s960_s20 + $0x28] sm:$0xff]  }
  0x13   : > { %870 = vmatmul.mubr.msk.bf16.vlgmr.msra.gmra.mrb[0].mxu1 %vm295_vm1, %v900_v5  ;;  %857 = vmatprep.mubr.msk.bf16.mxu0 %vm295_vm1, %v901_v6  ;;  %v904_v9 = vld [vmem:[%s960_s20 + $0x58] sm:$0xff]   ;;  %v906_v11 = vld [vmem:[%s960_s20 + $0x60] sm:$0xff]   ;;  %v908_v13 = vld [vmem:[%s960_s20 + $0x68] sm:$0xff]  }
  0x14   : > { %873 = vmatprep.mubr.msk.bf16.mxu1 %vm295_vm1, %v902_v7  ;;  %v909_v14 = vld [vmem:[%s960_s20 + $0x30] sm:$0xff]   ;;  %v911_v16 = vld [vmem:[%s960_s20 + $0x38] sm:$0xff]  }
  0x15   : > { %v910_v15 = vld [vmem:[%s960_s20 + $0x70] sm:$0xff]   ;;  %v912_v17 = vld [vmem:[%s960_s20 + $0x78] sm:$0xff]  }
  0x1a   : > { %858 = vmatmul.mubr.msk.bf16.gmra.mrb[4].mxu0 %vm295_vm1, %v903_v8 }
  0x1b   : > { %874 = vmatmul.mubr.msk.bf16.gmra.mrb[4].mxu1 %vm295_vm1, %v904_v9  ;;  %861 = vmatprep.mubr.msk.bf16.mxu0 %vm295_vm1, %v905_v10 }
  0x1c   : > { %877 = vmatprep.mubr.msk.bf16.mxu1 %vm295_vm1, %v906_v11 }
  0x22   : > { %862 = vmatmul.mubr.msk.bf16.gmra.mrb[8].mxu0 %vm295_vm1, %v907_v12 }
  0x23   : > { %878 = vmatmul.mubr.msk.bf16.gmra.mrb[8].mxu1 %vm295_vm1, %v908_v13  ;;  %865 = vmatprep.mubr.msk.bf16.mxu0 %vm295_vm1, %v909_v14 }
  0x24   : > { %881 = vmatprep.mubr.msk.bf16.mxu1 %vm295_vm1, %v910_v15 }
  0x2a   : > { %866 = vmatmul.mubr.msk.bf16.gmra.mrb[12].mxu0 %vm295_vm1, %v911_v16 }
  0x2b   : > { %882 = vmatmul.mubr.msk.bf16.gmra.mrb[12].mxu1 %vm295_vm1, %v912_v17 }
  0xe5   : > { %v855_v19 = vpop.f32.mrb[0].mxu0 }
  0xe6   : > { %v391_v20 = vadd.f32 %v855_v19, %v997_v18  ;;  %v871_v21 = vpop.f32.mrb[0].mxu1  ;;  %v382_v22 = vpop.f32.mrb[1].mxu0 }
  0xe7   : > { %v455_v23 = vadd.f32 %v871_v21, %v997_v18  ;;  %v383_v24 = vadd.f32 %v997_v18, %v382_v22  ;;  %v446_v25 = vpop.f32.mrb[1].mxu1  ;;  %v856_v26 = vpop.f32.mrb[2].mxu0 }
  0xe8   : > { %v804_v27 = vpack.c.bf16 %v391_v20, %v391_v20  ;;  %v447_v28 = vadd.f32 %v997_v18, %v446_v25  ;;  %v394_v29 = vadd.f32 %v856_v26, %v997_v18  ;;  %v872_v30 = vpop.f32.mrb[2].mxu1  ;;  %v385_v31 = vpop.f32.mrb[3].mxu0 }
  0xe9   : > { %v820_v32 = vpack.c.bf16 %v455_v23, %v455_v23  ;;  %v802_v33 = vpack.c.bf16 %v383_v24, %v383_v24  ;;  %v458_v34 = vadd.f32 %v872_v30, %v997_v18  ;;  %v386_v35 = vadd.f32 %v997_v18, %v385_v31  ;;  %v449_v36 = vpop.f32.mrb[3].mxu1 }
  0xea   : > { %640 = vst.msk [vmem:[%s1005_s25 + $0x8] sm:$0xf] %vm637_vm2, %v804_v27  ;;  %v818_v37 = vpack.c.bf16 %v447_v28, %v447_v28  ;;  %v805_v38 = vpack.c.bf16 %v394_v29, %v394_v29  ;;  %v450_v39 = vadd.f32 %v997_v18, %v449_v36 }
  0xeb   : > { %656 = vst.msk [vmem:[%s1005_s25 + $0x48] sm:$0xf] %vm637_vm2, %v820_v32  ;;  %638 = vst.msk [vmem:[%s1005_s25] sm:$0xf] %vm637_vm2, %v802_v33  ;;  %v821_v40 = vpack.c.bf16 %v458_v34, %v458_v34  ;;  %v803_v41 = vpack.c.bf16 %v386_v35, %v386_v35 }
  0xec   : > { %654 = vst.msk [vmem:[%s1005_s25 + $0x40] sm:$0xf] %vm637_vm2, %v818_v37  ;;  %641 = vst.msk [vmem:[%s1005_s25 + $0xc] sm:$0xf] %vm637_vm2, %v805_v38  ;;  %v819_v42 = vpack.c.bf16 %v450_v39, %v450_v39 }
  0xed   : > { %657 = vst.msk [vmem:[%s1005_s25 + $0x4c] sm:$0xf] %vm637_vm2, %v821_v40  ;;  %639 = vst.msk [vmem:[%s1005_s25 + $0x4] sm:$0xf] %vm637_vm2, %v803_v41  ;;  %v859_v43 = vpop.f32.mrb[4].mxu0 }
  0xee   : > { %655 = vst.msk [vmem:[%s1005_s25 + $0x44] sm:$0xf] %vm637_vm2, %v819_v42  ;;  %v407_v44 = vadd.f32 %v859_v43, %v997_v18  ;;  %v875_v45 = vpop.f32.mrb[4].mxu1  ;;  %v398_v46 = vpop.f32.mrb[5].mxu0 }
  0xef   : > { %v471_v47 = vadd.f32 %v875_v45, %v997_v18  ;;  %v399_v48 = vadd.f32 %v997_v18, %v398_v46  ;;  %v462_v49 = vpop.f32.mrb[5].mxu1  ;;  %v860_v50 = vpop.f32.mrb[6].mxu0 }
  0xf0   : > { %v808_v51 = vpack.c.bf16 %v407_v44, %v407_v44  ;;  %v463_v52 = vadd.f32 %v997_v18, %v462_v49  ;;  %v410_v53 = vadd.f32 %v860_v50, %v997_v18  ;;  %v876_v54 = vpop.f32.mrb[6].mxu1  ;;  %v401_v55 = vpop.f32.mrb[7].mxu0 }
  0xf1   : > { %v824_v56 = vpack.c.bf16 %v471_v47, %v471_v47  ;;  %v806_v57 = vpack.c.bf16 %v399_v48, %v399_v48  ;;  %v474_v58 = vadd.f32 %v876_v54, %v997_v18  ;;  %v402_v59 = vadd.f32 %v997_v18, %v401_v55  ;;  %v465_v60 = vpop.f32.mrb[7].mxu1 }
  0xf2   : > { %644 = vst.msk [vmem:[%s1005_s25 + $0x18] sm:$0xf] %vm637_vm2, %v808_v51  ;;  %v822_v61 = vpack.c.bf16 %v463_v52, %v463_v52  ;;  %v809_v62 = vpack.c.bf16 %v410_v53, %v410_v53  ;;  %v466_v63 = vadd.f32 %v997_v18, %v465_v60 }
  0xf3   : > { %660 = vst.msk [vmem:[%s1005_s25 + $0x58] sm:$0xf] %vm637_vm2, %v824_v56  ;;  %642 = vst.msk [vmem:[%s1005_s25 + $0x10] sm:$0xf] %vm637_vm2, %v806_v57  ;;  %v825_v0 = vpack.c.bf16 %v474_v58, %v474_v58  ;;  %v807_v1 = vpack.c.bf16 %v402_v59, %v402_v59 }
  0xf4   : > { %658 = vst.msk [vmem:[%s1005_s25 + $0x50] sm:$0xf] %vm637_vm2, %v822_v61  ;;  %645 = vst.msk [vmem:[%s1005_s25 + $0x1c] sm:$0xf] %vm637_vm2, %v809_v62  ;;  %v823_v2 = vpack.c.bf16 %v466_v63, %v466_v63 }
  0xf5   : > { %661 = vst.msk [vmem:[%s1005_s25 + $0x5c] sm:$0xf] %vm637_vm2, %v825_v0  ;;  %643 = vst.msk [vmem:[%s1005_s25 + $0x14] sm:$0xf] %vm637_vm2, %v807_v1  ;;  %v863_v3 = vpop.f32.mrb[8].mxu0 }
  0xf6   : > { %659 = vst.msk [vmem:[%s1005_s25 + $0x54] sm:$0xf] %vm637_vm2, %v823_v2  ;;  %v423_v4 = vadd.f32 %v863_v3, %v997_v18  ;;  %v879_v5 = vpop.f32.mrb[8].mxu1  ;;  %v414_v6 = vpop.f32.mrb[9].mxu0 }
  0xf7   : > { %v487_v7 = vadd.f32 %v879_v5, %v997_v18  ;;  %v415_v8 = vadd.f32 %v997_v18, %v414_v6  ;;  %v478_v9 = vpop.f32.mrb[9].mxu1  ;;  %v864_v10 = vpop.f32.mrb[10].mxu0 }
  0xf8   : > { %v812_v11 = vpack.c.bf16 %v423_v4, %v423_v4  ;;  %v479_v12 = vadd.f32 %v997_v18, %v478_v9  ;;  %v426_v13 = vadd.f32 %v864_v10, %v997_v18  ;;  %v880_v14 = vpop.f32.mrb[10].mxu1  ;;  %v417_v15 = vpop.f32.mrb[11].mxu0 }
  0xf9   : > { %v828_v16 = vpack.c.bf16 %v487_v7, %v487_v7  ;;  %v810_v17 = vpack.c.bf16 %v415_v8, %v415_v8  ;;  %v490_v19 = vadd.f32 %v880_v14, %v997_v18  ;;  %v418_v20 = vadd.f32 %v997_v18, %v417_v15  ;;  %v481_v21 = vpop.f32.mrb[11].mxu1 }
  0xfa   : > { %648 = vst.msk [vmem:[%s1005_s25 + $0x28] sm:$0xf] %vm637_vm2, %v812_v11  ;;  %v826_v22 = vpack.c.bf16 %v479_v12, %v479_v12  ;;  %v813_v23 = vpack.c.bf16 %v426_v13, %v426_v13  ;;  %v482_v24 = vadd.f32 %v997_v18, %v481_v21 }
  0xfb   : > { %664 = vst.msk [vmem:[%s1005_s25 + $0x68] sm:$0xf] %vm637_vm2, %v828_v16  ;;  %646 = vst.msk [vmem:[%s1005_s25 + $0x20] sm:$0xf] %vm637_vm2, %v810_v17  ;;  %v829_v25 = vpack.c.bf16 %v490_v19, %v490_v19  ;;  %v811_v26 = vpack.c.bf16 %v418_v20, %v418_v20 }
  0xfc   : > { %662 = vst.msk [vmem:[%s1005_s25 + $0x60] sm:$0xf] %vm637_vm2, %v826_v22  ;;  %649 = vst.msk [vmem:[%s1005_s25 + $0x2c] sm:$0xf] %vm637_vm2, %v813_v23  ;;  %v827_v27 = vpack.c.bf16 %v482_v24, %v482_v24 }
  0xfd   : > { %665 = vst.msk [vmem:[%s1005_s25 + $0x6c] sm:$0xf] %vm637_vm2, %v829_v25  ;;  %647 = vst.msk [vmem:[%s1005_s25 + $0x24] sm:$0xf] %vm637_vm2, %v811_v26  ;;  %v867_v28 = vpop.f32.mrb[12].mxu0 }
  0xfe   : > { %663 = vst.msk [vmem:[%s1005_s25 + $0x64] sm:$0xf] %vm637_vm2, %v827_v27  ;;  %v439_v29 = vadd.f32 %v867_v28, %v997_v18  ;;  %v883_v30 = vpop.f32.mrb[12].mxu1  ;;  %v430_v31 = vpop.f32.mrb[13].mxu0 }
  0xff   : > { %v503_v32 = vadd.f32 %v883_v30, %v997_v18  ;;  %v431_v33 = vadd.f32 %v997_v18, %v430_v31  ;;  %v494_v34 = vpop.f32.mrb[13].mxu1  ;;  %v868_v35 = vpop.f32.mrb[14].mxu0 }
 0x100   : > { %v816_v36 = vpack.c.bf16 %v439_v29, %v439_v29  ;;  %v495_v37 = vadd.f32 %v997_v18, %v494_v34  ;;  %v442_v38 = vadd.f32 %v868_v35, %v997_v18  ;;  %v884_v39 = vpop.f32.mrb[14].mxu1  ;;  %v433_v40 = vpop.f32.mrb[15].mxu0 }
 0x101   : > { %v832_v41 = vpack.c.bf16 %v503_v32, %v503_v32  ;;  %v814_v42 = vpack.c.bf16 %v431_v33, %v431_v33  ;;  %v506_v43 = vadd.f32 %v884_v39, %v997_v18  ;;  %v434_v44 = vadd.f32 %v997_v18, %v433_v40  ;;  %v497_v45 = vpop.f32.mrb[15].mxu1 }
 0x102   : > { %652 = vst.msk [vmem:[%s1005_s25 + $0x38] sm:$0xf] %vm637_vm2, %v816_v36  ;;  %v830_v46 = vpack.c.bf16 %v495_v37, %v495_v37  ;;  %v817_v47 = vpack.c.bf16 %v442_v38, %v442_v38  ;;  %v498_v48 = vadd.f32 %v997_v18, %v497_v45 }
 0x103   : > { %668 = vst.msk [vmem:[%s1005_s25 + $0x78] sm:$0xf] %vm637_vm2, %v832_v41  ;;  %650 = vst.msk [vmem:[%s1005_s25 + $0x30] sm:$0xf] %vm637_vm2, %v814_v42  ;;  %v833_v49 = vpack.c.bf16 %v506_v43, %v506_v43  ;;  %v815_v50 = vpack.c.bf16 %v434_v44, %v434_v44 }
 0x104   : > { %666 = vst.msk [vmem:[%s1005_s25 + $0x70] sm:$0xf] %vm637_vm2, %v830_v46  ;;  %653 = vst.msk [vmem:[%s1005_s25 + $0x3c] sm:$0xf] %vm637_vm2, %v817_v47  ;;  %v831_v51 = vpack.c.bf16 %v498_v48, %v498_v48 }
 0x105   : > { %669 = vst.msk [vmem:[%s1005_s25 + $0x7c] sm:$0xf] %vm637_vm2, %v833_v49  ;;  %651 = vst.msk [vmem:[%s1005_s25 + $0x34] sm:$0xf] %vm637_vm2, %v815_v50 }
 0x106   : > { %667 = vst.msk [vmem:[%s1005_s25 + $0x74] sm:$0xf] %vm637_vm2, %v831_v51 }
 0x107 PF: > { %s13_s12 = sadd.s32 1, %s919_s12  }
 0x108   : > { %p10_p4 = scmp.ge.s32.totalorder %s13_s12, 4  }
 0x10a   :  { %12 = sbr.rel (!%p10_p4) target bundleno = 1 (0x1), region = 62 }

// kernel: re_up_forward.7
= control target key start
LH: loop header
LB: loop body
LE: loop exit
PB: predicated region body
PF: predicated region fallthrough
CT: control target
= control target key end

     0   :  { %s6479_s15 = smov 0   ;;  %s6481_s16 = smov 0   ;;  %s8371_s0 = inlined_call_operand.vmem [shape: bf16[2,18,18,8], index: 0, kind: input, shape index: {}]   ;;  %s8372_s1 = inlined_call_operand.vmem [shape: bf16[9,8,8], index: 1, kind: input, shape index: {}]   ;;  %s8373_s2 = inlined_call_operand.vmem [shape: f32[1,8], index: 2, kind: input, shape index: {}]   ;;  %s8374_s3 = inlined_call_operand.vmem [shape: f32[1,8], index: 3, kind: input, shape index: {}]   ;;  %s8375_s4 = inlined_call_operand.vmem [shape: f32[2,256,8], index: 4, kind: output, shape index: {}]  }
   0x1   :  { %s6483_s17 = smov 0  }
   0x2 LB: > { %s26_s18 = sadd.s32 1, %s6448_s16  ;;  %p5028_p0 = scmp.ge.s32.totalorder %s6452_s17, 1  ;;  %s6452_s17 = sphi %s6483_s17, %s14_s17   ;;  %s6448_s16 = sphi %s6481_s16, %s8444_s16   ;;  %s6444_s15 = sphi %s6479_s15, %s8443_s15  }
   0x3   : > { %p28_p1 = scmp.ge.s32.totalorder %s26_s18, 2  ;;  %p176_p2 = scmp.lt.s32.totalorder %s6452_s17, 3 }
   0x5   : > { %s8446_s18 = smov (%p28_p1, %s26_s18), 0  ;;  %p177_p3 = pnand %p5028_p0, %p176_p2 }
   0x7   : > { %180 = sbr.rel (%p177_p3) target bundleno = 590 (0x24e), region = 36 }
   0xe   : > { %v5032_v0 = vld [vmem:[%s8372_s1 + $0x4] sm:$0xf]  ;;  %vm761_vm0 = vcmask 1043456   ;;  %v5259_v1 = vld [vmem:[%s8372_s1 + $0x10] sm:$0xf]  ;;  %p206_p4 = scmp.lt.s32.totalorder %s6444_s15, 1 }
   0xf   : > { %6290 = vmatprep.subr.msk.bf16.mxu1 %vm761_vm0, %v5032_v0  ;;  %6294 = vmatprep.subr.msk.bf16.mxu0 %vm761_vm0, %v5259_v1  ;;  %v763_v2 = vsel %vm761_vm0, %v5032_v0, 0  ;;  %v6507_v3 = vsel %vm761_vm0, %v5259_v1, 0  ;;  %v258_v4 = vld [vmem:[%s8372_s1] sm:$0xf]  ;;  %v5324_v5 = vld [vmem:[%s8372_s1 + $0x14] sm:$0xf] }
  0x10   : > { %8389 = vst [vmem:[#allocation2_spill] sm:$0xff] %v6507_v3  ;;  %5727 = vmatpush3.bf16.msra.mxu1 %v763_v2  ;;  %5863 = vmatpush3.bf16.msra.mxu0 %v6507_v3  ;;  %s8448_s15 = smov (!%p206_p4, %s6444_s15), 1  ;;  %vm275_vm1 = vsmask.f32 3328  ;;  %vm276_vm2 = vsmask.f32 7440 }
  0x11   : > { %6291 = vmatprep.subr.msk.bf16.mxu1 %vm761_vm0, %v258_v4  ;;  %6296 = vmatprep.subr.msk.bf16.mxu0 %vm761_vm0, %v5324_v5  ;;  %s6300_s27 = smul.u32 216, %s8448_s15  ;;  %vm712_vm3 = vcmask 64512   ;;  %v6537_v17 = vsel %vm761_vm0, %v258_v4, 0  ;;  %v6543_v26 = vld [vmem:[%s8372_s1 + $0x18] sm:$0xf]  ;;  %vm6550_vm4 = vmor %vm275_vm1, %vm276_vm2  ;;  %v6556_v37 = vsel %vm761_vm0, %v5324_v5, 0 }
  0x12   : > { %v6560_v41 = vsel %vm761_vm0, %v6543_v26, 0  ;;  %vm1266_vm5 = vcmask 1042432   ;;  %vm1267_vm6 = vcmask 1046532  }
  0x13   : > { %s6524_s30 = scalar_lea.vmem %s8371_s0, %s6300_s27  ;;  %vm6776_vm7 = vmor %vm1266_vm5, %vm1267_vm6  ;;  %s5572_s27 = sshll.u32 %s8448_s15, 8 }
  0x14   : > { %v226_v6 = vld [vmem:[%s6524_s30] sm:$0xf]  ;;  %v227_v7 = vld [vmem:[%s6524_s30 + $0x4] sm:$0xf]  ;;  %v259_v8 = vld [vmem:[%s6524_s30 + $0x8] sm:$0x1] }
  0x15   : > { %v279_v9 = vshrl.u32 %v226_v6, 16  ;;  %v282_v10 = vshll.u32 %v226_v6, 16  ;;  %v288_v11 = vshll.u32 %v227_v7, 16  ;;  %v292_v12 = vshrl.u32 %v227_v7, 16  ;;  %v5211_v13 = vld [vmem:[%s6524_s30 + $0xc] sm:$0xf] }
  0x16   : > { %v298_v14 = vshll.u32 %v259_v8, 16  ;;  %v6531_v15 = vld [vmem:[%s6524_s30 + $0x10] sm:$0xf]  ;;  %v6534_v16 = vld [vmem:[%s6524_s30 + $0x14] sm:$0x1]  ;;  %v2086_v23 = vshrl.u32 %v5211_v13, 16 }
  0x17   : > { %v281_v18 = vrot.slane %v279_v9, 4  ;;  %v284_v19 = vrot.slane %v282_v10, 5  ;;  %v290_v20 = vrot.slane %v288_v11, 5  ;;  %v294_v21 = vrot.slane %v292_v12, 4  ;;  %v228_v31 = vld [vmem:[%s6524_s30 + $0xc] sm:$0xf] }
  0x18   : > { %v300_v22 = vrot.slane %v298_v14, 5  ;;  %v2089_v24 = vshll.u32 %v5211_v13, 16  ;;  %v2095_v25 = vshll.u32 %v6531_v15, 16  ;;  %v2099_v29 = vshrl.u32 %v6531_v15, 16  ;;  %v229_v36 = vld [vmem:[%s6524_s30 + $0x10] sm:$0xf] }
  0x19   : > { %v285_v27 = vor.u32 %v284_v19, %v281_v18  ;;  %v295_v28 = vor.u32 %v294_v21, %v290_v20  ;;  %v2105_v30 = vshll.u32 %v6534_v16, 16  ;;  %v2088_v33 = vrot.slane %v2086_v23, 4  ;;  %v260_v44 = vld [vmem:[%s6524_s30 + $0x14] sm:$0x1]  ;;  %v5214_v55 = vld [vmem:[%s6524_s30 + $0x18] sm:$0xf] }
  0x1a   : > { %v2091_v34 = vrot.slane %v2089_v24, 5  ;;  %v2097_v35 = vrot.slane %v2095_v25, 5  ;;  %v2101_v40 = vrot.slane %v2099_v29, 4  ;;  %v303_v45 = vshrl.u32 %v228_v31, 16  ;;  %v6569_v60 = vld [vmem:[%s6524_s30 + $0x1c] sm:$0xf] }
  0x1b   : > { %v286_v38 = vrot.slane %v285_v27, 4  ;;  %v296_v39 = vrot.slane %v295_v28, 4  ;;  %v2107_v43 = vrot.slane %v2105_v30, 5  ;;  %v306_v46 = vshll.u32 %v228_v31, 16  ;;  %v6577_v1 = vld [vmem:[%s6524_s30 + $0x20] sm:$0x1] }
  0x1c   : > { %v2092_v42 = vor.u32 %v2091_v34, %v2088_v33  ;;  %v2102_v49 = vor.u32 %v2101_v40, %v2097_v35  ;;  %v312_v50 = vshll.u32 %v229_v36, 16  ;;  %v305_v53 = vrot.slane %v303_v45, 4  ;;  %v230_v18 = vld [vmem:[%s6524_s30 + $0x18] sm:$0xf]  ;;  %v231_v23 = vld [vmem:[%s6524_s30 + $0x1c] sm:$0xf] }
  0x1d   : > { %v291_v47 = vsel %vm6550_vm4, %v286_v38, %v290_v20  ;;  %v301_v48 = vsel %vm6550_vm4, %v296_v39, %v300_v22  ;;  %v308_v54 = vrot.slane %v306_v46, 5  ;;  %v316_v58 = vshrl.u32 %v229_v36, 16  ;;  %v261_v31 = vld [vmem:[%s6524_s30 + $0x20] sm:$0x1]  ;;  %v5217_v40 = vld [vmem:[%s6524_s30 + $0x24] sm:$0xf] }
  0x1e   : > { %v5033_v51 = vcombine.low %v291_v47, %v301_v48  ;;  %v2093_v52 = vrot.slane %v2092_v42, 4  ;;  %v2103_v56 = vrot.slane %v2102_v49, 4  ;;  %v314_v57 = vrot.slane %v312_v50, 5  ;;  %v6600_v46 = vld [vmem:[%s6524_s30 + $0x28] sm:$0xf] }
  0x1f   : > { %v322_v59 = vshll.u32 %v260_v44, 16  ;;  %v2829_v62 = vrot.slane %v6531_v15, 5  ;;  %v2832_v63 = vrot.slane %v6534_v16, 5  ;;  %v309_v0 = vor.u32 %v308_v54, %v305_v53  ;;  %v6609_v54 = vld [vmem:[%s6524_s30 + $0x2c] sm:$0x1] }
  0x20   : > { %5728 = vmatprep.mubr.msk.bf16.mxu1 %vm712_vm3, %v5033_v51  ;;  %v2098_v61 = vsel %vm6550_vm4, %v2093_v52, %v2097_v35  ;;  %v2108_v2 = vsel %vm6550_vm4, %v2103_v56, %v2107_v43  ;;  %v318_v4 = vrot.slane %v316_v58, 4  ;;  %v2110_v6 = vshrl.u32 %v5214_v55, 16  ;;  %v5113_v51 = vld [vmem:[%s8372_s1 + $0x8] sm:$0xf]  ;;  %v6809_v16 = vld [vmem:[%s6524_s30 + $0x7c] sm:$0xf] }
  0x21   : > { %v324_v5 = vrot.slane %v322_v59, 5  ;;  %v5260_v7 = vcombine.low %v2098_v61, %v2108_v2  ;;  %v310_v8 = vrot.slane %v309_v0, 4  ;;  %v2113_v9 = vshll.u32 %v5214_v55, 16  ;;  %v232_v0 = vld [vmem:[%s6524_s30 + $0x24] sm:$0xf] }
  0x22   : > { %v2119_v10 = vshll.u32 %v6569_v60, 16  ;;  %v319_v11 = vor.u32 %v318_v4, %v314_v57  ;;  %v2112_v12 = vrot.slane %v2110_v6, 4  ;;  %v2123_v13 = vshrl.u32 %v6569_v60, 16 }
  0x23   : > { %v2129_v14 = vshll.u32 %v6577_v1, 16  ;;  %5864 = vmatprep.mubr.msk.bf16.mxu0 %vm712_vm3, %v5260_v7  ;;  %v315_v19 = vsel %vm6550_vm4, %v310_v8, %v314_v57  ;;  %v2115_v20 = vrot.slane %v2113_v9, 5  ;;  %v2836_v22 = vrot.slane %v6569_v60, 5  ;;  %v233_v7 = vld [vmem:[%s6524_s30 + $0x28] sm:$0xf] }
  0x24   : > { %v2121_v21 = vrot.slane %v2119_v10, 5  ;;  %v320_v24 = vrot.slane %v319_v11, 4  ;;  %v2125_v25 = vrot.slane %v2123_v13, 4  ;;  %v2839_v28 = vrot.slane %v6577_v1, 5  ;;  %v262_v13 = vld [vmem:[%s6524_s30 + $0x2c] sm:$0x1] }
  0x25   : > { %v2131_v27 = vrot.slane %v2129_v14, 5  ;;  %v2116_v29 = vor.u32 %v2115_v20, %v2112_v12  ;;  %v6593_v30 = vrot.slane %v2836_v22, 4  ;;  %v327_v33 = vshrl.u32 %v230_v18, 16 }
  0x26   : > { %v330_v34 = vshll.u32 %v230_v18, 16  ;;  %v325_v35 = vsel %vm6550_vm4, %v320_v24, %v324_v5  ;;  %v2126_v36 = vor.u32 %v2125_v25, %v2121_v21  ;;  %v336_v38 = vshll.u32 %v231_v23, 16  ;;  %v5220_v24 = vld [vmem:[%s6524_s30 + $0x30] sm:$0xf] }
  0x27   : > { %v340_v39 = vshrl.u32 %v231_v23, 16  ;;  %v5034_v42 = vcombine.low %v315_v19, %v325_v35  ;;  %v2117_v43 = vrot.slane %v2116_v29, 4  ;;  %v329_v44 = vrot.slane %v327_v33, 4  ;;  %v6629_v33 = vld [vmem:[%s6524_s30 + $0x34] sm:$0xf] }
  0x28   : > { %v332_v45 = vrot.slane %v330_v34, 5  ;;  %v2127_v47 = vrot.slane %v2126_v36, 4  ;;  %v338_v48 = vrot.slane %v336_v38, 5  ;;  %v346_v50 = vshll.u32 %v261_v31, 16 }
  0x29   : > { %v342_v49 = vrot.slane %v340_v39, 4  ;;  %5729 = vmatmul.mubr.msk.bf16.vlgmr.msra.gmra.mrb[0].mxu1 %vm712_vm3, %v5034_v42  ;;  %v2122_v52 = vsel %vm6550_vm4, %v2117_v43, %v2121_v21  ;;  %v2134_v55 = vshrl.u32 %v5217_v40, 16  ;;  %v2137_v56 = vshll.u32 %v5217_v40, 16  ;;  %v6637_v40 = vld [vmem:[%s6524_s30 + $0x38] sm:$0x1] }
  0x2a   : > { %v333_v53 = vor.u32 %v332_v45, %v329_v44  ;;  %5761 = vmatpush3.bf16.msra.mxu1 %v6537_v17  ;;  %v2132_v57 = vsel %vm6550_vm4, %v2127_v47, %v2131_v27  ;;  %v348_v59 = vrot.slane %v346_v50, 5  ;;  %v2143_v61 = vshll.u32 %v6600_v46, 16 }
  0x2b   : > { %v343_v58 = vor.u32 %v342_v49, %v338_v48  ;;  %v5261_v2 = vcombine.low %v2122_v52, %v2132_v57  ;;  %v2136_v5 = vrot.slane %v2134_v55, 4  ;;  %v2139_v6 = vrot.slane %v2137_v56, 5  ;;  %6292 = vmatprep.subr.msk.bf16.mxu1 %vm761_vm0, %v5113_v51  ;;  %v234_v52 = vld [vmem:[%s6524_s30 + $0x30] sm:$0xf] }
  0x2c   : > { %v334_v4 = vrot.slane %v333_v53, 4  ;;  %v2145_v9 = vrot.slane %v2143_v61, 5  ;;  %v2147_v17 = vshrl.u32 %v6600_v46, 16  ;;  %v2153_v10 = vshll.u32 %v6609_v54, 16 }
  0x2d   : > { %v344_v8 = vrot.slane %v343_v58, 4  ;;  %5865 = vmatmul.mubr.msk.bf16.vlgmr.msra.gmra.mrb[0].mxu0 %vm712_vm3, %v5261_v2  ;;  %v2140_v12 = vor.u32 %v2139_v6, %v2136_v5  ;;  %v351_v14 = vshrl.u32 %v232_v0, 16  ;;  %v354_v18 = vshll.u32 %v232_v0, 16  ;;  %v235_v58 = vld [vmem:[%s6524_s30 + $0x34] sm:$0xf] }
  0x2e   : > { %v339_v11 = vsel %vm6550_vm4, %v334_v4, %v338_v48  ;;  %5897 = vmatpush3.bf16.msra.mxu0 %v6556_v37  ;;  %v2149_v20 = vrot.slane %v2147_v17, 4  ;;  %v2155_v21 = vrot.slane %v2153_v10, 5  ;;  %v360_v23 = vshll.u32 %v233_v7, 16  ;;  %v263_v4 = vld [vmem:[%s6524_s30 + $0x38] sm:$0x1] }
  0x2f   : > { %v349_v19 = vsel %vm6550_vm4, %v344_v8, %v348_v59  ;;  %v2141_v27 = vrot.slane %v2140_v12, 4  ;;  %v353_v29 = vrot.slane %v351_v14, 4  ;;  %v356_v31 = vrot.slane %v354_v18, 5  ;;  %6297 = vmatprep.subr.msk.bf16.mxu0 %vm761_vm0, %v6543_v26  ;;  %v5223_v12 = vld [vmem:[%s6524_s30 + $0x3c] sm:$0xf] }
  0x30   : > { %v5035_v25 = vcombine.low %v339_v11, %v349_v19  ;;  %v2150_v34 = vor.u32 %v2149_v20, %v2145_v9  ;;  %v362_v35 = vrot.slane %v360_v23, 5  ;;  %v364_v37 = vshrl.u32 %v233_v7, 16  ;;  %v6654_v20 = vld [vmem:[%s6524_s30 + $0x40] sm:$0xf] }
  0x31   : > { %v370_v36 = vshll.u32 %v262_v13, 16  ;;  %v2146_v38 = vsel %vm6550_vm4, %v2141_v27, %v2145_v9  ;;  %v357_v39 = vor.u32 %v356_v31, %v353_v29  ;;  %v2158_v42 = vshrl.u32 %v5220_v24, 16 }
  0x32   : > { %5732 = vmatprep.mubr.msk.bf16.mxu1 %vm712_vm3, %v5035_v25  ;;  %v2161_v43 = vshll.u32 %v5220_v24, 16  ;;  %v2151_v44 = vrot.slane %v2150_v34, 4  ;;  %v366_v45 = vrot.slane %v364_v37, 4  ;;  %v2167_v26 = vshll.u32 %v6629_v33, 16  ;;  %v6659_v34 = vld [vmem:[%s6524_s30 + $0x44] sm:$0x1] }
  0x33   : > { %v372_v47 = vrot.slane %v370_v36, 5  ;;  %v358_v48 = vrot.slane %v357_v39, 4  ;;  %v2160_v49 = vrot.slane %v2158_v42, 4  ;;  %v2171_v51 = vshrl.u32 %v6629_v33, 16  ;;  %v236_v42 = vld [vmem:[%s6524_s30 + $0x3c] sm:$0xf] }
  0x34   : > { %v2163_v50 = vrot.slane %v2161_v43, 5  ;;  %v2156_v53 = vsel %vm6550_vm4, %v2151_v44, %v2155_v21  ;;  %v367_v55 = vor.u32 %v366_v45, %v362_v35  ;;  %v2169_v56 = vrot.slane %v2167_v26, 5  ;;  %v237_v26 = vld [vmem:[%s6524_s30 + $0x40] sm:$0xf] }
  0x35   : > { %v2177_v57 = vshll.u32 %v6637_v40, 16  ;;  %v5262_v59 = vcombine.low %v2146_v38, %v2156_v53  ;;  %v363_v61 = vsel %vm6550_vm4, %v358_v48, %v362_v35  ;;  %v2173_v2 = vrot.slane %v2171_v51, 4 }
  0x36   : > { %v2164_v0 = vor.u32 %v2163_v50, %v2160_v49  ;;  %v368_v5 = vrot.slane %v367_v55, 4  ;;  %v375_v7 = vshrl.u32 %v234_v52, 16  ;;  %v378_v8 = vshll.u32 %v234_v52, 16 }
  0x37   : > { %v2179_v6 = vrot.slane %v2177_v57, 5  ;;  %5868 = vmatprep.mubr.msk.bf16.mxu0 %vm712_vm3, %v5262_v59  ;;  %v2174_v17 = vor.u32 %v2173_v2, %v2169_v56  ;;  %v384_v10 = vshll.u32 %v235_v58, 16  ;;  %v388_v11 = vshrl.u32 %v235_v58, 16  ;;  %v5226_v2 = vld [vmem:[%s6524_s30 + $0x48] sm:$0xf] }
  0x38   : > { %v2165_v9 = vrot.slane %v2164_v0, 4  ;;  %v373_v13 = vsel %vm6550_vm4, %v368_v5, %v372_v47  ;;  %v377_v14 = vrot.slane %v375_v7, 4  ;;  %v380_v18 = vrot.slane %v378_v8, 5  ;;  %v6677_v8 = vld [vmem:[%s6524_s30 + $0x4c] sm:$0xf] }
  0x39   : > { %v394_v19 = vshll.u32 %v263_v4, 16  ;;  %v5036_v21 = vcombine.low %v363_v61, %v373_v13  ;;  %v2175_v24 = vrot.slane %v2174_v17, 4  ;;  %v386_v25 = vrot.slane %v384_v10, 5  ;;  %v264_v61 = vld [vmem:[%s6524_s30 + $0x44] sm:$0x1] }
  0x3a   : > { %v2170_v23 = vsel %vm6550_vm4, %v2165_v9, %v2169_v56  ;;  %v381_v27 = vor.u32 %v380_v18, %v377_v14  ;;  %v390_v29 = vrot.slane %v388_v11, 4  ;;  %v2182_v35 = vshrl.u32 %v5223_v12, 16 }
  0x3b   : > { %v396_v31 = vrot.slane %v394_v19, 5  ;;  %5733 = vmatmul.mubr.msk.bf16.gmra.mrb[4].mxu1 %vm712_vm3, %v5036_v21  ;;  %v2180_v37 = vsel %vm6550_vm4, %v2175_v24, %v2179_v6  ;;  %v2185_v36 = vshll.u32 %v5223_v12, 16  ;;  %v2191_v38 = vshll.u32 %v6654_v20, 16 }
  0x3c   : > { %v2195_v39 = vshrl.u32 %v6654_v20, 16  ;;  %v5263_v43 = vcombine.low %v2170_v23, %v2180_v37  ;;  %v382_v44 = vrot.slane %v381_v27, 4  ;;  %v391_v45 = vor.u32 %v390_v29, %v386_v25  ;;  %v6685_v23 = vld [vmem:[%s6524_s30 + $0x50] sm:$0x1]  ;;  %v6689_v27 = vld [vmem:[%s6524_s30 + $0x48] sm:$0xf] }
  0x3d   : > { %v2184_v47 = vrot.slane %v2182_v35, 4  ;;  %v2187_v48 = vrot.slane %v2185_v36, 5  ;;  %v2193_v49 = vrot.slane %v2191_v38, 5  ;;  %v2201_v51 = vshll.u32 %v6659_v34, 16  ;;  %v6692_v36 = vld [vmem:[%s6524_s30 + $0x4c] sm:$0xf] }
  0x3e   : > { %v2197_v50 = vrot.slane %v2195_v39, 4  ;;  %5869 = vmatmul.mubr.msk.bf16.gmra.mrb[4].mxu0 %vm712_vm3, %v5263_v43  ;;  %v387_v52 = vsel %vm6550_vm4, %v382_v44, %v386_v25  ;;  %v392_v53 = vrot.slane %v391_v45, 4  ;;  %v399_v55 = vshrl.u32 %v236_v42, 16 }
  0x3f   : > { %v402_v56 = vshll.u32 %v236_v42, 16  ;;  %v2188_v57 = vor.u32 %v2187_v48, %v2184_v47  ;;  %v2203_v59 = vrot.slane %v2201_v51, 5  ;;  %v408_v0 = vshll.u32 %v237_v26, 16 }
  0x40   : > { %v2198_v58 = vor.u32 %v2197_v50, %v2193_v49  ;;  %v397_v4 = vsel %vm6550_vm4, %v392_v53, %v396_v31  ;;  %v401_v5 = vrot.slane %v399_v55, 4  ;;  %v412_v7 = vshrl.u32 %v237_v26, 16  ;;  %v265_v26 = vld [vmem:[%s6524_s30 + $0x50] sm:$0x1]  ;;  %v5229_v53 = vld [vmem:[%s6524_s30 + $0x54] sm:$0xf] }
  0x41   : > { %v404_v6 = vrot.slane %v402_v56, 5  ;;  %v5037_v9 = vcombine.low %v387_v52, %v397_v4  ;;  %v2189_v17 = vrot.slane %v2188_v57, 4  ;;  %v410_v11 = vrot.slane %v408_v0, 5  ;;  %v6708_v4 = vld [vmem:[%s6524_s30 + $0x58] sm:$0xf] }
  0x42   : > { %v2199_v10 = vrot.slane %v2198_v58, 4  ;;  %v414_v13 = vrot.slane %v412_v7, 4  ;;  %v418_v14 = vshll.u32 %v264_v61, 16  ;;  %v2206_v18 = vshrl.u32 %v5226_v2, 16 }
  0x43   : > { %v405_v12 = vor.u32 %v404_v6, %v401_v5  ;;  %5736 = vmatprep.mubr.msk.bf16.mxu1 %vm712_vm3, %v5037_v9  ;;  %v2194_v19 = vsel %vm6550_vm4, %v2189_v17, %v2193_v49  ;;  %v2209_v24 = vshll.u32 %v5226_v2, 16  ;;  %v2215_v25 = vshll.u32 %v6677_v8, 16 }
  0x44   : > { %v2204_v21 = vsel %vm6550_vm4, %v2199_v10, %v2203_v59  ;;  %v415_v35 = vor.u32 %v414_v13, %v410_v11  ;;  %v420_v37 = vrot.slane %v418_v14, 5  ;;  %v2208_v38 = vrot.slane %v2206_v18, 4 }
  0x45   : > { %v5264_v29 = vcombine.low %v2194_v19, %v2204_v21  ;;  %v406_v31 = vrot.slane %v405_v12, 4  ;;  %v2211_v39 = vrot.slane %v2209_v24, 5  ;;  %v2217_v42 = vrot.slane %v2215_v25, 5  ;;  %v6714_v12 = vld [vmem:[%s6524_s30 + $0x5c] sm:$0x1] }
  0x46   : > { %v2219_v43 = vshrl.u32 %v6677_v8, 16  ;;  %v416_v45 = vrot.slane %v415_v35, 4  ;;  %v2225_v47 = vshll.u32 %v6685_v23, 16  ;;  %v423_v48 = vshrl.u32 %v6689_v27, 16  ;;  %v6718_v24 = vld [vmem:[%s6524_s30 + $0x54] sm:$0xf] }
  0x47   : > { %5872 = vmatprep.mubr.msk.bf16.mxu0 %vm712_vm3, %v5264_v29  ;;  %v411_v44 = vsel %vm6550_vm4, %v406_v31, %v410_v11  ;;  %v2212_v49 = vor.u32 %v2211_v39, %v2208_v38  ;;  %v426_v51 = vshll.u32 %v6689_v27, 16  ;;  %v432_v52 = vshll.u32 %v6692_v36, 16 }
  0x48   : > { %v2221_v50 = vrot.slane %v2219_v43, 4  ;;  %v421_v55 = vsel %vm6550_vm4, %v416_v45, %v420_v37  ;;  %v2227_v56 = vrot.slane %v2225_v47, 5  ;;  %v425_v57 = vrot.slane %v423_v48, 4  ;;  %v6724_v37 = vld [vmem:[%s6524_s30 + $0x58] sm:$0xf] }
  0x49   : > { %v436_v58 = vshrl.u32 %v6692_v36, 16  ;;  %v5038_v59 = vcombine.low %v411_v44, %v421_v55  ;;  %v2213_v61 = vrot.slane %v2212_v49, 4  ;;  %v428_v2 = vrot.slane %v426_v51, 5 }
  0x4a   : > { %v2222_v0 = vor.u32 %v2221_v50, %v2217_v42  ;;  %v434_v5 = vrot.slane %v432_v52, 5  ;;  %v442_v7 = vshll.u32 %v265_v26, 16  ;;  %v2230_v9 = vshrl.u32 %v5229_v53, 16  ;;  %v266_v26 = vld [vmem:[%s6524_s30 + $0x5c] sm:$0x1] }
  0x4b   : > { %v438_v6 = vrot.slane %v436_v58, 4  ;;  %5737 = vmatmul.mubr.msk.bf16.gmra.mrb[8].mxu1 %vm712_vm3, %v5038_v59  ;;  %v2218_v17 = vsel %vm6550_vm4, %v2213_v61, %v2217_v42  ;;  %v429_v11 = vor.u32 %v428_v2, %v425_v57  ;;  %v2233_v13 = vshll.u32 %v5229_v53, 16  ;;  %v5232_v53 = vld [vmem:[%s6524_s30 + $0x60] sm:$0xf]  ;;  %v6738_v59 = vld [vmem:[%s6524_s30 + $0x64] sm:$0xf] }
  0x4c   : > { %v2223_v10 = vrot.slane %v2222_v0, 4  ;;  %v444_v18 = vrot.slane %v442_v7, 5  ;;  %v2232_v19 = vrot.slane %v2230_v9, 4  ;;  %v2239_v21 = vshll.u32 %v6708_v4, 16  ;;  %v6745_v9 = vld [vmem:[%s6524_s30 + $0x68] sm:$0x1] }
  0x4d   : > { %v439_v14 = vor.u32 %v438_v6, %v434_v5  ;;  %v430_v29 = vrot.slane %v429_v11, 4  ;;  %v2235_v31 = vrot.slane %v2233_v13, 5  ;;  %v2243_v35 = vshrl.u32 %v6708_v4, 16 }
  0x4e   : > { %v2228_v25 = vsel %vm6550_vm4, %v2223_v10, %v2227_v56  ;;  %v2241_v42 = vrot.slane %v2239_v21, 5  ;;  %v2249_v43 = vshll.u32 %v6714_v12, 16  ;;  %v447_v48 = vshrl.u32 %v6718_v24, 16 }
  0x4f   : > { %v5265_v38 = vcombine.low %v2218_v17, %v2228_v25  ;;  %v440_v39 = vrot.slane %v439_v14, 4  ;;  %v435_v44 = vsel %vm6550_vm4, %v430_v29, %v434_v5  ;;  %v2236_v45 = vor.u32 %v2235_v31, %v2232_v19  ;;  %v6749_v19 = vld [vmem:[%s6524_s30 + $0x60] sm:$0xf] }
  0x50   : > { %v2245_v47 = vrot.slane %v2243_v35, 4  ;;  %v2251_v50 = vrot.slane %v2249_v43, 5  ;;  %v450_v51 = vshll.u32 %v6718_v24, 16  ;;  %v456_v52 = vshll.u32 %v6724_v37, 16  ;;  %v6755_v35 = vld [vmem:[%s6524_s30 + $0x64] sm:$0xf] }
  0x51   : > { %5873 = vmatmul.mubr.msk.bf16.gmra.mrb[8].mxu0 %vm712_vm3, %v5265_v38  ;;  %v445_v49 = vsel %vm6550_vm4, %v440_v39, %v444_v18  ;;  %v2237_v56 = vrot.slane %v2236_v45, 4  ;;  %v449_v58 = vrot.slane %v447_v48, 4  ;;  %v460_v2 = vshrl.u32 %v6724_v37, 16 }
  0x52   : > { %v5039_v55 = vcombine.low %v435_v44, %v445_v49  ;;  %v2246_v57 = vor.u32 %v2245_v47, %v2241_v42  ;;  %v452_v61 = vrot.slane %v450_v51, 5  ;;  %v458_v0 = vrot.slane %v456_v52, 5 }
  0x53   : > { %v466_v5 = vshll.u32 %v266_v26, 16  ;;  %v2242_v6 = vsel %vm6550_vm4, %v2237_v56, %v2241_v42  ;;  %v2254_v17 = vshrl.u32 %v5232_v53, 16  ;;  %v2257_v10 = vshll.u32 %v5232_v53, 16 }
  0x54   : > { %5740 = vmatprep.mubr.msk.bf16.mxu1 %vm712_vm3, %v5039_v55  ;;  %v2247_v7 = vrot.slane %v2246_v57, 4  ;;  %v453_v11 = vor.u32 %v452_v61, %v449_v58  ;;  %v462_v13 = vrot.slane %v460_v2, 4  ;;  %v2263_v18 = vshll.u32 %v6738_v59, 16  ;;  %v5292_v58 = vld [vmem:[%s6524_s30 + $0xc] sm:$0xe] }
  0x55   : > { %v468_v14 = vrot.slane %v466_v5, 5  ;;  %v2256_v25 = vrot.slane %v2254_v17, 4  ;;  %v2259_v29 = vrot.slane %v2257_v10, 5  ;;  %v2267_v31 = vshrl.u32 %v6738_v59, 16 }
  0x56   : > { %v2252_v21 = vsel %vm6550_vm4, %v2247_v7, %v2251_v50  ;;  %v454_v39 = vrot.slane %v453_v11, 4  ;;  %v463_v42 = vor.u32 %v462_v13, %v458_v0  ;;  %v2265_v43 = vrot.slane %v2263_v18, 5  ;;  %v267_v50 = vld [vmem:[%s6524_s30 + $0x68] sm:$0x1] }
  0x57   : > { %v5266_v38 = vcombine.low %v2242_v6, %v2252_v21  ;;  %v2260_v44 = vor.u32 %v2259_v29, %v2256_v25  ;;  %v2269_v45 = vrot.slane %v2267_v31, 4  ;;  %v2273_v47 = vshll.u32 %v6745_v9, 16  ;;  %v6783_v29 = vld [vmem:[%s6524_s30 + $0x70] sm:$0xf] }
  0x58   : > { %v471_v26 = vshrl.u32 %v6749_v19, 16  ;;  %v459_v48 = vsel %vm6550_vm4, %v454_v39, %v458_v0  ;;  %v464_v49 = vrot.slane %v463_v42, 4  ;;  %v474_v51 = vshll.u32 %v6749_v19, 16  ;;  %v6770_v0 = vld [vmem:[%s6524_s30 + $0x6c] sm:$0xf] }
  0x59   : > { %5876 = vmatprep.mubr.msk.bf16.mxu0 %vm712_vm3, %v5266_v38  ;;  %v480_v52 = vshll.u32 %v6755_v35, 16  ;;  %v2261_v53 = vrot.slane %v2260_v44, 4  ;;  %v2270_v55 = vor.u32 %v2269_v45, %v2265_v43  ;;  %v2275_v56 = vrot.slane %v2273_v47, 5 }
  0x5a   : > { %v473_v57 = vrot.slane %v471_v26, 4  ;;  %v469_v61 = vsel %vm6550_vm4, %v464_v49, %v468_v14  ;;  %v476_v2 = vrot.slane %v474_v51, 5  ;;  %v484_v6 = vshrl.u32 %v6755_v35, 16  ;;  %v268_v26 = vld [vmem:[%s6524_s30 + $0x74] sm:$0x1] }
  0x5b   : > { %v482_v5 = vrot.slane %v480_v52, 5  ;;  %v5040_v7 = vcombine.low %v459_v48, %v469_v61  ;;  %v2266_v17 = vsel %vm6550_vm4, %v2261_v53, %v2265_v43  ;;  %v2271_v10 = vrot.slane %v2270_v55, 4  ;;  %v5293_v48 = vld [vmem:[%s6524_s30 + $0x18] sm:$0xe] }
  0x5c   : > { %v490_v11 = vshll.u32 %v267_v50, 16  ;;  %v477_v14 = vor.u32 %v476_v2, %v473_v57  ;;  %v486_v18 = vrot.slane %v484_v6, 4  ;;  %v5308_v21 = vrot.slane %v5292_v58, 9  ;;  %v6802_v53 = vld [vmem:[%s6524_s30 + $0x78] sm:$0xf] }
  0x5d   : > { %v2831_v25 = vrot.slane %v2829_v62, 4  ;;  %5741 = vmatmul.mubr.msk.bf16.gmra.mrb[12].mxu1 %vm712_vm3, %v5040_v7  ;;  %v2276_v31 = vsel %vm6550_vm4, %v2271_v10, %v2275_v56  ;;  %v495_v39 = vshrl.u32 %v6770_v0, 16  ;;  %v498_v42 = vshll.u32 %v6770_v0, 16  ;;  %v269_v57 = vld [vmem:[%s6524_s30 + $0x80] sm:$0x1] }
  0x5e   : > { %v492_v38 = vrot.slane %v490_v11, 5  ;;  %v5267_v43 = vcombine.low %v2266_v17, %v2276_v31  ;;  %v478_v44 = vrot.slane %v477_v14, 4  ;;  %v487_v45 = vor.u32 %v486_v18, %v482_v5  ;;  %v5294_v10 = vld [vmem:[%s6524_s30 + $0x24] sm:$0xe] }
  0x5f   : > { %v2830_v47 = vsel %vm6776_vm7, %v5308_v21, %v2829_v62  ;;  %v2833_v49 = vsel %vm6776_vm7, %v2831_v25, %v2832_v63  ;;  %v497_v50 = vrot.slane %v495_v39, 4  ;;  %v500_v51 = vrot.slane %v498_v42, 5  ;;  %v6828_v39 = vld [vmem:[%s6524_s30 + $0x84] sm:$0xf] }
  0x60   : > { %v504_v52 = vshll.u32 %v6783_v29, 16  ;;  %5877 = vmatmul.mubr.msk.bf16.gmra.mrb[12].mxu0 %vm712_vm3, %v5267_v43  ;;  %v483_v15 = vsel %vm6550_vm4, %v478_v44, %v482_v5  ;;  %v488_v62 = vrot.slane %v487_v45, 4  ;;  %v5325_v55 = vcombine.low %v2830_v47, %v2833_v49  ;;  %v6836_v43 = vld [vmem:[%s6524_s30 + $0x88] sm:$0xf] }
  0x61   : > { %v508_v56 = vshrl.u32 %v6783_v29, 16  ;;  %v501_v63 = vor.u32 %v500_v51, %v497_v50  ;;  %v514_v61 = vshll.u32 %v268_v26, 16  ;;  %v5309_v2 = vrot.slane %v5293_v48, 9 }
  0x62   : > { %v506_v58 = vrot.slane %v504_v52, 5  ;;  %v493_v6 = vsel %vm6550_vm4, %v488_v62, %v492_v38  ;;  %5898 = vmatprep.mubr.msk.bf16.mxu0 %vm712_vm3, %v5325_v55  ;;  %v2840_v5 = vsel %vm6776_vm7, %v6593_v30, %v2839_v28  ;;  %v519_v17 = vshrl.u32 %v6802_v53, 16  ;;  %v270_v52 = vld [vmem:[%s6524_s30 + $0x8c] sm:$0x1] }
  0x63   : > { %v510_v7 = vrot.slane %v508_v56, 4  ;;  %v5041_v11 = vcombine.low %v483_v15, %v493_v6  ;;  %v502_v14 = vrot.slane %v501_v63, 4  ;;  %v516_v18 = vrot.slane %v514_v61, 5 }
  0x64   : > { %v2837_v21 = vsel %vm6776_vm7, %v5309_v2, %v2836_v22  ;;  %v521_v38 = vrot.slane %v519_v17, 4  ;;  %v522_v1 = vshll.u32 %v6802_v53, 16  ;;  %v528_v30 = vshll.u32 %v6809_v16, 16  ;;  %v6841_v22 = vld [vmem:[%s8372_s1 + $0x1c] sm:$0xf] }
  0x65   : > { %v511_v25 = vor.u32 %v510_v7, %v506_v58  ;;  %v5326_v31 = vcombine.low %v2837_v21, %v2840_v5  ;;  %5744 = vmatprep.mubr.msk.bf16.mxu1 %vm712_vm3, %v5041_v11  ;;  %v507_v28 = vsel %vm6550_vm4, %v502_v14, %v506_v58  ;;  %v532_v60 = vshrl.u32 %v6809_v16, 16  ;;  %v6860_v5 = vld [vmem:[%s6524_s30 + $0x90] sm:$0xf] }
  0x66   : > { %v538_v42 = vshll.u32 %v269_v57, 16  ;;  %v524_v45 = vrot.slane %v522_v1, 5  ;;  %v5310_v47 = vrot.slane %v5294_v10, 9  ;;  %v2843_v26 = vrot.slane %v6600_v46, 5  ;;  %v5295_v57 = vld [vmem:[%s6524_s30 + $0x30] sm:$0xe] }
  0x67   : > { %v512_v44 = vrot.slane %v511_v25, 4  ;;  %v530_v48 = vrot.slane %v528_v30, 5  ;;  %v534_v49 = vrot.slane %v532_v60, 4  ;;  %v2846_v51 = vrot.slane %v6609_v54, 5  ;;  %v6872_v30 = vld [vmem:[%s6524_s30 + $0x94] sm:$0xf] }
  0x68   : > { %v540_v50 = vrot.slane %v538_v42, 5  ;;  %5899 = vmatmul.mubr.msk.bf16.vlgmr.msra.gmra.mrb[0].mxu0 %vm712_vm3, %v5326_v31  ;;  %v525_v62 = vor.u32 %v524_v45, %v521_v38  ;;  %v2844_v55 = vsel %vm6776_vm7, %v5310_v47, %v2843_v26  ;;  %v2845_v56 = vrot.slane %v2843_v26, 4  ;;  %v271_v60 = vld [vmem:[%s6524_s30 + $0x98] sm:$0x1]  ;;  %v5296_v26 = vld [vmem:[%s6524_s30 + $0x3c] sm:$0xe] }
  0x69   : > { %v517_v15 = vsel %vm6550_vm4, %v512_v44, %v516_v18  ;;  %5931 = vmatpush3.bf16.msra.mxu0 %v6560_v41  ;;  %v535_v46 = vor.u32 %v534_v49, %v530_v48  ;;  %v543_v58 = vshrl.u32 %v6828_v39, 16  ;;  %v546_v54 = vshll.u32 %v6828_v39, 16 }
  0x6a   : > { %v5042_v63 = vcombine.low %v507_v28, %v517_v15  ;;  %v526_v61 = vrot.slane %v525_v62, 4  ;;  %v2847_v2 = vsel %vm6776_vm7, %v2845_v56, %v2846_v51  ;;  %v552_v6 = vshll.u32 %v6836_v43, 16  ;;  %6298 = vmatprep.subr.msk.bf16.mxu0 %vm761_vm0, %v6841_v22 }
  0x6b   : > { %v556_v7 = vshrl.u32 %v6836_v43, 16  ;;  %v536_v41 = vrot.slane %v535_v46, 4  ;;  %v5327_v17 = vcombine.low %v2844_v55, %v2847_v2  ;;  %v545_v10 = vrot.slane %v543_v58, 4  ;;  %v6892_v46 = vld [vmem:[%s6524_s30 + $0xa0] sm:$0xf] }
  0x6c   : > { %5745 = vmatmul.mubr.msk.bf16.gmra.mrb[16].mxu1 %vm712_vm3, %v5042_v63  ;;  %v548_v11 = vrot.slane %v546_v54, 5  ;;  %v531_v14 = vsel %vm6550_vm4, %v526_v61, %v530_v48  ;;  %v554_v18 = vrot.slane %v552_v6, 5  ;;  %v562_v25 = vshll.u32 %v270_v52, 16  ;;  %v6881_v52 = vld [vmem:[%s6524_s30 + $0x9c] sm:$0xf] }
  0x6d   : > { %v558_v21 = vrot.slane %v556_v7, 4  ;;  %v541_v31 = vsel %vm6550_vm4, %v536_v41, %v540_v50  ;;  %5902 = vmatprep.mubr.msk.bf16.mxu0 %vm712_vm3, %v5327_v17  ;;  %v5311_v1 = vrot.slane %v5295_v57, 9  ;;  %v2850_v28 = vrot.slane %v6629_v33, 5 }
  0x6e   : > { %v549_v38 = vor.u32 %v548_v11, %v545_v10  ;;  %v5043_v42 = vcombine.low %v531_v14, %v541_v31  ;;  %v564_v45 = vrot.slane %v562_v25, 5  ;;  %v2853_v47 = vrot.slane %v6637_v40, 5  ;;  %v272_v10 = vld [vmem:[%s6524_s30 + $0xa4] sm:$0x1]  ;;  %v5297_v11 = vld [vmem:[%s6524_s30 + $0x48] sm:$0xe] }
  0x6f   : > { %v559_v44 = vor.u32 %v558_v21, %v554_v18  ;;  %v2851_v49 = vsel %vm6776_vm7, %v5311_v1, %v2850_v28  ;;  %v2852_v50 = vrot.slane %v2850_v28, 4  ;;  %v567_v51 = vshrl.u32 %v6860_v5, 16 }
  0x70   : > { %v550_v48 = vrot.slane %v549_v38, 4  ;;  %5748 = vmatprep.mubr.msk.bf16.mxu1 %vm712_vm3, %v5043_v42  ;;  %v570_v15 = vshll.u32 %v6860_v5, 16  ;;  %v576_v62 = vshll.u32 %v6872_v30, 16  ;;  %v580_v40 = vshrl.u32 %v6872_v30, 16 }
  0x71   : > { %v560_v33 = vrot.slane %v559_v44, 4  ;;  %v2854_v56 = vsel %vm6776_vm7, %v2852_v50, %v2853_v47  ;;  %v569_v57 = vrot.slane %v567_v51, 4  ;;  %v586_v63 = vshll.u32 %v271_v60, 16 }
  0x72   : > { %v555_v55 = vsel %vm6550_vm4, %v550_v48, %v554_v18  ;;  %v5328_v54 = vcombine.low %v2851_v49, %v2854_v56  ;;  %v572_v61 = vrot.slane %v570_v15, 5  ;;  %v578_v2 = vrot.slane %v576_v62, 5  ;;  %v6918_v56 = vld [vmem:[%s6524_s30 + $0xac] sm:$0xf] }
  0x73   : > { %v565_v58 = vsel %vm6550_vm4, %v560_v33, %v564_v45  ;;  %v582_v7 = vrot.slane %v580_v40, 4  ;;  %v588_v41 = vrot.slane %v586_v63, 5  ;;  %v5312_v17 = vrot.slane %v5296_v26, 9  ;;  %v6913_v33 = vld [vmem:[%s6524_s30 + $0xa8] sm:$0xf] }
  0x74   : > { %v5044_v6 = vcombine.low %v555_v55, %v565_v58  ;;  %5903 = vmatmul.mubr.msk.bf16.gmra.mrb[4].mxu0 %vm712_vm3, %v5328_v54  ;;  %v573_v14 = vor.u32 %v572_v61, %v569_v57  ;;  %v2857_v18 = vrot.slane %v6654_v20, 5  ;;  %v2860_v21 = vrot.slane %v6659_v34, 5  ;;  %v273_v61 = vld [vmem:[%s6524_s30 + $0xb0] sm:$0x1] }
  0x75   : > { %v591_v25 = vshrl.u32 %v6881_v52, 16  ;;  %v583_v31 = vor.u32 %v582_v7, %v578_v2  ;;  %v594_v38 = vshll.u32 %v6881_v52, 16  ;;  %v600_v1 = vshll.u32 %v6892_v46, 16 }
  0x76   : > { %5749 = vmatmul.mubr.msk.bf16.gmra.mrb[20].mxu1 %vm712_vm3, %v5044_v6  ;;  %v604_v28 = vshrl.u32 %v6892_v46, 16  ;;  %v574_v60 = vrot.slane %v573_v14, 4  ;;  %v2858_v42 = vsel %vm6776_vm7, %v5312_v17, %v2857_v18  ;;  %v2859_v20 = vrot.slane %v2857_v18, 4  ;;  %v6933_v14 = vld [vmem:[%s6524_s30 + $0xb4] sm:$0xf] }
  0x77   : > { %v593_v44 = vrot.slane %v591_v25, 4  ;;  %v584_v34 = vrot.slane %v583_v31, 4  ;;  %v596_v45 = vrot.slane %v594_v38, 5  ;;  %v602_v47 = vrot.slane %v600_v1, 5 }
  0x78   : > { %v606_v26 = vrot.slane %v604_v28, 4  ;;  %v579_v48 = vsel %vm6550_vm4, %v574_v60, %v578_v2  ;;  %v2861_v49 = vsel %vm6776_vm7, %v2859_v20, %v2860_v21  ;;  %v610_v50 = vshll.u32 %v272_v10, 16  ;;  %v5298_v2 = vld [vmem:[%s6524_s30 + $0x54] sm:$0xe] }
  0x79   : > { %v5313_v51 = vrot.slane %v5297_v11, 9  ;;  %v589_v15 = vsel %vm6550_vm4, %v584_v34, %v588_v41  ;;  %v5329_v62 = vcombine.low %v2858_v42, %v2861_v49  ;;  %v597_v40 = vor.u32 %v596_v45, %v593_v44  ;;  %v6942_v42 = vld [vmem:[%s6524_s30 + $0xb8] sm:$0xf]  ;;  %v274_v49 = vld [vmem:[%s6524_s30 + $0xbc] sm:$0x1] }
  0x7a   : > { %v607_v55 = vor.u32 %v606_v26, %v602_v47  ;;  %v5045_v57 = vcombine.low %v579_v48, %v589_v15  ;;  %v612_v63 = vrot.slane %v610_v50, 5  ;;  %v2864_v58 = vrot.slane %v6677_v8, 5 }
  0x7b   : > { %v2867_v54 = vrot.slane %v6685_v23, 5  ;;  %5906 = vmatprep.mubr.msk.bf16.mxu0 %vm712_vm3, %v5329_v62  ;;  %v598_v6 = vrot.slane %v597_v40, 4  ;;  %v615_v41 = vshrl.u32 %v6913_v33, 16  ;;  %v618_v17 = vshll.u32 %v6913_v33, 16 }
  0x7c   : > { %v608_v7 = vrot.slane %v607_v55, 4  ;;  %5752 = vmatprep.mubr.msk.bf16.mxu1 %vm712_vm3, %v5045_v57  ;;  %v2865_v10 = vsel %vm6776_vm7, %v5313_v51, %v2864_v58  ;;  %v2866_v11 = vrot.slane %v2864_v58, 4  ;;  %v624_v8 = vshll.u32 %v6918_v56, 16  ;;  %v5299_v55 = vld [vmem:[%s6524_s30 + $0x60] sm:$0xe] }
  0x7d   : > { %v628_v23 = vshrl.u32 %v6918_v56, 16  ;;  %v603_v18 = vsel %vm6550_vm4, %v598_v6, %v602_v47  ;;  %v617_v25 = vrot.slane %v615_v41, 4  ;;  %v620_v31 = vrot.slane %v618_v17, 5  ;;  %v5300_v6 = vld [vmem:[%s6524_s30 + $0x6c] sm:$0xe] }
  0x7e   : > { %v613_v21 = vsel %vm6550_vm4, %v608_v7, %v612_v63  ;;  %v2868_v1 = vsel %vm6776_vm7, %v2866_v11, %v2867_v54  ;;  %v626_v28 = vrot.slane %v624_v8, 5  ;;  %v634_v34 = vshll.u32 %v273_v61, 16  ;;  %v5236_v11 = vld [vmem:[%s6524_s30 + $0x70] sm:$0xf]  ;;  %v5237_v8 = vld [vmem:[%s6524_s30 + $0x74] sm:$0x1] }
  0x7f   : > { %v5046_v38 = vcombine.low %v603_v18, %v613_v21  ;;  %v630_v60 = vrot.slane %v628_v23, 4  ;;  %v5330_v20 = vcombine.low %v2865_v10, %v2868_v1  ;;  %v621_v44 = vor.u32 %v620_v31, %v617_v25 }
  0x80   : > { %v5314_v45 = vrot.slane %v5298_v2, 9  ;;  %v2871_v26 = vrot.slane %v6708_v4, 5  ;;  %v2874_v48 = vrot.slane %v6714_v12, 5  ;;  %v639_v50 = vshrl.u32 %v6933_v14, 16 }
  0x81   : > { %5753 = vmatmul.mubr.msk.bf16.gmra.mrb[24].mxu1 %vm712_vm3, %v5046_v38  ;;  %v631_v47 = vor.u32 %v630_v60, %v626_v28  ;;  %5907 = vmatmul.mubr.msk.bf16.gmra.mrb[8].mxu0 %vm712_vm3, %v5330_v20  ;;  %v622_v51 = vrot.slane %v621_v44, 4  ;;  %v636_v15 = vrot.slane %v634_v34, 5  ;;  %v642_v62 = vshll.u32 %v6933_v14, 16 }
  0x82   : > { %v648_v40 = vshll.u32 %v6942_v42, 16  ;;  %v2872_v4 = vsel %vm6776_vm7, %v5314_v45, %v2871_v26  ;;  %v2873_v12 = vrot.slane %v2871_v26, 4  ;;  %v641_v63 = vrot.slane %v639_v50, 4 }
  0x83   : > { %v632_v57 = vrot.slane %v631_v47, 4  ;;  %v627_v58 = vsel %vm6550_vm4, %v622_v51, %v626_v28  ;;  %v644_v54 = vrot.slane %v642_v62, 5  ;;  %v652_v2 = vshrl.u32 %v6942_v42, 16  ;;  %v5301_v47 = vld [vmem:[%s6524_s30 + $0x78] sm:$0xe] }
  0x84   : > { %v650_v61 = vrot.slane %v648_v40, 5  ;;  %v2875_v41 = vsel %vm6776_vm7, %v2873_v12, %v2874_v48  ;;  %v658_v17 = vshll.u32 %v274_v49, 16  ;;  %v5315_v10 = vrot.slane %v5299_v55, 9  ;;  %v6373_v51 = vld [vmem:[%s6524_s30] sm:$0xf] }
  0x85   : > { %v637_v7 = vsel %vm6550_vm4, %v632_v57, %v636_v15  ;;  %v5331_v18 = vcombine.low %v2872_v4, %v2875_v41  ;;  %v645_v21 = vor.u32 %v644_v54, %v641_v63  ;;  %v654_v25 = vrot.slane %v652_v2, 4  ;;  %v6980_v15 = vld [vmem:[%s6524_s30 + $0x4] sm:$0xf]  ;;  %v6984_v40 = vld [vmem:[%s6524_s30 + $0x7c] sm:$0xf] }
  0x86   : > { %v5047_v23 = vcombine.low %v627_v58, %v637_v7  ;;  %v660_v31 = vrot.slane %v658_v17, 5  ;;  %v2878_v38 = vrot.slane %v6738_v59, 5  ;;  %v2881_v1 = vrot.slane %v6745_v9, 5  ;;  %v6987_v55 = vld [vmem:[%s6524_s30 + $0x80] sm:$0x1] }
  0x87   : > { %v5316_v28 = vrot.slane %v5300_v6, 9  ;;  %5910 = vmatprep.mubr.msk.bf16.mxu0 %vm712_vm3, %v5331_v18  ;;  %v646_v60 = vrot.slane %v645_v21, 4  ;;  %v655_v20 = vor.u32 %v654_v25, %v650_v61  ;;  %v2885_v44 = vrot.slane %v5236_v11, 5  ;;  %v5242_v57 = vld [vmem:[%s6524_s30 + $0x88] sm:$0xf] }
  0x88   : > { %5756 = vmatprep.mubr.msk.bf16.mxu1 %vm712_vm3, %v5047_v23  ;;  %v2888_v34 = vrot.slane %v5237_v8, 5  ;;  %v2879_v45 = vsel %vm6776_vm7, %v5315_v10, %v2878_v38  ;;  %v2880_v59 = vrot.slane %v2878_v38, 4  ;;  %v5065_v62 = vcombine.low %v6373_v51, %v6980_v15  ;;  %v5243_v54 = vld [vmem:[%s6524_s30 + $0x8c] sm:$0x1]  ;;  %v5245_v17 = vld [vmem:[%s6524_s30 + $0x94] sm:$0xf] }
  0x89   : > { %v651_v9 = vsel %vm6550_vm4, %v646_v60, %v650_v61  ;;  %v656_v26 = vrot.slane %v655_v20, 4  ;;  %v2886_v48 = vsel %vm6776_vm7, %v5316_v28, %v2885_v44  ;;  %v2887_v49 = vrot.slane %v2885_v44, 4  ;;  %v5302_v61 = vld [vmem:[%s6524_s30 + $0x84] sm:$0xe]  ;;  %v5303_v23 = vld [vmem:[%s6524_s30 + $0x90] sm:$0xe] }
  0x8a   : > { %v2882_v50 = vsel %vm6776_vm7, %v2880_v59, %v2881_v1  ;;  %v5317_v58 = vrot.slane %v5301_v47, 9  ;;  %v2892_v7 = vrot.slane %v6984_v40, 5  ;;  %v2895_v41 = vrot.slane %v6987_v55, 5  ;;  %v5246_v25 = vld [vmem:[%s6524_s30 + $0x98] sm:$0x1] }
  0x8b   : > { %v661_v4 = vsel %vm6550_vm4, %v656_v26, %v660_v31  ;;  %v5332_v12 = vcombine.low %v2879_v45, %v2882_v50  ;;  %v2889_v63 = vsel %vm6776_vm7, %v2887_v49, %v2888_v34  ;;  %v5318_v10 = vrot.slane %v5302_v61, 9  ;;  %v5248_v31 = vld [vmem:[%s6524_s30 + $0xa0] sm:$0xf]  ;;  %v5249_v60 = vld [vmem:[%s6524_s30 + $0xa4] sm:$0x1] }
  0x8c   : > { %v5048_v2 = vcombine.low %v651_v9, %v661_v4  ;;  %v5333_v6 = vcombine.low %v2886_v48, %v2889_v63  ;;  %v2899_v11 = vrot.slane %v5242_v57, 5  ;;  %v2902_v8 = vrot.slane %v5243_v54, 5  ;;  %v5304_v20 = vld [vmem:[%s6524_s30 + $0x9c] sm:$0xe]  ;;  %v6375_v44 = vld [vmem:[%s6524_s30 + $0xc] sm:$0xf] }
  0x8d   : > { %5911 = vmatmul.mubr.msk.bf16.gmra.mrb[12].mxu0 %vm712_vm3, %v5332_v12  ;;  %v2893_v18 = vsel %vm6776_vm7, %v5317_v58, %v2892_v7  ;;  %v2894_v21 = vrot.slane %v2892_v7, 4  ;;  %v2906_v28 = vrot.slane %v5245_v17, 5  ;;  %v7014_v34 = vld [vmem:[%s6524_s30 + $0x10] sm:$0xf]  ;;  %v6377_v47 = vld [vmem:[%s6524_s30 + $0x18] sm:$0xf] }
  0x8e   : > { %5757 = vmatmul.mubr.msk.bf16.gmra.mrb[28].mxu1 %vm712_vm3, %v5048_v2  ;;  %5914 = vmatprep.mubr.msk.bf16.mxu0 %vm712_vm3, %v5333_v6  ;;  %v2900_v38 = vsel %vm6776_vm7, %v5318_v10, %v2899_v11  ;;  %v2901_v1 = vrot.slane %v2899_v11, 4  ;;  %v5066_v45 = vcombine.low %v6375_v44, %v7014_v34  ;;  %v7021_v9 = vld [vmem:[%s6524_s30 + $0x1c] sm:$0xf]  ;;  %v5319_v48 = vrot.slane %v5303_v23, 9  ;;  %v5251_v57 = vld [vmem:[%s6524_s30 + $0xac] sm:$0xf] }
  0x8f   : > { %5762 = vmatprep.mubr.msk.bf16.mxu1 %vm712_vm3, %v5065_v62  ;;  %v2896_v59 = vsel %vm6776_vm7, %v2894_v21, %v2895_v41  ;;  %v5067_v26 = vcombine.low %v6377_v47, %v7021_v9  ;;  %v2908_v51 = vrot.slane %v2906_v28, 4  ;;  %v2909_v62 = vrot.slane %v5246_v25, 5  ;;  %v6379_v54 = vld [vmem:[%s8372_s1 + $0x8] sm:$0xf]  ;;  %v5254_v2 = vld [vmem:[%s6524_s30 + $0xb8] sm:$0xf] }
  0x90   : > { %v5334_v49 = vcombine.low %v2893_v18, %v2896_v59  ;;  %v2903_v50 = vsel %vm6776_vm7, %v2901_v1, %v2902_v8  ;;  %v5320_v12 = vrot.slane %v5304_v20, 9  ;;  %v2913_v63 = vrot.slane %v5248_v31, 5  ;;  %v7036_v7 = vld [vmem:[%s8372_s1 + $0xc] sm:$0xf]  ;;  %v5252_v10 = vld [vmem:[%s6524_s30 + $0xb0] sm:$0x1] }
  0x91   : > { %v5335_v4 = vcombine.low %v2900_v38, %v2903_v50  ;;  %v2916_v58 = vrot.slane %v5249_v60, 5  ;;  %v1480_v61 = vsel %vm761_vm0, %v6379_v54, 0  ;;  %v2907_v41 = vsel %vm6776_vm7, %v5319_v48, %v2906_v28  ;;  %v5305_v11 = vld [vmem:[%s6524_s30 + $0xa8] sm:$0xe]  ;;  %v5255_v25 = vld [vmem:[%s6524_s30 + $0xbc] sm:$0x1] }
  0x92   : > { %v2915_v6 = vrot.slane %v2913_v63, 4  ;;  %v2910_v17 = vsel %vm6776_vm7, %v2908_v51, %v2909_v62  ;;  %v2920_v8 = vrot.slane %v5251_v57, 5  ;;  %v2914_v23 = vsel %vm6776_vm7, %v5320_v12, %v2913_v63  ;;  %v5306_v31 = vld [vmem:[%s6524_s30 + $0xb4] sm:$0xe]  ;;  %v6380_v38 = vld [vmem:[%s6524_s30 + $0x24] sm:$0xf] }
  0x93   : > { %v2927_v21 = vrot.slane %v5254_v2, 5  ;;  %v7057_v1 = vld [vmem:[%s6524_s30 + $0x28] sm:$0xf]  ;;  %v5336_v60 = vcombine.low %v2907_v41, %v2910_v17  ;;  %v5321_v44 = vrot.slane %v5305_v11, 9  ;;  %v2923_v59 = vrot.slane %v5252_v10, 5 }
  0x94   : > { %v2917_v18 = vsel %vm6776_vm7, %v2915_v6, %v2916_v58  ;;  %v5068_v28 = vcombine.low %v6380_v38, %v7057_v1  ;;  %v6382_v47 = vld [vmem:[%s6524_s30 + $0x30] sm:$0xf]  ;;  %v2930_v51 = vrot.slane %v5255_v25, 5  ;;  %v5257_v62 = vld [vmem:[%s6524_s30 + $0xc4] sm:$0xf]  ;;  %v2315_v25 = vshrl.u32 %v6984_v40, 16 }
  0x95   : > { %5915 = vmatmul.mubr.msk.bf16.gmra.mrb[16].mxu0 %vm712_vm3, %v5334_v49  ;;  %v5337_v20 = vcombine.low %v2914_v23, %v2917_v18  ;;  %v5322_v49 = vrot.slane %v5306_v31, 9  ;;  %v2929_v50 = vrot.slane %v2927_v21, 4  ;;  %v2921_v57 = vsel %vm6776_vm7, %v5321_v44, %v2920_v8  ;;  %v5307_v12 = vld [vmem:[%s6524_s30 + $0xc0] sm:$0xe]  ;;  %v6384_v41 = vld [vmem:[%s6524_s30 + $0x3c] sm:$0xf] }
  0x96   : > { %5763 = vmatmul.mubr.msk.bf16.vlgmr.msra.gmra.mrb[0].mxu1 %vm712_vm3, %v5066_v45  ;;  %5918 = vmatprep.mubr.msk.bf16.mxu0 %vm712_vm3, %v5335_v4  ;;  %v2922_v45 = vrot.slane %v2920_v8, 4  ;;  %v2934_v63 = vrot.slane %v5257_v62, 5  ;;  %v5323_v6 = vrot.slane %v5307_v12, 9  ;;  %v7082_v17 = vld [vmem:[%s6524_s30 + $0x40] sm:$0xf]  ;;  %v5071_v18 = vcombine.low %v6689_v27, %v6692_v36  ;;  %v6336_v62 = vld [vmem:[%s6524_s30 + $0x24] sm:$0xff]  }
  0x97   : > { %5795 = vmatpush3.bf16.msra.mxu1 %v1480_v61  ;;  %5766 = vmatprep.mubr.msk.bf16.mxu1 %vm712_vm3, %v5067_v26  ;;  %v7062_v26 = vld [vmem:[%s6524_s30 + $0x34] sm:$0xf]  ;;  %v2928_v58 = vsel %vm6776_vm7, %v5322_v49, %v2927_v21  ;;  %v2931_v54 = vsel %vm6776_vm7, %v2929_v50, %v2930_v51  ;;  %v5258_v61 = vld [vmem:[%s6524_s30 + $0xc8] sm:$0x1]  ;;  %v5070_v10 = vcombine.low %v6384_v41, %v7082_v17  ;;  %v2311_v21 = vshll.u32 %v6984_v40, 16 }
  0x98   : > { %6293 = vmatprep.subr.msk.bf16.mxu1 %vm761_vm0, %v7036_v7  ;;  %v5069_v48 = vcombine.low %v6382_v47, %v7062_v26  ;;  %v2924_v4 = vsel %vm6776_vm7, %v2922_v45, %v2923_v59  ;;  %v5339_v11 = vcombine.low %v2928_v58, %v2931_v54  ;;  %v2936_v8 = vrot.slane %v2934_v63, 4  ;;  %v1218_v45 = vld [vmem:[%s6524_s30] sm:$0xe]  ;;  %v1219_v59 = vld [vmem:[%s6524_s30 + $0xc] sm:$0xe] }
  0x99   : > { %v5338_v2 = vcombine.low %v2921_v57, %v2924_v4  ;;  %v2937_v23 = vrot.slane %v5258_v61, 5  ;;  %v2935_v31 = vsel %vm6776_vm7, %v5323_v6, %v2934_v63  ;;  %v7097_v27 = vrot.slane %v2311_v21, 5  ;;  %v1222_v41 = vld [vmem:[%s6524_s30 + $0x30] sm:$0xe] }
  0x9a   : > { %v2317_v36 = vrot.slane %v2315_v25, 4  ;;  %v5073_v44 = vcombine.low %v6749_v19, %v6755_v35  ;;  %v2321_v47 = vshll.u32 %v6987_v55, 16  ;;  %v5097_v19 = vrot.slane %v1218_v45, 9 }
  0x9b   : > { %v2938_v38 = vsel %vm6776_vm7, %v2936_v8, %v2937_v23  ;;  %8394 = vst [vmem:[#allocation3_spill] sm:$0xff] %v7097_v27  ;;  %v5098_v35 = vrot.slane %v1219_v59, 9  ;;  %v1285_v4 = vrot.slane %v7021_v9, 5  ;;  %v1292_v12 = vrot.slane %v7057_v1, 5  ;;  %v1223_v8 = vld [vmem:[%s6524_s30 + $0x3c] sm:$0xe] }
  0x9c   : > { %v5340_v40 = vcombine.low %v2935_v31, %v2938_v38  ;;  %v2318_v49 = vor.u32 %v2317_v36, %v7097_v27  ;;  %v7117_v51 = vrot.slane %v2321_v47, 5  ;;  %v5074_v58 = vcombine.low %v6770_v0, %v6783_v29  ;;  %v1224_v31 = vld [vmem:[%s6524_s30 + $0x48] sm:$0xe]  ;;  %v6390_v59 = vld [vmem:[%s6524_s30 + $0x38] sm:$0x1] }
  0x9d   : > { %5919 = vmatmul.mubr.msk.bf16.gmra.mrb[20].mxu0 %vm712_vm3, %v5336_v60  ;;  %v5072_v60 = vcombine.low %v6718_v24, %v6724_v37  ;;  %v6387_v24 = vld [vmem:[%s6524_s30 + $0x14] sm:$0x1]  ;;  %v4126_v54 = vsel %vm761_vm0, %v6841_v22, 0  ;;  %v5075_v61 = vcombine.low %v6802_v53, %v6809_v16  ;;  %v5076_v6 = vcombine.low %v6828_v39, %v6836_v43  ;;  %v6388_v16 = vld [vmem:[%s6524_s30 + $0x20] sm:$0x1] }
  0x9e   : > { %5767 = vmatmul.mubr.msk.bf16.gmra.mrb[4].mxu1 %vm712_vm3, %v5068_v28  ;;  %5922 = vmatprep.mubr.msk.bf16.mxu0 %vm712_vm3, %v5337_v20  ;;  %v1278_v28 = vrot.slane %v7014_v34, 5  ;;  %v6334_v20 = vld [vmem:[%s6524_s30 + $0x18] sm:$0xff]   ;;  %v6386_v34 = vld [vmem:[%s6524_s30 + $0x8] sm:$0x1]  ;;  %v1281_v37 = vrot.slane %v6387_v24, 5  ;;  %8395 = vst [vmem:[#allocation4_spill] sm:$0xff] %v7117_v51  ;;  %v5077_v9 = vcombine.low %v6860_v5, %v6872_v30 }
  0x9f   : > { %5770 = vmatprep.mubr.msk.bf16.mxu1 %vm712_vm3, %v5069_v48  ;;  %v1271_v48 = vrot.slane %v6980_v15, 5  ;;  %v1274_v50 = vrot.slane %v6386_v34, 5  ;;  %v1220_v15 = vld [vmem:[%s6524_s30 + $0x18] sm:$0xe]  ;;  %v7122_v63 = vrot.slane %v2318_v49, 4  ;;  %v1288_v22 = vrot.slane %v6388_v16, 5 }
  0xa0   : > { %v1280_v55 = vrot.slane %v1278_v28, 4  ;;  %v5099_v1 = vrot.slane %v1220_v15, 9  ;;  %v7144_v29 = vsel %vm6776_vm7, %v5098_v35, %v1278_v28  ;;  %v1294_v25 = vrot.slane %v1292_v12, 4  ;;  %v5422_v24 = vld [vmem:[%s6524_s30 + $0x18] sm:$0xf] }
  0xa1   : > { %v1273_v57 = vrot.slane %v1271_v48, 4  ;;  %8396 = vst [vmem:[#allocation5_spill] sm:$0xff] %v7122_v63  ;;  %v7140_v0 = vsel %vm6776_vm7, %v5097_v19, %v1271_v48  ;;  %v1302_v47 = vrot.slane %v6390_v59, 5  ;;  %v7181_v49 = vsel %vm761_vm0, %v7036_v7, 0  ;;  %v5423_v7 = vld [vmem:[%s6524_s30 + $0x1c] sm:$0xf] }
  0xa2   : > { %v7148_v53 = vsel %vm6776_vm7, %v1280_v55, %v1281_v37  ;;  %v7185_v34 = vsel %vm6776_vm7, %v5099_v1, %v1285_v4  ;;  %v6340_v37 = vld [vmem:[%s6524_s30 + $0x3c] sm:$0xff]   ;;  %v5102_v35 = vrot.slane %v1223_v8, 9  ;;  %v6391_v55 = vld [vmem:[%s6524_s30 + $0x44] sm:$0x1]  ;;  %v3647_v8 = vshll.u32 %v5422_v24, 16 }
  0xa3   : > { %v7159_v23 = vsel %vm6776_vm7, %v1273_v57, %v1274_v50  ;;  %v1225_v50 = vld [vmem:[%s6524_s30 + $0x54] sm:$0xe]  ;;  %v1309_v15 = vrot.slane %v6391_v55, 5  ;;  %v5426_v39 = vld [vmem:[%s6524_s30 + $0x28] sm:$0xf] }
  0xa4   : > { %v6398_v5 = vld [vmem:[%s6524_s30 + $0x70] sm:$0xf] }
  0xa5   : > { %5923 = vmatmul.mubr.msk.bf16.gmra.mrb[24].mxu0 %vm712_vm3, %v5338_v2  ;;  %v1221_v2 = vld [vmem:[%s6524_s30 + $0x24] sm:$0xe]  ;;  %v1334_v30 = vrot.slane %v6398_v5, 5 }
  0xa6   : > { %5771 = vmatmul.mubr.msk.bf16.gmra.mrb[8].mxu1 %vm712_vm3, %v5070_v10  ;;  %5926 = vmatprep.mubr.msk.bf16.mxu0 %vm712_vm3, %v5339_v11  ;;  %v1299_v10 = vrot.slane %v7062_v26, 5  ;;  %v6338_v11 = vld [vmem:[%s6524_s30 + $0x30] sm:$0xff]   ;;  %v7155_v26 = vld [vmem:[%s8372_s1 + $0x20] sm:$0xf]  ;;  %v5100_v21 = vrot.slane %v1221_v2, 9 }
  0xa7   : > { %5774 = vmatprep.mubr.msk.bf16.mxu1 %vm712_vm3, %v5071_v18  ;;  %v1287_v18 = vrot.slane %v1285_v4, 4  ;;  %v1336_v48 = vrot.slane %v1334_v30, 4 }
  0xa8   : > { %v1301_v45 = vrot.slane %v1299_v10, 4  ;;  %v7192_v19 = vsel %vm6776_vm7, %v5100_v21, %v1292_v12  ;;  %v3657_v21 = vshrl.u32 %v5423_v7, 16 }
  0xa9   : > { %v7201_v4 = vsel %vm6776_vm7, %v1287_v18, %v1288_v22  ;;  %v3644_v22 = vshrl.u32 %v5422_v24, 16  ;;  %v3653_v18 = vshll.u32 %v5423_v7, 16  ;;  %v5425_v24 = vld [vmem:[%s6524_s30 + $0x24] sm:$0xf] }
  0xaa   : > { %v7214_v1 = vsel %vm6776_vm7, %v1301_v45, %v1302_v47 }
  0xab   : > { %v3646_v43 = vrot.slane %v3644_v22, 4  ;;  %v7256_v7 = vrot.slane %v3653_v18, 5  ;;  %v3671_v22 = vshll.u32 %v5425_v24, 16  ;;  %v3681_v18 = vshrl.u32 %v5426_v39, 16 }
  0xad   : > { %5927 = vmatmul.mubr.msk.bf16.gmra.mrb[28].mxu0 %vm712_vm3, %v5340_v40  ;;  %v6389_v40 = vld [vmem:[%s6524_s30 + $0x2c] sm:$0x1]  ;;  %v3673_v27 = vrot.slane %v3671_v22, 5 }
  0xae   : > { %5775 = vmatmul.mubr.msk.bf16.gmra.mrb[12].mxu1 %vm712_vm3, %v5072_v60  ;;  %5932 = vmatprep.mubr.msk.bf16.mxu0 %vm712_vm3, %v6334_v20  ;;  %v1295_v28 = vrot.slane %v6389_v40, 5  ;;  %v1306_v60 = vrot.slane %v7082_v17, 5  ;;  %v6394_v40 = vld [vmem:[%s6524_s30 + $0x50] sm:$0x1]  ;;  %v6399_v17 = vld [vmem:[%s6524_s30 + $0x74] sm:$0x1] }
  0xaf   : > { %5778 = vmatprep.mubr.msk.bf16.mxu1 %vm712_vm3, %v5073_v44  ;;  %v5101_v44 = vrot.slane %v1222_v41, 9  ;;  %v5104_v41 = vrot.slane %v1225_v50, 9  ;;  %v1226_v50 = vld [vmem:[%s6524_s30 + $0x60] sm:$0xe]  ;;  %v5427_v20 = vld [vmem:[%s6524_s30 + $0x2c] sm:$0x1] }
  0xb0   : > { %v1308_v12 = vrot.slane %v1306_v60, 4  ;;  %v7227_v45 = vsel %vm6776_vm7, %v5102_v35, %v1306_v60  ;;  %v6395_v35 = vld [vmem:[%s6524_s30 + $0x5c] sm:$0x1] }
  0xb1   : > { %v7210_v2 = vsel %vm6776_vm7, %v5101_v44, %v1299_v10  ;;  %v1323_v55 = vrot.slane %v6395_v35, 5  ;;  %v1227_v35 = vld [vmem:[%s6524_s30 + $0x6c] sm:$0xe] }
  0xb2   : > { %v7231_v59 = vsel %vm6776_vm7, %v1308_v12, %v1309_v15  ;;  %v6396_v15 = vld [vmem:[%s6524_s30 + $0x64] sm:$0xf]  ;;  %v3659_v12 = vrot.slane %v3657_v21, 4  ;;  %v5106_v5 = vrot.slane %v1227_v35, 9 }
  0xb3   : > { %v6346_v21 = vld [vmem:[%s6524_s30 + $0x60] sm:$0xff]  }
  0xb5   : > { %5933 = vmatmul.mubr.msk.bf16.vlgmr.msra.gmra.mrb[0].mxu0 %vm712_vm3, %v6336_v62  ;;  %v6392_v62 = vld [vmem:[%s6524_s30 + $0x4c] sm:$0xf] }
  0xb6   : > { %5779 = vmatmul.mubr.msk.bf16.gmra.mrb[16].mxu1 %vm712_vm3, %v5074_v58  ;;  %5965 = vmatpush3.bf16.msra.mxu0 %v4126_v54  ;;  %v1313_v57 = vrot.slane %v6392_v62, 5  ;;  %v7205_v58 = vsel %vm6776_vm7, %v1294_v25, %v1295_v28  ;;  %v5103_v54 = vrot.slane %v1224_v31, 9  ;;  %v1316_v28 = vrot.slane %v6394_v40, 5 }
  0xb7   : > { %5782 = vmatprep.mubr.msk.bf16.mxu1 %vm712_vm3, %v5075_v61  ;;  %5936 = vmatprep.mubr.msk.bf16.mxu0 %vm712_vm3, %v6338_v11  ;;  %v6342_v61 = vld [vmem:[%s6524_s30 + $0x48] sm:$0xff]   ;;  %v6393_v11 = vld [vmem:[%s6524_s30 + $0x58] sm:$0xf]  ;;  %v1327_v62 = vrot.slane %v6396_v15, 5  ;;  %v5429_v15 = vld [vmem:[%s6524_s30 + $0x34] sm:$0xf] }
  0xb8   : > { %6299 = vmatprep.subr.msk.bf16.mxu0 %vm761_vm0, %v7155_v26  ;;  %v1320_v16 = vrot.slane %v6393_v11, 5  ;;  %v1315_v31 = vrot.slane %v1313_v57, 4  ;;  %v7235_v47 = vsel %vm6776_vm7, %v5103_v54, %v1313_v57  ;;  %v5424_v57 = vld [vmem:[%s6524_s30 + $0x20] sm:$0x1]  ;;  %v5428_v54 = vld [vmem:[%s6524_s30 + $0x30] sm:$0xf] }
  0xb9   : > { %v5105_v11 = vrot.slane %v1226_v50, 9  ;;  %v3695_v50 = vshll.u32 %v5428_v54, 16  ;;  %v3663_v25 = vshll.u32 %v5424_v57, 16  ;;  %v3701_v36 = vshll.u32 %v5429_v15, 16 }
  0xba   : > { %v7246_v60 = vsel %vm6776_vm7, %v5104_v41, %v1320_v16  ;;  %v7262_v41 = vsel %vm6776_vm7, %v1315_v31, %v1316_v28  ;;  %v1329_v31 = vrot.slane %v1327_v62, 4  ;;  %v3692_v28 = vshrl.u32 %v5428_v54, 16 }
  0xbb   : > { %v7304_v35 = vrot.slane %v3701_v36, 5 }
  0xbd   : > { %5937 = vmatmul.mubr.msk.bf16.gmra.mrb[4].mxu0 %vm712_vm3, %v6340_v37  ;;  %v1322_v37 = vrot.slane %v1320_v16, 4  ;;  %v6397_v16 = vld [vmem:[%s6524_s30 + $0x68] sm:$0x1] }
  0xbe   : > { %5783 = vmatmul.mubr.msk.bf16.gmra.mrb[20].mxu1 %vm712_vm3, %v5076_v6  ;;  %5940 = vmatprep.mubr.msk.bf16.mxu0 %vm712_vm3, %v6342_v61  ;;  %v3649_v6 = vrot.slane %v3647_v8, 5  ;;  %v6344_v61 = vld [vmem:[%s6524_s30 + $0x54] sm:$0xff]   ;;  %v1330_v40 = vrot.slane %v6397_v16, 5  ;;  %v3677_v8 = vshll.u32 %v5426_v39, 16  ;;  %v3660_v16 = vor.u32 %v3659_v12, %v7256_v7 }
  0xbf   : > { %5786 = vmatprep.mubr.msk.bf16.mxu1 %vm712_vm3, %v5077_v9  ;;  %v3668_v9 = vshrl.u32 %v5425_v24, 16  ;;  %v7271_v44 = vsel %vm6776_vm7, %v1322_v37, %v1323_v55  ;;  %v1337_v24 = vrot.slane %v6399_v17, 5  ;;  %v3705_v39 = vshrl.u32 %v5429_v15, 16 }
  0xc0   : > { %v3650_v10 = vor.u32 %v3649_v6, %v3646_v43  ;;  %v7277_v37 = vrot.slane %v3677_v8, 5  ;;  %v3683_v55 = vrot.slane %v3681_v18, 4  ;;  %v8397_v43 = vcombine.low %v6881_v52, %v6892_v46  ;;  %v6400_v8 = vld [vmem:[%s6524_s30 + $0x7c] sm:$0xf]  ;;  %v7313_v18 = vld [vmem:[%s6524_s30 + $0x38] sm:$0x1] }
  0xc1   : > { %v3670_v38 = vrot.slane %v3668_v9, 4  ;;  %v7286_v17 = vsel %vm6776_vm7, %v5105_v11, %v1327_v62  ;;  %v7290_v57 = vsel %vm6776_vm7, %v1329_v31, %v1330_v40  ;;  %v3694_v6 = vrot.slane %v3692_v28, 4  ;;  %8399 = vst [vmem:[#allocation6_spill] sm:$0xff] %v7313_v18 }
  0xc2   : > { %v3697_v12 = vrot.slane %v3695_v50, 5  ;;  %v8398_v52 = vcombine.low %v6913_v33, %v6918_v56  ;;  %v3651_v46 = vrot.slane %v3650_v10, 4  ;;  %v3661_v54 = vrot.slane %v3660_v16, 4  ;;  %v6348_v33 = vld [vmem:[%s6524_s30 + $0x6c] sm:$0xff]   ;;  %v1229_v16 = vld [vmem:[%s6524_s30 + $0x84] sm:$0xe] }
  0xc3   : > { %v3687_v62 = vshll.u32 %v5427_v20, 16  ;;  %v7298_v11 = vsel %vm6776_vm7, %v5106_v5, %v1334_v30  ;;  %v7302_v40 = vsel %vm6776_vm7, %v1336_v48, %v1337_v24  ;;  %v3707_v9 = vrot.slane %v3705_v39, 4  ;;  %v6349_v48 = vld [vmem:[%s6524_s30 + $0x78] sm:$0xff]  }
  0xc4   : > { %v3674_v10 = vor.u32 %v3673_v27, %v3670_v38  ;;  %v3684_v20 = vor.u32 %v3683_v55, %v7277_v37  ;;  %v1341_v30 = vrot.slane %v6400_v8, 5  ;;  %v3698_v38 = vor.u32 %v3697_v12, %v3694_v6  ;;  %v5431_v5 = vld [vmem:[%s6524_s30 + $0x3c] sm:$0xf] }
  0xc5   : > { %5941 = vmatmul.mubr.msk.bf16.gmra.mrb[8].mxu0 %vm712_vm3, %v6344_v61  ;;  %v3665_v61 = vrot.slane %v3663_v25, 5  ;;  %v1228_v25 = vld [vmem:[%s6524_s30 + $0x78] sm:$0xe]  ;;  %v7329_v50 = vrot.slane %v3687_v62, 5  ;;  %v3708_v39 = vor.u32 %v3707_v9, %v7304_v35  ;;  %v3711_v55 = vshll.u32 %v7313_v18, 16 }
  0xc6   : > { %5787 = vmatmul.mubr.msk.bf16.gmra.mrb[24].mxu1 %vm712_vm3, %v8397_v43  ;;  %5944 = vmatprep.mubr.msk.bf16.mxu0 %vm712_vm3, %v6346_v21  ;;  %v3656_v21 = vsel %vm6550_vm4, %v3651_v46, %v7256_v7  ;;  %v5107_v24 = vrot.slane %v1228_v25, 9  ;;  %v6401_v43 = vld [vmem:[%s6524_s30 + $0x88] sm:$0xf]  ;;  %v7337_v7 = vld [vmem:[%s6524_s30 + $0x40] sm:$0xf]  ;;  %v3675_v12 = vrot.slane %v3674_v10, 4  ;;  %v8401_v62 = vcombine.low %v6933_v14, %v6942_v42 }
  0xc7   : > { %5790 = vmatprep.mubr.msk.bf16.mxu1 %vm712_vm3, %v8398_v52  ;;  %v3666_v31 = vsel %vm6550_vm4, %v3661_v54, %v3665_v61  ;;  %v1348_v6 = vrot.slane %v6401_v43, 5  ;;  %8400 = vst [vmem:[#allocation7_spill] sm:$0xff] %v7337_v7  ;;  %v3685_v52 = vrot.slane %v3684_v20, 4  ;;  %v1343_v46 = vrot.slane %v1341_v30, 4  ;;  %v6402_v54 = vld [vmem:[%s6524_s30 + $0x80] sm:$0x1] }
  0xc8   : > { %v1344_v61 = vrot.slane %v6402_v54, 5  ;;  %v3699_v9 = vrot.slane %v3698_v38, 4  ;;  %v5108_v25 = vrot.slane %v1229_v16, 9  ;;  %v3716_v8 = vshrl.u32 %v5431_v5, 16  ;;  %v6350_v10 = vld [vmem:[%s6524_s30 + $0x84] sm:$0xff]  }
  0xc9   : > { %v3719_v43 = vshll.u32 %v5431_v5, 16  ;;  %v7351_v20 = vcombine.low %v3656_v21, %v3666_v31  ;;  %v7355_v14 = vsel %vm761_vm0, %v7155_v26, 0  ;;  %v3729_v38 = vshrl.u32 %v7337_v7, 16  ;;  %v6351_v21 = vld [vmem:[%s6524_s30 + $0x90] sm:$0xff]   ;;  %v6407_v18 = vld [vmem:[%s6524_s30 + $0xa0] sm:$0xf] }
  0xca   : > { %v3709_v16 = vrot.slane %v3708_v39, 4  ;;  %v3713_v5 = vrot.slane %v3711_v55, 5  ;;  %v1350_v54 = vrot.slane %v1348_v6, 4  ;;  %v3680_v31 = vsel %vm6550_vm4, %v3675_v12, %v7277_v37 }
  0xcb   : > { %v3690_v26 = vsel %vm6550_vm4, %v3685_v52, %v7329_v50  ;;  %v7370_v39 = vsel %vm6776_vm7, %v5107_v24, %v1341_v30  ;;  %v7374_v55 = vsel %vm6776_vm7, %v1343_v46, %v1344_v61  ;;  %v3704_v37 = vsel %vm6550_vm4, %v3699_v9, %v7304_v35  ;;  %v5437_v30 = vld [vmem:[%s6524_s30 + $0x54] sm:$0xf]  ;;  %v7391_v24 = vld [vmem:[%s6524_s30 + $0x58] sm:$0xf]  ;;  %v7396_v61 = vld [vmem:[%s6524_s30 + $0x90] sm:$0xe] }
  0xcc   : > { %v7387_v12 = vsel %vm6776_vm7, %v5108_v25, %v1348_v6  ;;  %v3718_v50 = vrot.slane %v3716_v8, 4  ;;  %v3721_v52 = vrot.slane %v3719_v43, 5  ;;  %v3731_v46 = vrot.slane %v3729_v38, 4 }
  0xcd   : > { %5945 = vmatmul.mubr.msk.bf16.gmra.mrb[12].mxu0 %vm712_vm3, %v6348_v33  ;;  %v8402_v33 = vcombine.low %v7140_v0, %v7159_v23  ;;  %v6403_v0 = vld [vmem:[%s6524_s30 + $0x8c] sm:$0x1]  ;;  %v3714_v36 = vsel %vm6550_vm4, %v3709_v16, %v3713_v5  ;;  %v3764_v25 = vshrl.u32 %v5437_v30, 16  ;;  %v3767_v8 = vshll.u32 %v5437_v30, 16 }
  0xce   : > { %5791 = vmatmul.mubr.msk.bf16.gmra.mrb[28].mxu1 %vm712_vm3, %v8401_v62  ;;  %5948 = vmatprep.mubr.msk.bf16.mxu0 %vm712_vm3, %v6349_v48  ;;  %v3725_v48 = vshll.u32 %v7337_v7, 16  ;;  %v1351_v23 = vrot.slane %v6403_v0, 5  ;;  %v5434_v62 = vld [vmem:[%s6524_s30 + $0x48] sm:$0xf]  ;;  %v7380_v0 = vld [vmem:[%s6524_s30 + $0x4c] sm:$0xf]  ;;  %v8404_v38 = vcombine.low %v7144_v29, %v7148_v53  ;;  %v7414_v16 = vcombine.low %v3680_v31, %v3690_v26 }
  0xcf   : > { %5796 = vmatprep.mubr.msk.bf16.mxu1 %vm712_vm3, %v8402_v33  ;;  %v7377_v33 = vld [vmem:[%s6524_s30 + $0x44] sm:$0x1]  ;;  %v3740_v27 = vshrl.u32 %v5434_v62, 16  ;;  %v3743_v15 = vshll.u32 %v5434_v62, 16  ;;  %v3749_v6 = vshll.u32 %v7380_v0, 16  ;;  %v3753_v9 = vshrl.u32 %v7380_v0, 16 }
  0xd0   : > { %8403 = vst [vmem:[#allocation8_spill] sm:$0xff] %v7377_v33  ;;  %v7393_v28 = vrot.slane %v3725_v48, 5  ;;  %v7402_v35 = vsel %vm6776_vm7, %v1350_v54, %v1351_v23  ;;  %v3773_v43 = vshll.u32 %v7391_v24, 16  ;;  %v3777_v48 = vshrl.u32 %v7391_v24, 16  ;;  %v5440_v31 = vld [vmem:[%s6524_s30 + $0x60] sm:$0xf] }
  0xd1   : > { %v3735_v5 = vshll.u32 %v7377_v33, 16  ;;  %v5109_v54 = vrot.slane %v7396_v61, 9  ;;  %v8405_v23 = vcombine.low %v7185_v34, %v7201_v4  ;;  %v7425_v29 = vcombine.low %v3704_v37, %v3714_v36  ;;  %v6352_v26 = vld [vmem:[%s6524_s30 + $0x9c] sm:$0xff]   ;;  %v6353_v30 = vld [vmem:[%s6524_s30 + $0xa8] sm:$0xff]   ;;  %v6404_v36 = vld [vmem:[%s8372_s1 + $0x10] sm:$0xf] }
  0xd2   : > { %v3722_v53 = vor.u32 %v3721_v52, %v3718_v50  ;;  %v3742_v62 = vrot.slane %v3740_v27, 4  ;;  %v7436_v34 = vrot.slane %v3749_v6, 5  ;;  %v3755_v4 = vrot.slane %v3753_v9, 4  ;;  %v6405_v6 = vld [vmem:[%s6524_s30 + $0x94] sm:$0xf] }
  0xd3   : > { %v3766_v27 = vrot.slane %v3764_v25, 4  ;;  %v3769_v37 = vrot.slane %v3767_v8, 5  ;;  %v7445_v50 = vrot.slane %v3773_v43, 5  ;;  %v3779_v52 = vrot.slane %v3777_v48, 4  ;;  %v7451_v9 = vld [vmem:[%s6524_s30 + $0x64] sm:$0xf] }
  0xd4   : > { %8406 = vst [vmem:[#allocation9_spill] sm:$0xff] %v7451_v9  ;;  %v3788_v61 = vshrl.u32 %v5440_v31, 16  ;;  %v7453_v22 = vrot.slane %v3722_v53, 4  ;;  %v1362_v25 = vrot.slane %v6407_v18, 5  ;;  %v3756_v43 = vor.u32 %v3755_v4, %v7436_v34 }
  0xd5   : > { %5949 = vmatmul.mubr.msk.bf16.gmra.mrb[16].mxu0 %vm712_vm3, %v6350_v10  ;;  %v3791_v10 = vshll.u32 %v5440_v31, 16  ;;  %v3770_v31 = vor.u32 %v3769_v37, %v3766_v27  ;;  %v3780_v53 = vor.u32 %v3779_v52, %v7445_v50  ;;  %v8407_v18 = vcombine.low %v7192_v19, %v7205_v58  ;;  %v6354_v37 = vld [vmem:[%s6524_s30 + $0xb4] sm:$0xff]  }
  0xd6   : > { %5797 = vmatmul.mubr.msk.bf16.vlgmr.msra.gmra.mrb[0].mxu1 %vm712_vm3, %v8404_v38  ;;  %5952 = vmatprep.mubr.msk.bf16.mxu0 %vm712_vm3, %v6351_v21  ;;  %v3745_v21 = vrot.slane %v3743_v15, 5  ;;  %v7434_v38 = vld [vmem:[%s6524_s30 + $0x50] sm:$0x1]  ;;  %v7443_v15 = vld [vmem:[%s6524_s30 + $0x5c] sm:$0x1]  ;;  %v8408_v27 = vcombine.low %v7210_v2, %v7214_v1  ;;  %v1364_v52 = vrot.slane %v1362_v25, 4 }
  0xd7   : > { %5829 = vmatpush3.bf16.msra.mxu1 %v7181_v49  ;;  %5800 = vmatprep.mubr.msk.bf16.mxu1 %vm712_vm3, %v8405_v23  ;;  %v3732_v49 = vor.u32 %v3731_v46, %v7393_v28  ;;  %v7447_v46 = vrot.slane %v3735_v5, 5  ;;  %v1355_v23 = vrot.slane %v6405_v6, 5  ;;  %v3759_v48 = vshll.u32 %v7434_v38, 16  ;;  %v1231_v5 = vld [vmem:[%s6524_s30 + $0x9c] sm:$0xe] }
  0xd8   : > { %6295 = vmatprep.subr.msk.bf16.mxu1 %vm761_vm0, %v6404_v36  ;;  %v6406_v36 = vld [vmem:[%s6524_s30 + $0x98] sm:$0x1]  ;;  %v3746_v7 = vor.u32 %v3745_v21, %v3742_v62  ;;  %v3783_v6 = vshll.u32 %v7443_v15, 16  ;;  %v3801_v62 = vshrl.u32 %v7451_v9, 16  ;;  %v3793_v4 = vrot.slane %v3791_v10, 5 }
  0xd9   : > { %v1358_v33 = vrot.slane %v6406_v36, 5  ;;  %v3733_v8 = vrot.slane %v3732_v49, 4  ;;  %v3797_v36 = vshll.u32 %v7451_v9, 16  ;;  %v7472_v21 = vsel %vm6776_vm7, %v5109_v54, %v1355_v23  ;;  %v7483_v2 = vld [vmem:[%s6524_s30 + $0x68] sm:$0x1] }
  0xda   : > { %v3790_v49 = vrot.slane %v3788_v61, 4  ;;  %v3747_v19 = vrot.slane %v3746_v7, 4  ;;  %v5110_v58 = vrot.slane %v1231_v5, 9  ;;  %v3757_v3 = vrot.slane %v3756_v43, 4  ;;  %8409 = vst [vmem:[#allocation10_spill] sm:$0xff] %v7483_v2  ;;  %v6355_v5 = vld [vmem:[%s6524_s30 + $0xc0] sm:$0xff]  }
  0xdb   : > { %v3761_v54 = vrot.slane %v3759_v48, 5  ;;  %v3785_v63 = vrot.slane %v3783_v6, 5  ;;  %v1369_v61 = vrot.slane %v6918_v56, 5  ;;  %v3771_v10 = vrot.slane %v3770_v31, 4  ;;  %v1233_v31 = vld [vmem:[%s6524_s30 + $0xb4] sm:$0xe] }
  0xdc   : > { %v3781_v51 = vrot.slane %v3780_v53, 4  ;;  %v7485_v1 = vrot.slane %v3797_v36, 5  ;;  %v3803_v7 = vrot.slane %v3801_v62, 4  ;;  %v3728_v43 = vsel %vm6550_vm4, %v7453_v22, %v7393_v28  ;;  %v6409_v62 = vld [vmem:[%s6524_s30 + $0xb0] sm:$0x1] }
  0xdd   : > { %5953 = vmatmul.mubr.msk.bf16.gmra.mrb[20].mxu0 %vm712_vm3, %v6352_v26  ;;  %v1357_v26 = vrot.slane %v1355_v23, 4  ;;  %v1232_v23 = vld [vmem:[%s6524_s30 + $0xa8] sm:$0xe]  ;;  %v3738_v48 = vsel %vm6550_vm4, %v3733_v8, %v7447_v46  ;;  %v3794_v6 = vor.u32 %v3793_v4, %v3790_v49  ;;  %v3752_v53 = vsel %vm6550_vm4, %v3747_v19, %v7436_v34  ;;  %v5443_v46 = vld [vmem:[%s6524_s30 + $0x6c] sm:$0xf] }
  0xde   : > { %5801 = vmatmul.mubr.msk.bf16.gmra.mrb[4].mxu1 %vm712_vm3, %v8407_v18  ;;  %5956 = vmatprep.mubr.msk.bf16.mxu0 %vm712_vm3, %v6353_v30  ;;  %v6408_v18 = vld [vmem:[%s6524_s30 + $0xa4] sm:$0x1]  ;;  %v7505_v36 = vsel %vm6776_vm7, %v5110_v58, %v1362_v25  ;;  %v5111_v28 = vrot.slane %v1232_v23, 9  ;;  %v1371_v8 = vrot.slane %v1369_v61, 4  ;;  %v3807_v49 = vshll.u32 %v7483_v2, 16 }
  0xdf   : > { %5804 = vmatprep.mubr.msk.bf16.mxu1 %vm712_vm3, %v8408_v27  ;;  %v1365_v30 = vrot.slane %v6408_v18, 5  ;;  %v7497_v56 = vsel %vm6776_vm7, %v1357_v26, %v1358_v33  ;;  %v3762_v33 = vsel %vm6550_vm4, %v3757_v3, %v3761_v54  ;;  %v1372_v26 = vrot.slane %v6409_v62, 5  ;;  %v5446_v18 = vld [vmem:[%s6524_s30 + $0x78] sm:$0xf]  ;;  %v7560_v54 = vld [vmem:[%s6524_s30 + $0xbc] sm:$0x1] }
  0xe0   : > { %v3776_v34 = vsel %vm6550_vm4, %v3771_v10, %v7445_v50  ;;  %v3786_v25 = vsel %vm6550_vm4, %v3781_v51, %v3785_v63  ;;  %v3804_v4 = vor.u32 %v3803_v7, %v7485_v1  ;;  %v5112_v27 = vrot.slane %v1233_v31, 9  ;;  %v7534_v51 = vld [vmem:[%s6524_s30 + $0x70] sm:$0xf]  ;;  %v7564_v10 = vld [vmem:[%s6524_s30 + $0x7c] sm:$0xf] }
  0xe1   : > { %v7509_v22 = vsel %vm6776_vm7, %v1364_v52, %v1365_v30  ;;  %v8411_v3 = vcombine.low %v7227_v45, %v7231_v59  ;;  %v7530_v19 = vrot.slane %v3794_v6, 4  ;;  %v1376_v50 = vrot.slane %v6942_v42, 5  ;;  %8412 = vst [vmem:[#allocation12_spill] sm:$0xff] %v7534_v51  ;;  %8414 = vst [vmem:[#allocation13_spill] sm:$0xff] %v7564_v10  ;;  %v5449_v7 = vld [vmem:[%s6524_s30 + $0x84] sm:$0xf] }
  0xe2   : > { %8410 = vst [vmem:[#allocation11_spill] sm:$0xff] %v7509_v22  ;;  %v3812_v63 = vshrl.u32 %v5443_v46, 16  ;;  %v8413_v45 = vcombine.low %v7235_v47, %v7262_v41  ;;  %v7542_v58 = vcombine.low %v3752_v53, %v3762_v33  ;;  %v7548_v42 = vsel %vm6776_vm7, %v5111_v28, %v1369_v61  ;;  %v6356_v61 = vld [vmem:[%s6524_s30 + $0xcc] sm:$0xff]   ;;  %v7576_v31 = vld [vmem:[%s6524_s30 + $0x88] sm:$0xf] }
  0xe3   : > { %v7551_v30 = vcombine.low %v3776_v34, %v3786_v25  ;;  %v7555_v47 = vsel %vm6776_vm7, %v1371_v8, %v1372_v26  ;;  %v7557_v41 = vrot.slane %v3807_v49, 5  ;;  %v3821_v6 = vshll.u32 %v7534_v51, 16  ;;  %8415 = vst [vmem:[#allocation14_spill] sm:$0xff] %v7576_v31  ;;  %v5452_v62 = vld [vmem:[%s6524_s30 + $0x90] sm:$0xf] }
  0xe4   : > { %v7582_v28 = vrot.slane %v1376_v50, 4  ;;  %v7584_v33 = vrot.slane %v3812_v63, 4  ;;  %v3825_v8 = vshrl.u32 %v7534_v51, 16  ;;  %v3836_v26 = vshrl.u32 %v5446_v18, 16  ;;  %v7591_v25 = vld [vmem:[%s6524_s30 + $0x94] sm:$0xf] }
  0xe5   : > { %5957 = vmatmul.mubr.msk.bf16.gmra.mrb[24].mxu0 %vm712_vm3, %v6354_v37  ;;  %v7528_v37 = vcombine.low %v3728_v43, %v3738_v48  ;;  %v7572_v43 = vsel %vm6776_vm7, %v5112_v27, %v1376_v50  ;;  %v3815_v48 = vshll.u32 %v5443_v46, 16  ;;  %v3839_v49 = vshll.u32 %v5446_v18, 16  ;;  %8416 = vst [vmem:[#allocation15_spill] sm:$0xff] %v7591_v25  ;;  %v7629_v2 = vld [vmem:[%s6524_s30 + $0x8c] sm:$0x1] }
  0xe6   : > { %5805 = vmatmul.mubr.msk.bf16.gmra.mrb[8].mxu1 %vm712_vm3, %v8411_v3  ;;  %5960 = vmatprep.mubr.msk.bf16.mxu0 %vm712_vm3, %v6355_v5  ;;  %v7568_v5 = vrot.slane %v3804_v4, 4  ;;  %v3845_v46 = vshll.u32 %v7564_v10, 16  ;;  %v3849_v34 = vshrl.u32 %v7564_v10, 16  ;;  %v3860_v4 = vshrl.u32 %v5449_v7, 16 }
  0xe7   : > { %5808 = vmatprep.mubr.msk.bf16.mxu1 %vm712_vm3, %v8413_v45  ;;  %v3863_v27 = vshll.u32 %v5449_v7, 16  ;;  %v3869_v3 = vshll.u32 %v7576_v31, 16  ;;  %v3873_v50 = vshrl.u32 %v7576_v31, 16  ;;  %v7601_v45 = vld [vmem:[%s6524_s30 + $0x74] sm:$0x1]  ;;  %v3817_v18 = vrot.slane %v3815_v48, 5 }
  0xe8   : > { %v3884_v52 = vshrl.u32 %v5452_v62, 16  ;;  %v3887_v53 = vshll.u32 %v5452_v62, 16  ;;  %v8417_v7 = vcombine.low %v7246_v60, %v7271_v44  ;;  %v3827_v59 = vrot.slane %v3825_v8, 4  ;;  %v5455_v48 = vld [vmem:[%s6524_s30 + $0x9c] sm:$0xf] }
  0xe9   : > { %v3893_v63 = vshll.u32 %v7591_v25, 16  ;;  %v3897_v23 = vshrl.u32 %v7591_v25, 16  ;;  %v8418_v62 = vcombine.low %v7286_v17, %v7290_v57  ;;  %v7619_v44 = vld [vmem:[%s6524_s30 + $0x80] sm:$0x1]  ;;  %v3838_v60 = vrot.slane %v3836_v26, 4 }
  0xea   : > { %8419 = vst [vmem:[#allocation16_spill] sm:$0xff] %v7619_v44  ;;  %v3862_v31 = vrot.slane %v3860_v4, 4  ;;  %v3865_v8 = vrot.slane %v3863_v27, 5  ;;  %v7623_v10 = vrot.slane %v3869_v3, 5  ;;  %v3875_v51 = vrot.slane %v3873_v50, 4 }
  0xeb   : > { %v7626_v25 = vld [vmem:[%s6524_s30 + $0xa0] sm:$0xf]  ;;  %v3886_v17 = vrot.slane %v3884_v52, 4  ;;  %v3889_v57 = vrot.slane %v3887_v53, 5  ;;  %v3911_v9 = vshll.u32 %v5455_v48, 16  ;;  %v3818_v26 = vor.u32 %v3817_v18, %v7584_v33 }
  0xec   : > { %v3855_v27 = vshll.u32 %v7619_v44, 16  ;;  %v7638_v3 = vld [vmem:[%s6524_s30 + $0x98] sm:$0x1]  ;;  %v3917_v50 = vshll.u32 %v7626_v25, 16  ;;  %v3921_v52 = vshrl.u32 %v7626_v25, 16  ;;  %v3866_v22 = vor.u32 %v3865_v8, %v3862_v31 }
  0xed   : > { %5961 = vmatmul.mubr.msk.bf16.gmra.mrb[28].mxu0 %vm712_vm3, %v6356_v61  ;;  %v7609_v61 = vrot.slane %v3821_v6, 5  ;;  %v3851_v6 = vrot.slane %v3849_v34, 4  ;;  %v3899_v34 = vrot.slane %v3897_v23, 4  ;;  %v3879_v33 = vshll.u32 %v7629_v2, 16 }
  0xee   : > { %5809 = vmatmul.mubr.msk.bf16.gmra.mrb[12].mxu1 %vm712_vm3, %v8417_v7  ;;  %5966 = vmatprep.mubr.msk.bf16.mxu0 %vm712_vm3, %v7351_v20  ;;  %v3841_v7 = vrot.slane %v3839_v49, 5  ;;  %v7621_v20 = vrot.slane %v3845_v46, 5  ;;  %v3831_v49 = vshll.u32 %v7601_v45, 16  ;;  %v7633_v46 = vrot.slane %v3893_v63, 5 }
  0xef   : > { %5812 = vmatprep.mubr.msk.bf16.mxu1 %vm712_vm3, %v8418_v62  ;;  %v3908_v62 = vshrl.u32 %v5455_v48, 16  ;;  %v3828_v4 = vor.u32 %v3827_v59, %v7609_v61  ;;  %v3876_v23 = vor.u32 %v3875_v51, %v7623_v10  ;;  %v3890_v59 = vor.u32 %v3889_v57, %v3886_v17  ;;  %v7671_v57 = vld [vmem:[%s6524_s30 + $0xa4] sm:$0x1] }
  0xf0   : > { %v3842_v53 = vor.u32 %v3841_v7, %v3838_v60  ;;  %v3852_v48 = vor.u32 %v3851_v6, %v7621_v20  ;;  %v3913_v18 = vrot.slane %v3911_v9, 5  ;;  %v8420_v44 = vcombine.low %v7298_v11, %v7302_v40 }
  0xf1   : > { %v3910_v63 = vrot.slane %v3908_v62, 4  ;;  %v8421_v31 = vrot.slane %v7560_v54, 5  ;;  %v3833_v51 = vrot.slane %v3831_v49, 5  ;;  %v3900_v60 = vor.u32 %v3899_v34, %v7633_v46  ;;  %v7674_v34 = vld [vmem:[%s6524_s30 + $0xac] sm:$0xf] }
  0xf2   : > { %v3903_v9 = vshll.u32 %v7638_v3, 16  ;;  %v8422_v11 = vcombine.low %v7370_v39, %v7374_v55  ;;  %v3819_v40 = vrot.slane %v3818_v26, 4  ;;  %v7667_v54 = vrot.slane %v3917_v50, 5 }
  0xf3   : > { %v3843_v7 = vrot.slane %v3842_v53, 4  ;;  %v3853_v6 = vrot.slane %v3852_v48, 4  ;;  %v3857_v8 = vrot.slane %v3855_v27, 5  ;;  %v3881_v17 = vrot.slane %v3879_v33, 5  ;;  %v7684_v48 = vld [vmem:[%s6524_s30 + $0xb0] sm:$0x1] }
  0xf4   : > { %v3867_v39 = vrot.slane %v3866_v22, 4  ;;  %v3877_v55 = vrot.slane %v3876_v23, 4  ;;  %v3891_v62 = vrot.slane %v3890_v59, 4  ;;  %v3914_v49 = vor.u32 %v3913_v18, %v3910_v63 }
  0xf5   : > { %5967 = vmatmul.mubr.msk.bf16.vlgmr.msra.gmra.mrb[0].mxu0 %vm712_vm3, %v7414_v16  ;;  %v7657_v16 = vsel %vm6776_vm7, %v7582_v28, %v8421_v31  ;;  %v3923_v28 = vrot.slane %v3921_v52, 4  ;;  %v3905_v26 = vrot.slane %v3903_v9, 5  ;;  %v3824_v52 = vsel %vm6550_vm4, %v3819_v40, %v7609_v61 }
  0xf6   : > { %5813 = vmatmul.mubr.msk.bf16.gmra.mrb[16].mxu1 %vm712_vm3, %v8420_v44  ;;  %5999 = vmatpush3.bf16.msra.mxu0 %v7355_v14  ;;  %v3829_v14 = vrot.slane %v3828_v4, 4  ;;  %v5458_v44 = vld [vmem:[%s6524_s30 + $0xa8] sm:$0xf]  ;;  %v3927_v22 = vshll.u32 %v7671_v57, 16  ;;  %v3848_v33 = vsel %vm6550_vm4, %v3843_v7, %v7621_v20  ;;  %v3858_v23 = vsel %vm6550_vm4, %v3853_v6, %v3857_v8 }
  0xf7   : > { %5816 = vmatprep.mubr.msk.bf16.mxu1 %vm712_vm3, %v8422_v11  ;;  %5970 = vmatprep.mubr.msk.bf16.mxu0 %vm712_vm3, %v7425_v29  ;;  %v3901_v29 = vrot.slane %v3900_v60, 4  ;;  %v3932_v4 = vshrl.u32 %v5458_v44, 16  ;;  %v3935_v50 = vshll.u32 %v5458_v44, 16  ;;  %v3924_v53 = vor.u32 %v3923_v28, %v7667_v54  ;;  %v5507_v11 = vld [vmem:[%s6524_s30 + $0x48] sm:$0xe] }
  0xf8   : > { %v3834_v27 = vsel %vm6550_vm4, %v3829_v14, %v3833_v51  ;;  %v3941_v59 = vshll.u32 %v7674_v34, 16  ;;  %v3945_v61 = vshrl.u32 %v7674_v34, 16  ;;  %v3872_v63 = vsel %vm6550_vm4, %v3867_v39, %v7623_v10  ;;  %v7749_v39 = vld [vmem:[%s6524_s30 + $0xb8] sm:$0xf] }
  0xf9   : > { %v3882_v18 = vsel %vm6550_vm4, %v3877_v55, %v3881_v17  ;;  %v3896_v20 = vsel %vm6550_vm4, %v3891_v62, %v7633_v46  ;;  %v3915_v31 = vrot.slane %v3914_v49, 4  ;;  %v8423_v51 = vcombine.low %v7387_v12, %v7402_v35 }
  0xfa   : > { %v3934_v10 = vrot.slane %v3932_v4, 4  ;;  %v3937_v60 = vrot.slane %v3935_v50, 5  ;;  %v3951_v9 = vshll.u32 %v7684_v48, 16  ;;  %v8424_v46 = vcombine.low %v7472_v21, %v7497_v56  ;;  %v5461_v21 = vld [vmem:[%s6524_s30 + $0xb4] sm:$0xf] }
  0xfb   : > { %v5128_v12 = vcombine.low %v7548_v42, %v7555_v47  ;;  %v8425_v35 = vsel %vm6550_vm4, %v7568_v5, %v7557_v41  ;;  %v3925_v14 = vrot.slane %v3924_v53, 4  ;;  %v3929_v28 = vrot.slane %v3927_v22, 5  ;;  %v5509_v4 = vld [vmem:[%s6524_s30 + $0x60] sm:$0xe]  ;;  %v5510_v53 = vld [vmem:[%s6524_s30 + $0x6c] sm:$0xe] }
  0xfc   : > { %v5129_v56 = vcombine.low %v7572_v43, %v7657_v16  ;;  %v7732_v44 = vcombine.low %v3824_v52, %v3834_v27  ;;  %v7734_v42 = vrot.slane %v3941_v59, 5  ;;  %v3947_v47 = vrot.slane %v3945_v61, 4  ;;  %v8434_v16 = vld [vmem:[#allocation4_spill] sm:$0xff] }
  0xfd   : > { %5971 = vmatmul.mubr.msk.bf16.gmra.mrb[4].mxu0 %vm712_vm3, %v7528_v37  ;;  %v3906_v37 = vsel %vm6550_vm4, %v3901_v29, %v3905_v26  ;;  %v7736_v41 = vcombine.low %v3848_v33, %v3858_v23  ;;  %v7738_v5 = vcombine.low %v3872_v63, %v3882_v18  ;;  %v3920_v6 = vsel %vm6550_vm4, %v3915_v31, %v7667_v54  ;;  %v8427_v23 = vld [vmem:[#allocation11_spill] sm:$0xff]  ;;  %v5464_v63 = vld [vmem:[%s6524_s30 + $0xc0] sm:$0xf]  ;;  %v8429_v18 = vld [vmem:[#allocation9_spill] sm:$0xff] }
  0xfe   : > { %5817 = vmatmul.mubr.msk.bf16.gmra.mrb[20].mxu1 %vm712_vm3, %v8423_v51  ;;  %5974 = vmatprep.mubr.msk.bf16.mxu0 %vm712_vm3, %v7542_v58  ;;  %v8426_v58 = vsel %vm6550_vm4, %v7530_v19, %v7485_v1  ;;  %v7740_v7 = vcombine.low %v3896_v20, %v3906_v37  ;;  %v5523_v1 = vrot.slane %v5507_v11, 9  ;;  %v5508_v19 = vld [vmem:[%s6524_s30 + $0x54] sm:$0xe]  ;;  %v3938_v8 = vor.u32 %v3937_v60, %v3934_v10  ;;  %v8430_v31 = vld [vmem:[#allocation10_spill] sm:$0xff] }
  0xff   : > { %5820 = vmatprep.mubr.msk.bf16.mxu1 %vm712_vm3, %v8424_v46  ;;  %v5477_v40 = vcombine.low %v8426_v58, %v8425_v35  ;;  %v7746_v17 = vrot.slane %v3951_v9, 5  ;;  %v3956_v55 = vshrl.u32 %v5461_v21, 16  ;;  %v3930_v62 = vsel %vm6550_vm4, %v3925_v14, %v3929_v28  ;;  %v8431_v9 = vld [vmem:[#allocation12_spill] sm:$0xff]  ;;  %v7798_v35 = vld [vmem:[%s6524_s30 + $0xbc] sm:$0x1] }
 0x100   : > { %v3959_v49 = vshll.u32 %v5461_v21, 16  ;;  %v4415_v29 = vrot.slane %v7380_v0, 5  ;;  %v4418_v26 = vrot.slane %v7434_v38, 5  ;;  %v3948_v50 = vor.u32 %v3947_v47, %v7734_v42  ;;  %v7801_v58 = vld [vmem:[%s6524_s30 + $0xc4] sm:$0xf] }
 0x101   : > { %v5524_v52 = vrot.slane %v5508_v19, 9  ;;  %v4422_v54 = vrot.slane %v7391_v24, 5  ;;  %v4425_v27 = vrot.slane %v7443_v15, 5  ;;  %v3965_v22 = vshll.u32 %v7749_v39, 16  ;;  %v5511_v19 = vld [vmem:[%s6524_s30 + $0x78] sm:$0xe] }
 0x102   : > { %v3969_v33 = vshrl.u32 %v7749_v39, 16  ;;  %v7766_v0 = vsel %vm6776_vm7, %v5523_v1, %v4415_v29  ;;  %v4417_v38 = vrot.slane %v4415_v29, 4  ;;  %v8428_v59 = vcombine.low %v7505_v36, %v8427_v23  ;;  %v8432_v23 = vld [vmem:[#allocation13_spill] sm:$0xff] }
 0x103   : > { %v7773_v24 = vcombine.low %v3920_v6, %v3930_v62  ;;  %v7777_v15 = vsel %vm6776_vm7, %v5524_v52, %v4422_v54  ;;  %v5525_v61 = vrot.slane %v5509_v4, 9  ;;  %v4429_v20 = vrot.slane %v8429_v18, 5  ;;  %v6357_v6 = vld [vmem:[%s6524_s30 + $0xc] sm:$0xff]  }
 0x104   : > { %v7783_v36 = vsel %vm6776_vm7, %v4417_v38, %v4418_v26  ;;  %v4432_v51 = vrot.slane %v8430_v31, 5  ;;  %v5526_v37 = vrot.slane %v5510_v53, 9  ;;  %v4436_v11 = vrot.slane %v8431_v9, 5 }
 0x105   : > { %5975 = vmatmul.mubr.msk.bf16.gmra.mrb[8].mxu0 %vm712_vm3, %v7551_v30  ;;  %v4424_v30 = vrot.slane %v4422_v54, 4  ;;  %v5540_v10 = vcombine.low %v7766_v0, %v7783_v36  ;;  %v4439_v46 = vrot.slane %v7601_v45, 5  ;;  %v7807_v14 = vsel %vm6776_vm7, %v5525_v61, %v4429_v20 }
 0x106   : > { %5821 = vmatmul.mubr.msk.bf16.gmra.mrb[24].mxu1 %vm712_vm3, %v8428_v59  ;;  %5978 = vmatprep.mubr.msk.bf16.mxu0 %vm712_vm3, %v5477_v40  ;;  %v4431_v28 = vrot.slane %v4429_v20, 4  ;;  %v7809_v21 = vrot.slane %v3956_v55, 4  ;;  %v3980_v47 = vshrl.u32 %v5464_v63, 16  ;;  %v7813_v45 = vsel %vm6776_vm7, %v5526_v37, %v4436_v11  ;;  %v5238_v55 = vld [vmem:[%s6524_s30 + $0x78] sm:$0xf]  ;;  %v8433_v59 = vld [vmem:[#allocation16_spill] sm:$0xff] }
 0x107   : > { %5824 = vmatprep.mubr.msk.bf16.mxu1 %vm712_vm3, %v5128_v12  ;;  %v7791_v60 = vsel %vm6776_vm7, %v4424_v30, %v4425_v27  ;;  %v7795_v12 = vrot.slane %v3938_v8, 4  ;;  %v4438_v1 = vrot.slane %v4436_v11, 4  ;;  %v7817_v8 = vrot.slane %v3948_v50, 4 }
 0x108   : > { %v5541_v40 = vcombine.low %v7777_v15, %v7791_v60  ;;  %v7819_v62 = vrot.slane %v3959_v49, 5  ;;  %v3983_v29 = vshll.u32 %v5464_v63, 16  ;;  %v7823_v26 = vsel %vm6776_vm7, %v4431_v28, %v4432_v51  ;;  %v8436_v28 = vld [vmem:[#allocation14_spill] sm:$0xff] }
 0x109   : > { %v7826_v4 = vrot.slane %v3965_v22, 5  ;;  %v7828_v52 = vrot.slane %v3969_v33, 4  ;;  %v5542_v54 = vcombine.low %v7807_v14, %v7823_v26  ;;  %v7834_v27 = vsel %vm6776_vm7, %v4438_v1, %v4439_v46  ;;  %v5512_v33 = vld [vmem:[%s6524_s30 + $0x84] sm:$0xe]  ;;  %v6358_v1 = vld [vmem:[%s6524_s30 + $0x18] sm:$0xff]  }
 0x10a   : > { %v3975_v49 = vshll.u32 %v7798_v35, 16  ;;  %v3989_v50 = vshll.u32 %v7801_v58, 16  ;;  %v5543_v53 = vcombine.low %v7813_v45, %v7834_v27  ;;  %v5527_v22 = vrot.slane %v5511_v19, 9  ;;  %v6420_v60 = vld [vmem:[%s6524_s30 + $0xa0] sm:$0xf] }
 0x10b   : > { %v3982_v38 = vrot.slane %v3980_v47, 4  ;;  %v4446_v30 = vrot.slane %v8433_v59, 5  ;;  %v2302_v61 = vshrl.u32 %v5238_v55, 16  ;;  %v3985_v63 = vrot.slane %v3983_v29, 5  ;;  %v5467_v29 = vld [vmem:[%s6524_s30 + $0xcc] sm:$0xf] }
 0x10c   : > { %v3993_v18 = vshrl.u32 %v7801_v58, 16  ;;  %v2305_v43 = vshll.u32 %v5238_v55, 16  ;;  %v5528_v37 = vrot.slane %v5512_v33, 9  ;;  %v3944_v9 = vsel %vm6550_vm4, %v7795_v12, %v7734_v42  ;;  %v7877_v55 = vld [vmem:[%s6524_s30 + $0xd0] sm:$0xf] }
 0x10d   : > { %5979 = vmatmul.mubr.msk.bf16.gmra.mrb[12].mxu0 %vm712_vm3, %v7732_v44  ;;  %v4443_v44 = vrot.slane %v8432_v23, 5  ;;  %v2304_v51 = vrot.slane %v2302_v61, 4  ;;  %v3962_v11 = vor.u32 %v7819_v62, %v7809_v21  ;;  %v4450_v47 = vrot.slane %v8436_v28, 5  ;;  %v6359_v21 = vld [vmem:[%s6524_s30 + $0x24] sm:$0xff]   ;;  %v6424_v27 = vld [vmem:[%s6524_s30 + $0xac] sm:$0xf] }
 0x10e   : > { %5825 = vmatmul.mubr.msk.bf16.gmra.mrb[28].mxu1 %vm712_vm3, %v5129_v56  ;;  %5982 = vmatprep.mubr.msk.bf16.mxu0 %vm712_vm3, %v7736_v41  ;;  %v8435_v56 = vld [vmem:[#allocation5_spill] sm:$0xff]  ;;  %v2307_v46 = vrot.slane %v2305_v43, 5  ;;  %v3954_v19 = vsel %vm6550_vm4, %v7817_v8, %v7746_v17  ;;  %v4453_v12 = vrot.slane %v7629_v2, 5  ;;  %v7885_v62 = vrot.slane %v3989_v50, 5  ;;  %v5513_v8 = vld [vmem:[%s6524_s30 + $0x90] sm:$0xe] }
 0x10f   : > { %5830 = vmatprep.mubr.msk.bf16.mxu1 %vm712_vm3, %v6357_v6  ;;  %v2324_v41 = vsel %vm6550_vm4, %v8435_v56, %v8434_v16  ;;  %v7859_v20 = vsel %vm6776_vm7, %v5527_v22, %v4443_v44  ;;  %v4445_v31 = vrot.slane %v4443_v44, 4  ;;  %v3972_v6 = vor.u32 %v7828_v52, %v7826_v4  ;;  %v7891_v52 = vld [vmem:[%s6524_s30 + $0xc8] sm:$0x1]  ;;  %v8438_v16 = vld [vmem:[#allocation2_spill] sm:$0xff] }
 0x110   : > { %v3995_v22 = vrot.slane %v3993_v18, 4  ;;  %v2308_v17 = vor.u32 %v2307_v46, %v2304_v51  ;;  %v3977_v23 = vrot.slane %v3975_v49, 5  ;;  %v3986_v44 = vor.u32 %v3985_v63, %v3982_v38  ;;  %v8439_v51 = vld [vmem:[#allocation3_spill] sm:$0xff] }
 0x111   : > { %v7881_v42 = vsel %vm6776_vm7, %v4445_v31, %v4446_v30  ;;  %v7895_v59 = vsel %vm6776_vm7, %v5528_v37, %v4450_v47  ;;  %v4452_v30 = vrot.slane %v4450_v47, 4  ;;  %v4004_v2 = vshrl.u32 %v5467_v29, 16 }
 0x112   : > { %v5544_v33 = vcombine.low %v7859_v20, %v7881_v42  ;;  %v4007_v50 = vshll.u32 %v5467_v29, 16  ;;  %v4013_v61 = vshll.u32 %v7877_v55, 16  ;;  %v2309_v18 = vrot.slane %v2308_v17, 4  ;;  %v6360_v29 = vld [vmem:[%s6524_s30 + $0x30] sm:$0xff]  }
 0x113   : > { %v4017_v49 = vshrl.u32 %v7877_v55, 16  ;;  %v7906_v38 = vsel %vm6776_vm7, %v4452_v30, %v4453_v12  ;;  %v5529_v63 = vrot.slane %v5513_v8, 9  ;;  %v3996_v56 = vor.u32 %v3995_v22, %v7885_v62 }
 0x114   : > { %v3999_v31 = vshll.u32 %v7891_v52, 16  ;;  %v5545_v37 = vcombine.low %v7895_v59, %v7906_v38  ;;  %v5483_v46 = vcombine.low %v3944_v9, %v3954_v19  ;;  %v3963_v28 = vrot.slane %v3962_v11, 4  ;;  %v5514_v11 = vld [vmem:[%s6524_s30 + $0x9c] sm:$0xe] }
 0x115   : > { %5983 = vmatmul.mubr.msk.bf16.gmra.mrb[16].mxu0 %vm712_vm3, %v7738_v5  ;;  %v8437_v5 = vld [vmem:[#allocation15_spill] sm:$0xff]  ;;  %v3973_v47 = vrot.slane %v3972_v6, 4  ;;  %v3987_v12 = vrot.slane %v3986_v44, 4  ;;  %v4460_v8 = vrot.slane %v7638_v3, 5  ;;  %v4006_v30 = vrot.slane %v4004_v2, 4  ;;  %v6361_v19 = vld [vmem:[%s6524_s30 + $0x3c] sm:$0xff]  }
 0x116   : > { %5831 = vmatmul.mubr.msk.bf16.vlgmr.msra.gmra.mrb[0].mxu1 %vm712_vm3, %v6358_v1  ;;  %5986 = vmatprep.mubr.msk.bf16.mxu0 %vm712_vm3, %v7740_v7  ;;  %v4457_v43 = vrot.slane %v8437_v5, 5  ;;  %v2314_v7 = vsel %vm6550_vm4, %v2309_v18, %v8439_v51  ;;  %v4009_v18 = vrot.slane %v4007_v50, 5  ;;  %v7929_v5 = vrot.slane %v4013_v61, 5 }
 0x117   : > { %6033 = vmatpush3.bf16.msra.mxu1 %v8438_v16  ;;  %5834 = vmatprep.mubr.msk.bf16.mxu1 %vm712_vm3, %v6359_v21  ;;  %v7918_v1 = vcombine.low %v2314_v7, %v2324_v41  ;;  %v7922_v21 = vld [vmem:[%s6524_s30 + $0xd4] sm:$0x1]  ;;  %v4019_v9 = vrot.slane %v4017_v49, 4  ;;  %v3997_v41 = vrot.slane %v3996_v56, 4  ;;  %v4001_v6 = vrot.slane %v3999_v31, 5 }
 0x118   : > { %v7926_v22 = vsel %vm6776_vm7, %v5529_v63, %v4457_v43  ;;  %v4459_v17 = vrot.slane %v4457_v43, 4  ;;  %v3968_v63 = vsel %vm6550_vm4, %v3963_v28, %v7826_v4  ;;  %v3978_v2 = vsel %vm6550_vm4, %v3973_v47, %v3977_v23  ;;  %v6411_v16 = vld [vmem:[%s6524_s30 + $0x1c] sm:$0xf]  ;;  %v5515_v28 = vld [vmem:[%s6524_s30 + $0xa8] sm:$0xe] }
 0x119   : > { %v4023_v50 = vshll.u32 %v7922_v21, 16  ;;  %v5530_v61 = vrot.slane %v5514_v11, 9  ;;  %v4464_v49 = vrot.slane %v7626_v25, 5  ;;  %v3992_v4 = vsel %vm6550_vm4, %v3987_v12, %v7885_v62  ;;  %v5503_v62 = vld [vmem:[%s6524_s30 + $0x18] sm:$0xe]  ;;  %v6362_v47 = vld [vmem:[%s6524_s30 + $0x48] sm:$0xff]  }
 0x11a   : > { %v7935_v44 = vsel %vm6776_vm7, %v4459_v17, %v4460_v8  ;;  %v4020_v43 = vor.u32 %v4019_v9, %v7929_v5  ;;  %v4467_v23 = vrot.slane %v7671_v57, 5  ;;  %v4002_v25 = vsel %vm6550_vm4, %v3997_v41, %v4001_v6  ;;  %v6412_v11 = vld [vmem:[%s6524_s30 + $0x20] sm:$0x1] }
 0x11b   : > { %v5546_v3 = vcombine.low %v7926_v22, %v7935_v44  ;;  %v4387_v56 = vrot.slane %v6411_v16, 5  ;;  %v7961_v31 = vsel %vm6776_vm7, %v5530_v61, %v4464_v49  ;;  %v4466_v51 = vrot.slane %v4464_v49, 4  ;;  %v5516_v49 = vld [vmem:[%s6524_s30 + $0xb4] sm:$0xe] }
 0x11c   : > { %v5484_v7 = vcombine.low %v3968_v63, %v3978_v2  ;;  %v4021_v17 = vrot.slane %v4020_v43, 4  ;;  %v5531_v41 = vrot.slane %v5515_v28, 9  ;;  %v4471_v6 = vrot.slane %v7674_v34, 5  ;;  %v5504_v2 = vld [vmem:[%s6524_s30 + $0x24] sm:$0xe] }
 0x11d   : > { %5987 = vmatmul.mubr.msk.bf16.gmra.mrb[20].mxu0 %vm712_vm3, %v7773_v24  ;;  %v4010_v24 = vor.u32 %v4009_v18, %v4006_v30  ;;  %v7966_v57 = vsel %vm6776_vm7, %v4466_v51, %v4467_v23  ;;  %v6363_v30 = vld [vmem:[%s6524_s30 + $0x54] sm:$0xff]   ;;  %v5519_v18 = vrot.slane %v5503_v62, 9  ;;  %v4389_v9 = vrot.slane %v4387_v56, 4  ;;  %v6415_v28 = vld [vmem:[%s6524_s30 + $0x2c] sm:$0x1] }
 0x11e   : > { %5835 = vmatmul.mubr.msk.bf16.gmra.mrb[4].mxu1 %vm712_vm3, %v6360_v29  ;;  %5990 = vmatprep.mubr.msk.bf16.mxu0 %vm712_vm3, %v5483_v46  ;;  %v4025_v46 = vrot.slane %v4023_v50, 5  ;;  %v5485_v29 = vcombine.low %v3992_v4, %v4002_v25  ;;  %v5547_v8 = vcombine.low %v7961_v31, %v7966_v57  ;;  %v4474_v63 = vrot.slane %v7684_v48, 5  ;;  %v6413_v50 = vld [vmem:[%s6524_s30 + $0x28] sm:$0xf]  ;;  %v5505_v25 = vld [vmem:[%s6524_s30 + $0x30] sm:$0xe] }
 0x11f   : > { %5838 = vmatprep.mubr.msk.bf16.mxu1 %vm712_vm3, %v6361_v19  ;;  %v4011_v12 = vrot.slane %v4010_v24, 4  ;;  %v4390_v19 = vrot.slane %v6412_v11, 5  ;;  %v4394_v61 = vrot.slane %v6413_v50, 5  ;;  %v7989_v48 = vsel %vm6776_vm7, %v5531_v41, %v4471_v6  ;;  %v6365_v11 = vld [vmem:[%s6524_s30 + $0x6c] sm:$0xff]   ;;  %v8440_v41 = vld [vmem:[#allocation6_spill] sm:$0xff] }
 0x120   : > { %v4026_v34 = vsel %vm6550_vm4, %v4021_v17, %v4025_v46  ;;  %v4473_v24 = vrot.slane %v4471_v6, 4  ;;  %v4388_v43 = vsel %vm6776_vm7, %v5519_v18, %v4387_v56  ;;  %v5520_v51 = vrot.slane %v5504_v2, 9  ;;  %v5517_v50 = vld [vmem:[%s6524_s30 + $0xc0] sm:$0xe]  ;;  %v6429_v31 = vld [vmem:[%s6524_s30 + $0xc8] sm:$0x1] }
 0x121   : > { %v4016_v4 = vsel %vm6550_vm4, %v4011_v12, %v7929_v5  ;;  %v4391_v23 = vsel %vm6776_vm7, %v4389_v9, %v4390_v19  ;;  %v6414_v5 = vld [vmem:[%s6524_s30 + $0x34] sm:$0xf]  ;;  %v6364_v12 = vld [vmem:[%s6524_s30 + $0x60] sm:$0xff]   ;;  %v5521_v18 = vrot.slane %v5505_v25, 9  ;;  %v4481_v9 = vrot.slane %v7798_v35, 5 }
 0x122   : > { %v4401_v16 = vrot.slane %v6414_v5, 5  ;;  %v8000_v62 = vsel %vm6776_vm7, %v4473_v24, %v4474_v63  ;;  %v5486_v46 = vcombine.low %v4016_v4, %v4026_v34  ;;  %v5536_v17 = vcombine.low %v4388_v43, %v4391_v23  ;;  %v5506_v24 = vld [vmem:[%s6524_s30 + $0x3c] sm:$0xe] }
 0x123   : > { %v5548_v56 = vcombine.low %v7989_v48, %v8000_v62  ;;  %v4404_v6 = vrot.slane %v8440_v41, 5  ;;  %v4395_v35 = vsel %vm6776_vm7, %v5520_v51, %v4394_v61  ;;  %v5533_v5 = vrot.slane %v5517_v50, 9 }
 0x124   : > { %v4403_v19 = vrot.slane %v4401_v16, 4  ;;  %v4402_v23 = vsel %vm6776_vm7, %v5521_v18, %v4401_v16  ;;  %v4488_v51 = vrot.slane %v7891_v52, 5  ;;  %v2465_v57 = vshll.u32 %v6429_v31, 16 }
 0x125   : > { %5991 = vmatmul.mubr.msk.bf16.gmra.mrb[24].mxu0 %vm712_vm3, %v5484_v7  ;;  %v5532_v7 = vrot.slane %v5516_v49, 9 }
 0x126   : > { %5839 = vmatmul.mubr.msk.bf16.gmra.mrb[8].mxu1 %vm712_vm3, %v6362_v47  ;;  %5994 = vmatprep.mubr.msk.bf16.mxu0 %vm712_vm3, %v5485_v29  ;;  %v4397_v47 = vrot.slane %v6415_v28, 5  ;;  %v4478_v29 = vrot.slane %v7749_v39, 5  ;;  %v8441_v39 = vld [vmem:[#allocation7_spill] sm:$0xff]  ;;  %v4405_v25 = vsel %vm6776_vm7, %v4403_v19, %v4404_v6  ;;  %v5522_v28 = vrot.slane %v5506_v24, 9 }
 0x127   : > { %5842 = vmatprep.mubr.msk.bf16.mxu1 %vm712_vm3, %v6363_v30  ;;  %v4396_v30 = vrot.slane %v4394_v61, 4  ;;  %v4408_v49 = vrot.slane %v8441_v39, 5  ;;  %v4485_v61 = vrot.slane %v7801_v58, 5  ;;  %v6416_v39 = vld [vmem:[%s6524_s30 + $0x70] sm:$0xf]  ;;  %v4492_v24 = vrot.slane %v7877_v55, 5 }
 0x128   : > { %v8012_v63 = vsel %vm6776_vm7, %v5532_v7, %v4478_v29  ;;  %v4480_v2 = vrot.slane %v4478_v29, 4  ;;  %v5235_v7 = vld [vmem:[%s6524_s30 + $0x6c] sm:$0xf]  ;;  %v8442_v29 = vld [vmem:[#allocation8_spill] sm:$0xff] }
 0x129   : > { %v4398_v34 = vsel %vm6776_vm7, %v4396_v30, %v4397_v47  ;;  %v4410_v47 = vrot.slane %v4408_v49, 4  ;;  %v6366_v30 = vld [vmem:[%s6524_s30 + $0x78] sm:$0xff]   ;;  %v8043_v16 = vsel %vm6776_vm7, %v5533_v5, %v4485_v61  ;;  %v4487_v18 = vrot.slane %v4485_v61, 4 }
 0x12a   : > { %v8019_v4 = vsel %vm6776_vm7, %v4480_v2, %v4481_v9  ;;  %v5538_v9 = vcombine.low %v4402_v23, %v4405_v25  ;;  %v2278_v19 = vshrl.u32 %v5235_v7, 16  ;;  %v2281_v41 = vshll.u32 %v5235_v7, 16 }
 0x12b   : > { %v5549_v43 = vcombine.low %v8012_v63, %v8019_v4  ;;  %v8048_v58 = vsel %vm6776_vm7, %v4487_v18, %v4488_v51  ;;  %v4409_v6 = vsel %vm6776_vm7, %v5522_v28, %v4408_v49  ;;  %v4495_v49 = vrot.slane %v7922_v21, 5  ;;  %v6368_v51 = vld [vmem:[%s6524_s30 + $0x90] sm:$0xff]   ;;  %v6369_v21 = vld [vmem:[%s6524_s30 + $0x9c] sm:$0xff]  }
 0x12c   : > { %v5550_v50 = vcombine.low %v8043_v16, %v8048_v58  ;;  %v2280_v23 = vrot.slane %v2278_v19, 4  ;;  %v2283_v25 = vrot.slane %v2281_v41, 5  ;;  %v4494_v7 = vrot.slane %v4492_v24, 4 }
 0x12d   : > { %5995 = vmatmul.mubr.msk.bf16.gmra.mrb[28].mxu0 %vm712_vm3, %v5486_v46  ;;  %v5537_v46 = vcombine.low %v4395_v35, %v4398_v34  ;;  %v2287_v35 = vshll.u32 %v6416_v39, 16  ;;  %v2291_v34 = vshrl.u32 %v6416_v39, 16 }
 0x12e   : > { %5843 = vmatmul.mubr.msk.bf16.gmra.mrb[12].mxu1 %vm712_vm3, %v6364_v12  ;;  %6000 = vmatprep.mubr.msk.bf16.mxu0 %vm712_vm3, %v5536_v17  ;;  %v4411_v12 = vrot.slane %v8442_v29, 5  ;;  %v5518_v17 = vld [vmem:[%s6524_s30 + $0xcc] sm:$0xe]  ;;  %v8070_v55 = vsel %vm6776_vm7, %v4494_v7, %v4495_v49 }
 0x12f   : > { %5846 = vmatprep.mubr.msk.bf16.mxu1 %vm712_vm3, %v6365_v11  ;;  %v6367_v11 = vld [vmem:[%s6524_s30 + $0x84] sm:$0xff]   ;;  %v5534_v52 = vrot.slane %v5518_v17, 9  ;;  %v2293_v28 = vrot.slane %v2291_v34, 4  ;;  %v6417_v17 = vld [vmem:[%s6524_s30 + $0x74] sm:$0x1] }
 0x130   : > { %v4412_v2 = vsel %vm6776_vm7, %v4410_v47, %v4411_v12  ;;  %v5241_v47 = vld [vmem:[%s6524_s30 + $0x84] sm:$0xf]  ;;  %v2284_v12 = vor.u32 %v2283_v25, %v2280_v23  ;;  %v6371_v34 = vld [vmem:[%s6524_s30 + $0xb4] sm:$0xff]  }
 0x131   : > { %v8065_v5 = vsel %vm6776_vm7, %v5534_v52, %v4492_v24  ;;  %v5539_v61 = vcombine.low %v4409_v6, %v4412_v2  ;;  %v2329_v18 = vshll.u32 %v5241_v47, 16  ;;  %v5244_v6 = vld [vmem:[%s6524_s30 + $0x90] sm:$0xf]  ;;  %v6370_v2 = vld [vmem:[%s6524_s30 + $0xa8] sm:$0xff]  }
 0x132   : > { %v5551_v29 = vcombine.low %v8065_v5, %v8070_v55  ;;  %v2285_v52 = vrot.slane %v2284_v12, 4  ;;  %v2350_v23 = vshrl.u32 %v5244_v6, 16  ;;  %v2353_v25 = vshll.u32 %v5244_v6, 16 }
 0x133   : > { %v2383_v12 = vshll.u32 %v6420_v60, 16 }
 0x134   : > { %v2355_v14 = vrot.slane %v2353_v25, 5  ;;  %v6423_v25 = vld [vmem:[%s6524_s30 + $0xa4] sm:$0x1] }
 0x135   : > { %6001 = vmatmul.mubr.msk.bf16.vlgmr.msra.gmra.mrb[0].mxu0 %vm712_vm3, %v5537_v46  ;;  %v2289_v46 = vrot.slane %v2287_v35, 5  ;;  %v5247_v35 = vld [vmem:[%s6524_s30 + $0x9c] sm:$0xf]  ;;  %v8112_v6 = vrot.slane %v2383_v12, 5 }
 0x136   : > { %5847 = vmatmul.mubr.msk.bf16.gmra.mrb[16].mxu1 %vm712_vm3, %v6366_v30  ;;  %6004 = vmatprep.mubr.msk.bf16.mxu0 %vm712_vm3, %v5538_v9  ;;  %v2297_v30 = vshll.u32 %v6417_v17, 16  ;;  %v2326_v9 = vshrl.u32 %v5241_v47, 16  ;;  %v2377_v47 = vshll.u32 %v5247_v35, 16  ;;  %v6421_v17 = vld [vmem:[%s6524_s30 + $0x8c] sm:$0x1] }
 0x137   : > { %5850 = vmatprep.mubr.msk.bf16.mxu1 %vm712_vm3, %v6367_v11  ;;  %v2294_v13 = vor.u32 %v2293_v28, %v2289_v46  ;;  %v6418_v11 = vld [vmem:[%s6524_s30 + $0x88] sm:$0xf]  ;;  %v2290_v7 = vsel %vm6550_vm4, %v2285_v52, %v2289_v46 }
 0x138   : > { %v2335_v19 = vshll.u32 %v6418_v11, 16  ;;  %v2339_v41 = vshrl.u32 %v6418_v11, 16  ;;  %v2299_v0 = vrot.slane %v2297_v30, 5  ;;  %v2328_v36 = vrot.slane %v2326_v9, 4 }
 0x139   : > { %v2295_v39 = vrot.slane %v2294_v13, 4  ;;  %v2345_v30 = vshll.u32 %v6421_v17, 16  ;;  %v2352_v9 = vrot.slane %v2350_v23, 4  ;;  %v2379_v11 = vrot.slane %v2377_v47, 5 }
 0x13a   : > { %v8089_v24 = vrot.slane %v2335_v19, 5  ;;  %v2341_v49 = vrot.slane %v2339_v41, 4  ;;  %v6372_v19 = vld [vmem:[%s6524_s30 + $0xc0] sm:$0xff]  }
 0x13b   : > { %v2300_v46 = vsel %vm6550_vm4, %v2295_v39, %v2299_v0  ;;  %v5250_v39 = vld [vmem:[%s6524_s30 + $0xa8] sm:$0xf] }
 0x13c   : > { %v2342_v13 = vor.u32 %v2341_v49, %v8089_v24  ;;  %v5268_v41 = vcombine.low %v2290_v7, %v2300_v46  ;;  %v2393_v7 = vshll.u32 %v6423_v25, 16  ;;  %v2401_v45 = vshll.u32 %v5250_v39, 16 }
 0x13d   : > { %6005 = vmatmul.mubr.msk.bf16.gmra.mrb[4].mxu0 %vm712_vm3, %v5539_v61  ;;  %v6419_v61 = vld [vmem:[%s6524_s30 + $0x94] sm:$0xf] }
 0x13e   : > { %5851 = vmatmul.mubr.msk.bf16.gmra.mrb[20].mxu1 %vm712_vm3, %v6368_v51  ;;  %6008 = vmatprep.mubr.msk.bf16.mxu0 %vm712_vm3, %v5540_v10  ;;  %v2331_v10 = vrot.slane %v2329_v18, 5  ;;  %v2359_v51 = vshll.u32 %v6419_v61, 16  ;;  %v2363_v28 = vshrl.u32 %v6419_v61, 16  ;;  %v2343_v0 = vrot.slane %v2342_v13, 4 }
 0x13f   : > { %5854 = vmatprep.mubr.msk.bf16.mxu1 %vm712_vm3, %v6369_v21  ;;  %v2374_v21 = vshrl.u32 %v5247_v35, 16  ;;  %v6422_v35 = vld [vmem:[%s6524_s30 + $0x98] sm:$0x1]  ;;  %v2398_v61 = vshrl.u32 %v5250_v39, 16  ;;  %v5256_v39 = vld [vmem:[%s6524_s30 + $0xc0] sm:$0xf] }
 0x140   : > { %v2332_v15 = vor.u32 %v2331_v10, %v2328_v36  ;;  %v8109_v26 = vrot.slane %v2359_v51, 5  ;;  %v2347_v36 = vrot.slane %v2345_v30, 5  ;;  %v2356_v10 = vor.u32 %v2355_v14, %v2352_v9  ;;  %v5253_v51 = vld [vmem:[%s6524_s30 + $0xb4] sm:$0xf] }
 0x141   : > { %v2376_v18 = vrot.slane %v2374_v21, 4  ;;  %v2411_v21 = vshrl.u32 %v6424_v27, 16  ;;  %v2422_v20 = vshrl.u32 %v5253_v51, 16  ;;  %v2425_v42 = vshll.u32 %v5253_v51, 16 }
 0x142   : > { %v2333_v52 = vrot.slane %v2332_v15, 4  ;;  %v2348_v46 = vsel %vm6550_vm4, %v2343_v0, %v2347_v36  ;;  %v2357_v15 = vrot.slane %v2356_v10, 4  ;;  %v2395_v30 = vrot.slane %v2393_v7, 5 }
 0x143   : > { %v2380_v23 = vor.u32 %v2379_v11, %v2376_v18  ;;  %v2400_v9 = vrot.slane %v2398_v61, 4  ;;  %v2413_v11 = vrot.slane %v2411_v21, 4  ;;  %v6428_v61 = vld [vmem:[%s6524_s30 + $0xbc] sm:$0x1] }
 0x144   : > { %v2338_v47 = vsel %vm6550_vm4, %v2333_v52, %v8089_v24  ;;  %v2362_v0 = vsel %vm6550_vm4, %v2357_v15, %v8109_v26  ;;  %v2441_v22 = vshll.u32 %v6428_v61, 16 }
 0x145   : > { %6009 = vmatmul.mubr.msk.bf16.gmra.mrb[8].mxu0 %vm712_vm3, %v5541_v40  ;;  %v2387_v40 = vshrl.u32 %v6420_v60, 16  ;;  %v2381_v17 = vrot.slane %v2380_v23, 4  ;;  %v5270_v24 = vcombine.low %v2338_v47, %v2348_v46 }
 0x146   : > { %5855 = vmatmul.mubr.msk.bf16.gmra.mrb[24].mxu1 %vm712_vm3, %v6370_v2  ;;  %6012 = vmatprep.mubr.msk.bf16.mxu0 %vm712_vm3, %v5542_v54  ;;  %v2365_v54 = vrot.slane %v2363_v28, 4 }
 0x147   : > { %5858 = vmatprep.mubr.msk.bf16.mxu1 %vm712_vm3, %v6371_v34  ;;  %v2389_v2 = vrot.slane %v2387_v40, 4  ;;  %v2369_v34 = vshll.u32 %v6422_v35, 16  ;;  %v2386_v10 = vsel %vm6550_vm4, %v2381_v17, %v8112_v6  ;;  %v2467_v17 = vrot.slane %v2465_v57, 5 }
 0x148   : > { %v2366_v49 = vor.u32 %v2365_v54, %v8109_v26  ;;  %v2403_v54 = vrot.slane %v2401_v45, 5  ;;  %v6426_v26 = vld [vmem:[%s6524_s30 + $0xb0] sm:$0x1] }
 0x149   : > { %v2390_v28 = vor.u32 %v2389_v2, %v8112_v6  ;;  %v2371_v60 = vrot.slane %v2369_v34, 5  ;;  %v2417_v35 = vshll.u32 %v6426_v26, 16  ;;  %v2446_v34 = vshrl.u32 %v5256_v39, 16 }
 0x14a   : > { %v2367_v13 = vrot.slane %v2366_v49, 4  ;;  %v2404_v38 = vor.u32 %v2403_v54, %v2400_v9  ;;  %v2449_v6 = vshll.u32 %v5256_v39, 16  ;;  %v6427_v49 = vld [vmem:[%s6524_s30 + $0xc4] sm:$0xf] }
 0x14b   : > { %v2391_v14 = vrot.slane %v2390_v28, 4  ;;  %v2455_v23 = vshll.u32 %v6427_v49, 16  ;;  %v2459_v25 = vshrl.u32 %v6427_v49, 16  ;;  %v2419_v45 = vrot.slane %v2417_v35, 5 }
 0x14c   : > { %v2372_v36 = vsel %vm6550_vm4, %v2367_v13, %v2371_v60  ;;  %v2405_v51 = vrot.slane %v2404_v38, 4  ;;  %v2443_v60 = vrot.slane %v2441_v22, 5 }
 0x14d   : > { %6013 = vmatmul.mubr.msk.bf16.gmra.mrb[12].mxu0 %vm712_vm3, %v5543_v53  ;;  %v2407_v53 = vshll.u32 %v6424_v27, 16  ;;  %v2396_v59 = vsel %vm6550_vm4, %v2391_v14, %v2395_v30  ;;  %v5271_v44 = vcombine.low %v2362_v0, %v2372_v36  ;;  %v2448_v27 = vrot.slane %v2446_v34, 4  ;;  %v8220_v36 = vld [vmem:[%s8374_s3] ss:$0 sm:$0xff] }
 0x14e   : > { %5859 = vmatmul.mubr.msk.bf16.gmra.mrb[28].mxu1 %vm712_vm3, %v6372_v19  ;;  %6016 = vmatprep.mubr.msk.bf16.mxu0 %vm712_vm3, %v5544_v33  ;;  %v6425_v33 = vld [vmem:[%s6524_s30 + $0xb8] sm:$0xf]  ;;  %v2424_v19 = vrot.slane %v2422_v20, 4  ;;  %v2457_v21 = vrot.slane %v2455_v23, 5  ;;  %v2461_v47 = vrot.slane %v2459_v25, 4  ;;  %s8230_s30 = scalar_lea.vmem %s8375_s4, %s5572_s27 }
 0x14f   : > { %5880 = vmatprep.mubr.msk.bf16.mxu1 %vm712_vm3, %v5268_v41  ;;  %v2431_v12 = vshll.u32 %v6425_v33, 16  ;;  %v2435_v40 = vshrl.u32 %v6425_v33, 16  ;;  %v2409_v18 = vrot.slane %v2407_v53, 5  ;;  %v2427_v41 = vrot.slane %v2425_v42, 5 }
 0x150   : > { %v2451_v53 = vrot.slane %v2449_v6, 5 }
 0x151   : > { %v2433_v52 = vrot.slane %v2431_v12, 5  ;;  %v2437_v2 = vrot.slane %v2435_v40, 4  ;;  %v2410_v20 = vsel %vm6550_vm4, %v2405_v51, %v2409_v18  ;;  %v2462_v12 = vor.u32 %v2461_v47, %v2457_v21 }
 0x152   : > { %v2452_v33 = vor.u32 %v2451_v53, %v2448_v27 }
 0x153   : > { %v2438_v7 = vor.u32 %v2437_v2, %v2433_v52  ;;  %v2463_v13 = vrot.slane %v2462_v12, 4  ;;  %v8215_v2 = vld [vmem:[%s8373_s2] ss:$0 sm:$0xff] }
 0x154   : > { %v2453_v40 = vrot.slane %v2452_v33, 4 }
 0x155   : > { %6017 = vmatmul.mubr.msk.bf16.gmra.mrb[16].mxu0 %vm712_vm3, %v5545_v37  ;;  %v2414_v37 = vor.u32 %v2413_v11, %v2409_v18  ;;  %v2439_v15 = vrot.slane %v2438_v7, 4  ;;  %v2468_v9 = vsel %vm6550_vm4, %v2463_v13, %v2467_v17 }
 0x156   : > { %5881 = vmatmul.mubr.msk.bf16.vlgmr.msra.gmra.mrb[16].mxu1 %vm712_vm3, %v7918_v1  ;;  %6020 = vmatprep.mubr.msk.bf16.mxu0 %vm712_vm3, %v5546_v3  ;;  %v2428_v1 = vor.u32 %v2427_v41, %v2424_v19  ;;  %v5272_v3 = vcombine.low %v2386_v10, %v2396_v59  ;;  %v2458_v30 = vsel %vm6550_vm4, %v2453_v40, %v2457_v21 }
 0x157   : > { %5884 = vmatprep.mubr.msk.bf16.mxu1 %vm712_vm3, %v5270_v24  ;;  %v2415_v28 = vrot.slane %v2414_v37, 4  ;;  %v2444_v48 = vsel %vm6550_vm4, %v2439_v15, %v2443_v60  ;;  %v5275_v14 = vcombine.low %v2458_v30, %v2468_v9 }
 0x158   : > { %v2429_v46 = vrot.slane %v2428_v1, 4 }
 0x159   : > { %v2420_v42 = vsel %vm6550_vm4, %v2415_v28, %v2419_v45 }
 0x15a   : > { %v5273_v62 = vcombine.low %v2410_v20, %v2420_v42 }
 0x15d   : > { %6021 = vmatmul.mubr.msk.bf16.gmra.mrb[20].mxu0 %vm712_vm3, %v5547_v8  ;;  %v2434_v8 = vsel %vm6550_vm4, %v2429_v46, %v2433_v52 }
 0x15e   : > { %5885 = vmatmul.mubr.msk.bf16.gmra.mrb[20].mxu1 %vm712_vm3, %v5271_v44  ;;  %6024 = vmatprep.mubr.msk.bf16.mxu0 %vm712_vm3, %v5548_v56  ;;  %v5274_v56 = vcombine.low %v2434_v8, %v2444_v48 }
 0x15f   : > { %5888 = vmatprep.mubr.msk.bf16.mxu1 %vm712_vm3, %v5272_v3 }
 0x165   : > { %6025 = vmatmul.mubr.msk.bf16.gmra.mrb[24].mxu0 %vm712_vm3, %v5549_v43 }
 0x166   : > { %5889 = vmatmul.mubr.msk.bf16.gmra.mrb[24].mxu1 %vm712_vm3, %v5273_v62  ;;  %6028 = vmatprep.mubr.msk.bf16.mxu0 %vm712_vm3, %v5550_v50 }
 0x167   : > { %5892 = vmatprep.mubr.msk.bf16.mxu1 %vm712_vm3, %v5274_v56 }
 0x16d   : > { %6029 = vmatmul.mubr.msk.bf16.gmra.mrb[28].mxu0 %vm712_vm3, %v5551_v29 }
 0x16e   : > { %5893 = vmatmul.mubr.msk.bf16.gmra.mrb[28].mxu1 %vm712_vm3, %v5275_v14 }
 0x1e9   : > { %v5832_v63 = vpop.f32.mrb[0].mxu1 }
 0x1ea   : > { %v1878_v4 = vpop.f32.mrb[1].mxu1 }
 0x1eb   : > { %v5833_v43 = vpop.f32.mrb[2].mxu1 }
 0x1ec   : > { %v1881_v16 = vpop.f32.mrb[3].mxu1 }
 0x1f1   : > { %v5836_v58 = vpop.f32.mrb[4].mxu1 }
 0x1f2   : > { %v1894_v50 = vpop.f32.mrb[5].mxu1 }
 0x1f3   : > { %v5837_v54 = vpop.f32.mrb[6].mxu1 }
 0x1f4   : > { %v1897_v18 = vpop.f32.mrb[7].mxu1 }
 0x1f9   : > { %v5840_v11 = vpop.f32.mrb[8].mxu1 }
 0x1fa   : > { %v1910_v32 = vpop.f32.mrb[9].mxu1 }
 0x1fb   : > { %v8200_v24 = vpop.f32.mrb[10].mxu1 }
 0x1fc   : > { %v8202_v19 = vpop.f32.mrb[11].mxu1 }
 0x201   : > { %v8204_v5 = vpop.f32.mrb[12].mxu1 }
 0x202   : > { %v8206_v55 = vpop.f32.mrb[13].mxu1 }
 0x203   : > { %v8208_v29 = vpop.f32.mrb[14].mxu1 }
 0x204   : > { %v8210_v41 = vpop.f32.mrb[15].mxu1 }
 0x208   : > { %v6002_v52 = vpop.f32.mrb[0].mxu0 }
 0x209   : > { %v6034_v39 = vadd.f32 %v6002_v52, %v5832_v63  ;;  %v4632_v0 = vpop.f32.mrb[1].mxu0 }
 0x20a   : > { %v6035_v10 = vadd.f32 %v4632_v0, %v1878_v4  ;;  %v6003_v59 = vpop.f32.mrb[2].mxu0 }
 0x20b   : > { %v4800_v38 = vmul.f32 %v6034_v39, %v8215_v2  ;;  %v6036_v37 = vadd.f32 %v6003_v59, %v5833_v43  ;;  %v4635_v26 = vpop.f32.mrb[3].mxu0 }
 0x20c   : > { %v4798_v35 = vmul.f32 %v6035_v10, %v8215_v2  ;;  %v6037_v34 = vadd.f32 %v4635_v26, %v1881_v16 }
 0x20d   : > { %v4839_v6 = vadd.f32 %v8220_v36, %v4800_v38  ;;  %v4801_v49 = vmul.f32 %v6036_v37, %v8215_v2 }
 0x20e   : > { %v4837_v23 = vadd.f32 %v8220_v36, %v4798_v35  ;;  %v4799_v25 = vmul.f32 %v6037_v34, %v8215_v2 }
 0x20f   : > { %v4871_v1 = vmax.f32 %v4839_v6, 0.0  ;;  %v4840_v7 = vadd.f32 %v8220_v36, %v4801_v49 }
 0x210   : > { %v4869_v61 = vmax.f32 %v4837_v23, 0.0  ;;  %v4838_v22 = vadd.f32 %v8220_v36, %v4799_v25  ;;  %v6006_v44 = vpop.f32.mrb[4].mxu0 }
 0x211   : > { %4903 = vst.msk [vmem:[%s8230_s30 + $0x10] sm:$0xff] %vm712_vm3, %v4871_v1  ;;  %v4872_v3 = vmax.f32 %v4840_v7, 0.0  ;;  %v6038_v51 = vadd.f32 %v6006_v44, %v5836_v58  ;;  %v4648_v28 = vpop.f32.mrb[5].mxu0 }
 0x212   : > { %4901 = vst.msk [vmem:[%s8230_s30] sm:$0xff] %vm712_vm3, %v4869_v61  ;;  %v4870_v45 = vmax.f32 %v4838_v22, 0.0  ;;  %v6039_v27 = vadd.f32 %v4648_v28, %v1894_v50  ;;  %v6007_v53 = vpop.f32.mrb[6].mxu0 }
 0x213   : > { %4904 = vst.msk [vmem:[%s8230_s30 + $0x18] sm:$0xff] %vm712_vm3, %v4872_v3  ;;  %v4804_v21 = vmul.f32 %v6038_v51, %v8215_v2  ;;  %v6040_v47 = vadd.f32 %v6007_v53, %v5837_v54  ;;  %v4651_v46 = vpop.f32.mrb[7].mxu0 }
 0x214   : > { %4902 = vst.msk [vmem:[%s8230_s30 + $0x8] sm:$0xff] %vm712_vm3, %v4870_v45  ;;  %v4802_v15 = vmul.f32 %v6039_v27, %v8215_v2  ;;  %v6041_v60 = vadd.f32 %v4651_v46, %v1897_v18 }
 0x215   : > { %v4843_v20 = vadd.f32 %v8220_v36, %v4804_v21  ;;  %v4805_v42 = vmul.f32 %v6040_v47, %v8215_v2 }
 0x216   : > { %v4841_v33 = vadd.f32 %v8220_v36, %v4802_v15  ;;  %v4803_v12 = vmul.f32 %v6041_v60, %v8215_v2 }
 0x217   : > { %v4875_v31 = vmax.f32 %v4843_v20, 0.0  ;;  %v4844_v57 = vadd.f32 %v8220_v36, %v4805_v42 }
 0x218   : > { %v4873_v8 = vmax.f32 %v4841_v33, 0.0  ;;  %v4842_v48 = vadd.f32 %v8220_v36, %v4803_v12  ;;  %v6010_v62 = vpop.f32.mrb[8].mxu0 }
 0x219   : > { %4907 = vst.msk [vmem:[%s8230_s30 + $0x30] sm:$0xff] %vm712_vm3, %v4875_v31  ;;  %v4876_v56 = vmax.f32 %v4844_v57, 0.0  ;;  %v6042_v40 = vadd.f32 %v6010_v62, %v5840_v11  ;;  %v4664_v13 = vpop.f32.mrb[9].mxu0 }
 0x21a   : > { %4905 = vst.msk [vmem:[%s8230_s30 + $0x20] sm:$0xff] %vm712_vm3, %v4873_v8  ;;  %v4874_v17 = vmax.f32 %v4842_v48, 0.0  ;;  %v6043_v30 = vadd.f32 %v4664_v13, %v1910_v32  ;;  %v6011_v9 = vpop.f32.mrb[10].mxu0 }
 0x21b   : > { %4908 = vst.msk [vmem:[%s8230_s30 + $0x38] sm:$0xff] %vm712_vm3, %v4876_v56  ;;  %v4808_v14 = vmul.f32 %v6042_v40, %v8215_v2  ;;  %v6044_v63 = vadd.f32 %v6011_v9, %v8200_v24  ;;  %v4667_v4 = vpop.f32.mrb[11].mxu0 }
 0x21c   : > { %4906 = vst.msk [vmem:[%s8230_s30 + $0x28] sm:$0xff] %vm712_vm3, %v4874_v17  ;;  %v4806_v43 = vmul.f32 %v6043_v30, %v8215_v2  ;;  %v6045_v16 = vadd.f32 %v4667_v4, %v8202_v19 }
 0x21d   : > { %v4847_v58 = vadd.f32 %v8220_v36, %v4808_v14  ;;  %v4809_v50 = vmul.f32 %v6044_v63, %v8215_v2 }
 0x21e   : > { %v4845_v54 = vadd.f32 %v8220_v36, %v4806_v43  ;;  %v4807_v18 = vmul.f32 %v6045_v16, %v8215_v2 }
 0x21f   : > { %v4879_v11 = vmax.f32 %v4847_v58, 0.0  ;;  %v4848_v32 = vadd.f32 %v8220_v36, %v4809_v50 }
 0x220   : > { %v4877_v24 = vmax.f32 %v4845_v54, 0.0  ;;  %v4846_v52 = vadd.f32 %v8220_v36, %v4807_v18  ;;  %v6014_v39 = vpop.f32.mrb[12].mxu0 }
 0x221   : > { %4911 = vst.msk [vmem:[%s8230_s30 + $0x50] sm:$0xff] %vm712_vm3, %v4879_v11  ;;  %v4880_v19 = vmax.f32 %v4848_v32, 0.0  ;;  %v6046_v0 = vadd.f32 %v6014_v39, %v8204_v5  ;;  %v4680_v10 = vpop.f32.mrb[13].mxu0 }
 0x222   : > { %4909 = vst.msk [vmem:[%s8230_s30 + $0x40] sm:$0xff] %vm712_vm3, %v4877_v24  ;;  %v4878_v59 = vmax.f32 %v4846_v52, 0.0  ;;  %v6047_v38 = vadd.f32 %v4680_v10, %v8206_v55  ;;  %v6015_v37 = vpop.f32.mrb[14].mxu0 }
 0x223   : > { %4912 = vst.msk [vmem:[%s8230_s30 + $0x58] sm:$0xff] %vm712_vm3, %v4880_v19  ;;  %v4812_v26 = vmul.f32 %v6046_v0, %v8215_v2  ;;  %v6048_v35 = vadd.f32 %v6015_v37, %v8208_v29  ;;  %v4683_v34 = vpop.f32.mrb[15].mxu0 }
 0x224   : > { %4910 = vst.msk [vmem:[%s8230_s30 + $0x48] sm:$0xff] %vm712_vm3, %v4878_v59  ;;  %v4810_v5 = vmul.f32 %v6047_v38, %v8215_v2  ;;  %v6049_v6 = vadd.f32 %v4683_v34, %v8210_v41 }
 0x225   : > { %v4851_v49 = vadd.f32 %v8220_v36, %v4812_v26  ;;  %v4813_v55 = vmul.f32 %v6048_v35, %v8215_v2 }
 0x226   : > { %v4849_v23 = vadd.f32 %v8220_v36, %v4810_v5  ;;  %v4811_v25 = vmul.f32 %v6049_v6, %v8215_v2 }
 0x227   : > { %v4883_v1 = vmax.f32 %v4851_v49, 0.0  ;;  %v4852_v29 = vadd.f32 %v8220_v36, %v4813_v55 }
 0x228   : > { %v4881_v7 = vmax.f32 %v4849_v23, 0.0  ;;  %v4850_v61 = vadd.f32 %v8220_v36, %v4811_v25  ;;  %v6018_v22 = vpop.f32.mrb[16].mxu0 }
 0x229   : > { %4915 = vst.msk [vmem:[%s8230_s30 + $0x70] sm:$0xff] %vm712_vm3, %v4883_v1  ;;  %v4884_v41 = vmax.f32 %v4852_v29, 0.0  ;;  %v5882_v44 = vpop.f32.mrb[16].mxu1  ;;  %v4696_v3 = vpop.f32.mrb[17].mxu0 }
 0x22a   : > { %4913 = vst.msk [vmem:[%s8230_s30 + $0x60] sm:$0xff] %vm712_vm3, %v4881_v7  ;;  %v4882_v51 = vmax.f32 %v4850_v61, 0.0  ;;  %v6050_v28 = vadd.f32 %v6018_v22, %v5882_v44  ;;  %v2668_v45 = vpop.f32.mrb[17].mxu1  ;;  %v6019_v27 = vpop.f32.mrb[18].mxu0 }
 0x22b   : > { %4916 = vst.msk [vmem:[%s8230_s30 + $0x78] sm:$0xff] %vm712_vm3, %v4884_v41  ;;  %v6051_v53 = vadd.f32 %v4696_v3, %v2668_v45  ;;  %v5883_v21 = vpop.f32.mrb[18].mxu1  ;;  %v4699_v47 = vpop.f32.mrb[19].mxu0 }
 0x22c   : > { %4914 = vst.msk [vmem:[%s8230_s30 + $0x68] sm:$0xff] %vm712_vm3, %v4882_v51  ;;  %v4816_v46 = vmul.f32 %v6050_v28, %v8215_v2  ;;  %v6052_v15 = vadd.f32 %v6019_v27, %v5883_v21  ;;  %v2671_v60 = vpop.f32.mrb[19].mxu1 }
 0x22d   : > { %v4814_v20 = vmul.f32 %v6051_v53, %v8215_v2  ;;  %v6053_v42 = vadd.f32 %v4699_v47, %v2671_v60 }
 0x22e   : > { %v4855_v33 = vadd.f32 %v8220_v36, %v4816_v46  ;;  %v4817_v12 = vmul.f32 %v6052_v15, %v8215_v2 }
 0x22f   : > { %v4853_v31 = vadd.f32 %v8220_v36, %v4814_v20  ;;  %v4815_v57 = vmul.f32 %v6053_v42, %v8215_v2 }
 0x230   : > { %v4887_v8 = vmax.f32 %v4855_v33, 0.0  ;;  %v4856_v48 = vadd.f32 %v8220_v36, %v4817_v12  ;;  %v6022_v62 = vpop.f32.mrb[20].mxu0 }
 0x231   : > { %v4885_v56 = vmax.f32 %v4853_v31, 0.0  ;;  %v4854_v40 = vadd.f32 %v8220_v36, %v4815_v57  ;;  %v5886_v13 = vpop.f32.mrb[20].mxu1  ;;  %v4712_v17 = vpop.f32.mrb[21].mxu0 }
 0x232   : > { %4919 = vst.msk [vmem:[%s8230_s30 + $0x90] sm:$0xff] %vm712_vm3, %v4887_v8  ;;  %v4888_v30 = vmax.f32 %v4856_v48, 0.0  ;;  %v6054_v9 = vadd.f32 %v6022_v62, %v5886_v13  ;;  %v2684_v14 = vpop.f32.mrb[21].mxu1  ;;  %v6023_v63 = vpop.f32.mrb[22].mxu0 }
 0x233   : > { %4917 = vst.msk [vmem:[%s8230_s30 + $0x80] sm:$0xff] %vm712_vm3, %v4885_v56  ;;  %v4886_v4 = vmax.f32 %v4854_v40, 0.0  ;;  %v6055_v43 = vadd.f32 %v4712_v17, %v2684_v14  ;;  %v5887_v16 = vpop.f32.mrb[22].mxu1  ;;  %v4715_v58 = vpop.f32.mrb[23].mxu0 }
 0x234   : > { %4920 = vst.msk [vmem:[%s8230_s30 + $0x98] sm:$0xff] %vm712_vm3, %v4888_v30  ;;  %v4820_v50 = vmul.f32 %v6054_v9, %v8215_v2  ;;  %v6056_v54 = vadd.f32 %v6023_v63, %v5887_v16  ;;  %v2687_v18 = vpop.f32.mrb[23].mxu1 }
 0x235   : > { %4918 = vst.msk [vmem:[%s8230_s30 + $0x88] sm:$0xff] %vm712_vm3, %v4886_v4  ;;  %v4818_v11 = vmul.f32 %v6055_v43, %v8215_v2  ;;  %v6057_v32 = vadd.f32 %v4715_v58, %v2687_v18 }
 0x236   : > { %v4859_v24 = vadd.f32 %v8220_v36, %v4820_v50  ;;  %v4821_v52 = vmul.f32 %v6056_v54, %v8215_v2 }
 0x237   : > { %v4857_v39 = vadd.f32 %v8220_v36, %v4818_v11  ;;  %v4819_v19 = vmul.f32 %v6057_v32, %v8215_v2 }
 0x238   : > { %v4891_v0 = vmax.f32 %v4859_v24, 0.0  ;;  %v4860_v10 = vadd.f32 %v8220_v36, %v4821_v52  ;;  %v6026_v59 = vpop.f32.mrb[24].mxu0 }
 0x239   : > { %v4889_v38 = vmax.f32 %v4857_v39, 0.0  ;;  %v4858_v37 = vadd.f32 %v8220_v36, %v4819_v19  ;;  %v5890_v26 = vpop.f32.mrb[24].mxu1  ;;  %v4728_v35 = vpop.f32.mrb[25].mxu0 }
 0x23a   : > { %4923 = vst.msk [vmem:[%s8230_s30 + $0xb0] sm:$0xff] %vm712_vm3, %v4891_v0  ;;  %v4892_v34 = vmax.f32 %v4860_v10, 0.0  ;;  %v6058_v5 = vadd.f32 %v6026_v59, %v5890_v26  ;;  %v2700_v6 = vpop.f32.mrb[25].mxu1  ;;  %v6027_v49 = vpop.f32.mrb[26].mxu0 }
 0x23b   : > { %4921 = vst.msk [vmem:[%s8230_s30 + $0xa0] sm:$0xff] %vm712_vm3, %v4889_v38  ;;  %v4890_v55 = vmax.f32 %v4858_v37, 0.0  ;;  %v6059_v23 = vadd.f32 %v4728_v35, %v2700_v6  ;;  %v5891_v25 = vpop.f32.mrb[26].mxu1  ;;  %v4731_v1 = vpop.f32.mrb[27].mxu0 }
 0x23c   : > { %4924 = vst.msk [vmem:[%s8230_s30 + $0xb8] sm:$0xff] %vm712_vm3, %v4892_v34  ;;  %v4824_v29 = vmul.f32 %v6058_v5, %v8215_v2  ;;  %v6060_v7 = vadd.f32 %v6027_v49, %v5891_v25  ;;  %v2703_v61 = vpop.f32.mrb[27].mxu1 }
 0x23d   : > { %4922 = vst.msk [vmem:[%s8230_s30 + $0xa8] sm:$0xff] %vm712_vm3, %v4890_v55  ;;  %v4822_v22 = vmul.f32 %v6059_v23, %v8215_v2  ;;  %v6061_v41 = vadd.f32 %v4731_v1, %v2703_v61 }
 0x23e   : > { %v4863_v44 = vadd.f32 %v8220_v36, %v4824_v29  ;;  %v4825_v3 = vmul.f32 %v6060_v7, %v8215_v2 }
 0x23f   : > { %v4861_v51 = vadd.f32 %v8220_v36, %v4822_v22  ;;  %v4823_v28 = vmul.f32 %v6061_v41, %v8215_v2 }
 0x240   : > { %v4895_v45 = vmax.f32 %v4863_v44, 0.0  ;;  %v4864_v27 = vadd.f32 %v8220_v36, %v4825_v3  ;;  %v6030_v53 = vpop.f32.mrb[28].mxu0 }
 0x241   : > { %v4893_v21 = vmax.f32 %v4861_v51, 0.0  ;;  %v4862_v47 = vadd.f32 %v8220_v36, %v4823_v28  ;;  %v5894_v46 = vpop.f32.mrb[28].mxu1  ;;  %v4744_v15 = vpop.f32.mrb[29].mxu0 }
 0x242   : > { %4927 = vst.msk [vmem:[%s8230_s30 + $0xd0] sm:$0xff] %vm712_vm3, %v4895_v45  ;;  %v4896_v60 = vmax.f32 %v4864_v27, 0.0  ;;  %v6062_v20 = vadd.f32 %v6030_v53, %v5894_v46  ;;  %v2716_v42 = vpop.f32.mrb[29].mxu1  ;;  %v6031_v33 = vpop.f32.mrb[30].mxu0 }
 0x243   : > { %4925 = vst.msk [vmem:[%s8230_s30 + $0xc0] sm:$0xff] %vm712_vm3, %v4893_v21  ;;  %v4894_v12 = vmax.f32 %v4862_v47, 0.0  ;;  %v6063_v31 = vadd.f32 %v4744_v15, %v2716_v42  ;;  %v5895_v57 = vpop.f32.mrb[30].mxu1  ;;  %v4747_v8 = vpop.f32.mrb[31].mxu0 }
 0x244   : > { %4928 = vst.msk [vmem:[%s8230_s30 + $0xd8] sm:$0xff] %vm712_vm3, %v4896_v60  ;;  %v4828_v48 = vmul.f32 %v6062_v20, %v8215_v2  ;;  %v6064_v62 = vadd.f32 %v6031_v33, %v5895_v57  ;;  %v2719_v56 = vpop.f32.mrb[31].mxu1 }
 0x245   : > { %4926 = vst.msk [vmem:[%s8230_s30 + $0xc8] sm:$0xff] %vm712_vm3, %v4894_v12  ;;  %v4826_v40 = vmul.f32 %v6063_v31, %v8215_v2  ;;  %v6065_v13 = vadd.f32 %v4747_v8, %v2719_v56 }
 0x246   : > { %v4867_v17 = vadd.f32 %v8220_v36, %v4828_v48  ;;  %v4829_v30 = vmul.f32 %v6064_v62, %v8215_v2 }
 0x247   : > { %v4865_v9 = vadd.f32 %v8220_v36, %v4826_v40  ;;  %v4827_v14 = vmul.f32 %v6065_v13, %v8215_v2 }
 0x248   : > { %v4899_v63 = vmax.f32 %v4867_v17, 0.0  ;;  %v4868_v4 = vadd.f32 %v8220_v36, %v4829_v30 }
 0x249   : > { %v4897_v43 = vmax.f32 %v4865_v9, 0.0  ;;  %v4866_v16 = vadd.f32 %v8220_v36, %v4827_v14 }
 0x24a   : > { %4931 = vst.msk [vmem:[%s8230_s30 + $0xf0] sm:$0xff] %vm712_vm3, %v4899_v63  ;;  %v4900_v58 = vmax.f32 %v4868_v4, 0.0 }
 0x24b   : > { %4929 = vst.msk [vmem:[%s8230_s30 + $0xe0] sm:$0xff] %vm712_vm3, %v4897_v43  ;;  %v4898_v50 = vmax.f32 %v4866_v16, 0.0 }
 0x24c   : > { %4932 = vst.msk [vmem:[%s8230_s30 + $0xf8] sm:$0xff] %vm712_vm3, %v4900_v58 }
 0x24d   : > { %4930 = vst.msk [vmem:[%s8230_s30 + $0xe8] sm:$0xff] %vm712_vm3, %v4898_v50 }
 0x24e PF: > { %s14_s17 = sadd.s32 1, %s6452_s17   ;;  %s8443_s15 = smov %s6448_s16 }
 0x24f   : > { %p11_p5 = scmp.ge.s32.totalorder %s14_s17, 4   ;;  %s8444_s16 = smov %s8446_s18 }
 0x251   :  { %13 = sbr.rel (!%p11_p5) target bundleno = 2 (0x2), region = 77 }

// kernel: re_up_forward.6
= control target key start
LH: loop header
LB: loop body
LE: loop exit
PB: predicated region body
PF: predicated region fallthrough
CT: control target
= control target key end

     0   :  { %s13041_s21 = smov 0   ;;  %s13043_s22 = smov 0   ;;  %s15943_s0 = inlined_call_operand.vmem [shape: bf16[2,18,18,4], index: 0, kind: input, shape index: {}]   ;;  %s15944_s1 = inlined_call_operand.vmem [shape: bf16[2,18,18,12], index: 1, kind: input, shape index: {}]   ;;  %s15945_s2 = inlined_call_operand.vmem [shape: bf16[9,4,8], index: 2, kind: input, shape index: {}]   ;;  %s15946_s3 = inlined_call_operand.vmem [shape: bf16[9,12,8], index: 3, kind: input, shape index: {}]   ;;  %s15947_s4 = inlined_call_operand.vmem [shape: f32[1,8], index: 4, kind: input, shape index: {}]   ;;  %s15948_s5 = inlined_call_operand.vmem [shape: f32[1,8], index: 5, kind: input, shape index: {}]   ;;  %s15949_s6 = inlined_call_operand.vmem [shape: bf16[2,256,8], index: 6, kind: output, shape index: {}]  }
   0x1   :  { %s13045_s23 = smov 0  }
   0x2 LB: > { %s28_s24 = sadd.s32 1, %s13000_s22  ;;  %p10024_p0 = scmp.ge.s32.totalorder %s13004_s23, 1  ;;  %s13004_s23 = sphi %s13045_s23, %s16_s23   ;;  %s13000_s22 = sphi %s13043_s22, %s15958_s22   ;;  %s12996_s21 = sphi %s13041_s21, %s15957_s21  }
   0x3   : > { %p30_p1 = scmp.ge.s32.totalorder %s28_s24, 2  ;;  %p236_p2 = scmp.lt.s32.totalorder %s13004_s23, 3 }
   0x5   : > { %s15960_s24 = smov (%p30_p1, %s28_s24), 0  ;;  %p237_p3 = pnand %p10024_p0, %p236_p2 }
   0x6   : > { %v12692_v0 = vld [vmem:[%s15946_s3] sm:$0x3f] (!%p237_p3)   ;;  %vm503_vm0 = vcmask (!%p237_p3), 1045504   ;;  %p275_p4 = scmp.lt.s32.totalorder (!%p237_p3), %s12996_s21, 1  ;;  %vm797_vm1 = vcmask (!%p237_p3), 1041408   ;;  %vm454_vm2 = vcmask (!%p237_p3), 97280  }
   0x7   : > { %240 = sbr.rel (%p237_p3) target bundleno = 837 (0x345), region = 44  ;;  %12649 = vmatprep.subr.msk.bf16.mxu1 (!%p237_p3), %vm503_vm0, %v12692_v0  ;;  %v505_v1 = vsel (!%p237_p3), %vm503_vm0, %v12692_v0, 0  ;;  %v12695_v2 = vld [vmem:[%s15946_s3 + $0x20] sm:$0x3f] (!%p237_p3)   ;;  %v10590_v5 = vld [vmem:[%s15945_s2 + $0xa] sm:$0x3] (!%p237_p3) }
   0x8   : > { %11494 = vmatpush3.bf16.msra.mxu1 (!%p237_p3), %v505_v1  ;;  %v332_v3 = vld [vmem:[%s15945_s2] sm:$0x3] (!%p237_p3)  ;;  %12658 = vmatprep.subr.msk.bf16.mxu0 (!%p237_p3), %vm503_vm0, %v12695_v2  ;;  %v5363_v4 = vsel (!%p237_p3), %vm503_vm0, %v12695_v2, 0  ;;  %vm1010_vm3 = vsmask.f32 (!%p237_p3), 3328  ;;  %v13114_v23 = vsel (!%p237_p3), %vm797_vm1, %v10590_v5, 0 }
   0x9   : > { %12650 = vmatprep.subr.msk.bf16.mxu1 (!%p237_p3), %vm797_vm1, %v332_v3  ;;  %11800 = vmatpush3.bf16.msra.mxu0 (!%p237_p3), %v5363_v4  ;;  %v10094_v7 = vld [vmem:[%s15945_s2 + $0x2] sm:$0x3] (!%p237_p3)  ;;  %v799_v9 = vsel (!%p237_p3), %vm797_vm1, %v332_v3, 0  ;;  %vm1011_vm4 = vsmask.f32 (!%p237_p3), 7440  ;;  %vm2487_vm5 = vcmask (!%p237_p3), 1042432  }
   0xa   : > { %12659 = vmatprep.subr.msk.bf16.mxu0 (!%p237_p3), %vm797_vm1, %v10590_v5  ;;  %vm2488_vm6 = vcmask (!%p237_p3), 1046532   ;;  %vm13125_vm7 = vmor (!%p237_p3), %vm1010_vm3, %vm1011_vm4  ;;  %v13131_v42 = vsel (!%p237_p3), %vm797_vm1, %v10094_v7, 0  ;;  %v12714_v0 = vld [vmem:[%s15946_s3 + $0x28] sm:$0x3f] (!%p237_p3)   ;;  %vm748_vm9 = vcmask (!%p237_p3), 31744   ;;  %vm9874_vm10 = vcmask (!%p237_p3), 60416  }
   0xb   : > { %vm13173_vm8 = vmor (!%p237_p3), %vm2487_vm5, %vm2488_vm6 }
   0xe   : > { %s15962_s21 = smov (!%p275_p4, %s12996_s21), 1 }
   0xf   : > { %s12667_s9 = smul.u32 216, %s15962_s21  ;;  %s11154_s8 = sshll.u32 %s15962_s21, 7 }
  0x10   : > { %s15811_s11 = scalar_lea.vmem %s15949_s6, %s11154_s8 }
  0x11   : > { %s13085_s12 = scalar_lea.vmem %s15944_s1, %s12667_s9  ;;  %s13268_s19 = scalar_lea.vmem %s15943_s0, %s12667_s9 }
  0x12   : > { %v12693_v6 = vld [vmem:[%s13085_s12] sm:$0xff]   ;;  %v12694_v8 = vld [vmem:[%s13085_s12 + $0xc] sm:$0xff]   ;;  %v12696_v10 = vld [vmem:[%s13085_s12 + $0x18] sm:$0xff]  }
  0x13   : > { %11495 = vmatprep.mubr.msk.bf16.mxu1 %vm454_vm2, %v12693_v6  ;;  %v10475_v11 = vld [vmem:[%s13085_s12 + $0xc] sm:$0xf]  ;;  %v13099_v12 = vld [vmem:[%s13085_s12 + $0x10] sm:$0xf]  ;;  %v13102_v13 = vld [vmem:[%s13085_s12 + $0x14] sm:$0x1] }
  0x14   : > { %11496 = vmatmul.mubr.msk.bf16.vlgmr.msra.gmra.mrb[0].mxu1 %vm454_vm2, %v12694_v8  ;;  %v4875_v14 = vshrl.u32 %v10475_v11, 16  ;;  %v4878_v15 = vshll.u32 %v10475_v11, 16  ;;  %v4884_v16 = vshll.u32 %v13099_v12, 16  ;;  %v4888_v17 = vshrl.u32 %v13099_v12, 16  ;;  %v10478_v18 = vld [vmem:[%s13085_s12 + $0x18] sm:$0xf] }
  0x15   : > { %11499 = vmatprep.mubr.msk.bf16.mxu1 %vm454_vm2, %v12696_v10  ;;  %11528 = vmatpush3.bf16.msra.mxu1 %v799_v9  ;;  %v12697_v19 = vld [vmem:[%s13085_s12 + $0x24] sm:$0xff]   ;;  %v4894_v20 = vshll.u32 %v13102_v13, 16  ;;  %v13111_v21 = vld [vmem:[%s13085_s12 + $0x1c] sm:$0xf]  ;;  %v4899_v22 = vshrl.u32 %v10478_v18, 16  ;;  %v4902_v31 = vshll.u32 %v10478_v18, 16 }
  0x16   : > { %12651 = vmatprep.subr.msk.bf16.mxu1 %vm797_vm1, %v10094_v7  ;;  %v4877_v24 = vrot.slane %v4875_v14, 4  ;;  %v4880_v25 = vrot.slane %v4878_v15, 5  ;;  %v4886_v26 = vrot.slane %v4884_v16, 5  ;;  %v4890_v27 = vrot.slane %v4888_v17, 4  ;;  %v13117_v28 = vld [vmem:[%s13085_s12 + $0x20] sm:$0x1] }
  0x17   : > { %v4896_v29 = vrot.slane %v4894_v20, 5  ;;  %v4901_v30 = vrot.slane %v4899_v22, 4  ;;  %v4908_v32 = vshll.u32 %v13111_v21, 16  ;;  %v4912_v35 = vshrl.u32 %v13111_v21, 16  ;;  %v12698_v37 = vld [vmem:[%s13085_s12 + $0x30] sm:$0xff]   ;;  %v12699_v60 = vld [vmem:[%s13085_s12 + $0x3c] sm:$0xff]  }
  0x18   : > { %v4881_v33 = vor.u32 %v4880_v25, %v4877_v24  ;;  %v4891_v34 = vor.u32 %v4890_v27, %v4886_v26  ;;  %v4918_v36 = vshll.u32 %v13117_v28, 16  ;;  %v4904_v39 = vrot.slane %v4902_v31, 5  ;;  %v10481_v50 = vld [vmem:[%s13085_s12 + $0x24] sm:$0xf]  ;;  %v13140_v51 = vld [vmem:[%s13085_s12 + $0x28] sm:$0xf] }
  0x19   : > { %v4910_v40 = vrot.slane %v4908_v32, 5  ;;  %v6101_v41 = vrot.slane %v13111_v21, 5  ;;  %v4914_v45 = vrot.slane %v4912_v35, 4  ;;  %v6104_v46 = vrot.slane %v13117_v28, 5  ;;  %v13147_v55 = vld [vmem:[%s13085_s12 + $0x2c] sm:$0x1] }
  0x1a   : > { %v4882_v43 = vrot.slane %v4881_v33, 4  ;;  %v4892_v44 = vrot.slane %v4891_v34, 4  ;;  %v4905_v47 = vor.u32 %v4904_v39, %v4901_v30  ;;  %v4920_v48 = vrot.slane %v4918_v36, 5  ;;  %v10484_v57 = vld [vmem:[%s13085_s12 + $0x30] sm:$0xf]  ;;  %v12700_v10 = vld [vmem:[%s13085_s12 + $0x48] sm:$0xff]  }
  0x1b   : > { %v6103_v49 = vrot.slane %v6101_v41, 4  ;;  %v4915_v54 = vor.u32 %v4914_v45, %v4910_v40  ;;  %v4923_v56 = vshrl.u32 %v10481_v50, 16  ;;  %v4926_v61 = vshll.u32 %v10481_v50, 16  ;;  %v13153_v63 = vld [vmem:[%s13085_s12 + $0x34] sm:$0xf] }
  0x1c   : > { %11500 = vmatmul.mubr.msk.bf16.gmra.mrb[4].mxu1 %vm454_vm2, %v12697_v19  ;;  %v4887_v52 = vsel %vm13125_vm7, %v4882_v43, %v4886_v26  ;;  %v4897_v53 = vsel %vm13125_vm7, %v4892_v44, %v4896_v29  ;;  %v4906_v59 = vrot.slane %v4905_v47, 4  ;;  %v4932_v62 = vshll.u32 %v13140_v51, 16  ;;  %v10486_v5 = vld [vmem:[%s13085_s12 + $0x38] sm:$0x1]  ;;  %v10487_v27 = vld [vmem:[%s13085_s12 + $0x3c] sm:$0xf] }
  0x1d   : > { %11503 = vmatprep.mubr.msk.bf16.mxu1 %vm454_vm2, %v12698_v37  ;;  %v10525_v58 = vcombine.low %v4887_v52, %v4897_v53  ;;  %v4916_v1 = vrot.slane %v4915_v54, 4  ;;  %v4925_v2 = vrot.slane %v4923_v56, 4  ;;  %v4936_v3 = vshrl.u32 %v13140_v51, 16  ;;  %v10488_v31 = vld [vmem:[%s13085_s12 + $0x40] sm:$0xf]  ;;  %v12701_v43 = vld [vmem:[%s13085_s12 + $0x54] sm:$0xff]  }
  0x1e   : > { %v4942_v4 = vshll.u32 %v13147_v55, 16  ;;  %v4911_v6 = vsel %vm13125_vm7, %v4906_v59, %v4910_v40  ;;  %v4928_v7 = vrot.slane %v4926_v61, 5  ;;  %v4934_v8 = vrot.slane %v4932_v62, 5  ;;  %v10489_v39 = vld [vmem:[%s13085_s12 + $0x44] sm:$0x1] }
  0x1f   : > { %11801 = vmatprep.mubr.msk.bf16.mxu0 %vm454_vm2, %v10525_v58  ;;  %v4947_v9 = vshrl.u32 %v10484_v57, 16  ;;  %v4921_v11 = vsel %vm13125_vm7, %v4916_v1, %v4920_v48  ;;  %v4938_v14 = vrot.slane %v4936_v3, 4  ;;  %v4950_v16 = vshll.u32 %v10484_v57, 16  ;;  %v10490_v48 = vld [vmem:[%s13085_s12 + $0x48] sm:$0xf]  ;;  %v12702_v59 = vld [vmem:[%s13085_s12 + $0x60] sm:$0xff]  }
  0x20   : > { %v4944_v15 = vrot.slane %v4942_v4, 5  ;;  %v10526_v17 = vcombine.low %v4911_v6, %v4921_v11  ;;  %v4929_v18 = vor.u32 %v4928_v7, %v4925_v2  ;;  %v4956_v20 = vshll.u32 %v13153_v63, 16  ;;  %v10491_v52 = vld [vmem:[%s13085_s12 + $0x4c] sm:$0xf]  ;;  %v10492_v58 = vld [vmem:[%s13085_s12 + $0x50] sm:$0x1] }
  0x21   : > { %v4949_v19 = vrot.slane %v4947_v9, 4  ;;  %v4939_v22 = vor.u32 %v4938_v14, %v4934_v8  ;;  %v4952_v24 = vrot.slane %v4950_v16, 5  ;;  %v4960_v25 = vshrl.u32 %v13153_v63, 16  ;;  %v10493_v9 = vld [vmem:[%s13085_s12 + $0x54] sm:$0xf] }
  0x22   : > { %v4966_v26 = vshll.u32 %v10486_v5, 16  ;;  %11802 = vmatmul.mubr.msk.bf16.vlgmr.msra.gmra.mrb[0].mxu0 %vm454_vm2, %v10526_v17  ;;  %v4930_v29 = vrot.slane %v4929_v18, 4  ;;  %v4958_v30 = vrot.slane %v4956_v20, 5  ;;  %v13181_v32 = vsel %vm503_vm0, %v12714_v0, 0  ;;  %v10494_v16 = vld [vmem:[%s13085_s12 + $0x58] sm:$0xf] }
  0x23   : > { %v13185_v33 = vsel %vm13173_vm8, %v6103_v49, %v6104_v46  ;;  %11834 = vmatpush3.bf16.msra.mxu0 %v13114_v23  ;;  %v4940_v34 = vrot.slane %v4939_v22, 4  ;;  %v4953_v35 = vor.u32 %v4952_v24, %v4949_v19  ;;  %v4962_v36 = vrot.slane %v4960_v25, 4  ;;  %v12703_v22 = vld [vmem:[%s13085_s12 + $0x6c] sm:$0xff]   ;;  %v10495_v24 = vld [vmem:[%s13085_s12 + $0x5c] sm:$0x1] }
  0x24   : > { %11504 = vmatmul.mubr.msk.bf16.gmra.mrb[8].mxu1 %vm454_vm2, %v12699_v60  ;;  %v4968_v37 = vrot.slane %v4966_v26, 5  ;;  %v4935_v40 = vsel %vm13125_vm7, %v4930_v29, %v4934_v8  ;;  %v4971_v44 = vshrl.u32 %v10487_v27, 16  ;;  %v4974_v45 = vshll.u32 %v10487_v27, 16  ;;  %12660 = vmatprep.subr.msk.bf16.mxu0 %vm503_vm0, %v12714_v0 }
  0x25   : > { %11507 = vmatprep.mubr.msk.bf16.mxu1 %vm454_vm2, %v12700_v10  ;;  %v4980_v47 = vshll.u32 %v10488_v31, 16  ;;  %v4945_v23 = vsel %vm13125_vm7, %v4940_v34, %v4944_v15  ;;  %v4954_v46 = vrot.slane %v4953_v35, 4  ;;  %v4963_v49 = vor.u32 %v4962_v36, %v4958_v30 }
  0x26   : > { %v4984_v50 = vshrl.u32 %v10488_v31, 16  ;;  %v10527_v53 = vcombine.low %v4935_v40, %v4945_v23  ;;  %v4973_v54 = vrot.slane %v4971_v44, 4  ;;  %v4976_v56 = vrot.slane %v4974_v45, 5  ;;  %v10497_v31 = vld [vmem:[%s13085_s12 + $0x64] sm:$0xf]  ;;  %v12704_v45 = vld [vmem:[%s13085_s12 + $0x78] sm:$0xff]  }
  0x27   : > { %v4982_v57 = vrot.slane %v4980_v47, 5  ;;  %v4959_v60 = vsel %vm13125_vm7, %v4954_v46, %v4958_v30  ;;  %v4964_v61 = vrot.slane %v4963_v49, 4  ;;  %v4990_v0 = vshll.u32 %v10489_v39, 16  ;;  %v10496_v30 = vld [vmem:[%s13085_s12 + $0x60] sm:$0xf] }
  0x28   : > { %v4986_v62 = vrot.slane %v4984_v50, 4  ;;  %11805 = vmatprep.mubr.msk.bf16.mxu0 %vm454_vm2, %v10527_v53  ;;  %v4977_v1 = vor.u32 %v4976_v56, %v4973_v54  ;;  %v4995_v2 = vshrl.u32 %v10490_v48, 16  ;;  %v4998_v3 = vshll.u32 %v10490_v48, 16 }
  0x29   : > { %v5004_v4 = vshll.u32 %v10491_v52, 16  ;;  %v4969_v5 = vsel %vm13125_vm7, %v4964_v61, %v4968_v37  ;;  %v4992_v7 = vrot.slane %v4990_v0, 5  ;;  %v5008_v8 = vshrl.u32 %v10491_v52, 16  ;;  %v10498_v52 = vld [vmem:[%s13085_s12 + $0x68] sm:$0x1] }
  0x2a   : > { %v4987_v6 = vor.u32 %v4986_v62, %v4982_v57  ;;  %v10528_v10 = vcombine.low %v4959_v60, %v4969_v5  ;;  %v4978_v11 = vrot.slane %v4977_v1, 4  ;;  %v4997_v14 = vrot.slane %v4995_v2, 4  ;;  %v10499_v60 = vld [vmem:[%s13085_s12 + $0x6c] sm:$0xf]  ;;  %v10500_v2 = vld [vmem:[%s13085_s12 + $0x70] sm:$0xf] }
  0x2b   : > { %v5000_v15 = vrot.slane %v4998_v3, 5  ;;  %v5006_v18 = vrot.slane %v5004_v4, 5  ;;  %v5010_v19 = vrot.slane %v5008_v8, 4  ;;  %v5014_v20 = vshll.u32 %v10492_v58, 16  ;;  %v10501_v8 = vld [vmem:[%s13085_s12 + $0x74] sm:$0x1] }
  0x2c   : > { %11508 = vmatmul.mubr.msk.bf16.gmra.mrb[12].mxu1 %vm454_vm2, %v12701_v43  ;;  %v4988_v17 = vrot.slane %v4987_v6, 4  ;;  %11806 = vmatmul.mubr.msk.bf16.gmra.mrb[4].mxu0 %vm454_vm2, %v10528_v10  ;;  %v4983_v25 = vsel %vm13125_vm7, %v4978_v11, %v4982_v57  ;;  %v5019_v27 = vshrl.u32 %v10493_v9, 16  ;;  %v5022_v29 = vshll.u32 %v10493_v9, 16 }
  0x2d   : > { %11511 = vmatprep.mubr.msk.bf16.mxu1 %vm454_vm2, %v12702_v59  ;;  %v5001_v26 = vor.u32 %v5000_v15, %v4997_v14  ;;  %v5011_v35 = vor.u32 %v5010_v19, %v5006_v18  ;;  %v5016_v36 = vrot.slane %v5014_v20, 5  ;;  %v5028_v37 = vshll.u32 %v10494_v16, 16  ;;  %v10502_v15 = vld [vmem:[%s13085_s12 + $0x78] sm:$0xf] }
  0x2e   : > { %v4993_v34 = vsel %vm13125_vm7, %v4988_v17, %v4992_v7  ;;  %v5021_v43 = vrot.slane %v5019_v27, 4  ;;  %v5024_v44 = vrot.slane %v5022_v29, 5  ;;  %v5032_v23 = vshrl.u32 %v10494_v16, 16  ;;  %v12705_v7 = vld [vmem:[%s13085_s12 + $0x84] sm:$0xff]   ;;  %v12706_v16 = vld [vmem:[%s13085_s12 + $0x90] sm:$0xff]  }
  0x2f   : > { %v10529_v39 = vcombine.low %v4983_v25, %v4993_v34  ;;  %v5002_v40 = vrot.slane %v5001_v26, 4  ;;  %v5012_v47 = vrot.slane %v5011_v35, 4  ;;  %v5030_v48 = vrot.slane %v5028_v37, 5  ;;  %v10503_v34 = vld [vmem:[%s13085_s12 + $0x7c] sm:$0xf] }
  0x30   : > { %v5038_v46 = vshll.u32 %v10495_v24, 16  ;;  %v5025_v50 = vor.u32 %v5024_v44, %v5021_v43  ;;  %v5043_v53 = vshrl.u32 %v10496_v30, 16  ;;  %v5046_v54 = vshll.u32 %v10496_v30, 16 }
  0x31   : > { %11809 = vmatprep.mubr.msk.bf16.mxu0 %vm454_vm2, %v10529_v39  ;;  %v5007_v49 = vsel %vm13125_vm7, %v5002_v40, %v5006_v18  ;;  %v5017_v56 = vsel %vm13125_vm7, %v5012_v47, %v5016_v36  ;;  %v5034_v57 = vrot.slane %v5032_v23, 4  ;;  %v5052_v59 = vshll.u32 %v10497_v31, 16  ;;  %v10504_v40 = vld [vmem:[%s13085_s12 + $0x80] sm:$0x1] }
  0x32   : > { %v5040_v58 = vrot.slane %v5038_v46, 5  ;;  %v10530_v61 = vcombine.low %v5007_v49, %v5017_v56  ;;  %v5026_v62 = vrot.slane %v5025_v50, 4  ;;  %v5045_v0 = vrot.slane %v5043_v53, 4 }
  0x33   : > { %v5048_v1 = vrot.slane %v5046_v54, 5  ;;  %v5035_v3 = vor.u32 %v5034_v57, %v5030_v48  ;;  %v5054_v4 = vrot.slane %v5052_v59, 5  ;;  %v5056_v5 = vshrl.u32 %v10497_v31, 16 }
  0x34   : > { %11512 = vmatmul.mubr.msk.bf16.gmra.mrb[16].mxu1 %vm454_vm2, %v12703_v22  ;;  %v5062_v6 = vshll.u32 %v10498_v52, 16  ;;  %11810 = vmatmul.mubr.msk.bf16.gmra.mrb[8].mxu0 %vm454_vm2, %v10530_v61  ;;  %v5031_v9 = vsel %vm13125_vm7, %v5026_v62, %v5030_v48  ;;  %v5067_v11 = vshrl.u32 %v10499_v60, 16  ;;  %v5070_v14 = vshll.u32 %v10499_v60, 16  ;;  %v10505_v48 = vld [vmem:[%s13085_s12 + $0x84] sm:$0xf] }
  0x35   : > { %11515 = vmatprep.mubr.msk.bf16.mxu1 %vm454_vm2, %v12704_v45  ;;  %v5049_v10 = vor.u32 %v5048_v1, %v5045_v0  ;;  %v5036_v17 = vrot.slane %v5035_v3, 4  ;;  %v5058_v18 = vrot.slane %v5056_v5, 4  ;;  %v5076_v20 = vshll.u32 %v10500_v2, 16  ;;  %v10506_v52 = vld [vmem:[%s13085_s12 + $0x88] sm:$0xf] }
  0x36   : > { %v5064_v19 = vrot.slane %v5062_v6, 5  ;;  %v5069_v24 = vrot.slane %v5067_v11, 4  ;;  %v5072_v25 = vrot.slane %v5070_v14, 5  ;;  %v5080_v26 = vshrl.u32 %v10500_v2, 16  ;;  %v10508_v0 = vld [vmem:[%s13085_s12 + $0x90] sm:$0xf] }
  0x37   : > { %v5050_v22 = vrot.slane %v5049_v10, 4  ;;  %v5041_v27 = vsel %vm13125_vm7, %v5036_v17, %v5040_v58  ;;  %v5059_v29 = vor.u32 %v5058_v18, %v5054_v4  ;;  %v5078_v30 = vrot.slane %v5076_v20, 5  ;;  %v10507_v58 = vld [vmem:[%s13085_s12 + $0x8c] sm:$0x1]  ;;  %v10509_v17 = vld [vmem:[%s13085_s12 + $0x94] sm:$0xf] }
  0x38   : > { %v5086_v31 = vshll.u32 %v10501_v8, 16  ;;  %v10531_v35 = vcombine.low %v5031_v9, %v5041_v27  ;;  %v5073_v37 = vor.u32 %v5072_v25, %v5069_v24  ;;  %v5082_v39 = vrot.slane %v5080_v26, 4  ;;  %v12708_v10 = vld [vmem:[%s13085_s12 + $0xa8] sm:$0xff]   ;;  %v10510_v26 = vld [vmem:[%s13085_s12 + $0x98] sm:$0x1] }
  0x39   : > { %v5055_v36 = vsel %vm13125_vm7, %v5050_v22, %v5054_v4  ;;  %v5060_v43 = vrot.slane %v5059_v29, 4  ;;  %v5091_v45 = vshrl.u32 %v10502_v15, 16  ;;  %v5094_v47 = vshll.u32 %v10502_v15, 16  ;;  %v12707_v4 = vld [vmem:[%s13085_s12 + $0x9c] sm:$0xff]  }
  0x3a   : > { %v5088_v44 = vrot.slane %v5086_v31, 5  ;;  %11813 = vmatprep.mubr.msk.bf16.mxu0 %vm454_vm2, %v10531_v35  ;;  %v5074_v23 = vrot.slane %v5073_v37, 4  ;;  %v5083_v46 = vor.u32 %v5082_v39, %v5078_v30  ;;  %v5100_v49 = vshll.u32 %v10503_v34, 16  ;;  %v10512_v37 = vld [vmem:[%s13085_s12 + $0xa0] sm:$0xf] }
  0x3b   : > { %v5104_v50 = vshrl.u32 %v10503_v34, 16  ;;  %v5065_v53 = vsel %vm13125_vm7, %v5060_v43, %v5064_v19  ;;  %v5093_v54 = vrot.slane %v5091_v45, 4  ;;  %v5096_v56 = vrot.slane %v5094_v47, 5 }
  0x3c   : > { %11516 = vmatmul.mubr.msk.bf16.gmra.mrb[20].mxu1 %vm454_vm2, %v12705_v7  ;;  %v5110_v57 = vshll.u32 %v10504_v40, 16  ;;  %v10532_v59 = vcombine.low %v5055_v36, %v5065_v53  ;;  %v5079_v60 = vsel %vm13125_vm7, %v5074_v23, %v5078_v30  ;;  %v5084_v61 = vrot.slane %v5083_v46, 4  ;;  %v10511_v36 = vld [vmem:[%s13085_s12 + $0x9c] sm:$0xf]  ;;  %v12709_v46 = vld [vmem:[%s13085_s12 + $0xb4] sm:$0xff]  }
  0x3d   : > { %11519 = vmatprep.mubr.msk.bf16.mxu1 %vm454_vm2, %v12706_v16  ;;  %v5102_v62 = vrot.slane %v5100_v49, 5  ;;  %v5097_v1 = vor.u32 %v5096_v56, %v5093_v54  ;;  %v5106_v2 = vrot.slane %v5104_v50, 4  ;;  %v5115_v5 = vshrl.u32 %v10505_v48, 16  ;;  %v10513_v49 = vld [vmem:[%s13085_s12 + $0xa4] sm:$0x1] }
  0x3e   : > { %v5112_v3 = vrot.slane %v5110_v57, 5  ;;  %11814 = vmatmul.mubr.msk.bf16.gmra.mrb[12].mxu0 %vm454_vm2, %v10532_v59  ;;  %v5089_v6 = vsel %vm13125_vm7, %v5084_v61, %v5088_v44  ;;  %v5118_v7 = vshll.u32 %v10505_v48, 16  ;;  %v5124_v8 = vshll.u32 %v10506_v52, 16  ;;  %v12710_v56 = vld [vmem:[%s13268_s19] sm:$0xff]   ;;  %v10514_v61 = vld [vmem:[%s13085_s12 + $0xa8] sm:$0xf] }
  0x3f   : > { %v5128_v9 = vshrl.u32 %v10506_v52, 16  ;;  %v10533_v11 = vcombine.low %v5079_v60, %v5089_v6  ;;  %v5098_v14 = vrot.slane %v5097_v1, 4  ;;  %v5107_v15 = vor.u32 %v5106_v2, %v5102_v62 }
  0x40   : > { %v5117_v16 = vrot.slane %v5115_v5, 4  ;;  %v5120_v18 = vrot.slane %v5118_v7, 5  ;;  %v5126_v19 = vrot.slane %v5124_v8, 5  ;;  %v5134_v22 = vshll.u32 %v10507_v58, 16  ;;  %v10516_v8 = vld [vmem:[%s13085_s12 + $0xb0] sm:$0x1] }
  0x41   : > { %v5130_v20 = vrot.slane %v5128_v9, 4  ;;  %11817 = vmatprep.mubr.msk.bf16.mxu0 %vm454_vm2, %v10533_v11  ;;  %v5103_v24 = vsel %vm13125_vm7, %v5098_v14, %v5102_v62  ;;  %v5108_v25 = vrot.slane %v5107_v15, 4  ;;  %v5139_v27 = vshrl.u32 %v10508_v0, 16  ;;  %v10517_v15 = vld [vmem:[%s13085_s12 + $0xb4] sm:$0xf] }
  0x42   : > { %v5142_v29 = vshll.u32 %v10508_v0, 16  ;;  %v5121_v30 = vor.u32 %v5120_v18, %v5117_v16  ;;  %v5136_v34 = vrot.slane %v5134_v22, 5  ;;  %v5148_v35 = vshll.u32 %v10509_v17, 16 }
  0x43   : > { %v5131_v31 = vor.u32 %v5130_v20, %v5126_v19  ;;  %v5113_v39 = vsel %vm13125_vm7, %v5108_v25, %v5112_v3  ;;  %v5141_v40 = vrot.slane %v5139_v27, 4  ;;  %v5152_v44 = vshrl.u32 %v10509_v17, 16  ;;  %v10515_v3 = vld [vmem:[%s13085_s12 + $0xac] sm:$0xf]  ;;  %v10518_v20 = vld [vmem:[%s13085_s12 + $0xb8] sm:$0xf] }
  0x44   : > { %11520 = vmatmul.mubr.msk.bf16.gmra.mrb[24].mxu1 %vm454_vm2, %v12707_v4  ;;  %v5144_v43 = vrot.slane %v5142_v29, 5  ;;  %v10534_v45 = vcombine.low %v5103_v24, %v5113_v39  ;;  %v5122_v47 = vrot.slane %v5121_v30, 4  ;;  %v5150_v23 = vrot.slane %v5148_v35, 5  ;;  %v12711_v27 = vld [vmem:[%s13268_s19 + $0xc] sm:$0xff]   ;;  %v12712_v35 = vld [vmem:[%s13268_s19 + $0x18] sm:$0xff]  }
  0x45   : > { %11523 = vmatprep.mubr.msk.bf16.mxu1 %vm454_vm2, %v12708_v10  ;;  %v5132_v48 = vrot.slane %v5131_v31, 4  ;;  %v5154_v52 = vrot.slane %v5152_v44, 4  ;;  %v5158_v53 = vshll.u32 %v10510_v26, 16  ;;  %v5163_v54 = vshrl.u32 %v10511_v36, 16 }
  0x46   : > { %v5145_v50 = vor.u32 %v5144_v43, %v5141_v40  ;;  %11818 = vmatmul.mubr.msk.bf16.gmra.mrb[16].mxu0 %vm454_vm2, %v10534_v45  ;;  %v5127_v57 = vsel %vm13125_vm7, %v5122_v47, %v5126_v19  ;;  %v5166_v59 = vshll.u32 %v10511_v36, 16  ;;  %v5172_v60 = vshll.u32 %v10512_v37, 16  ;;  %v10519_v47 = vld [vmem:[%s13085_s12 + $0xbc] sm:$0x1] }
  0x47   : > { %v5137_v58 = vsel %vm13125_vm7, %v5132_v48, %v5136_v34  ;;  %v5155_v1 = vor.u32 %v5154_v52, %v5150_v23  ;;  %v5160_v2 = vrot.slane %v5158_v53, 5  ;;  %v5165_v4 = vrot.slane %v5163_v54, 4  ;;  %v10521_v53 = vld [vmem:[%s13085_s12 + $0xc4] sm:$0xf] }
  0x48   : > { %v10535_v62 = vcombine.low %v5127_v57, %v5137_v58  ;;  %v5146_v0 = vrot.slane %v5145_v50, 4  ;;  %v5168_v5 = vrot.slane %v5166_v59, 5  ;;  %v5174_v6 = vrot.slane %v5172_v60, 5  ;;  %v10522_v59 = vld [vmem:[%s13085_s12 + $0xc8] sm:$0x1] }
  0x49   : > { %v5176_v7 = vshrl.u32 %v10512_v37, 16  ;;  %v5156_v10 = vrot.slane %v5155_v1, 4  ;;  %v5182_v11 = vshll.u32 %v10513_v49, 16  ;;  %v5187_v14 = vshrl.u32 %v10514_v61, 16  ;;  %v10395_v1 = vld [vmem:[%s13268_s19 + $0x10] sm:$0xf] }
  0x4a   : > { %11821 = vmatprep.mubr.msk.bf16.mxu0 %vm454_vm2, %v10535_v62  ;;  %v5151_v9 = vsel %vm13125_vm7, %v5146_v0, %v5150_v23  ;;  %v5169_v16 = vor.u32 %v5168_v5, %v5165_v4  ;;  %v5190_v18 = vshll.u32 %v10514_v61, 16  ;;  %v5196_v19 = vshll.u32 %v10515_v3, 16  ;;  %v10520_v23 = vld [vmem:[%s13085_s12 + $0xc0] sm:$0xf] }
  0x4b   : > { %v5178_v17 = vrot.slane %v5176_v7, 4  ;;  %v5161_v22 = vsel %vm13125_vm7, %v5156_v10, %v5160_v2  ;;  %v5184_v24 = vrot.slane %v5182_v11, 5  ;;  %v5189_v25 = vrot.slane %v5187_v14, 4  ;;  %v10558_v7 = vld [vmem:[%s13268_s19 + $0xc] sm:$0xe] }
  0x4c   : > { %11524 = vmatmul.mubr.msk.bf16.gmra.mrb[28].mxu1 %vm454_vm2, %v12709_v46  ;;  %v5200_v26 = vshrl.u32 %v10515_v3, 16  ;;  %v10536_v29 = vcombine.low %v5151_v9, %v5161_v22  ;;  %v5170_v30 = vrot.slane %v5169_v16, 4  ;;  %v5192_v34 = vrot.slane %v5190_v18, 5  ;;  %v12713_v22 = vld [vmem:[%s13268_s19 + $0x24] sm:$0xff]  }
  0x4d   : > { %11529 = vmatprep.mubr.msk.bf16.mxu1 %vm748_vm9, %v12710_v56  ;;  %v5179_v31 = vor.u32 %v5178_v17, %v5174_v6  ;;  %v5198_v36 = vrot.slane %v5196_v19, 5  ;;  %v5206_v39 = vshll.u32 %v10516_v8, 16  ;;  %v5211_v40 = vshrl.u32 %v10517_v15, 16 }
  0x4e   : > { %v5202_v37 = vrot.slane %v5200_v26, 4  ;;  %11822 = vmatmul.mubr.msk.bf16.gmra.mrb[20].mxu0 %vm454_vm2, %v10536_v29  ;;  %v5175_v43 = vsel %vm13125_vm7, %v5170_v30, %v5174_v6  ;;  %v5193_v45 = vor.u32 %v5192_v34, %v5189_v25  ;;  %v5214_v48 = vshll.u32 %v10517_v15, 16  ;;  %v10396_v6 = vld [vmem:[%s13268_s19 + $0x14] sm:$0x1]  ;;  %v10398_v29 = vld [vmem:[%s13268_s19 + $0x1c] sm:$0xf] }
  0x4f   : > { %v5180_v44 = vrot.slane %v5179_v31, 4  ;;  %v5208_v49 = vrot.slane %v5206_v39, 5  ;;  %v5213_v50 = vrot.slane %v5211_v40, 4  ;;  %v5220_v52 = vshll.u32 %v10518_v20, 16  ;;  %v12715_v30 = vld [vmem:[%s13268_s19 + $0x30] sm:$0xff]  }
  0x50   : > { %v5203_v46 = vor.u32 %v5202_v37, %v5198_v36  ;;  %v5194_v56 = vrot.slane %v5193_v45, 4  ;;  %v5216_v57 = vrot.slane %v5214_v48, 5  ;;  %v5224_v58 = vshrl.u32 %v10518_v20, 16  ;;  %v10559_v37 = vld [vmem:[%s13268_s19 + $0x18] sm:$0xe] }
  0x51   : > { %v5185_v54 = vsel %vm13125_vm7, %v5180_v44, %v5184_v24  ;;  %v5222_v62 = vrot.slane %v5220_v52, 5  ;;  %v5230_v0 = vshll.u32 %v10519_v47, 16  ;;  %v5235_v5 = vshrl.u32 %v10520_v23, 16  ;;  %v10401_v39 = vld [vmem:[%s13268_s19 + $0x28] sm:$0xf] }
  0x52   : > { %v10537_v60 = vcombine.low %v5175_v43, %v5185_v54  ;;  %v5204_v61 = vrot.slane %v5203_v46, 4  ;;  %v5199_v2 = vsel %vm13125_vm7, %v5194_v56, %v5198_v36  ;;  %v5217_v3 = vor.u32 %v5216_v57, %v5213_v50  ;;  %v10399_v36 = vld [vmem:[%s13268_s19 + $0x20] sm:$0x1]  ;;  %v10402_v47 = vld [vmem:[%s13268_s19 + $0x2c] sm:$0x1] }
  0x53   : > { %v5226_v4 = vrot.slane %v5224_v58, 4  ;;  %v5232_v9 = vrot.slane %v5230_v0, 5  ;;  %v5238_v10 = vshll.u32 %v10520_v23, 16  ;;  %v5244_v11 = vshll.u32 %v10521_v53, 16  ;;  %v10560_v48 = vld [vmem:[%s13268_s19 + $0x24] sm:$0xe] }
  0x54   : > { %11530 = vmatmul.mubr.msk.bf16.vlgmr.msra.gmra.mrb[0].mxu1 %vm748_vm9, %v12711_v27  ;;  %11825 = vmatprep.mubr.msk.bf16.mxu0 %vm454_vm2, %v10537_v60  ;;  %v5209_v8 = vsel %vm13125_vm7, %v5204_v61, %v5208_v49  ;;  %v5218_v15 = vrot.slane %v5217_v3, 4  ;;  %v5237_v17 = vrot.slane %v5235_v5, 4  ;;  %v5254_v20 = vshll.u32 %v10522_v59, 16  ;;  %v13334_v52 = vld [vmem:[%s13268_s19 + $0x34] sm:$0xf]  ;;  %v12716_v5 = vld [vmem:[%s13268_s19 + $0x3c] sm:$0xff]  }
  0x55   : > { %11533 = vmatprep.mubr.msk.bf16.mxu1 %vm748_vm9, %v12712_v35  ;;  %11562 = vmatpush3.bf16.msra.mxu1 %v13131_v42  ;;  %v10538_v14 = vcombine.low %v5199_v2, %v5209_v8  ;;  %v5227_v16 = vor.u32 %v5226_v4, %v5222_v62  ;;  %v5240_v18 = vrot.slane %v5238_v10, 5  ;;  %v5246_v19 = vrot.slane %v5244_v11, 5  ;;  %v10405_v57 = vld [vmem:[%s13268_s19 + $0x38] sm:$0x1]  ;;  %v10561_v58 = vld [vmem:[%s13268_s19 + $0x30] sm:$0xe] }
  0x56   : > { %v5248_v42 = vshrl.u32 %v10521_v53, 16  ;;  %v5223_v24 = vsel %vm13125_vm7, %v5218_v15, %v5222_v62  ;;  %v10574_v26 = vrot.slane %v10558_v7, 9  ;;  %v5624_v27 = vrot.slane %v10395_v1, 5  ;;  %v10407_v3 = vld [vmem:[%s13268_s19 + $0x40] sm:$0xf]  ;;  %v12717_v11 = vld [vmem:[%s13268_s19 + $0x48] sm:$0xff]  }
  0x57   : > { %11826 = vmatmul.mubr.msk.bf16.gmra.mrb[24].mxu0 %vm454_vm2, %v10538_v14  ;;  %v5228_v25 = vrot.slane %v5227_v16, 4  ;;  %v5241_v31 = vor.u32 %v5240_v18, %v5237_v17  ;;  %v5627_v35 = vrot.slane %v10396_v6, 5  ;;  %v5256_v43 = vrot.slane %v5254_v20, 5  ;;  %v10562_v14 = vld [vmem:[%s13268_s19 + $0x3c] sm:$0xe] }
  0x58   : > { %v5250_v34 = vrot.slane %v5248_v42, 4  ;;  %v5625_v44 = vsel %vm13173_vm8, %v10574_v26, %v5624_v27  ;;  %v5626_v45 = vrot.slane %v5624_v27, 4  ;;  %v5631_v50 = vrot.slane %v10398_v29, 5  ;;  %v10410_v16 = vld [vmem:[%s13268_s19 + $0x4c] sm:$0xf] }
  0x59   : > { %v5233_v40 = vsel %vm13125_vm7, %v5228_v25, %v5232_v9  ;;  %v5242_v46 = vrot.slane %v5241_v31, 4  ;;  %v6094_v53 = vrot.slane %v13099_v12, 5  ;;  %v5638_v56 = vrot.slane %v10401_v39, 5  ;;  %v10408_v9 = vld [vmem:[%s13268_s19 + $0x44] sm:$0x1] }
  0x5a   : > { %v10539_v23 = vcombine.low %v5223_v24, %v5233_v40  ;;  %v5251_v49 = vor.u32 %v5250_v34, %v5246_v19  ;;  %v5628_v54 = vsel %vm13173_vm8, %v5626_v45, %v5627_v35  ;;  %v10575_v61 = vrot.slane %v10559_v37, 9  ;;  %v10411_v20 = vld [vmem:[%s13268_s19 + $0x50] sm:$0x1]  ;;  %v10563_v27 = vld [vmem:[%s13268_s19 + $0x48] sm:$0xe]  ;;  %v12718_v45 = vld [vmem:[%s13268_s19 + $0x54] sm:$0xff]  }
  0x5b   : > { %v5247_v59 = vsel %vm13125_vm7, %v5242_v46, %v5246_v19  ;;  %v10591_v62 = vcombine.low %v5625_v44, %v5628_v54  ;;  %v5633_v0 = vrot.slane %v5631_v50, 4  ;;  %v5634_v1 = vrot.slane %v10399_v36, 5  ;;  %v10413_v34 = vld [vmem:[%s13268_s19 + $0x58] sm:$0xf]  ;;  %v10414_v35 = vld [vmem:[%s13268_s19 + $0x5c] sm:$0x1] }
  0x5c   : > { %11534 = vmatmul.mubr.msk.bf16.gmra.mrb[4].mxu1 %vm748_vm9, %v12713_v22  ;;  %11829 = vmatprep.mubr.msk.bf16.mxu0 %vm454_vm2, %v10539_v23  ;;  %v5252_v60 = vrot.slane %v5251_v49, 4  ;;  %v10576_v2 = vrot.slane %v10560_v48, 9  ;;  %v5640_v6 = vrot.slane %v5638_v56, 4  ;;  %v5641_v7 = vrot.slane %v10402_v47, 5  ;;  %v10564_v37 = vld [vmem:[%s13268_s19 + $0x54] sm:$0xe] }
  0x5d   : > { %11537 = vmatprep.mubr.msk.bf16.mxu1 %vm748_vm9, %v12715_v30  ;;  %v5645_v8 = vrot.slane %v13334_v52, 5  ;;  %v5652_v15 = vrot.slane %v10407_v3, 5  ;;  %v6097_v17 = vrot.slane %v13102_v13, 5  ;;  %v10577_v18 = vrot.slane %v10561_v58, 9  ;;  %v10416_v40 = vld [vmem:[%s13268_s19 + $0x64] sm:$0xf] }
  0x5e   : > { %v5257_v4 = vsel %vm13125_vm7, %v5252_v60, %v5256_v43  ;;  %v5648_v42 = vrot.slane %v10405_v57, 5  ;;  %v5632_v22 = vsel %vm13173_vm8, %v10575_v61, %v5631_v50  ;;  %v5639_v24 = vsel %vm13173_vm8, %v10576_v2, %v5638_v56  ;;  %v10417_v23 = vld [vmem:[%s13268_s19 + $0x68] sm:$0x1]  ;;  %v10565_v46 = vld [vmem:[%s13268_s19 + $0x60] sm:$0xe] }
  0x5f   : > { %v10540_v10 = vcombine.low %v5247_v59, %v5257_v4  ;;  %v5647_v19 = vrot.slane %v5645_v8, 4  ;;  %v10578_v25 = vrot.slane %v10562_v14, 9  ;;  %v5654_v26 = vrot.slane %v5652_v15, 4  ;;  %v12719_v59 = vld [vmem:[%s13268_s19 + $0x60] sm:$0xff]   ;;  %v10419_v2 = vld [vmem:[%s13268_s19 + $0x70] sm:$0xf] }
  0x60   : > { %v5635_v13 = vsel %vm13173_vm8, %v5633_v0, %v5634_v1  ;;  %v5642_v29 = vsel %vm13173_vm8, %v5640_v6, %v5641_v7  ;;  %v5655_v30 = vrot.slane %v10408_v9, 5  ;;  %v5659_v31 = vrot.slane %v10410_v16, 5  ;;  %v10566_v6 = vld [vmem:[%s13268_s19 + $0x6c] sm:$0xe]  ;;  %v10422_v14 = vld [vmem:[%s13268_s19 + $0x7c] sm:$0xf] }
  0x61   : > { %11830 = vmatmul.mubr.msk.bf16.gmra.mrb[28].mxu0 %vm454_vm2, %v10540_v10  ;;  %v10579_v36 = vrot.slane %v10563_v27, 9  ;;  %v5666_v39 = vrot.slane %v10413_v34, 5  ;;  %v10592_v43 = vcombine.low %v5632_v22, %v5635_v13  ;;  %v10593_v44 = vcombine.low %v5639_v24, %v5642_v29  ;;  %v12720_v27 = vld [vmem:[%s13268_s19 + $0x6c] sm:$0xff]  }
  0x62   : > { %11835 = vmatprep.mubr.msk.bf16.mxu0 %vm748_vm9, %v10591_v62  ;;  %v5661_v47 = vrot.slane %v5659_v31, 4  ;;  %v5662_v48 = vrot.slane %v10411_v20, 5  ;;  %v10580_v49 = vrot.slane %v10564_v37, 9  ;;  %v5669_v52 = vrot.slane %v10414_v35, 5  ;;  %v10425_v35 = vld [vmem:[%s13268_s19 + $0x88] sm:$0xf] }
  0x63   : > { %v5668_v50 = vrot.slane %v5666_v39, 4  ;;  %v5673_v54 = vrot.slane %v10416_v40, 5  ;;  %v5646_v56 = vsel %vm13173_vm8, %v10577_v18, %v5645_v8  ;;  %v5649_v57 = vsel %vm13173_vm8, %v5647_v19, %v5648_v42  ;;  %v10567_v18 = vld [vmem:[%s13268_s19 + $0x78] sm:$0xe]  ;;  %v10568_v37 = vld [vmem:[%s13268_s19 + $0x84] sm:$0xe] }
  0x64   : > { %11538 = vmatmul.mubr.msk.bf16.gmra.mrb[8].mxu1 %vm748_vm9, %v12716_v5  ;;  %v13382_v58 = vsel %vm13173_vm8, %v10578_v25, %v5652_v15  ;;  %v6096_v60 = vrot.slane %v6094_v53, 4  ;;  %v5656_v61 = vsel %vm13173_vm8, %v5654_v26, %v5655_v30  ;;  %v13391_v62 = vsel %vm13173_vm8, %v10579_v36, %v5659_v31  ;;  %v10420_v5 = vld [vmem:[%s13268_s19 + $0x74] sm:$0x1]  ;;  %v10423_v15 = vld [vmem:[%s13268_s19 + $0x80] sm:$0x1] }
  0x65   : > { %11541 = vmatprep.mubr.msk.bf16.mxu1 %vm748_vm9, %v12717_v11  ;;  %v10581_v0 = vrot.slane %v10565_v46, 9  ;;  %v5676_v1 = vrot.slane %v10417_v23, 5  ;;  %v13397_v3 = vsel %vm13173_vm8, %v5661_v47, %v5662_v48  ;;  %v5675_v4 = vrot.slane %v5673_v54, 4  ;;  %v10426_v36 = vld [vmem:[%s13268_s19 + $0x8c] sm:$0x1]  ;;  %v12721_v47 = vld [vmem:[%s13268_s19 + $0x78] sm:$0xff]  }
  0x66   : > { %v5680_v7 = vrot.slane %v10419_v2, 5  ;;  %v13403_v8 = vsel %vm13173_vm8, %v6096_v60, %v6097_v17  ;;  %v13409_v9 = vsel %vm13173_vm8, %v10580_v49, %v5666_v39  ;;  %v13413_v10 = vsel %vm13173_vm8, %v5668_v50, %v5669_v52  ;;  %v10429_v49 = vld [vmem:[%s13268_s19 + $0x98] sm:$0x1]  ;;  %v10569_v50 = vld [vmem:[%s13268_s19 + $0x90] sm:$0xe] }
  0x67   : > { %v10582_v11 = vrot.slane %v10566_v6, 9  ;;  %v6108_v16 = vrot.slane %v13140_v51, 5  ;;  %v5687_v19 = vrot.slane %v10422_v14, 5  ;;  %v6111_v42 = vrot.slane %v13147_v55, 5  ;;  %v10431_v6 = vld [vmem:[%s13268_s19 + $0xa0] sm:$0xf] }
  0x68   : > { %v5682_v17 = vrot.slane %v5680_v7, 4  ;;  %v10594_v20 = vcombine.low %v5646_v56, %v5649_v57  ;;  %v10583_v22 = vrot.slane %v10567_v18, 9  ;;  %v5690_v24 = vrot.slane %v10423_v15, 5 }
  0x69   : > { %11836 = vmatmul.mubr.msk.bf16.vlgmr.msra.gmra.mrb[0].mxu0 %vm748_vm9, %v10592_v43  ;;  %v10595_v25 = vcombine.low %v13382_v58, %v5656_v61  ;;  %v10596_v26 = vcombine.low %v13391_v62, %v13397_v3  ;;  %v5689_v13 = vrot.slane %v5687_v19, 4  ;;  %v6115_v29 = vrot.slane %v13153_v63, 5  ;;  %v12725_v62 = vld [vmem:[%s13268_s19 + $0xa8] sm:$0xff]   ;;  %v983_v63 = vld [vmem:[%s13268_s19 + $0x54] sm:$0xf] }
  0x6a   : > { %11868 = vmatpush3.bf16.msra.mxu0 %v13181_v32  ;;  %11839 = vmatprep.mubr.msk.bf16.mxu0 %vm748_vm9, %v10593_v44  ;;  %v5683_v32 = vrot.slane %v10420_v5, 5  ;;  %v10597_v55 = vcombine.low %v13409_v9, %v13413_v10  ;;  %v13431_v30 = vsel %vm13173_vm8, %v10581_v0, %v5673_v54  ;;  %v13435_v31 = vsel %vm13173_vm8, %v5675_v4, %v5676_v1  ;;  %v10428_v44 = vld [vmem:[%s13268_s19 + $0x94] sm:$0xf]  ;;  %v12797_v0 = vld [vmem:[%s13085_s12 + $0x38] sm:$0x1] }
  0x6b   : > { %v13439_v34 = vsel %vm13173_vm8, %v10582_v11, %v5680_v7  ;;  %v10584_v39 = vrot.slane %v10568_v37, 9  ;;  %v5694_v40 = vrot.slane %v10425_v35, 5  ;;  %v5697_v43 = vrot.slane %v10426_v36, 5  ;;  %v10432_v7 = vld [vmem:[%s13268_s19 + $0xa4] sm:$0x1]  ;;  %v12723_v35 = vld [vmem:[%s13268_s19 + $0x90] sm:$0xff]  }
  0x6c   : > { %11542 = vmatmul.mubr.msk.bf16.gmra.mrb[12].mxu1 %vm748_vm9, %v12718_v45  ;;  %v6110_v45 = vrot.slane %v6108_v16, 4  ;;  %v13450_v48 = vsel %vm13173_vm8, %v5682_v17, %v5683_v32  ;;  %v13454_v23 = vsel %vm13173_vm8, %v10583_v22, %v5687_v19  ;;  %v13458_v46 = vsel %vm13173_vm8, %v5689_v13, %v5690_v24  ;;  %v10570_v17 = vld [vmem:[%s13268_s19 + $0x9c] sm:$0xe]  ;;  %v10434_v19 = vld [vmem:[%s13268_s19 + $0xac] sm:$0xf] }
  0x6d   : > { %11545 = vmatprep.mubr.msk.bf16.mxu1 %vm748_vm9, %v12719_v59  ;;  %v5701_v52 = vrot.slane %v10428_v44, 5  ;;  %v5696_v54 = vrot.slane %v5694_v40, 4  ;;  %v10585_v56 = vrot.slane %v10569_v50, 9  ;;  %v5704_v57 = vrot.slane %v10429_v49, 5  ;;  %v963_v49 = vld [vmem:[%s13268_s19 + $0x4] sm:$0xf] }
  0x6e   : > { %v6117_v58 = vrot.slane %v6115_v29, 4  ;;  %v10598_v59 = vcombine.low %v13431_v30, %v13435_v31  ;;  %v13470_v60 = vsel %vm13173_vm8, %v10584_v39, %v5694_v40  ;;  %v6118_v1 = vrot.slane %v12797_v0, 5  ;;  %v962_v40 = vld [vmem:[%s13268_s19] sm:$0xf]  ;;  %v964_v50 = vld [vmem:[%s13268_s19 + $0x8] sm:$0x1] }
  0x6f   : > { %v5703_v61 = vrot.slane %v5701_v52, 4  ;;  %v10599_v2 = vcombine.low %v13439_v34, %v13450_v48  ;;  %v13478_v4 = vsel %vm13173_vm8, %v5696_v54, %v5697_v43  ;;  %v13482_v5 = vsel %vm13173_vm8, %v10585_v56, %v5701_v52  ;;  %v13509_v43 = vld [vmem:[%s13085_s12 + $0x40] sm:$0xf] }
  0x70   : > { %v13488_v11 = vsel %vm13173_vm8, %v6110_v45, %v6111_v42  ;;  %v10600_v14 = vcombine.low %v13454_v23, %v13458_v46  ;;  %v5708_v32 = vrot.slane %v10431_v6, 5  ;;  %v5711_v18 = vrot.slane %v10432_v7, 5  ;;  %v965_v6 = vld [vmem:[%s13268_s19 + $0xc] sm:$0xf]  ;;  %v966_v7 = vld [vmem:[%s13268_s19 + $0x10] sm:$0xf] }
  0x71   : > { %11840 = vmatmul.mubr.msk.bf16.gmra.mrb[4].mxu0 %vm748_vm9, %v10594_v20  ;;  %v13495_v15 = vsel %vm13173_vm8, %v5703_v61, %v5704_v57  ;;  %v12722_v20 = vld [vmem:[%s13268_s19 + $0x84] sm:$0xff]   ;;  %v10601_v42 = vcombine.low %v13470_v60, %v13478_v4  ;;  %v10586_v24 = vrot.slane %v10570_v17, 9  ;;  %v5715_v13 = vrot.slane %v10434_v19, 5  ;;  %v10573_v44 = vld [vmem:[%s13268_s19 + $0xc0] sm:$0xe] }
  0x72   : > { %11843 = vmatprep.mubr.msk.bf16.mxu0 %vm748_vm9, %v10595_v25  ;;  %v10602_v22 = vcombine.low %v13482_v5, %v13495_v15  ;;  %v10435_v25 = vld [vmem:[%s13268_s19 + $0xb0] sm:$0x1]  ;;  %v5710_v36 = vrot.slane %v5708_v32, 4  ;;  %v1014_v52 = vshrl.u32 %v962_v40, 16  ;;  %v13520_v54 = vsel %vm13173_vm8, %v6117_v58, %v6118_v1 }
  0x73   : > { %v5718_v39 = vrot.slane %v10435_v25, 5  ;;  %v13514_v45 = vsel %vm13173_vm8, %v10586_v24, %v5708_v32  ;;  %v1017_v61 = vshll.u32 %v962_v40, 16  ;;  %v1023_v0 = vshll.u32 %v963_v49, 16  ;;  %v10437_v24 = vld [vmem:[%s13268_s19 + $0xb8] sm:$0xf] }
  0x74   : > { %11546 = vmatmul.mubr.msk.bf16.gmra.mrb[16].mxu1 %vm748_vm9, %v12720_v27  ;;  %v10571_v27 = vld [vmem:[%s13268_s19 + $0xa8] sm:$0xe]  ;;  %v13524_v56 = vsel %vm13173_vm8, %v5710_v36, %v5711_v18  ;;  %v1016_v17 = vrot.slane %v1014_v52, 4  ;;  %v1027_v32 = vshrl.u32 %v963_v49, 16  ;;  %v967_v18 = vld [vmem:[%s13268_s19 + $0x14] sm:$0x1] }
  0x75   : > { %11549 = vmatprep.mubr.msk.bf16.mxu1 %vm748_vm9, %v12721_v47  ;;  %v10587_v37 = vrot.slane %v10571_v27, 9  ;;  %v5717_v47 = vrot.slane %v5715_v13, 4  ;;  %v10603_v58 = vcombine.low %v13514_v45, %v13524_v56  ;;  %v1019_v3 = vrot.slane %v1017_v61, 5  ;;  %v10438_v40 = vld [vmem:[%s13268_s19 + $0xbc] sm:$0x1] }
  0x76   : > { %v1033_v19 = vshll.u32 %v964_v50, 16  ;;  %v1029_v25 = vrot.slane %v1027_v32, 4  ;;  %v1038_v27 = vshrl.u32 %v965_v6, 16  ;;  %v1047_v36 = vshll.u32 %v966_v7, 16  ;;  %v10440_v52 = vld [vmem:[%s13268_s19 + $0xc4] sm:$0xf] }
  0x77   : > { %v13528_v57 = vsel %vm13173_vm8, %v10587_v37, %v5715_v13  ;;  %v13540_v1 = vsel %vm13173_vm8, %v5717_v47, %v5718_v39  ;;  %v1041_v13 = vshll.u32 %v965_v6, 16  ;;  %v10572_v37 = vld [vmem:[%s13268_s19 + $0xb4] sm:$0xe]  ;;  %v1020_v9 = vor.u32 %v1019_v3, %v1016_v17 }
  0x78   : > { %v1035_v10 = vrot.slane %v1033_v19, 5  ;;  %v1057_v39 = vshll.u32 %v967_v18, 16  ;;  %v1040_v49 = vrot.slane %v1038_v27, 4  ;;  %v10588_v32 = vrot.slane %v10572_v37, 9  ;;  %v10441_v27 = vld [vmem:[%s13268_s19 + $0xc8] sm:$0x1] }
  0x79   : > { %11844 = vmatmul.mubr.msk.bf16.gmra.mrb[8].mxu0 %vm748_vm9, %v10596_v26  ;;  %v1025_v26 = vrot.slane %v1023_v0, 5  ;;  %v1043_v50 = vrot.slane %v1041_v13, 5  ;;  %v1021_v61 = vrot.slane %v1020_v9, 4  ;;  %v5725_v18 = vrot.slane %v10438_v40, 5  ;;  %v968_v9 = vld [vmem:[%s13268_s19 + $0x18] sm:$0xf] }
  0x7a   : > { %11847 = vmatprep.mubr.msk.bf16.mxu0 %vm748_vm9, %v10597_v55  ;;  %v1051_v55 = vshrl.u32 %v966_v7, 16  ;;  %v1059_v6 = vrot.slane %v1057_v39, 5  ;;  %v5722_v7 = vrot.slane %v10437_v24, 5  ;;  %v10589_v13 = vrot.slane %v10573_v44, 9  ;;  %v969_v39 = vld [vmem:[%s13268_s19 + $0x1c] sm:$0xf] }
  0x7b   : > { %v1030_v47 = vor.u32 %v1029_v25, %v1025_v26  ;;  %v1044_v3 = vor.u32 %v1043_v50, %v1040_v49  ;;  %v1026_v19 = vsel %vm13125_vm7, %v1021_v61, %v1025_v26  ;;  %v970_v40 = vld [vmem:[%s13268_s19 + $0x20] sm:$0x1]  ;;  %v10722_v49 = vld [vmem:[%s15945_s2 + $0xc] sm:$0x3]  ;;  %v1071_v61 = vshll.u32 %v969_v39, 16 }
  0x7c   : > { %11550 = vmatmul.mubr.msk.bf16.gmra.mrb[20].mxu1 %vm748_vm9, %v12722_v20  ;;  %v1049_v20 = vrot.slane %v1047_v36, 5  ;;  %v1053_v0 = vrot.slane %v1051_v55, 4  ;;  %v5729_v36 = vrot.slane %v10440_v52, 5  ;;  %v13570_v24 = vsel %vm13173_vm8, %v10588_v32, %v5722_v7  ;;  %v972_v32 = vld [vmem:[%s13268_s19 + $0x28] sm:$0xf]  ;;  %12661 = vmatprep.subr.msk.bf16.mxu0 %vm797_vm1, %v10722_v49 }
  0x7d   : > { %11553 = vmatprep.mubr.msk.bf16.mxu1 %vm748_vm9, %v12723_v35  ;;  %v12724_v35 = vld [vmem:[%s13268_s19 + $0x9c] sm:$0xff]   ;;  %v1031_v17 = vrot.slane %v1030_v47, 4  ;;  %v1045_v55 = vrot.slane %v1044_v3, 4  ;;  %v5724_v26 = vrot.slane %v5722_v7, 4  ;;  %v1062_v47 = vshrl.u32 %v968_v9, 16 }
  0x7e   : > { %v1054_v25 = vor.u32 %v1053_v0, %v1049_v20  ;;  %v13579_v31 = vsel %vm13173_vm8, %v10589_v13, %v5729_v36  ;;  %v1065_v52 = vshll.u32 %v968_v9, 16  ;;  %v971_v0 = vld [vmem:[%s13268_s19 + $0x24] sm:$0xf]  ;;  %v1075_v3 = vshrl.u32 %v969_v39, 16  ;;  %v973_v7 = vld [vmem:[%s13268_s19 + $0x2c] sm:$0x1] }
  0x7f   : > { %v1036_v37 = vsel %vm13125_vm7, %v1031_v17, %v1035_v10  ;;  %v12727_v10 = vld [vmem:[%s15946_s3 + $0x8] sm:$0x3f]   ;;  %v1050_v34 = vsel %vm13125_vm7, %v1045_v55, %v1049_v20  ;;  %v13589_v48 = vsel %vm13173_vm8, %v5724_v26, %v5725_v18  ;;  %v1089_v9 = vshll.u32 %v971_v0, 16 }
  0x80   : > { %v10095_v44 = vcombine.low %v1026_v19, %v1036_v37  ;;  %v1055_v30 = vrot.slane %v1054_v25, 4  ;;  %v10605_v20 = vcombine.low %v13570_v24, %v13589_v48  ;;  %12652 = vmatprep.subr.msk.bf16.mxu1 %vm503_vm0, %v12727_v10  ;;  %v1067_v19 = vrot.slane %v1065_v52, 5  ;;  %v10623_v55 = vld [vmem:[%s13085_s12 + $0xc] sm:$0xe] }
  0x81   : > { %11848 = vmatmul.mubr.msk.bf16.gmra.mrb[12].mxu0 %vm748_vm9, %v10598_v59  ;;  %v5731_v59 = vrot.slane %v5729_v36, 4  ;;  %v1073_v25 = vrot.slane %v1071_v61, 5  ;;  %v1077_v13 = vrot.slane %v1075_v3, 4  ;;  %v1086_v36 = vshrl.u32 %v971_v0, 16  ;;  %v974_v3 = vld [vmem:[%s13268_s19 + $0x30] sm:$0xf] }
  0x82   : > { %11851 = vmatprep.mubr.msk.bf16.mxu0 %vm748_vm9, %v10599_v2  ;;  %v5732_v2 = vrot.slane %v10441_v27, 5  ;;  %v1060_v50 = vsel %vm13125_vm7, %v1055_v30, %v1059_v6  ;;  %v12726_v6 = vld [vmem:[%s13268_s19 + $0xb4] sm:$0xff]   ;;  %v1081_v27 = vshll.u32 %v970_v40, 16  ;;  %v1095_v37 = vshll.u32 %v972_v32, 16 }
  0x83   : > { %v1105_v39 = vshll.u32 %v973_v7, 16  ;;  %v13637_v7 = vsel %vm797_vm1, %v10722_v49, 0 }
  0x84   : > { %11554 = vmatmul.mubr.msk.bf16.gmra.mrb[24].mxu1 %vm748_vm9, %v12724_v35  ;;  %v13603_v35 = vcombine.low %v1050_v34, %v1060_v50  ;;  %v13607_v17 = vsel %vm13173_vm8, %v5731_v59, %v5732_v2  ;;  %v1083_v30 = vrot.slane %v1081_v27, 5  ;;  %v1099_v59 = vshrl.u32 %v972_v32, 16  ;;  %v10624_v34 = vld [vmem:[%s13085_s12 + $0x18] sm:$0xe] }
  0x85   : > { %11557 = vmatprep.mubr.msk.bf16.mxu1 %vm748_vm9, %v12725_v62  ;;  %v1064_v62 = vrot.slane %v1062_v47, 4  ;;  %v10606_v18 = vcombine.low %v13579_v31, %v13607_v17  ;;  %v1078_v2 = vor.u32 %v1077_v13, %v1073_v25  ;;  %v1088_v47 = vrot.slane %v1086_v36, 4 }
  0x86   : > { %v1091_v50 = vrot.slane %v1089_v9, 5  ;;  %v1097_v40 = vrot.slane %v1095_v37, 5  ;;  %v1101_v61 = vrot.slane %v1099_v59, 4  ;;  %v1107_v0 = vrot.slane %v1105_v39, 5  ;;  %v978_v9 = vld [vmem:[%s13268_s19 + $0x40] sm:$0xf] }
  0x87   : > { %v1068_v26 = vor.u32 %v1067_v19, %v1064_v62  ;;  %v10639_v32 = vrot.slane %v10623_v55, 9  ;;  %v1079_v23 = vrot.slane %v1078_v2, 4  ;;  %v10640_v62 = vrot.slane %v10624_v34, 9  ;;  %v10625_v2 = vld [vmem:[%s13085_s12 + $0x24] sm:$0xe] }
  0x88   : > { %v1092_v46 = vor.u32 %v1091_v50, %v1088_v47  ;;  %v1102_v4 = vor.u32 %v1101_v61, %v1097_v40  ;;  %v1110_v36 = vshrl.u32 %v974_v3, 16  ;;  %v1113_v55 = vshll.u32 %v974_v3, 16  ;;  %v10626_v61 = vld [vmem:[%s13085_s12 + $0x30] sm:$0xe]  ;;  %v980_v3 = vld [vmem:[%s13268_s19 + $0x48] sm:$0xf] }
  0x89   : > { %11852 = vmatmul.mubr.msk.bf16.gmra.mrb[16].mxu0 %vm748_vm9, %v10600_v14  ;;  %v1069_v52 = vrot.slane %v1068_v26, 4  ;;  %v2228_v14 = vsel %vm503_vm0, %v12727_v10, 0  ;;  %v1084_v10 = vsel %vm13125_vm7, %v1079_v23, %v1083_v30  ;;  %v13648_v12 = vsel %vm13173_vm8, %v10640_v62, %v6101_v41  ;;  %v979_v30 = vld [vmem:[%s13268_s19 + $0x44] sm:$0x1] }
  0x8a   : > { %11855 = vmatprep.mubr.msk.bf16.mxu0 %vm748_vm9, %v10601_v42  ;;  %v13634_v42 = vsel %vm13173_vm8, %v10639_v32, %v6094_v53  ;;  %v976_v53 = vld [vmem:[%s13268_s19 + $0x38] sm:$0x1]  ;;  %v1103_v27 = vrot.slane %v1102_v4, 4  ;;  %v10658_v13 = vcombine.low %v13648_v12, %v13185_v33  ;;  %v1112_v59 = vrot.slane %v1110_v36, 4 }
  0x8b   : > { %v1074_v60 = vsel %vm13125_vm7, %v1069_v52, %v1073_v25  ;;  %v10657_v19 = vcombine.low %v13634_v42, %v13403_v8  ;;  %v977_v25 = vld [vmem:[%s13268_s19 + $0x3c] sm:$0xf]  ;;  %v1129_v39 = vshll.u32 %v976_v53, 16  ;;  %v1115_v50 = vrot.slane %v1113_v55, 5  ;;  %v12801_v42 = vld [vmem:[%s13085_s12 + $0x50] sm:$0x1] }
  0x8c   : > { %11558 = vmatmul.mubr.msk.bf16.gmra.mrb[28].mxu1 %vm748_vm9, %v12726_v6  ;;  %v975_v6 = vld [vmem:[%s13268_s19 + $0x34] sm:$0xf]  ;;  %v10097_v49 = vcombine.low %v1074_v60, %v1084_v10  ;;  %v1108_v41 = vsel %vm13125_vm7, %v1103_v27, %v1107_v0  ;;  %v1134_v34 = vshrl.u32 %v977_v25, 16  ;;  %v1137_v23 = vshll.u32 %v977_v25, 16  ;;  %v981_v25 = vld [vmem:[%s13268_s19 + $0x4c] sm:$0xf] }
  0x8d   : > { %11563 = vmatprep.mubr.msk.bf16.mxu1 %vm748_vm9, %v10095_v44  ;;  %v1093_v44 = vrot.slane %v1092_v46, 4  ;;  %v1119_v21 = vshll.u32 %v975_v6, 16  ;;  %v1123_v26 = vshrl.u32 %v975_v6, 16  ;;  %v1131_v0 = vrot.slane %v1129_v39, 5 }
  0x8e   : > { %v1136_v32 = vrot.slane %v1134_v34, 4  ;;  %v1143_v46 = vshll.u32 %v978_v9, 16  ;;  %v1116_v5 = vor.u32 %v1115_v50, %v1112_v59  ;;  %v1153_v62 = vshll.u32 %v979_v30, 16  ;;  %v984_v34 = vld [vmem:[%s13268_s19 + $0x58] sm:$0xf] }
  0x8f   : > { %v1098_v37 = vsel %vm13125_vm7, %v1093_v44, %v1097_v40  ;;  %v1121_v40 = vrot.slane %v1119_v21, 5  ;;  %v1125_v52 = vrot.slane %v1123_v26, 4  ;;  %v1139_v60 = vrot.slane %v1137_v23, 5  ;;  %v10627_v23 = vld [vmem:[%s13085_s12 + $0x3c] sm:$0xe] }
  0x90   : > { %v10098_v47 = vcombine.low %v1098_v37, %v1108_v41  ;;  %v1145_v45 = vrot.slane %v1143_v46, 5  ;;  %v10641_v56 = vrot.slane %v10625_v2, 9  ;;  %v1117_v4 = vrot.slane %v1116_v5, 4 }
  0x91   : > { %11856 = vmatmul.mubr.msk.bf16.gmra.mrb[20].mxu0 %vm748_vm9, %v10602_v22  ;;  %v1126_v15 = vor.u32 %v1125_v52, %v1121_v40  ;;  %v1147_v22 = vshrl.u32 %v978_v9, 16  ;;  %v1155_v44 = vrot.slane %v1153_v62, 5  ;;  %v982_v9 = vld [vmem:[%s13268_s19 + $0x50] sm:$0x1]  ;;  %v15954_v26 = vcombine.low %v13528_v57, %v13540_v1 }
  0x92   : > { %11859 = vmatprep.mubr.msk.bf16.mxu0 %vm748_vm9, %v10603_v58  ;;  %v10642_v58 = vrot.slane %v10626_v61, 9  ;;  %v13678_v53 = vsel %vm13173_vm8, %v10641_v56, %v6108_v16  ;;  %v1122_v27 = vsel %vm13125_vm7, %v1117_v4, %v1121_v40  ;;  %v1161_v41 = vshll.u32 %v980_v3, 16  ;;  %v985_v40 = vld [vmem:[%s13268_s19 + $0x5c] sm:$0x1] }
  0x93   : > { %v1127_v6 = vrot.slane %v1126_v15, 4  ;;  %v1149_v10 = vrot.slane %v1147_v22, 4  ;;  %v10659_v16 = vcombine.low %v13678_v53, %v13488_v11  ;;  %v1167_v59 = vshll.u32 %v981_v25, 16 }
  0x94   : > { %11564 = vmatmul.mubr.msk.bf16.vlgmr.msra.gmra.mrb[0].mxu1 %vm748_vm9, %v13603_v35  ;;  %v1140_v35 = vor.u32 %v1139_v60, %v1136_v32  ;;  %v1171_v39 = vshrl.u32 %v981_v25, 16  ;;  %v1177_v50 = vshll.u32 %v982_v9, 16  ;;  %v1182_v52 = vshrl.u32 %v983_v63, 16  ;;  %v986_v9 = vld [vmem:[%s13268_s19 + $0x60] sm:$0xf] }
  0x95   : > { %11567 = vmatprep.mubr.msk.bf16.mxu1 %vm748_vm9, %v10097_v49  ;;  %11596 = vmatpush3.bf16.msra.mxu1 %v2228_v14  ;;  %v13684_v14 = vsel %vm13173_vm8, %v10642_v58, %v6115_v29  ;;  %v1158_v49 = vshrl.u32 %v980_v3, 16  ;;  %v1132_v36 = vsel %vm13125_vm7, %v1127_v6, %v1131_v0  ;;  %v1150_v51 = vor.u32 %v1149_v10, %v1145_v45  ;;  %v10628_v58 = vld [vmem:[%s13085_s12 + $0x48] sm:$0xe] }
  0x96   : > { %v10099_v37 = vcombine.low %v1122_v27, %v1132_v36  ;;  %v1141_v55 = vrot.slane %v1140_v35, 4  ;;  %v10660_v29 = vcombine.low %v13684_v14, %v13520_v54  ;;  %v1185_v57 = vshll.u32 %v983_v63, 16  ;;  %v12799_v36 = vld [vmem:[%s13085_s12 + $0x44] sm:$0x1] }
  0x97   : > { %v1160_v21 = vrot.slane %v1158_v49, 4  ;;  %v1151_v30 = vrot.slane %v1150_v51, 4  ;;  %v1163_v61 = vrot.slane %v1161_v41, 5  ;;  %v1169_v0 = vrot.slane %v1167_v59, 5  ;;  %v988_v41 = vld [vmem:[%s13268_s19 + $0x68] sm:$0x1] }
  0x98   : > { %v1146_v2 = vsel %vm13125_vm7, %v1141_v55, %v1145_v45  ;;  %v1173_v32 = vrot.slane %v1171_v39, 4  ;;  %v1179_v48 = vrot.slane %v1177_v50, 5  ;;  %v1187_v46 = vrot.slane %v1185_v57, 5 }
  0x99   : > { %11860 = vmatmul.mubr.msk.bf16.gmra.mrb[24].mxu0 %vm748_vm9, %v15954_v26  ;;  %v1156_v1 = vsel %vm13125_vm7, %v1151_v30, %v1155_v44  ;;  %v1164_v5 = vor.u32 %v1163_v61, %v1160_v21  ;;  %v1191_v22 = vshll.u32 %v984_v34, 16  ;;  %v1201_v3 = vshll.u32 %v985_v40, 16  ;;  %v987_v21 = vld [vmem:[%s13268_s19 + $0x64] sm:$0xf] }
  0x9a   : > { %11863 = vmatprep.mubr.msk.bf16.mxu0 %vm748_vm9, %v10605_v20  ;;  %v10100_v24 = vcombine.low %v1146_v2, %v1156_v1  ;;  %v1184_v20 = vrot.slane %v1182_v52, 4  ;;  %v1174_v15 = vor.u32 %v1173_v32, %v1169_v0  ;;  %v10643_v60 = vrot.slane %v10627_v23, 9  ;;  %v989_v52 = vld [vmem:[%s13268_s19 + $0x6c] sm:$0xf]  ;;  %v990_v32 = vld [vmem:[%s13268_s19 + $0x70] sm:$0xf] }
  0x9b   : > { %v15955_v45 = vrot.slane %v13509_v43, 5  ;;  %v1165_v4 = vrot.slane %v1164_v5, 4  ;;  %v1193_v10 = vrot.slane %v1191_v22, 5  ;;  %v1203_v25 = vrot.slane %v1201_v3, 5  ;;  %v10629_v5 = vld [vmem:[%s13085_s12 + $0x54] sm:$0xe] }
  0x9c   : > { %11568 = vmatmul.mubr.msk.bf16.gmra.mrb[4].mxu1 %vm748_vm9, %v10098_v47  ;;  %v1195_v47 = vshrl.u32 %v984_v34, 16  ;;  %v1188_v62 = vor.u32 %v1187_v46, %v1184_v20  ;;  %v1175_v6 = vrot.slane %v1174_v15, 4  ;;  %v6125_v51 = vrot.slane %v12799_v36, 5  ;;  %v991_v46 = vld [vmem:[%s13268_s19 + $0x74] sm:$0x1] }
  0x9d   : > { %11571 = vmatprep.mubr.msk.bf16.mxu1 %vm748_vm9, %v10099_v37  ;;  %v6124_v56 = vrot.slane %v15955_v45, 4  ;;  %v15956_v49 = vmov %v15955_v45  ;;  %v1170_v63 = vsel %vm13125_vm7, %v1165_v4, %v1169_v0  ;;  %v10644_v55 = vrot.slane %v10628_v58, 9  ;;  %v12802_v36 = vld [vmem:[%s13085_s12 + $0x58] sm:$0xf] }
  0x9e   : > { %v1197_v44 = vrot.slane %v1195_v47, 4  ;;  %v1189_v35 = vrot.slane %v1188_v62, 4  ;;  %v13721_v27 = vsel %vm13173_vm8, %v10643_v60, %v15956_v49  ;;  %v1180_v43 = vsel %vm13125_vm7, %v1175_v6, %v1179_v48 }
  0x9f   : > { %v10101_v26 = vcombine.low %v1170_v63, %v1180_v43  ;;  %v13742_v17 = vsel %vm13173_vm8, %v6124_v56, %v6125_v51  ;;  %v1206_v39 = vshrl.u32 %v986_v9, 16  ;;  %v1209_v50 = vshll.u32 %v986_v9, 16  ;;  %v12803_v9 = vld [vmem:[%s13085_s12 + $0x5c] sm:$0x1]  ;;  %v992_v43 = vld [vmem:[%s13268_s19 + $0x78] sm:$0xf] }
  0xa0   : > { %v1198_v37 = vor.u32 %v1197_v44, %v1193_v10  ;;  %v1194_v31 = vsel %vm13125_vm7, %v1189_v35, %v1193_v10  ;;  %v10661_v8 = vcombine.low %v13721_v27, %v13742_v17  ;;  %v1215_v40 = vshll.u32 %v987_v21, 16  ;;  %v10630_v44 = vld [vmem:[%s13085_s12 + $0x60] sm:$0xe] }
  0xa1   : > { %11864 = vmatmul.mubr.msk.bf16.gmra.mrb[28].mxu0 %vm748_vm9, %v10606_v18  ;;  %v12800_v18 = vld [vmem:[%s13085_s12 + $0x4c] sm:$0xf]  ;;  %v1208_v1 = vrot.slane %v1206_v39, 4  ;;  %v1219_v61 = vshrl.u32 %v987_v21, 16  ;;  %v1225_v0 = vshll.u32 %v988_v41, 16  ;;  %v1211_v48 = vrot.slane %v1209_v50, 5 }
  0xa2   : > { %11869 = vmatprep.mubr.msk.bf16.mxu0 %vm454_vm2, %v10657_v19  ;;  %v6129_v30 = vrot.slane %v12800_v18, 5  ;;  %v1199_v59 = vrot.slane %v1198_v37, 4  ;;  %v6132_v19 = vrot.slane %v12801_v42, 5  ;;  %v1217_v20 = vrot.slane %v1215_v40, 5  ;;  %v994_v40 = vld [vmem:[%s13268_s19 + $0x80] sm:$0x1] }
  0xa3   : > { %v1221_v22 = vrot.slane %v1219_v61, 4  ;;  %v1227_v47 = vrot.slane %v1225_v0, 5  ;;  %v1230_v62 = vshrl.u32 %v989_v52, 16  ;;  %v1212_v3 = vor.u32 %v1211_v48, %v1208_v1  ;;  %v997_v48 = vld [vmem:[%s13268_s19 + $0x8c] sm:$0x1] }
  0xa4   : > { %11572 = vmatmul.mubr.msk.bf16.gmra.mrb[8].mxu1 %vm748_vm9, %v10100_v24  ;;  %v13753_v34 = vsel %vm13173_vm8, %v10644_v55, %v6129_v30  ;;  %v6131_v2 = vrot.slane %v6129_v30, 4  ;;  %v1204_v57 = vsel %vm13125_vm7, %v1199_v59, %v1203_v25  ;;  %v1233_v60 = vshll.u32 %v989_v52, 16  ;;  %v12805_v59 = vld [vmem:[%s13085_s12 + $0x68] sm:$0x1] }
  0xa5   : > { %11575 = vmatprep.mubr.msk.bf16.mxu1 %vm748_vm9, %v10101_v26  ;;  %v10102_v23 = vcombine.low %v1194_v31, %v1204_v57  ;;  %v1239_v45 = vshll.u32 %v990_v32, 16  ;;  %v1243_v56 = vshrl.u32 %v990_v32, 16  ;;  %v1222_v58 = vor.u32 %v1221_v22, %v1217_v20  ;;  %v12804_v26 = vld [vmem:[%s13085_s12 + $0x64] sm:$0xf] }
  0xa6   : > { %v13761_v24 = vsel %vm13173_vm8, %v6131_v2, %v6132_v19  ;;  %v1232_v4 = vrot.slane %v1230_v62, 4  ;;  %v1249_v6 = vshll.u32 %v991_v46, 16  ;;  %v10645_v10 = vrot.slane %v10629_v5, 9  ;;  %v993_v19 = vld [vmem:[%s13268_s19 + $0x7c] sm:$0xf] }
  0xa7   : > { %v10662_v15 = vcombine.low %v13753_v34, %v13761_v24  ;;  %v1213_v35 = vrot.slane %v1212_v3, 4  ;;  %v1235_v25 = vrot.slane %v1233_v60, 5  ;;  %v1241_v33 = vrot.slane %v1239_v45, 5  ;;  %v995_v57 = vld [vmem:[%s13268_s19 + $0x84] sm:$0xf] }
  0xa8   : > { %v1245_v12 = vrot.slane %v1243_v56, 4  ;;  %v1251_v49 = vrot.slane %v1249_v6, 5  ;;  %v6136_v51 = vrot.slane %v12802_v36, 5  ;;  %v10646_v63 = vrot.slane %v10630_v44, 9  ;;  %v13823_v62 = vld [vmem:[%s15945_s2 + $0x4] sm:$0x3] }
  0xa9   : > { %11870 = vmatmul.mubr.msk.bf16.vlgmr.msra.gmra.mrb[0].mxu0 %vm454_vm2, %v10658_v13  ;;  %v1223_v13 = vrot.slane %v1222_v58, 4  ;;  %v1218_v11 = vsel %vm13125_vm7, %v1213_v35, %v1217_v20  ;;  %v1236_v53 = vor.u32 %v1235_v25, %v1232_v4  ;;  %v6143_v31 = vrot.slane %v12804_v26, 5  ;;  %12653 = vmatprep.subr.msk.bf16.mxu1 %vm797_vm1, %v13823_v62  ;;  %v10632_v4 = vld [vmem:[%s13085_s12 + $0x78] sm:$0xe]  ;;  %v1000_v24 = vld [vmem:[%s13268_s19 + $0x98] sm:$0x1] }
  0xaa   : > { %11902 = vmatpush3.bf16.msra.mxu0 %v13637_v7  ;;  %11873 = vmatprep.mubr.msk.bf16.mxu0 %vm454_vm2, %v10659_v16  ;;  %v6139_v7 = vrot.slane %v12803_v9, 5  ;;  %v1246_v16 = vor.u32 %v1245_v12, %v1241_v33  ;;  %v13787_v55 = vsel %vm13173_vm8, %v10645_v10, %v6136_v51  ;;  %v6138_v21 = vrot.slane %v6136_v51, 4  ;;  %v13839_v12 = vld [vmem:[%s15946_s3 + $0x30] sm:$0x3f]  }
  0xab   : > { %v1228_v37 = vsel %vm13125_vm7, %v1223_v13, %v1227_v47  ;;  %v1237_v30 = vrot.slane %v1236_v53, 4  ;;  %v6146_v42 = vrot.slane %v12805_v59, 5  ;;  %v13798_v2 = vsel %vm13173_vm8, %v10646_v63, %v6143_v31  ;;  %v10631_v47 = vld [vmem:[%s13085_s12 + $0x6c] sm:$0xe]  ;;  %12662 = vmatprep.subr.msk.bf16.mxu0 %vm503_vm0, %v13839_v12  ;;  %v999_v59 = vld [vmem:[%s13268_s19 + $0x94] sm:$0xf] }
  0xac   : > { %11576 = vmatmul.mubr.msk.bf16.gmra.mrb[12].mxu1 %vm748_vm9, %v10102_v23  ;;  %v10103_v18 = vcombine.low %v1218_v11, %v1228_v37  ;;  %v1247_v41 = vrot.slane %v1246_v16, 4  ;;  %v13794_v39 = vsel %vm13173_vm8, %v6138_v21, %v6139_v7  ;;  %v6145_v50 = vrot.slane %v6143_v31, 4  ;;  %v996_v23 = vld [vmem:[%s13268_s19 + $0x88] sm:$0xf]  ;;  %v12806_v11 = vld [vmem:[%s13085_s12 + $0x70] sm:$0xf] }
  0xad   : > { %v1254_v52 = vshrl.u32 %v992_v43, 16  ;;  %v1242_v1 = vsel %vm13125_vm7, %v1237_v30, %v1241_v33  ;;  %v10663_v0 = vcombine.low %v13787_v55, %v13794_v39  ;;  %v1257_v32 = vshll.u32 %v992_v43, 16  ;;  %v998_v33 = vld [vmem:[%s13268_s19 + $0x90] sm:$0xf]  ;;  %v12807_v16 = vld [vmem:[%s13085_s12 + $0x74] sm:$0x1] }
  0xae   : > { %11579 = vmatprep.mubr.msk.bf16.mxu1 %vm748_vm9, %v10103_v18  ;;  %v1252_v61 = vsel %vm13125_vm7, %v1247_v41, %v1251_v49  ;;  %v13817_v46 = vsel %vm13173_vm8, %v6145_v50, %v6146_v42  ;;  %v1263_v22 = vshll.u32 %v993_v19, 16  ;;  %v1273_v3 = vshll.u32 %v994_v40, 16  ;;  %v12808_v30 = vld [vmem:[%s13085_s12 + $0x7c] sm:$0xf]  ;;  %v12809_v39 = vld [vmem:[%s13085_s12 + $0x80] sm:$0x1] }
  0xaf   : > { %v10104_v20 = vcombine.low %v1242_v1, %v1252_v61  ;;  %v1256_v5 = vrot.slane %v1254_v52, 4  ;;  %v10664_v54 = vcombine.low %v13798_v2, %v13817_v46  ;;  %v1259_v14 = vrot.slane %v1257_v32, 5  ;;  %v1001_v1 = vld [vmem:[%s13268_s19 + $0x9c] sm:$0xf]  ;;  %v1002_v61 = vld [vmem:[%s13268_s19 + $0xa0] sm:$0xf] }
  0xb0   : > { %v1265_v60 = vrot.slane %v1263_v22, 5  ;;  %v1278_v45 = vshrl.u32 %v995_v57, 16  ;;  %v1281_v56 = vshll.u32 %v995_v57, 16  ;;  %v1287_v58 = vshll.u32 %v996_v23, 16 }
  0xb1   : > { %11874 = vmatmul.mubr.msk.bf16.gmra.mrb[4].mxu0 %vm454_vm2, %v10660_v29  ;;  %v1267_v29 = vshrl.u32 %v993_v19, 16  ;;  %v1260_v27 = vor.u32 %v1259_v14, %v1256_v5  ;;  %v1291_v6 = vshrl.u32 %v996_v23, 16  ;;  %v1297_v25 = vshll.u32 %v997_v48, 16 }
  0xb2   : > { %11877 = vmatprep.mubr.msk.bf16.mxu0 %vm454_vm2, %v10661_v8  ;;  %v1275_v8 = vrot.slane %v1273_v3, 5  ;;  %v1280_v10 = vrot.slane %v1278_v45, 4  ;;  %v1283_v44 = vrot.slane %v1281_v56, 5  ;;  %v1289_v35 = vrot.slane %v1287_v58, 5  ;;  %v1003_v3 = vld [vmem:[%s13268_s19 + $0xa4] sm:$0x1] }
  0xb3   : > { %v1269_v17 = vrot.slane %v1267_v29, 4  ;;  %v1261_v13 = vrot.slane %v1260_v27, 4  ;;  %v1293_v36 = vrot.slane %v1291_v6, 4  ;;  %v10647_v51 = vrot.slane %v10631_v47, 9 }
  0xb4   : > { %11580 = vmatmul.mubr.msk.bf16.gmra.mrb[16].mxu1 %vm748_vm9, %v10104_v20  ;;  %v1284_v9 = vor.u32 %v1283_v44, %v1280_v10  ;;  %v1299_v7 = vrot.slane %v1297_v25, 5  ;;  %v6150_v53 = vrot.slane %v12806_v11, 5  ;;  %v6153_v63 = vrot.slane %v12807_v16, 5 }
  0xb5   : > { %v1270_v49 = vor.u32 %v1269_v17, %v1265_v60  ;;  %v1266_v43 = vsel %vm13125_vm7, %v1261_v13, %v1265_v60  ;;  %v1294_v55 = vor.u32 %v1293_v36, %v1289_v35  ;;  %v10648_v21 = vrot.slane %v10632_v4, 9  ;;  %v10633_v17 = vld [vmem:[%s13085_s12 + $0x84] sm:$0xe] }
  0xb6   : > { %v1285_v26 = vrot.slane %v1284_v9, 4  ;;  %v6151_v31 = vsel %vm13173_vm8, %v10647_v51, %v6150_v53  ;;  %v6152_v18 = vrot.slane %v6150_v53, 4  ;;  %v6157_v41 = vrot.slane %v12808_v30, 5  ;;  %v1004_v53 = vld [vmem:[%s13268_s19 + $0xa8] sm:$0xf] }
  0xb7   : > { %v1271_v37 = vrot.slane %v1270_v49, 4  ;;  %v1295_v19 = vrot.slane %v1294_v55, 4  ;;  %v6160_v34 = vrot.slane %v12809_v39, 5  ;;  %v1305_v5 = vshll.u32 %v998_v33, 16  ;;  %v10634_v49 = vld [vmem:[%s13085_s12 + $0x90] sm:$0xe] }
  0xb8   : > { %v1290_v40 = vsel %vm13125_vm7, %v1285_v26, %v1289_v35  ;;  %v6154_v52 = vsel %vm13173_vm8, %v6152_v18, %v6153_v63  ;;  %v13866_v57 = vsel %vm13173_vm8, %v10648_v21, %v6157_v41  ;;  %v6159_v23 = vrot.slane %v6157_v41, 4  ;;  %v12811_v21 = vld [vmem:[%s13085_s12 + $0x8c] sm:$0x1]  ;;  %v12812_v39 = vld [vmem:[%s13085_s12 + $0x94] sm:$0xf] }
  0xb9   : > { %11878 = vmatmul.mubr.msk.bf16.gmra.mrb[8].mxu0 %vm454_vm2, %v10662_v15  ;;  %v1276_v42 = vsel %vm13125_vm7, %v1271_v37, %v1275_v8  ;;  %v1302_v15 = vshrl.u32 %v998_v33, 16  ;;  %v10665_v32 = vcombine.low %v6151_v31, %v6154_v52  ;;  %v1311_v22 = vshll.u32 %v999_v59, 16 }
  0xba   : > { %11881 = vmatprep.mubr.msk.bf16.mxu0 %vm454_vm2, %v10663_v0  ;;  %v10105_v50 = vcombine.low %v1266_v43, %v1276_v42  ;;  %v1300_v0 = vsel %vm13125_vm7, %v1295_v19, %v1299_v7  ;;  %v1315_v47 = vshrl.u32 %v999_v59, 16  ;;  %v6161_v14 = vsel %vm13173_vm8, %v6159_v23, %v6160_v34  ;;  %v12810_v7 = vld [vmem:[%s13085_s12 + $0x88] sm:$0xf] }
  0xbb   : > { %v1304_v48 = vrot.slane %v1302_v15, 4  ;;  %v10106_v20 = vcombine.low %v1290_v40, %v1300_v0  ;;  %v1321_v29 = vshll.u32 %v1000_v24, 16  ;;  %v1326_v60 = vshrl.u32 %v1001_v1, 16  ;;  %v1006_v24 = vld [vmem:[%s13268_s19 + $0xb0] sm:$0x1] }
  0xbc   : > { %11583 = vmatprep.mubr.msk.bf16.mxu1 %vm748_vm9, %v10105_v50  ;;  %v1329_v45 = vshll.u32 %v1001_v1, 16  ;;  %v10666_v56 = vcombine.low %v13866_v57, %v6161_v14  ;;  %v1307_v58 = vrot.slane %v1305_v5, 5  ;;  %v1313_v4 = vrot.slane %v1311_v22, 5  ;;  %v12813_v40 = vld [vmem:[%s13085_s12 + $0x98] sm:$0x1] }
  0xbd   : > { %11584 = vmatmul.mubr.msk.bf16.gmra.mrb[20].mxu1 %vm748_vm9, %v10106_v20  ;;  %v1317_v27 = vrot.slane %v1315_v47, 4  ;;  %v1323_v8 = vrot.slane %v1321_v29, 5  ;;  %v1328_v6 = vrot.slane %v1326_v60, 4  ;;  %v1335_v44 = vshll.u32 %v1002_v61, 16  ;;  %v1007_v1 = vld [vmem:[%s13268_s19 + $0xb4] sm:$0xf] }
  0xbe   : > { %v1331_v10 = vrot.slane %v1329_v45, 5  ;;  %v1308_v35 = vor.u32 %v1307_v58, %v1304_v48  ;;  %v1339_v33 = vshrl.u32 %v1002_v61, 16  ;;  %v1345_v13 = vshll.u32 %v1003_v3, 16  ;;  %v1008_v48 = vld [vmem:[%s13268_s19 + $0xb8] sm:$0xf] }
  0xbf   : > { %v1318_v25 = vor.u32 %v1317_v27, %v1313_v4  ;;  %v1337_v51 = vrot.slane %v1335_v44, 5  ;;  %v10649_v9 = vrot.slane %v10633_v17, 9  ;;  %v6164_v11 = vrot.slane %v12810_v7, 5  ;;  %v1009_v14 = vld [vmem:[%s13268_s19 + $0xbc] sm:$0x1] }
  0xc0   : > { %v1332_v36 = vor.u32 %v1331_v10, %v1328_v6  ;;  %v1309_v16 = vrot.slane %v1308_v35, 4  ;;  %v1341_v2 = vrot.slane %v1339_v33, 4  ;;  %v1347_v46 = vrot.slane %v1345_v13, 5  ;;  %v10635_v58 = vld [vmem:[%s13085_s12 + $0x9c] sm:$0xe] }
  0xc1   : > { %11882 = vmatmul.mubr.msk.bf16.gmra.mrb[12].mxu0 %vm454_vm2, %v10664_v54  ;;  %v1319_v63 = vrot.slane %v1318_v25, 4  ;;  %v1005_v54 = vld [vmem:[%s13268_s19 + $0xac] sm:$0xf]  ;;  %v6165_v37 = vsel %vm13173_vm8, %v10649_v9, %v6164_v11  ;;  %v6166_v55 = vrot.slane %v6164_v11, 4  ;;  %v6167_v26 = vrot.slane %v12811_v21, 5 }
  0xc2   : > { %11885 = vmatprep.mubr.msk.bf16.mxu0 %vm454_vm2, %v10665_v32  ;;  %v1333_v43 = vrot.slane %v1332_v36, 4  ;;  %v1314_v31 = vsel %vm13125_vm7, %v1309_v16, %v1313_v4  ;;  %v1342_v30 = vor.u32 %v1341_v2, %v1337_v51  ;;  %v10650_v41 = vrot.slane %v10634_v49, 9  ;;  %v12814_v16 = vld [vmem:[%s13085_s12 + $0xa0] sm:$0xf]  ;;  %v12815_v2 = vld [vmem:[%s13085_s12 + $0xa4] sm:$0x1] }
  0xc3   : > { %v1324_v18 = vsel %vm13125_vm7, %v1319_v63, %v1323_v8  ;;  %v6168_v19 = vsel %vm13173_vm8, %v6166_v55, %v6167_v26  ;;  %v6171_v34 = vrot.slane %v12812_v39, 5  ;;  %v6174_v52 = vrot.slane %v12813_v40, 5  ;;  %v10636_v8 = vld [vmem:[%s13085_s12 + $0xa8] sm:$0xe]  ;;  %v1691_v21 = vld [vmem:[%s13085_s12] sm:$0xf] }
  0xc4   : > { %v10107_v59 = vcombine.low %v1314_v31, %v1324_v18  ;;  %v1338_v42 = vsel %vm13125_vm7, %v1333_v43, %v1337_v51  ;;  %v1343_v15 = vrot.slane %v1342_v30, 4  ;;  %v10667_v50 = vcombine.low %v6165_v37, %v6168_v19  ;;  %v12816_v30 = vld [vmem:[%s13085_s12 + $0xac] sm:$0xf] }
  0xc5   : > { %v1350_v57 = vshrl.u32 %v1004_v53, 16  ;;  %v6172_v61 = vsel %vm13173_vm8, %v10650_v41, %v6171_v34  ;;  %v6173_v0 = vrot.slane %v6171_v34, 4  ;;  %v1353_v32 = vshll.u32 %v1004_v53, 16 }
  0xc6   : > { %11587 = vmatprep.mubr.msk.bf16.mxu1 %vm748_vm9, %v10107_v59  ;;  %v1359_v23 = vshll.u32 %v1005_v54, 16  ;;  %v1348_v20 = vsel %vm13125_vm7, %v1343_v15, %v1347_v46  ;;  %v1363_v22 = vshrl.u32 %v1005_v54, 16  ;;  %v1369_v47 = vshll.u32 %v1006_v24, 16  ;;  %v1692_v59 = vld [vmem:[%s13085_s12 + $0x4] sm:$0xf] }
  0xc7   : > { %v1352_v5 = vrot.slane %v1350_v57, 4  ;;  %v10108_v29 = vcombine.low %v1338_v42, %v1348_v20  ;;  %v6175_v3 = vsel %vm13173_vm8, %v6173_v0, %v6174_v52  ;;  %v1355_v60 = vrot.slane %v1353_v32, 5  ;;  %v1693_v42 = vld [vmem:[%s13085_s12 + $0x8] sm:$0x1]  ;;  %v12817_v24 = vld [vmem:[%s13085_s12 + $0xb0] sm:$0x1] }
  0xc8   : > { %v1361_v45 = vrot.slane %v1359_v23, 5  ;;  %v10668_v4 = vcombine.low %v6172_v61, %v6175_v3  ;;  %v1365_v27 = vrot.slane %v1363_v22, 4  ;;  %v1374_v17 = vshrl.u32 %v1007_v1, 16 }
  0xc9   : > { %11886 = vmatmul.mubr.msk.bf16.gmra.mrb[16].mxu0 %vm454_vm2, %v10666_v56  ;;  %v1371_v56 = vrot.slane %v1369_v47, 5  ;;  %11588 = vmatmul.mubr.msk.bf16.gmra.mrb[24].mxu1 %vm748_vm9, %v10108_v29  ;;  %v1356_v6 = vor.u32 %v1355_v60, %v1352_v5  ;;  %v1377_v10 = vshll.u32 %v1007_v1, 16  ;;  %v1383_v44 = vshll.u32 %v1008_v48, 16 }
  0xca   : > { %11889 = vmatprep.mubr.msk.bf16.mxu0 %vm454_vm2, %v10667_v50  ;;  %v1387_v35 = vshrl.u32 %v1008_v48, 16  ;;  %v1366_v25 = vor.u32 %v1365_v27, %v1361_v45  ;;  %v1376_v33 = vrot.slane %v1374_v17, 4  ;;  %v1393_v13 = vshll.u32 %v1009_v14, 16  ;;  %v1694_v50 = vld [vmem:[%s13085_s12 + $0xc] sm:$0xf] }
  0xcb   : > { %v10651_v49 = vrot.slane %v10635_v58, 9  ;;  %v1357_v36 = vrot.slane %v1356_v6, 4  ;;  %v1379_v51 = vrot.slane %v1377_v10, 5  ;;  %v1385_v9 = vrot.slane %v1383_v44, 5  ;;  %v1695_v48 = vld [vmem:[%s13085_s12 + $0x10] sm:$0xf] }
  0xcc   : > { %v1389_v7 = vrot.slane %v1387_v35, 4  ;;  %v1367_v11 = vrot.slane %v1366_v25, 4  ;;  %v1395_v53 = vrot.slane %v1393_v13, 5  ;;  %v6178_v63 = vrot.slane %v12814_v16, 5  ;;  %v10637_v17 = vld [vmem:[%s13085_s12 + $0xb4] sm:$0xe] }
  0xcd   : > { %v6181_v46 = vrot.slane %v12815_v2, 5  ;;  %v1362_v54 = vsel %vm13125_vm7, %v1357_v36, %v1361_v45  ;;  %v1380_v43 = vor.u32 %v1379_v51, %v1376_v33  ;;  %v10652_v55 = vrot.slane %v10636_v8, 9  ;;  %v1696_v45 = vld [vmem:[%s13085_s12 + $0x14] sm:$0x1]  ;;  %v10638_v35 = vld [vmem:[%s13085_s12 + $0xc0] sm:$0xe] }
  0xce   : > { %v1390_v37 = vor.u32 %v1389_v7, %v1385_v9  ;;  %v1372_v26 = vsel %vm13125_vm7, %v1367_v11, %v1371_v56  ;;  %v6179_v31 = vsel %vm13173_vm8, %v10651_v49, %v6178_v63  ;;  %v6180_v18 = vrot.slane %v6178_v63, 4  ;;  %v1697_v36 = vld [vmem:[%s13085_s12 + $0x18] sm:$0xf] }
  0xcf   : > { %v6185_v41 = vrot.slane %v12816_v30, 5  ;;  %v10109_v19 = vcombine.low %v1362_v54, %v1372_v26  ;;  %v1381_v39 = vrot.slane %v1380_v43, 4  ;;  %v6188_v15 = vrot.slane %v12817_v24, 5  ;;  %v12818_v63 = vld [vmem:[%s13085_s12 + $0xb8] sm:$0xf] }
  0xd0   : > { %v1391_v34 = vrot.slane %v1390_v37, 4  ;;  %v6182_v40 = vsel %vm13173_vm8, %v6180_v18, %v6181_v46  ;;  %v1740_v1 = vshrl.u32 %v1691_v21, 16  ;;  %v1743_v23 = vshll.u32 %v1691_v21, 16  ;;  %v12819_v46 = vld [vmem:[%s13085_s12 + $0xbc] sm:$0x1] }
  0xd1   : > { %11890 = vmatmul.mubr.msk.bf16.gmra.mrb[20].mxu0 %vm454_vm2, %v10668_v4  ;;  %v6186_v52 = vsel %vm13173_vm8, %v10652_v55, %v6185_v41  ;;  %v6187_v57 = vrot.slane %v6185_v41, 4  ;;  %11591 = vmatprep.mubr.msk.bf16.mxu1 %vm748_vm9, %v10109_v19  ;;  %v1386_v61 = vsel %vm13125_vm7, %v1381_v39, %v1385_v9  ;;  %v10669_v32 = vcombine.low %v6179_v31, %v6182_v40  ;;  %v12820_v30 = vld [vmem:[%s13085_s12 + $0xc4] sm:$0xf]  ;;  %v12821_v19 = vld [vmem:[%s13085_s12 + $0xc8] sm:$0x1] }
  0xd2   : > { %v1396_v0 = vsel %vm13125_vm7, %v1391_v34, %v1395_v53  ;;  %v1742_v22 = vrot.slane %v1740_v1, 4  ;;  %v1749_v47 = vshll.u32 %v1692_v59, 16  ;;  %v1745_v29 = vrot.slane %v1743_v23, 5  ;;  %v1698_v34 = vld [vmem:[%s13085_s12 + $0x1c] sm:$0xf] }
  0xd3   : > { %v10110_v20 = vcombine.low %v1386_v61, %v1396_v0  ;;  %v6189_v5 = vsel %vm13173_vm8, %v6187_v57, %v6188_v15  ;;  %11893 = vmatprep.mubr.msk.bf16.mxu0 %vm454_vm2, %v10669_v32  ;;  %v1753_v3 = vshrl.u32 %v1692_v59, 16  ;;  %v1759_v60 = vshll.u32 %v1693_v42, 16  ;;  %v1699_v57 = vld [vmem:[%s13085_s12 + $0x20] sm:$0x1]  ;;  %v1700_v1 = vld [vmem:[%s13085_s12 + $0x24] sm:$0xf] }
  0xd4   : > { %v10670_v14 = vcombine.low %v6186_v52, %v6189_v5  ;;  %v1751_v58 = vrot.slane %v1749_v47, 5  ;;  %v1764_v4 = vshrl.u32 %v1694_v50, 16  ;;  %v1767_v27 = vshll.u32 %v1694_v50, 16  ;;  %v1701_v61 = vld [vmem:[%s13085_s12 + $0x28] sm:$0xf] }
  0xd5   : > { %11592 = vmatmul.mubr.msk.bf16.gmra.mrb[28].mxu1 %vm748_vm9, %v10110_v20  ;;  %v1773_v56 = vshll.u32 %v1695_v48, 16  ;;  %v1746_v8 = vor.u32 %v1745_v29, %v1742_v22  ;;  %v1755_v6 = vrot.slane %v1753_v3, 4  ;;  %v1761_v10 = vrot.slane %v1759_v60, 5  ;;  %v1702_v20 = vld [vmem:[%s13085_s12 + $0x2c] sm:$0x1] }
  0xd6   : > { %v1777_v44 = vshrl.u32 %v1695_v48, 16  ;;  %v1766_v25 = vrot.slane %v1764_v4, 4  ;;  %v1769_v33 = vrot.slane %v1767_v27, 5  ;;  %v1783_v49 = vshll.u32 %v1696_v45, 16 }
  0xd7   : > { %v1775_v13 = vrot.slane %v1773_v56, 5  ;;  %v1747_v51 = vrot.slane %v1746_v8, 4  ;;  %v1756_v9 = vor.u32 %v1755_v6, %v1751_v58  ;;  %v10653_v11 = vrot.slane %v10637_v17, 9  ;;  %v1703_v8 = vld [vmem:[%s13085_s12 + $0x30] sm:$0xf] }
  0xd8   : > { %v1779_v7 = vrot.slane %v1777_v44, 4  ;;  %v1770_v53 = vor.u32 %v1769_v33, %v1766_v25  ;;  %v1785_v16 = vrot.slane %v1783_v49, 5  ;;  %v6192_v2 = vrot.slane %v12818_v63, 5  ;;  %v1704_v25 = vld [vmem:[%s13085_s12 + $0x34] sm:$0xf] }
  0xd9   : > { %11894 = vmatmul.mubr.msk.bf16.gmra.mrb[24].mxu0 %vm454_vm2, %v10670_v14  ;;  %v6195_v54 = vrot.slane %v12819_v46, 5  ;;  %v1752_v43 = vsel %vm13125_vm7, %v1747_v51, %v1751_v58  ;;  %v1757_v37 = vrot.slane %v1756_v9, 4  ;;  %v10654_v21 = vrot.slane %v10638_v35, 9  ;;  %v12728_v58 = vld [vmem:[%s13268_s19 + $0x18] sm:$0xff]  }
  0xda   : > { %v1780_v55 = vor.u32 %v1779_v7, %v1775_v13  ;;  %v1771_v26 = vrot.slane %v1770_v53, 4  ;;  %v6193_v31 = vsel %vm13173_vm8, %v10653_v11, %v6192_v2  ;;  %v6194_v18 = vrot.slane %v6192_v2, 4  ;;  %v1705_v53 = vld [vmem:[%s13085_s12 + $0x38] sm:$0x1] }
  0xdb   : > { %v6199_v41 = vrot.slane %v12820_v30, 5  ;;  %v1762_v59 = vsel %vm13125_vm7, %v1757_v37, %v1761_v10  ;;  %v6202_v39 = vrot.slane %v12821_v19, 5  ;;  %v1788_v24 = vshrl.u32 %v1697_v36, 16  ;;  %v1707_v30 = vld [vmem:[%s13085_s12 + $0x40] sm:$0xf] }
  0xdc   : > { %v1781_v42 = vrot.slane %v1780_v55, 4  ;;  %v10129_v15 = vcombine.low %v1752_v43, %v1762_v59  ;;  %v1776_v50 = vsel %vm13125_vm7, %v1771_v26, %v1775_v13  ;;  %v6196_v40 = vsel %vm13173_vm8, %v6194_v18, %v6195_v54  ;;  %v12730_v54 = vld [vmem:[%s13268_s19 + $0x24] sm:$0xff]   ;;  %v1706_v26 = vld [vmem:[%s13085_s12 + $0x3c] sm:$0xf] }
  0xdd   : > { %v6200_v52 = vsel %vm13173_vm8, %v10654_v21, %v6199_v41  ;;  %v10671_v32 = vcombine.low %v6193_v31, %v6196_v40  ;;  %v6201_v23 = vrot.slane %v6199_v41, 4  ;;  %v1790_v48 = vrot.slane %v1788_v24, 4  ;;  %v12731_v41 = vld [vmem:[%s13268_s19 + $0x30] sm:$0xff]  }
  0xde   : > { %v1786_v0 = vsel %vm13125_vm7, %v1781_v42, %v1785_v16  ;;  %11597 = vmatprep.mubr.msk.bf16.mxu1 %vm454_vm2, %v10129_v15  ;;  %v1791_v22 = vshll.u32 %v1697_v36, 16  ;;  %v1797_v47 = vshll.u32 %v1698_v34, 16  ;;  %v1801_v14 = vshrl.u32 %v1698_v34, 16  ;;  %v1708_v34 = vld [vmem:[%s13085_s12 + $0x44] sm:$0x1] }
  0xdf   : > { %v10130_v5 = vcombine.low %v1776_v50, %v1786_v0  ;;  %11897 = vmatprep.mubr.msk.bf16.mxu0 %vm454_vm2, %v10671_v32  ;;  %v6203_v29 = vsel %vm13173_vm8, %v6201_v23, %v6202_v39  ;;  %v1807_v3 = vshll.u32 %v1699_v57, 16  ;;  %v1812_v60 = vshrl.u32 %v1700_v1, 16  ;;  %v14003_v24 = vld [vmem:[%s15946_s3 + $0x10] sm:$0x3f]   ;;  %v1709_v57 = vld [vmem:[%s13085_s12 + $0x48] sm:$0xf] }
  0xe0   : > { %v1815_v45 = vshll.u32 %v1700_v1, 16  ;;  %v10672_v4 = vcombine.low %v6200_v52, %v6203_v29  ;;  %v1793_v27 = vrot.slane %v1791_v22, 5  ;;  %v1799_v56 = vrot.slane %v1797_v47, 5  ;;  %v1710_v23 = vld [vmem:[%s13085_s12 + $0x4c] sm:$0xf] }
  0xe1   : > { %11598 = vmatmul.mubr.msk.bf16.vlgmr.msra.gmra.mrb[0].mxu1 %vm454_vm2, %v10130_v5  ;;  %v1803_v17 = vrot.slane %v1801_v14, 4  ;;  %v1809_v6 = vrot.slane %v1807_v3, 5  ;;  %v1814_v10 = vrot.slane %v1812_v60, 4  ;;  %v1821_v35 = vshll.u32 %v1701_v61, 16  ;;  %v14016_v47 = vld [vmem:[%s15945_s2 + $0xe] sm:$0x3] }
  0xe2   : > { %v1817_v44 = vrot.slane %v1815_v45, 5  ;;  %11898 = vmatmul.mubr.msk.bf16.gmra.mrb[28].mxu0 %vm454_vm2, %v10672_v4  ;;  %v1794_v33 = vor.u32 %v1793_v27, %v1790_v48  ;;  %v1825_v49 = vshrl.u32 %v1701_v61, 16  ;;  %v1831_v36 = vshll.u32 %v1702_v20, 16  ;;  %v1711_v45 = vld [vmem:[%s13085_s12 + $0x50] sm:$0x1] }
  0xe3   : > { %v1804_v13 = vor.u32 %v1803_v17, %v1799_v56  ;;  %v1823_v9 = vrot.slane %v1821_v35, 5  ;;  %11903 = vmatprep.mubr.msk.bf16.mxu0 %vm748_vm9, %v12728_v58  ;;  %v2701_v7 = vsel %vm797_vm1, %v13823_v62, 0  ;;  %v7037_v11 = vsel %vm503_vm0, %v13839_v12, 0  ;;  %v12732_v17 = vld [vmem:[%s13268_s19 + $0x3c] sm:$0xff]  }
  0xe4   : > { %v1818_v51 = vor.u32 %v1817_v44, %v1814_v10  ;;  %v1795_v16 = vrot.slane %v1794_v33, 4  ;;  %v1827_v2 = vrot.slane %v1825_v49, 4  ;;  %v1833_v46 = vrot.slane %v1831_v36, 5  ;;  %11630 = vmatpush3.bf16.msra.mxu1 %v2701_v7 }
  0xe5   : > { %v1805_v63 = vrot.slane %v1804_v13, 4  ;;  %v1836_v37 = vshrl.u32 %v1703_v8, 16  ;;  %v1839_v55 = vshll.u32 %v1703_v8, 16  ;;  %v1845_v21 = vshll.u32 %v1704_v25, 16  ;;  %12654 = vmatprep.subr.msk.bf16.mxu1 %vm503_vm0, %v14003_v24  ;;  %v1712_v8 = vld [vmem:[%s13085_s12 + $0x54] sm:$0xf] }
  0xe6   : > { %v1819_v43 = vrot.slane %v1818_v51, 4  ;;  %v1800_v62 = vsel %vm13125_vm7, %v1795_v16, %v1799_v56  ;;  %v1828_v31 = vor.u32 %v1827_v2, %v1823_v9  ;;  %v1849_v18 = vshrl.u32 %v1704_v25, 16  ;;  %v1713_v25 = vld [vmem:[%s13085_s12 + $0x58] sm:$0xf]  ;;  %v12733_v16 = vld [vmem:[%s13268_s19 + $0x48] sm:$0xff]  }
  0xe7   : > { %v1810_v12 = vsel %vm13125_vm7, %v1805_v63, %v1809_v6  ;;  %v1838_v19 = vrot.slane %v1836_v37, 4  ;;  %v1841_v39 = vrot.slane %v1839_v55, 5  ;;  %v1847_v50 = vrot.slane %v1845_v21, 5 }
  0xe8   : > { %v10131_v59 = vcombine.low %v1800_v62, %v1810_v12  ;;  %v1824_v42 = vsel %vm13125_vm7, %v1819_v43, %v1823_v9  ;;  %v1829_v15 = vrot.slane %v1828_v31, 4  ;;  %v1851_v40 = vrot.slane %v1849_v18, 4  ;;  %v1715_v43 = vld [vmem:[%s13085_s12 + $0x60] sm:$0xf]  ;;  %v1716_v62 = vld [vmem:[%s13085_s12 + $0x64] sm:$0xf] }
  0xe9   : > { %v1855_v52 = vshll.u32 %v1705_v53, 16  ;;  %v1842_v1 = vor.u32 %v1841_v39, %v1838_v19  ;;  %v1860_v61 = vshrl.u32 %v1706_v26, 16  ;;  %v1863_v0 = vshll.u32 %v1706_v26, 16  ;;  %v1714_v53 = vld [vmem:[%s13085_s12 + $0x5c] sm:$0x1] }
  0xea   : > { %11601 = vmatprep.mubr.msk.bf16.mxu1 %vm454_vm2, %v10131_v59  ;;  %v1869_v32 = vshll.u32 %v1707_v30, 16  ;;  %v1834_v48 = vsel %vm13125_vm7, %v1829_v15, %v1833_v46  ;;  %11904 = vmatmul.mubr.msk.bf16.vlgmr.msra.gmra.mrb[0].mxu0 %vm748_vm9, %v12730_v54  ;;  %v1852_v20 = vor.u32 %v1851_v40, %v1847_v50  ;;  %v1873_v22 = vshrl.u32 %v1707_v30, 16  ;;  %v12734_v40 = vld [vmem:[%s13268_s19 + $0x54] sm:$0xff]  }
  0xeb   : > { %v1857_v5 = vrot.slane %v1855_v52, 5  ;;  %v10132_v14 = vcombine.low %v1824_v42, %v1834_v48  ;;  %11936 = vmatpush3.bf16.msra.mxu0 %v7037_v11  ;;  %v1843_v29 = vrot.slane %v1842_v1, 4  ;;  %v1862_v3 = vrot.slane %v1860_v61, 4  ;;  %11907 = vmatprep.mubr.msk.bf16.mxu0 %vm748_vm9, %v12731_v41  ;;  %v1717_v1 = vld [vmem:[%s13085_s12 + $0x68] sm:$0x1] }
  0xec   : > { %v1865_v60 = vrot.slane %v1863_v0, 5  ;;  %v1853_v58 = vrot.slane %v1852_v20, 4  ;;  %v1871_v4 = vrot.slane %v1869_v32, 5  ;;  %v1875_v27 = vrot.slane %v1873_v22, 4  ;;  %12663 = vmatprep.subr.msk.bf16.mxu0 %vm797_vm1, %v14016_v47  ;;  %v1718_v32 = vld [vmem:[%s13085_s12 + $0x6c] sm:$0xf] }
  0xed   : > { %v1879_v56 = vshll.u32 %v1708_v34, 16  ;;  %11602 = vmatmul.mubr.msk.bf16.gmra.mrb[4].mxu1 %vm454_vm2, %v10132_v14  ;;  %v1848_v6 = vsel %vm13125_vm7, %v1843_v29, %v1847_v50  ;;  %v1884_v44 = vshrl.u32 %v1709_v57, 16  ;;  %v1887_v35 = vshll.u32 %v1709_v57, 16  ;;  %v1719_v14 = vld [vmem:[%s13085_s12 + $0x70] sm:$0xf] }
  0xee   : > { %v1866_v10 = vor.u32 %v1865_v60, %v1862_v3  ;;  %v1858_v33 = vsel %vm13125_vm7, %v1853_v58, %v1857_v5  ;;  %v1876_v13 = vor.u32 %v1875_v27, %v1871_v4  ;;  %v1893_v36 = vshll.u32 %v1710_v23, 16 }
  0xef   : > { %v1881_v49 = vrot.slane %v1879_v56, 5  ;;  %v10133_v51 = vcombine.low %v1848_v6, %v1858_v33  ;;  %v1886_v7 = vrot.slane %v1884_v44, 4  ;;  %v1889_v11 = vrot.slane %v1887_v35, 5  ;;  %v1720_v44 = vld [vmem:[%s13085_s12 + $0x74] sm:$0x1] }
  0xf0   : > { %v1867_v9 = vrot.slane %v1866_v10, 4  ;;  %v1877_v63 = vrot.slane %v1876_v13, 4  ;;  %v1895_v2 = vrot.slane %v1893_v36, 5  ;;  %v1897_v46 = vshrl.u32 %v1710_v23, 16  ;;  %v12735_v23 = vld [vmem:[%s13268_s19 + $0x60] sm:$0xff]  }
  0xf1   : > { %v1903_v54 = vshll.u32 %v1711_v45, 16  ;;  %11605 = vmatprep.mubr.msk.bf16.mxu1 %vm454_vm2, %v10133_v51  ;;  %v1890_v55 = vor.u32 %v1889_v11, %v1886_v7  ;;  %v1908_v21 = vshrl.u32 %v1712_v8, 16  ;;  %v1911_v26 = vshll.u32 %v1712_v8, 16  ;;  %v1721_v35 = vld [vmem:[%s13085_s12 + $0x78] sm:$0xf] }
  0xf2   : > { %v1872_v37 = vsel %vm13125_vm7, %v1867_v9, %v1871_v4  ;;  %v1882_v12 = vsel %vm13125_vm7, %v1877_v63, %v1881_v49  ;;  %11908 = vmatmul.mubr.msk.bf16.gmra.mrb[4].mxu0 %vm748_vm9, %v12732_v17  ;;  %v1899_v31 = vrot.slane %v1897_v46, 4  ;;  %v1917_v30 = vshll.u32 %v1713_v25, 16  ;;  %v1722_v36 = vld [vmem:[%s13085_s12 + $0x7c] sm:$0xf]  ;;  %v1723_v46 = vld [vmem:[%s13085_s12 + $0x80] sm:$0x1] }
  0xf3   : > { %v1905_v18 = vrot.slane %v1903_v54, 5  ;;  %v10134_v41 = vcombine.low %v1872_v37, %v1882_v12  ;;  %v1891_v59 = vrot.slane %v1890_v55, 4  ;;  %v1910_v42 = vrot.slane %v1908_v21, 4  ;;  %11911 = vmatprep.mubr.msk.bf16.mxu0 %vm748_vm9, %v12733_v16  ;;  %v1724_v21 = vld [vmem:[%s13085_s12 + $0x84] sm:$0xf] }
  0xf4   : > { %v1913_v19 = vrot.slane %v1911_v26, 5  ;;  %v1900_v39 = vor.u32 %v1899_v31, %v1895_v2  ;;  %v1919_v34 = vrot.slane %v1917_v30, 5  ;;  %v1921_v15 = vshrl.u32 %v1713_v25, 16  ;;  %v12736_v31 = vld [vmem:[%s13268_s19 + $0x6c] sm:$0xff]   ;;  %v1725_v30 = vld [vmem:[%s13085_s12 + $0x88] sm:$0xf] }
  0xf5   : > { %v1927_v50 = vshll.u32 %v1714_v53, 16  ;;  %11606 = vmatmul.mubr.msk.bf16.gmra.mrb[8].mxu1 %vm454_vm2, %v10134_v41  ;;  %v1896_v52 = vsel %vm13125_vm7, %v1891_v59, %v1895_v2  ;;  %v1932_v61 = vshrl.u32 %v1715_v43, 16  ;;  %v1935_v0 = vshll.u32 %v1715_v43, 16 }
  0xf6   : > { %v1914_v57 = vor.u32 %v1913_v19, %v1910_v42  ;;  %v1901_v48 = vrot.slane %v1900_v39, 4  ;;  %v1923_v20 = vrot.slane %v1921_v15, 4  ;;  %v1941_v22 = vshll.u32 %v1716_v62, 16  ;;  %v12737_v39 = vld [vmem:[%s13268_s19 + $0x78] sm:$0xff]  }
  0xf7   : > { %v1929_v5 = vrot.slane %v1927_v50, 5  ;;  %v1934_v3 = vrot.slane %v1932_v61, 4  ;;  %v1937_v60 = vrot.slane %v1935_v0, 5  ;;  %v1945_v45 = vshrl.u32 %v1716_v62, 16  ;;  %v1726_v0 = vld [vmem:[%s13085_s12 + $0x8c] sm:$0x1] }
  0xf8   : > { %v1915_v29 = vrot.slane %v1914_v57, 4  ;;  %v1906_v58 = vsel %vm13125_vm7, %v1901_v48, %v1905_v18  ;;  %v1924_v4 = vor.u32 %v1923_v20, %v1919_v34  ;;  %v1943_v27 = vrot.slane %v1941_v22, 5 }
  0xf9   : > { %v1951_v56 = vshll.u32 %v1717_v1, 16  ;;  %v10135_v17 = vcombine.low %v1896_v52, %v1906_v58  ;;  %v1938_v6 = vor.u32 %v1937_v60, %v1934_v3  ;;  %v1947_v10 = vrot.slane %v1945_v45, 4  ;;  %v1728_v60 = vld [vmem:[%s13085_s12 + $0x94] sm:$0xf] }
  0xfa   : > { %v1920_v8 = vsel %vm13125_vm7, %v1915_v29, %v1919_v34  ;;  %v1925_v25 = vrot.slane %v1924_v4, 4  ;;  %11912 = vmatmul.mubr.msk.bf16.gmra.mrb[8].mxu0 %vm748_vm9, %v12734_v40  ;;  %v1956_v13 = vshrl.u32 %v1718_v32, 16  ;;  %v1959_v49 = vshll.u32 %v1718_v32, 16 }
  0xfb   : > { %v1953_v33 = vrot.slane %v1951_v56, 5  ;;  %11609 = vmatprep.mubr.msk.bf16.mxu1 %vm454_vm2, %v10135_v17  ;;  %v1939_v51 = vrot.slane %v1938_v6, 4  ;;  %v1948_v9 = vor.u32 %v1947_v10, %v1943_v27  ;;  %v1965_v7 = vshll.u32 %v1719_v14, 16  ;;  %11915 = vmatprep.mubr.msk.bf16.mxu0 %vm748_vm9, %v12735_v23  ;;  %v12738_v10 = vld [vmem:[%s13268_s19 + $0x84] sm:$0xff]  }
  0xfc   : > { %v1969_v11 = vshrl.u32 %v1719_v14, 16  ;;  %v1930_v53 = vsel %vm13125_vm7, %v1925_v25, %v1929_v5  ;;  %v1958_v16 = vrot.slane %v1956_v13, 4  ;;  %v1961_v63 = vrot.slane %v1959_v49, 5  ;;  %v1727_v5 = vld [vmem:[%s13085_s12 + $0x90] sm:$0xf] }
  0xfd   : > { %v1975_v2 = vshll.u32 %v1720_v44, 16  ;;  %v10136_v54 = vcombine.low %v1920_v8, %v1930_v53  ;;  %v1944_v43 = vsel %vm13125_vm7, %v1939_v51, %v1943_v27  ;;  %v1949_v37 = vrot.slane %v1948_v9, 4  ;;  %v1729_v44 = vld [vmem:[%s13085_s12 + $0x98] sm:$0x1]  ;;  %v12739_v49 = vld [vmem:[%s13268_s19 + $0x90] sm:$0xff]  }
  0xfe   : > { %v1967_v55 = vrot.slane %v1965_v7, 5  ;;  %v1962_v26 = vor.u32 %v1961_v63, %v1958_v16  ;;  %v1971_v62 = vrot.slane %v1969_v11, 4  ;;  %v1980_v18 = vshrl.u32 %v1721_v35, 16  ;;  %v1730_v11 = vld [vmem:[%s13085_s12 + $0x9c] sm:$0xf] }
  0xff   : > { %v1977_v12 = vrot.slane %v1975_v2, 5  ;;  %11610 = vmatmul.mubr.msk.bf16.gmra.mrb[12].mxu1 %vm454_vm2, %v10136_v54  ;;  %v1954_v41 = vsel %vm13125_vm7, %v1949_v37, %v1953_v33  ;;  %v1983_v59 = vshll.u32 %v1721_v35, 16  ;;  %v1989_v42 = vshll.u32 %v1722_v36, 16  ;;  %v1731_v53 = vld [vmem:[%s13085_s12 + $0xa0] sm:$0xf] }
 0x100   : > { %v1993_v19 = vshrl.u32 %v1722_v36, 16  ;;  %v10137_v34 = vcombine.low %v1944_v43, %v1954_v41  ;;  %v1963_v15 = vrot.slane %v1962_v26, 4  ;;  %v1972_v50 = vor.u32 %v1971_v62, %v1967_v55 }
 0x101   : > { %v1982_v40 = vrot.slane %v1980_v18, 4  ;;  %v1985_v52 = vrot.slane %v1983_v59, 5  ;;  %v1991_v57 = vrot.slane %v1989_v42, 5  ;;  %v1999_v61 = vshll.u32 %v1723_v46, 16  ;;  %v1733_v42 = vld [vmem:[%s13085_s12 + $0xa8] sm:$0xf] }
 0x102   : > { %v1995_v1 = vrot.slane %v1993_v19, 4  ;;  %11613 = vmatprep.mubr.msk.bf16.mxu1 %vm454_vm2, %v10137_v34  ;;  %v1968_v32 = vsel %vm13125_vm7, %v1963_v15, %v1967_v55  ;;  %v1973_v23 = vrot.slane %v1972_v50, 4  ;;  %11916 = vmatmul.mubr.msk.bf16.gmra.mrb[12].mxu0 %vm748_vm9, %v12736_v31  ;;  %v2004_v48 = vshrl.u32 %v1724_v21, 16 }
 0x103   : > { %v2007_v20 = vshll.u32 %v1724_v21, 16  ;;  %v1986_v22 = vor.u32 %v1985_v52, %v1982_v40  ;;  %v2001_v29 = vrot.slane %v1999_v61, 5  ;;  %v2013_v3 = vshll.u32 %v1725_v30, 16  ;;  %11919 = vmatprep.mubr.msk.bf16.mxu0 %vm748_vm9, %v12737_v39  ;;  %v1732_v21 = vld [vmem:[%s13085_s12 + $0xa4] sm:$0x1] }
 0x104   : > { %v1996_v14 = vor.u32 %v1995_v1, %v1991_v57  ;;  %v1978_v45 = vsel %vm13125_vm7, %v1973_v23, %v1977_v12  ;;  %v2006_v58 = vrot.slane %v2004_v48, 4  ;;  %v2017_v27 = vshrl.u32 %v1725_v30, 16  ;;  %v12740_v1 = vld [vmem:[%s13268_s19 + $0x9c] sm:$0xff]   ;;  %v1734_v61 = vld [vmem:[%s13085_s12 + $0xac] sm:$0xf] }
 0x105   : > { %v2009_v4 = vrot.slane %v2007_v20, 5  ;;  %v10138_v56 = vcombine.low %v1968_v32, %v1978_v45  ;;  %v1987_v17 = vrot.slane %v1986_v22, 4  ;;  %v2015_v6 = vrot.slane %v2013_v3, 5  ;;  %v1735_v20 = vld [vmem:[%s13085_s12 + $0xb0] sm:$0x1] }
 0x106   : > { %v1997_v8 = vrot.slane %v1996_v14, 4  ;;  %v2019_v25 = vrot.slane %v2017_v27, 4  ;;  %v2023_v33 = vshll.u32 %v1726_v0, 16  ;;  %v2028_v13 = vshrl.u32 %v1727_v5, 16  ;;  %v12741_v0 = vld [vmem:[%s13268_s19 + $0xa8] sm:$0xff]  }
 0x107   : > { %v2010_v35 = vor.u32 %v2009_v4, %v2006_v58  ;;  %11614 = vmatmul.mubr.msk.bf16.gmra.mrb[16].mxu1 %vm454_vm2, %v10138_v56  ;;  %v1992_v36 = vsel %vm13125_vm7, %v1987_v17, %v1991_v57  ;;  %v2031_v9 = vshll.u32 %v1727_v5, 16  ;;  %v2037_v7 = vshll.u32 %v1728_v60, 16 }
 0x108   : > { %v2002_v51 = vsel %vm13125_vm7, %v1997_v8, %v2001_v29  ;;  %v2020_v2 = vor.u32 %v2019_v25, %v2015_v6  ;;  %v2025_v46 = vrot.slane %v2023_v33, 5  ;;  %v2030_v54 = vrot.slane %v2028_v13, 4 }
 0x109   : > { %v10139_v16 = vcombine.low %v1992_v36, %v2002_v51  ;;  %v2011_v63 = vrot.slane %v2010_v35, 4  ;;  %v2033_v43 = vrot.slane %v2031_v9, 5  ;;  %v2039_v37 = vrot.slane %v2037_v7, 5  ;;  %v1738_v51 = vld [vmem:[%s13085_s12 + $0xbc] sm:$0x1] }
 0x10a   : > { %v2041_v55 = vshrl.u32 %v1728_v60, 16  ;;  %v2021_v62 = vrot.slane %v2020_v2, 4  ;;  %11920 = vmatmul.mubr.msk.bf16.gmra.mrb[16].mxu0 %vm748_vm9, %v12738_v10  ;;  %v2047_v12 = vshll.u32 %v1729_v44, 16  ;;  %v2052_v31 = vshrl.u32 %v1730_v11, 16  ;;  %v1736_v60 = vld [vmem:[%s13085_s12 + $0xb4] sm:$0xf] }
 0x10b   : > { %11617 = vmatprep.mubr.msk.bf16.mxu1 %vm454_vm2, %v10139_v16  ;;  %v2016_v26 = vsel %vm13125_vm7, %v2011_v63, %v2015_v6  ;;  %v2034_v18 = vor.u32 %v2033_v43, %v2030_v54  ;;  %v2055_v41 = vshll.u32 %v1730_v11, 16  ;;  %v2061_v59 = vshll.u32 %v1731_v53, 16  ;;  %11923 = vmatprep.mubr.msk.bf16.mxu0 %vm748_vm9, %v12739_v49  ;;  %v1737_v10 = vld [vmem:[%s13085_s12 + $0xb8] sm:$0xf]  ;;  %v2423_v63 = vld [vmem:[%s13268_s19] sm:$0xe] }
 0x10c   : > { %v2043_v30 = vrot.slane %v2041_v55, 4  ;;  %v2026_v19 = vsel %vm13125_vm7, %v2021_v62, %v2025_v46  ;;  %v2049_v39 = vrot.slane %v2047_v12, 5  ;;  %v2054_v34 = vrot.slane %v2052_v31, 4  ;;  %v2424_v12 = vld [vmem:[%s13268_s19 + $0xc] sm:$0xe] }
 0x10d   : > { %v2065_v15 = vshrl.u32 %v1731_v53, 16  ;;  %v10140_v50 = vcombine.low %v2016_v26, %v2026_v19  ;;  %v2035_v40 = vrot.slane %v2034_v18, 4  ;;  %v2057_v57 = vrot.slane %v2055_v41, 5  ;;  %v12822_v41 = vld [vmem:[%s13268_s19 + $0x4] sm:$0xf] }
 0x10e   : > { %v2044_v52 = vor.u32 %v2043_v30, %v2039_v37  ;;  %v2063_v32 = vrot.slane %v2061_v59, 5  ;;  %v2071_v48 = vshll.u32 %v1732_v21, 16  ;;  %v2076_v5 = vshrl.u32 %v1733_v42, 16 }
 0x10f   : > { %v2067_v23 = vrot.slane %v2065_v15, 4  ;;  %11618 = vmatmul.mubr.msk.bf16.gmra.mrb[20].mxu1 %vm454_vm2, %v10140_v50  ;;  %v2040_v22 = vsel %vm13125_vm7, %v2035_v40, %v2039_v37  ;;  %v2058_v29 = vor.u32 %v2057_v57, %v2054_v34  ;;  %v2079_v3 = vshll.u32 %v1733_v42, 16  ;;  %v12742_v37 = vld [vmem:[%s13268_s19 + $0xb4] sm:$0xff]   ;;  %v12743_v42 = vld [vmem:[%s13268_s19 + $0xc0] sm:$0xff]   ;;  %v12823_v15 = vld [vmem:[%s13268_s19 + $0x8] sm:$0x1] }
 0x110   : > { %v2045_v14 = vrot.slane %v2044_v52, 4  ;;  %v2073_v58 = vrot.slane %v2071_v48, 5  ;;  %v2078_v4 = vrot.slane %v2076_v5, 4  ;;  %v2085_v27 = vshll.u32 %v1734_v61, 16  ;;  %v2425_v40 = vld [vmem:[%s13268_s19 + $0x18] sm:$0xe] }
 0x111   : > { %v2068_v45 = vor.u32 %v2067_v23, %v2063_v32  ;;  %v2059_v17 = vrot.slane %v2058_v29, 4  ;;  %v2081_v8 = vrot.slane %v2079_v3, 5  ;;  %v2089_v6 = vshrl.u32 %v1734_v61, 16  ;;  %v12824_v48 = vld [vmem:[%s13268_s19 + $0x10] sm:$0xf] }
 0x112   : > { %v2050_v56 = vsel %vm13125_vm7, %v2045_v14, %v2049_v39  ;;  %11924 = vmatmul.mubr.msk.bf16.gmra.mrb[20].mxu0 %vm748_vm9, %v12740_v1  ;;  %v2087_v25 = vrot.slane %v2085_v27, 5  ;;  %v2095_v33 = vshll.u32 %v1735_v20, 16  ;;  %v2100_v9 = vshrl.u32 %v1736_v60, 16  ;;  %v12826_v3 = vld [vmem:[%s13268_s19 + $0x1c] sm:$0xf] }
 0x113   : > { %v10141_v44 = vcombine.low %v2040_v22, %v2050_v56  ;;  %v2069_v35 = vrot.slane %v2068_v45, 4  ;;  %v2064_v13 = vsel %vm13125_vm7, %v2059_v17, %v2063_v32  ;;  %v2082_v49 = vor.u32 %v2081_v8, %v2078_v4  ;;  %11927 = vmatprep.mubr.msk.bf16.mxu0 %vm748_vm9, %v12741_v0  ;;  %v12825_v22 = vld [vmem:[%s13268_s19 + $0x14] sm:$0x1]  ;;  %v2426_v45 = vld [vmem:[%s13268_s19 + $0x24] sm:$0xe] }
 0x114   : > { %v2091_v36 = vrot.slane %v2089_v6, 4  ;;  %v2097_v11 = vrot.slane %v2095_v33, 5  ;;  %v2103_v53 = vshll.u32 %v1736_v60, 16  ;;  %v2109_v16 = vshll.u32 %v1737_v10, 16 }
 0x115   : > { %11621 = vmatprep.mubr.msk.bf16.mxu1 %vm454_vm2, %v10141_v44  ;;  %v2074_v7 = vsel %vm13125_vm7, %v2069_v35, %v2073_v58  ;;  %v2083_v46 = vrot.slane %v2082_v49, 4  ;;  %v2102_v43 = vrot.slane %v2100_v9, 4  ;;  %v2113_v26 = vshrl.u32 %v1737_v10, 16  ;;  %v12827_v10 = vld [vmem:[%s13268_s19 + $0x20] sm:$0x1] }
 0x116   : > { %v10142_v2 = vcombine.low %v2064_v13, %v2074_v7  ;;  %v2092_v54 = vor.u32 %v2091_v36, %v2087_v25  ;;  %v2105_v55 = vrot.slane %v2103_v53, 5  ;;  %v2111_v21 = vrot.slane %v2109_v16, 5  ;;  %v12828_v13 = vld [vmem:[%s13268_s19 + $0x28] sm:$0xf]  ;;  %v12829_v36 = vld [vmem:[%s13268_s19 + $0x2c] sm:$0x1] }
 0x117   : > { %v2119_v62 = vshll.u32 %v1738_v51, 16  ;;  %v2088_v31 = vsel %vm13125_vm7, %v2083_v46, %v2087_v25  ;;  %v10162_v30 = vrot.slane %v2423_v63, 9  ;;  %v2492_v59 = vrot.slane %v12822_v41, 5  ;;  %v12744_v25 = vld [vmem:[%s13268_s19 + $0xcc] sm:$0xff]   ;;  %v12746_v16 = vld [vmem:[%s13085_s12 + $0x18] sm:$0xff]  }
 0x118   : > { %11622 = vmatmul.mubr.msk.bf16.gmra.mrb[24].mxu1 %vm454_vm2, %v10142_v2  ;;  %v2093_v18 = vrot.slane %v2092_v54, 4  ;;  %v2106_v19 = vor.u32 %v2105_v55, %v2102_v43  ;;  %v2115_v39 = vrot.slane %v2113_v26, 4  ;;  %v2495_v50 = vrot.slane %v12823_v15, 5  ;;  %v2427_v9 = vld [vmem:[%s13268_s19 + $0x30] sm:$0xe] }
 0x119   : > { %v2121_v34 = vrot.slane %v2119_v62, 5  ;;  %v2493_v57 = vsel %vm13173_vm8, %v10162_v30, %v2492_v59  ;;  %v2494_v1 = vrot.slane %v2492_v59, 4  ;;  %v10163_v61 = vrot.slane %v2424_v12, 9  ;;  %v2428_v2 = vld [vmem:[%s13268_s19 + $0x3c] sm:$0xe] }
 0x11a   : > { %v2098_v52 = vsel %vm13125_vm7, %v2093_v18, %v2097_v11  ;;  %v2107_v32 = vrot.slane %v2106_v19, 4  ;;  %v2116_v23 = vor.u32 %v2115_v39, %v2111_v21  ;;  %11928 = vmatmul.mubr.msk.bf16.gmra.mrb[24].mxu0 %vm748_vm9, %v12742_v37  ;;  %v2499_v20 = vrot.slane %v12824_v48, 5  ;;  %v2429_v55 = vld [vmem:[%s13268_s19 + $0x48] sm:$0xe]  ;;  %v12830_v26 = vld [vmem:[%s13268_s19 + $0x34] sm:$0xf] }
 0x11b   : > { %v10143_v0 = vcombine.low %v2088_v31, %v2098_v52  ;;  %v2496_v5 = vsel %vm13173_vm8, %v2494_v1, %v2495_v50  ;;  %v2502_v14 = vrot.slane %v12825_v22, 5  ;;  %11931 = vmatprep.mubr.msk.bf16.mxu0 %vm748_vm9, %v12743_v42  ;;  %v10164_v29 = vrot.slane %v2425_v40, 9  ;;  %v12831_v12 = vld [vmem:[%s13268_s19 + $0x38] sm:$0x1]  ;;  %v12832_v41 = vld [vmem:[%s13268_s19 + $0x40] sm:$0xf] }
 0x11c   : > { %v2506_v60 = vrot.slane %v12826_v3, 5  ;;  %v2112_v58 = vsel %vm13125_vm7, %v2107_v32, %v2111_v21  ;;  %v2117_v4 = vrot.slane %v2116_v23, 4  ;;  %v10179_v27 = vcombine.low %v2493_v57, %v2496_v5  ;;  %v12833_v59 = vld [vmem:[%s13268_s19 + $0x44] sm:$0x1]  ;;  %v2430_v19 = vld [vmem:[%s13268_s19 + $0x54] sm:$0xe] }
 0x11d   : > { %11625 = vmatprep.mubr.msk.bf16.mxu1 %vm454_vm2, %v10143_v0  ;;  %v14146_v56 = vsel %vm13173_vm8, %v10163_v61, %v2499_v20  ;;  %v2501_v17 = vrot.slane %v2499_v20, 4  ;;  %v2509_v44 = vrot.slane %v12827_v10, 5  ;;  %v10165_v33 = vrot.slane %v2426_v45, 9  ;;  %v12834_v57 = vld [vmem:[%s13268_s19 + $0x4c] sm:$0xf] }
 0x11e   : > { %v14150_v8 = vsel %vm13173_vm8, %v10164_v29, %v2506_v60  ;;  %v2508_v6 = vrot.slane %v2506_v60, 4  ;;  %v2122_v35 = vsel %vm13125_vm7, %v2117_v4, %v2121_v34  ;;  %v2513_v49 = vrot.slane %v12828_v13, 5  ;;  %v12835_v61 = vld [vmem:[%s13268_s19 + $0x50] sm:$0x1]  ;;  %v2431_v32 = vld [vmem:[%s13268_s19 + $0x60] sm:$0xe] }
 0x11f   : > { %v2516_v51 = vrot.slane %v12829_v36, 5  ;;  %v10144_v7 = vcombine.low %v2112_v58, %v2122_v35  ;;  %v14161_v11 = vsel %vm13173_vm8, %v2501_v17, %v2502_v14  ;;  %v14170_v63 = vsel %vm503_vm0, %v14003_v24, 0  ;;  %v12836_v20 = vld [vmem:[%s13268_s19 + $0x58] sm:$0xf]  ;;  %v12837_v22 = vld [vmem:[%s13268_s19 + $0x5c] sm:$0x1] }
 0x120   : > { %v14165_v53 = vsel %vm13173_vm8, %v2508_v6, %v2509_v44  ;;  %v10180_v46 = vcombine.low %v14146_v56, %v14161_v11  ;;  %v14179_v43 = vsel %vm13173_vm8, %v10165_v33, %v2513_v49  ;;  %v2515_v37 = vrot.slane %v2513_v49, 4  ;;  %v2432_v29 = vld [vmem:[%s13268_s19 + $0x6c] sm:$0xe]  ;;  %v12747_v4 = vld [vmem:[%s13085_s12 + $0x24] sm:$0xff]   ;;  %v2433_v10 = vld [vmem:[%s13268_s19 + $0x78] sm:$0xe] }
 0x121   : > { %v10181_v54 = vcombine.low %v14150_v8, %v14165_v53  ;;  %11626 = vmatmul.mubr.msk.bf16.gmra.mrb[28].mxu1 %vm454_vm2, %v10144_v7  ;;  %v14185_v24 = vsel %vm797_vm1, %v14016_v47, 0  ;;  %v10166_v21 = vrot.slane %v2427_v9, 9  ;;  %v2520_v62 = vrot.slane %v12830_v26, 5  ;;  %v12748_v44 = vld [vmem:[%s13085_s12 + $0x30] sm:$0xff]   ;;  %v12839_v13 = vld [vmem:[%s13268_s19 + $0x68] sm:$0x1] }
 0x122   : > { %v2523_v31 = vrot.slane %v12831_v12, 5  ;;  %11631 = vmatprep.mubr.msk.bf16.mxu1 %vm748_vm9, %v10179_v27  ;;  %11932 = vmatmul.mubr.msk.bf16.gmra.mrb[28].mxu0 %vm748_vm9, %v12744_v25  ;;  %v14193_v18 = vsel %vm13173_vm8, %v2515_v37, %v2516_v51  ;;  %v10167_v30 = vrot.slane %v2428_v2, 9  ;;  %v2527_v47 = vrot.slane %v12832_v41, 5  ;;  %v12838_v25 = vld [vmem:[%s13268_s19 + $0x64] sm:$0xf] }
 0x123   : > { %v2530_v42 = vrot.slane %v12833_v59, 5  ;;  %v10182_v39 = vcombine.low %v14179_v43, %v14193_v18  ;;  %11937 = vmatprep.mubr.msk.bf16.mxu0 %vm454_vm2, %v12746_v16  ;;  %v14203_v34 = vsel %vm13173_vm8, %v10166_v21, %v2520_v62  ;;  %v2522_v15 = vrot.slane %v2520_v62, 4  ;;  %v14247_v51 = vld [vmem:[%s15945_s2 + $0x6] sm:$0x3]  ;;  %v12840_v11 = vld [vmem:[%s13268_s19 + $0x70] sm:$0xf] }
 0x124   : > { %v10168_v50 = vrot.slane %v2429_v55, 9  ;;  %v14207_v40 = vsel %vm13173_vm8, %v10167_v30, %v2527_v47  ;;  %v2529_v52 = vrot.slane %v2527_v47, 4  ;;  %v2534_v1 = vrot.slane %v12834_v57, 5  ;;  %v12841_v2 = vld [vmem:[%s13268_s19 + $0x74] sm:$0x1] }
 0x125   : > { %v2537_v0 = vrot.slane %v12835_v61, 5  ;;  %v14214_v23 = vsel %vm13173_vm8, %v2522_v15, %v2523_v31  ;;  %v10169_v48 = vrot.slane %v2430_v19, 9  ;;  %v2541_v5 = vrot.slane %v12836_v20, 5  ;;  %v2434_v55 = vld [vmem:[%s13268_s19 + $0x84] sm:$0xe] }
 0x126   : > { %v2544_v14 = vrot.slane %v12837_v22, 5  ;;  %v10183_v3 = vcombine.low %v14203_v34, %v14214_v23  ;;  %v14223_v60 = vsel %vm13173_vm8, %v2529_v52, %v2530_v42  ;;  %v14227_v45 = vsel %vm13173_vm8, %v10168_v50, %v2534_v1  ;;  %v14262_v21 = vld [vmem:[%s15946_s3 + $0x38] sm:$0x3f]   ;;  %v12843_v31 = vld [vmem:[%s13268_s19 + $0x80] sm:$0x1] }
 0x127   : > { %v2536_v58 = vrot.slane %v2534_v1, 4  ;;  %v10184_v27 = vcombine.low %v14207_v40, %v14223_v60  ;;  %v14234_v56 = vsel %vm13173_vm8, %v10169_v48, %v2541_v5  ;;  %v2543_v17 = vrot.slane %v2541_v5, 4  ;;  %v2435_v41 = vld [vmem:[%s13268_s19 + $0x90] sm:$0xe]  ;;  %v12844_v42 = vld [vmem:[%s13268_s19 + $0x88] sm:$0xf] }
 0x128   : > { %v10170_v6 = vrot.slane %v2431_v32, 9  ;;  %v2548_v33 = vrot.slane %v12838_v25, 5  ;;  %v2551_v49 = vrot.slane %v12839_v13, 5  ;;  %v10171_v36 = vrot.slane %v2432_v29, 9  ;;  %v12845_v15 = vld [vmem:[%s13268_s19 + $0x8c] sm:$0x1] }
 0x129   : > { %v14240_v35 = vsel %vm13173_vm8, %v2536_v58, %v2537_v0  ;;  %11632 = vmatmul.mubr.msk.bf16.vlgmr.msra.gmra.mrb[0].mxu1 %vm748_vm9, %v10180_v46  ;;  %v14254_v7 = vsel %vm13173_vm8, %v2543_v17, %v2544_v14  ;;  %v2555_v16 = vrot.slane %v12840_v11, 5  ;;  %v2558_v37 = vrot.slane %v12841_v2, 5  ;;  %v2436_v52 = vld [vmem:[%s13268_s19 + $0x9c] sm:$0xe]  ;;  %v2437_v5 = vld [vmem:[%s13268_s19 + $0xa8] sm:$0xe] }
 0x12a   : > { %v10185_v9 = vcombine.low %v14227_v45, %v14240_v35  ;;  %11635 = vmatprep.mubr.msk.bf16.mxu1 %vm748_vm9, %v10181_v54  ;;  %11664 = vmatpush3.bf16.msra.mxu1 %v14170_v63  ;;  %v10186_v46 = vcombine.low %v14234_v56, %v14254_v7  ;;  %v14273_v26 = vsel %vm13173_vm8, %v10170_v6, %v2548_v33  ;;  %v2550_v62 = vrot.slane %v2548_v33, 4  ;;  %v12842_v63 = vld [vmem:[%s13268_s19 + $0x7c] sm:$0xf]  ;;  %v12846_v29 = vld [vmem:[%s13268_s19 + $0x94] sm:$0xf] }
 0x12b   : > { %v10172_v12 = vrot.slane %v2433_v10, 9  ;;  %11938 = vmatmul.mubr.msk.bf16.vlgmr.msra.gmra.mrb[0].mxu0 %vm454_vm2, %v12747_v4  ;;  %v14278_v8 = vsel %vm13173_vm8, %v10171_v36, %v2555_v16  ;;  %v2557_v53 = vrot.slane %v2555_v16, 4  ;;  %v2562_v54 = vrot.slane %v12842_v63, 5  ;;  %12655 = vmatprep.subr.msk.bf16.mxu1 %vm797_vm1, %v14247_v51  ;;  %v12749_v22 = vld [vmem:[%s13085_s12 + $0x3c] sm:$0xff]   ;;  %v12847_v4 = vld [vmem:[%s13268_s19 + $0x98] sm:$0x1] }
 0x12c   : > { %v2565_v30 = vrot.slane %v12843_v31, 5  ;;  %11970 = vmatpush3.bf16.msra.mxu0 %v14185_v24  ;;  %11941 = vmatprep.mubr.msk.bf16.mxu0 %vm454_vm2, %v12748_v44  ;;  %v14289_v47 = vsel %vm13173_vm8, %v2550_v62, %v2551_v49  ;;  %v10173_v59 = vrot.slane %v2434_v55, 9  ;;  %v2569_v19 = vrot.slane %v12844_v42, 5  ;;  %v12750_v10 = vld [vmem:[%s13085_s12 + $0x48] sm:$0xff]   ;;  %v12848_v33 = vld [vmem:[%s13268_s19 + $0xa0] sm:$0xf] }
 0x12d   : > { %v2572_v50 = vrot.slane %v12845_v15, 5  ;;  %v10187_v57 = vcombine.low %v14273_v26, %v14289_v47  ;;  %v14298_v24 = vsel %vm13173_vm8, %v2557_v53, %v2558_v37  ;;  %v14302_v1 = vsel %vm13173_vm8, %v10172_v12, %v2562_v54  ;;  %12664 = vmatprep.subr.msk.bf16.mxu0 %vm503_vm0, %v14262_v21  ;;  %v12849_v49 = vld [vmem:[%s13268_s19 + $0xa4] sm:$0x1]  ;;  %v2438_v11 = vld [vmem:[%s13268_s19 + $0xb4] sm:$0xe] }
 0x12e   : > { %v2564_v61 = vrot.slane %v2562_v54, 4  ;;  %v10188_v0 = vcombine.low %v14278_v8, %v14298_v24  ;;  %v14310_v32 = vsel %vm13173_vm8, %v10173_v59, %v2569_v19  ;;  %v2571_v48 = vrot.slane %v2569_v19, 4  ;;  %v12851_v12 = vld [vmem:[%s13268_s19 + $0xb0] sm:$0x1]  ;;  %v2896_v63 = vld [vmem:[%s13085_s12] sm:$0xe] }
 0x12f   : > { %v10174_v20 = vrot.slane %v2435_v41, 9  ;;  %v2576_v58 = vrot.slane %v12846_v29, 5  ;;  %v2579_v17 = vrot.slane %v12847_v4, 5  ;;  %v10175_v6 = vrot.slane %v2436_v52, 9  ;;  %v12852_v23 = vld [vmem:[%s13268_s19 + $0xb8] sm:$0xf] }
 0x130   : > { %v14316_v14 = vsel %vm13173_vm8, %v2564_v61, %v2565_v30  ;;  %v14325_v25 = vsel %vm13173_vm8, %v2571_v48, %v2572_v50  ;;  %v2583_v13 = vrot.slane %v12848_v33, 5  ;;  %v2586_v36 = vrot.slane %v12849_v49, 5  ;;  %v12853_v31 = vld [vmem:[%s13268_s19 + $0xbc] sm:$0x1]  ;;  %v2897_v41 = vld [vmem:[%s13085_s12 + $0xc] sm:$0xe] }
 0x131   : > { %v10189_v44 = vcombine.low %v14302_v1, %v14316_v14  ;;  %11636 = vmatmul.mubr.msk.bf16.gmra.mrb[4].mxu1 %vm748_vm9, %v10182_v39  ;;  %v10190_v16 = vcombine.low %v14310_v32, %v14325_v25  ;;  %v14338_v2 = vsel %vm13173_vm8, %v10174_v20, %v2576_v58  ;;  %v2578_v37 = vrot.slane %v2576_v58, 4  ;;  %v12850_v39 = vld [vmem:[%s13268_s19 + $0xac] sm:$0xf]  ;;  %v2898_v50 = vld [vmem:[%s13085_s12 + $0x18] sm:$0xe] }
 0x132   : > { %v10176_v55 = vrot.slane %v2437_v5, 9  ;;  %11639 = vmatprep.mubr.msk.bf16.mxu1 %vm748_vm9, %v10183_v3  ;;  %v14346_v43 = vsel %vm13173_vm8, %v10175_v6, %v2583_v13  ;;  %v2585_v18 = vrot.slane %v2583_v13, 4  ;;  %v2590_v62 = vrot.slane %v12850_v39, 5  ;;  %v12855_v58 = vld [vmem:[%s13085_s12 + $0x8] sm:$0x1]  ;;  %v12751_v6 = vld [vmem:[%s13085_s12 + $0x54] sm:$0xff]  }
 0x133   : > { %v2593_v53 = vrot.slane %v12851_v12, 5  ;;  %11942 = vmatmul.mubr.msk.bf16.gmra.mrb[4].mxu0 %vm454_vm2, %v12749_v22  ;;  %v14354_v54 = vsel %vm13173_vm8, %v2578_v37, %v2579_v17  ;;  %v10177_v34 = vrot.slane %v2438_v11, 9  ;;  %v2597_v3 = vrot.slane %v12852_v23, 5  ;;  %v12854_v22 = vld [vmem:[%s13085_s12 + $0x4] sm:$0xf] }
 0x134   : > { %v2600_v30 = vrot.slane %v12853_v31, 5  ;;  %11945 = vmatprep.mubr.msk.bf16.mxu0 %vm454_vm2, %v12750_v10  ;;  %v10191_v59 = vcombine.low %v14338_v2, %v14354_v54  ;;  %v14364_v42 = vsel %vm13173_vm8, %v2585_v18, %v2586_v36  ;;  %v14368_v19 = vsel %vm13173_vm8, %v10176_v55, %v2590_v62  ;;  %v12856_v13 = vld [vmem:[%s13085_s12 + $0x10] sm:$0xf]  ;;  %v12857_v36 = vld [vmem:[%s13085_s12 + $0x14] sm:$0x1]  ;;  %v12752_v55 = vld [vmem:[%s13085_s12 + $0x60] sm:$0xff]  }
 0x135   : > { %v2592_v15 = vrot.slane %v2590_v62, 4  ;;  %v10192_v52 = vcombine.low %v14346_v43, %v14364_v42  ;;  %v14375_v61 = vsel %vm13173_vm8, %v10177_v34, %v2597_v3  ;;  %v2599_v48 = vrot.slane %v2597_v3, 4  ;;  %v2899_v37 = vld [vmem:[%s13085_s12 + $0x24] sm:$0xe]  ;;  %v12858_v23 = vld [vmem:[%s13085_s12 + $0x1c] sm:$0xf] }
 0x136   : > { %v10211_v20 = vrot.slane %v2896_v63, 9  ;;  %v2962_v29 = vrot.slane %v12854_v22, 5  ;;  %v2965_v4 = vrot.slane %v12855_v58, 5  ;;  %v10212_v17 = vrot.slane %v2897_v41, 9  ;;  %v12859_v31 = vld [vmem:[%s13085_s12 + $0x20] sm:$0x1] }
 0x137   : > { %v14379_v5 = vsel %vm13173_vm8, %v2592_v15, %v2593_v53  ;;  %v14388_v33 = vsel %vm13173_vm8, %v2599_v48, %v2600_v30  ;;  %v2969_v49 = vrot.slane %v12856_v13, 5  ;;  %v2972_v11 = vrot.slane %v12857_v36, 5  ;;  %v10822_v53 = vld [vmem:[%s13268_s19 + $0x18] sm:$0xf]  ;;  %v10823_v41 = vld [vmem:[%s13268_s19 + $0x1c] sm:$0xf] }
 0x138   : > { %v10193_v10 = vcombine.low %v14368_v19, %v14379_v5  ;;  %v10194_v18 = vcombine.low %v14375_v61, %v14388_v33  ;;  %v14398_v39 = vsel %vm13173_vm8, %v10211_v20, %v2962_v29  ;;  %v2964_v62 = vrot.slane %v2962_v29, 4  ;;  %v10824_v20 = vld [vmem:[%s13268_s19 + $0x20] sm:$0x1]  ;;  %v10825_v29 = vld [vmem:[%s13268_s19 + $0x24] sm:$0xf] }
 0x139   : > { %v10213_v12 = vrot.slane %v2898_v50, 9  ;;  %11640 = vmatmul.mubr.msk.bf16.gmra.mrb[8].mxu1 %vm748_vm9, %v10184_v27  ;;  %v14407_v63 = vsel %vm13173_vm8, %v10212_v17, %v2969_v49  ;;  %v2971_v34 = vrot.slane %v2969_v49, 4  ;;  %v2976_v3 = vrot.slane %v12858_v23, 5  ;;  %v12860_v27 = vld [vmem:[%s13085_s12 + $0x28] sm:$0xf]  ;;  %v12753_v23 = vld [vmem:[%s13085_s12 + $0x6c] sm:$0xff]  }
 0x13a   : > { %v2979_v30 = vrot.slane %v12859_v31, 5  ;;  %11643 = vmatprep.mubr.msk.bf16.mxu1 %vm748_vm9, %v10185_v9  ;;  %v14418_v40 = vsel %vm13173_vm8, %v2964_v62, %v2965_v4  ;;  %v10214_v60 = vrot.slane %v2899_v37, 9  ;;  %v2983_v15 = vrot.slane %v12860_v27, 5  ;;  %v12861_v50 = vld [vmem:[%s13085_s12 + $0x2c] sm:$0x1] }
 0x13b   : > { %v2986_v48 = vrot.slane %v12861_v50, 5  ;;  %11946 = vmatmul.mubr.msk.bf16.gmra.mrb[8].mxu0 %vm454_vm2, %v12751_v6  ;;  %v10229_v22 = vcombine.low %v14398_v39, %v14418_v40  ;;  %v14428_v45 = vsel %vm13173_vm8, %v2971_v34, %v2972_v11  ;;  %v14432_v35 = vsel %vm13173_vm8, %v10213_v12, %v2976_v3  ;;  %v10826_v34 = vld [vmem:[%s13268_s19 + $0x28] sm:$0xf]  ;;  %v2901_v47 = vld [vmem:[%s13085_s12 + $0x3c] sm:$0xe] }
 0x13c   : > { %v2978_v9 = vrot.slane %v2976_v3, 4  ;;  %11949 = vmatprep.mubr.msk.bf16.mxu0 %vm454_vm2, %v12752_v55  ;;  %v10230_v58 = vcombine.low %v14407_v63, %v14428_v45  ;;  %v14440_v4 = vsel %vm13173_vm8, %v10214_v60, %v2983_v15  ;;  %v2985_v17 = vrot.slane %v2983_v15, 4  ;;  %v10827_v60 = vld [vmem:[%s13268_s19 + $0x2c] sm:$0x1]  ;;  %v10845_v40 = vld [vmem:[%s13268_s19 + $0x74] sm:$0x1] }
 0x13d   : > { %v7281_v6 = vshrl.u32 %v10822_v53, 16  ;;  %v7284_v49 = vshll.u32 %v10822_v53, 16  ;;  %v7290_v36 = vshll.u32 %v10823_v41, 16  ;;  %v7294_v11 = vshrl.u32 %v10823_v41, 16  ;;  %v12754_v41 = vld [vmem:[%s13085_s12 + $0x78] sm:$0xff]  }
 0x13e   : > { %v14444_v13 = vsel %vm13173_vm8, %v2978_v9, %v2979_v30  ;;  %v14450_v55 = vsel %vm13173_vm8, %v2985_v17, %v2986_v48  ;;  %v7300_v12 = vshll.u32 %v10824_v20, 16  ;;  %v14460_v15 = vsel %vm797_vm1, %v14247_v51, 0 }
 0x13f   : > { %v10231_v37 = vcombine.low %v14432_v35, %v14444_v13  ;;  %v7283_v62 = vrot.slane %v7281_v6, 4  ;;  %v10232_v3 = vcombine.low %v14440_v4, %v14450_v55  ;;  %v7286_v31 = vrot.slane %v7284_v49, 5  ;;  %v2900_v49 = vld [vmem:[%s13085_s12 + $0x30] sm:$0xe] }
 0x140   : > { %v7292_v30 = vrot.slane %v7290_v36, 5  ;;  %v7296_v53 = vrot.slane %v7294_v11, 4  ;;  %v7302_v27 = vrot.slane %v7300_v12, 5  ;;  %v7305_v50 = vshrl.u32 %v10825_v29, 16 }
 0x141   : > { %v7308_v48 = vshll.u32 %v10825_v29, 16  ;;  %11644 = vmatmul.mubr.msk.bf16.gmra.mrb[12].mxu1 %vm748_vm9, %v10186_v46  ;;  %v7287_v20 = vor.u32 %v7286_v31, %v7283_v62  ;;  %v7314_v17 = vshll.u32 %v10826_v34, 16  ;;  %v7318_v6 = vshrl.u32 %v10826_v34, 16  ;;  %v12862_v34 = vld [vmem:[%s13085_s12 + $0x34] sm:$0xf] }
 0x142   : > { %v7297_v9 = vor.u32 %v7296_v53, %v7292_v30  ;;  %11647 = vmatprep.mubr.msk.bf16.mxu1 %vm748_vm9, %v10187_v57  ;;  %v7307_v51 = vrot.slane %v7305_v50, 4  ;;  %v7324_v36 = vshll.u32 %v10827_v60, 16  ;;  %v14473_v56 = vsel %vm503_vm0, %v14262_v21, 0  ;;  %v10828_v53 = vld [vmem:[%s13268_s19 + $0x30] sm:$0xf]  ;;  %v12755_v21 = vld [vmem:[%s13085_s12 + $0x84] sm:$0xff]  }
 0x143   : > { %v7310_v29 = vrot.slane %v7308_v48, 5  ;;  %11950 = vmatmul.mubr.msk.bf16.gmra.mrb[12].mxu0 %vm454_vm2, %v12753_v23  ;;  %v7288_v7 = vrot.slane %v7287_v20, 4  ;;  %v7316_v11 = vrot.slane %v7314_v17, 5  ;;  %v7320_v26 = vrot.slane %v7318_v6, 4  ;;  %v12863_v48 = vld [vmem:[%s13085_s12 + $0x38] sm:$0x1] }
 0x144   : > { %v7298_v46 = vrot.slane %v7297_v9, 4  ;;  %11953 = vmatprep.mubr.msk.bf16.mxu0 %vm454_vm2, %v12754_v41  ;;  %v7326_v62 = vrot.slane %v7324_v36, 5  ;;  %v10215_v12 = vrot.slane %v2900_v49, 9  ;;  %v2990_v31 = vrot.slane %v12862_v34, 5  ;;  %v12756_v20 = vld [vmem:[%s13085_s12 + $0x90] sm:$0xff]  }
 0x145   : > { %v7311_v57 = vor.u32 %v7310_v29, %v7307_v51  ;;  %v7293_v23 = vsel %vm13125_vm7, %v7288_v7, %v7292_v30  ;;  %v7321_v50 = vor.u32 %v7320_v26, %v7316_v11  ;;  %v2993_v41 = vrot.slane %v12863_v48, 5  ;;  %v12864_v29 = vld [vmem:[%s13085_s12 + $0x40] sm:$0xf]  ;;  %v10830_v34 = vld [vmem:[%s13268_s19 + $0x38] sm:$0x1] }
 0x146   : > { %v7303_v60 = vsel %vm13125_vm7, %v7298_v46, %v7302_v27  ;;  %v14491_v6 = vsel %vm13173_vm8, %v10215_v12, %v2990_v31  ;;  %v2992_v49 = vrot.slane %v2990_v31, 4  ;;  %v10216_v30 = vrot.slane %v2901_v47, 9  ;;  %v12865_v27 = vld [vmem:[%s13085_s12 + $0x44] sm:$0x1]  ;;  %v10829_v46 = vld [vmem:[%s13268_s19 + $0x34] sm:$0xf] }
 0x147   : > { %v14487_v9 = vcombine.low %v7293_v23, %v7303_v60  ;;  %v7312_v17 = vrot.slane %v7311_v57, 4  ;;  %v7322_v51 = vrot.slane %v7321_v50, 4  ;;  %v2997_v36 = vrot.slane %v12864_v29, 5  ;;  %v10831_v23 = vld [vmem:[%s13268_s19 + $0x3c] sm:$0xf] }
 0x148   : > { %v3000_v7 = vrot.slane %v12865_v27, 5  ;;  %v14500_v57 = vsel %vm13173_vm8, %v2992_v49, %v2993_v41  ;;  %v7329_v12 = vshrl.u32 %v10828_v53, 16  ;;  %v7332_v31 = vshll.u32 %v10828_v53, 16  ;;  %v10832_v48 = vld [vmem:[%s13268_s19 + $0x40] sm:$0xf] }
 0x149   : > { %v7317_v26 = vsel %vm13125_vm7, %v7312_v17, %v7316_v11  ;;  %11648 = vmatmul.mubr.msk.bf16.gmra.mrb[16].mxu1 %vm748_vm9, %v10188_v0  ;;  %v7327_v47 = vsel %vm13125_vm7, %v7322_v51, %v7326_v62  ;;  %v10233_v11 = vcombine.low %v14491_v6, %v14500_v57  ;;  %v14514_v60 = vsel %vm13173_vm8, %v10216_v30, %v2997_v36  ;;  %v10833_v41 = vld [vmem:[%s13268_s19 + $0x44] sm:$0x1]  ;;  %v2902_v53 = vld [vmem:[%s13085_s12 + $0x48] sm:$0xe] }
 0x14a   : > { %v2999_v50 = vrot.slane %v2997_v36, 4  ;;  %11651 = vmatprep.mubr.msk.bf16.mxu1 %vm748_vm9, %v10189_v44  ;;  %v14522_v8 = vcombine.low %v7317_v26, %v7327_v47  ;;  %v7331_v24 = vrot.slane %v7329_v12, 4  ;;  %v7334_v0 = vrot.slane %v7332_v31, 5  ;;  %v12757_v31 = vld [vmem:[%s13085_s12 + $0x9c] sm:$0xff]  }
 0x14b   : > { %v7338_v62 = vshll.u32 %v10829_v46, 16  ;;  %11954 = vmatmul.mubr.msk.bf16.gmra.mrb[16].mxu0 %vm454_vm2, %v12755_v21  ;;  %v7342_v49 = vshrl.u32 %v10829_v46, 16  ;;  %v7348_v51 = vshll.u32 %v10830_v34, 16  ;;  %v7353_v30 = vshrl.u32 %v10831_v23, 16 }
 0x14c   : > { %v14528_v17 = vsel %vm13173_vm8, %v2999_v50, %v3000_v7  ;;  %11957 = vmatprep.mubr.msk.bf16.mxu0 %vm454_vm2, %v12756_v20  ;;  %v7335_v14 = vor.u32 %v7334_v0, %v7331_v24  ;;  %v7356_v29 = vshll.u32 %v10831_v23, 16  ;;  %v7362_v7 = vshll.u32 %v10832_v48, 16  ;;  %v12866_v24 = vld [vmem:[%s13085_s12 + $0x4c] sm:$0xf]  ;;  %v2903_v23 = vld [vmem:[%s13085_s12 + $0x54] sm:$0xe] }
 0x14d   : > { %v10234_v1 = vcombine.low %v14514_v60, %v14528_v17  ;;  %v7340_v44 = vrot.slane %v7338_v62, 5  ;;  %v7344_v21 = vrot.slane %v7342_v49, 4  ;;  %v7350_v36 = vrot.slane %v7348_v51, 5  ;;  %v12758_v62 = vld [vmem:[%s13085_s12 + $0xa8] sm:$0xff]  }
 0x14e   : > { %v7355_v27 = vrot.slane %v7353_v30, 4  ;;  %v7336_v26 = vrot.slane %v7335_v14, 4  ;;  %v7358_v46 = vrot.slane %v7356_v29, 5  ;;  %v7366_v34 = vshrl.u32 %v10832_v48, 16  ;;  %v10834_v48 = vld [vmem:[%s13268_s19 + $0x48] sm:$0xf] }
 0x14f   : > { %v7372_v12 = vshll.u32 %v10833_v41, 16  ;;  %v7345_v20 = vor.u32 %v7344_v21, %v7340_v44  ;;  %v7364_v47 = vrot.slane %v7362_v7, 5  ;;  %v10217_v50 = vrot.slane %v2902_v53, 9  ;;  %v12867_v21 = vld [vmem:[%s13085_s12 + $0x50] sm:$0x1] }
 0x150   : > { %v3004_v0 = vrot.slane %v12866_v24, 5  ;;  %v7341_v49 = vsel %vm13125_vm7, %v7336_v26, %v7340_v44  ;;  %v7359_v51 = vor.u32 %v7358_v46, %v7355_v27  ;;  %v7368_v30 = vrot.slane %v7366_v34, 4  ;;  %v10835_v27 = vld [vmem:[%s13268_s19 + $0x4c] sm:$0xf]  ;;  %v10836_v7 = vld [vmem:[%s13268_s19 + $0x50] sm:$0x1] }
 0x151   : > { %v7374_v14 = vrot.slane %v7372_v12, 5  ;;  %11652 = vmatmul.mubr.msk.bf16.gmra.mrb[20].mxu1 %vm748_vm9, %v10190_v16  ;;  %v7346_v41 = vrot.slane %v7345_v20, 4  ;;  %v3007_v44 = vrot.slane %v12867_v21, 5  ;;  %v10218_v25 = vrot.slane %v2903_v23, 9  ;;  %v12868_v16 = vld [vmem:[%s13085_s12 + $0x58] sm:$0xf] }
 0x152   : > { %v14546_v53 = vsel %vm13173_vm8, %v10217_v50, %v3004_v0  ;;  %v3006_v29 = vrot.slane %v3004_v0, 4  ;;  %11655 = vmatprep.mubr.msk.bf16.mxu1 %vm748_vm9, %v10191_v59  ;;  %v7360_v26 = vrot.slane %v7359_v51, 4  ;;  %v7369_v32 = vor.u32 %v7368_v30, %v7364_v47  ;;  %v10837_v34 = vld [vmem:[%s13268_s19 + $0x54] sm:$0xf]  ;;  %v12869_v50 = vld [vmem:[%s13085_s12 + $0x5c] sm:$0x1] }
 0x153   : > { %v3011_v46 = vrot.slane %v12868_v16, 5  ;;  %11958 = vmatmul.mubr.msk.bf16.gmra.mrb[20].mxu0 %vm454_vm2, %v12757_v31  ;;  %v7351_v12 = vsel %vm13125_vm7, %v7346_v41, %v7350_v36  ;;  %v3014_v2 = vrot.slane %v12869_v50, 5  ;;  %v7377_v54 = vshrl.u32 %v10834_v48, 16  ;;  %v10838_v21 = vld [vmem:[%s13268_s19 + $0x58] sm:$0xf] }
 0x154   : > { %v14562_v20 = vsel %vm13173_vm8, %v3006_v29, %v3007_v44  ;;  %11961 = vmatprep.mubr.msk.bf16.mxu0 %vm454_vm2, %v12758_v62  ;;  %v14566_v59 = vcombine.low %v7341_v49, %v7351_v12  ;;  %v7365_v24 = vsel %vm13125_vm7, %v7360_v26, %v7364_v47  ;;  %v7370_v31 = vrot.slane %v7369_v32, 4  ;;  %v12759_v62 = vld [vmem:[%s13085_s12 + $0xb4] sm:$0xff]  }
 0x155   : > { %v10235_v36 = vcombine.low %v14546_v53, %v14562_v20  ;;  %v14574_v0 = vsel %vm13173_vm8, %v10218_v25, %v3011_v46  ;;  %v3013_v23 = vrot.slane %v3011_v46, 4  ;;  %v7379_v51 = vrot.slane %v7377_v54, 4  ;;  %v10839_v25 = vld [vmem:[%s13268_s19 + $0x5c] sm:$0x1]  ;;  %v2904_v46 = vld [vmem:[%s13085_s12 + $0x60] sm:$0xe] }
 0x156   : > { %v7380_v30 = vshll.u32 %v10834_v48, 16  ;;  %v7375_v49 = vsel %vm13125_vm7, %v7370_v31, %v7374_v14  ;;  %v7386_v41 = vshll.u32 %v10835_v27, 16  ;;  %v7390_v47 = vshrl.u32 %v10835_v27, 16  ;;  %v12760_v48 = vld [vmem:[%s13085_s12 + $0xc0] sm:$0xff]   ;;  %v2905_v31 = vld [vmem:[%s13085_s12 + $0x6c] sm:$0xe] }
 0x157   : > { %v7396_v29 = vshll.u32 %v10836_v7, 16  ;;  %v14580_v44 = vcombine.low %v7365_v24, %v7375_v49  ;;  %v14584_v26 = vsel %vm13173_vm8, %v3013_v23, %v3014_v2  ;;  %v7401_v16 = vshrl.u32 %v10837_v34, 16 }
 0x158   : > { %v7382_v32 = vrot.slane %v7380_v30, 5  ;;  %v10236_v12 = vcombine.low %v14574_v0, %v14584_v26  ;;  %v7388_v14 = vrot.slane %v7386_v41, 5  ;;  %v7392_v50 = vrot.slane %v7390_v47, 4  ;;  %v12871_v47 = vld [vmem:[%s13085_s12 + $0x68] sm:$0x1] }
 0x159   : > { %v7398_v27 = vrot.slane %v7396_v29, 5  ;;  %11656 = vmatmul.mubr.msk.bf16.gmra.mrb[24].mxu1 %vm748_vm9, %v10192_v52  ;;  %v7403_v2 = vrot.slane %v7401_v16, 4  ;;  %v7404_v54 = vshll.u32 %v10837_v34, 16  ;;  %v7410_v24 = vshll.u32 %v10838_v21, 16 }
 0x15a   : > { %v7383_v7 = vor.u32 %v7382_v32, %v7379_v51  ;;  %11659 = vmatprep.mubr.msk.bf16.mxu1 %vm748_vm9, %v10193_v10  ;;  %v7393_v23 = vor.u32 %v7392_v50, %v7388_v14  ;;  %v7414_v30 = vshrl.u32 %v10838_v21, 16  ;;  %v7420_v49 = vshll.u32 %v10839_v25, 16  ;;  %v12870_v51 = vld [vmem:[%s13085_s12 + $0x64] sm:$0xf]  ;;  %v12761_v21 = vld [vmem:[%s13085_s12 + $0xcc] sm:$0xff]  }
 0x15b   : > { %v10219_v41 = vrot.slane %v2904_v46, 9  ;;  %11962 = vmatmul.mubr.msk.bf16.gmra.mrb[24].mxu0 %vm454_vm2, %v12759_v62  ;;  %v7406_v42 = vrot.slane %v7404_v54, 5  ;;  %v7412_v52 = vrot.slane %v7410_v24, 5  ;;  %v3018_v34 = vrot.slane %v12870_v51, 5  ;;  %v10840_v24 = vld [vmem:[%s13268_s19 + $0x60] sm:$0xf] }
 0x15c   : > { %v7384_v43 = vrot.slane %v7383_v7, 4  ;;  %11965 = vmatprep.mubr.msk.bf16.mxu0 %vm454_vm2, %v12760_v48  ;;  %v7394_v19 = vrot.slane %v7393_v23, 4  ;;  %v7416_v5 = vrot.slane %v7414_v30, 4  ;;  %v7422_v10 = vrot.slane %v7420_v49, 5  ;;  %v12872_v7 = vld [vmem:[%s13085_s12 + $0x70] sm:$0xf] }
 0x15d   : > { %v3021_v29 = vrot.slane %v12871_v47, 5  ;;  %v7407_v32 = vor.u32 %v7406_v42, %v7403_v2  ;;  %v14609_v25 = vsel %vm13173_vm8, %v10219_v41, %v3018_v34  ;;  %v3020_v16 = vrot.slane %v3018_v34, 4  ;;  %v10841_v23 = vld [vmem:[%s13268_s19 + $0x64] sm:$0xf]  ;;  %v12873_v49 = vld [vmem:[%s13085_s12 + $0x74] sm:$0x1] }
 0x15e   : > { %v7389_v62 = vsel %vm13125_vm7, %v7384_v43, %v7388_v14  ;;  %v7399_v46 = vsel %vm13125_vm7, %v7394_v19, %v7398_v27  ;;  %v7417_v48 = vor.u32 %v7416_v5, %v7412_v52  ;;  %v10220_v50 = vrot.slane %v2905_v31, 9  ;;  %v10842_v43 = vld [vmem:[%s13268_s19 + $0x68] sm:$0x1]  ;;  %v10843_v42 = vld [vmem:[%s13268_s19 + $0x6c] sm:$0xf] }
 0x15f   : > { %v3025_v54 = vrot.slane %v12872_v7, 5  ;;  %v14616_v30 = vcombine.low %v7389_v62, %v7399_v46  ;;  %v7408_v14 = vrot.slane %v7407_v32, 4  ;;  %v14620_v2 = vsel %vm13173_vm8, %v3020_v16, %v3021_v29  ;;  %v10844_v19 = vld [vmem:[%s13268_s19 + $0x70] sm:$0xf] }
 0x160   : > { %v3028_v41 = vrot.slane %v12873_v49, 5  ;;  %v7418_v51 = vrot.slane %v7417_v48, 4  ;;  %v10237_v27 = vcombine.low %v14609_v25, %v14620_v2  ;;  %v7425_v47 = vshrl.u32 %v10840_v24, 16  ;;  %v12884_v2 = vld [vmem:[%s13085_s12 + $0xb8] sm:$0xf] }
 0x161   : > { %v14629_v31 = vsel %vm13173_vm8, %v10220_v50, %v3025_v54  ;;  %v3027_v34 = vrot.slane %v3025_v54, 4  ;;  %11660 = vmatmul.mubr.msk.bf16.gmra.mrb[28].mxu1 %vm748_vm9, %v10194_v18  ;;  %v7413_v5 = vsel %vm13125_vm7, %v7408_v14, %v7412_v52  ;;  %v7428_v29 = vshll.u32 %v10840_v24, 16 }
 0x162   : > { %v7434_v62 = vshll.u32 %v10841_v23, 16  ;;  %11665 = vmatprep.mubr.msk.bf16.mxu1 %vm454_vm2, %v10229_v22  ;;  %v7423_v32 = vsel %vm13125_vm7, %v7418_v51, %v7422_v10  ;;  %v7438_v33 = vshrl.u32 %v10841_v23, 16  ;;  %v7444_v18 = vshll.u32 %v10842_v43, 16  ;;  %v2906_v22 = vld [vmem:[%s13085_s12 + $0x78] sm:$0xe] }
 0x163   : > { %v14646_v61 = vsel %vm13173_vm8, %v3027_v34, %v3028_v41  ;;  %11966 = vmatmul.mubr.msk.bf16.gmra.mrb[28].mxu0 %vm454_vm2, %v12761_v21  ;;  %v14649_v52 = vcombine.low %v7413_v5, %v7423_v32  ;;  %v7427_v46 = vrot.slane %v7425_v47, 4  ;;  %v7430_v39 = vrot.slane %v7428_v29, 5  ;;  %v2907_v51 = vld [vmem:[%s13085_s12 + $0x84] sm:$0xe]  ;;  %v10846_v29 = vld [vmem:[%s13268_s19 + $0x78] sm:$0xf] }
 0x164   : > { %v10238_v16 = vcombine.low %v14629_v31, %v14646_v61  ;;  %11971 = vmatprep.mubr.msk.bf16.mxu0 %vm748_vm9, %v14487_v9  ;;  %v7436_v10 = vrot.slane %v7434_v62, 5  ;;  %v7440_v48 = vrot.slane %v7438_v33, 4  ;;  %v7446_v50 = vrot.slane %v7444_v18, 5  ;;  %v14662_v62 = vld [vmem:[%s15946_s3 + $0x18] sm:$0x3f]  }
 0x165   : > { %v7449_v7 = vshrl.u32 %v10843_v42, 16  ;;  %v7431_v54 = vor.u32 %v7430_v39, %v7427_v46  ;;  %v7452_v21 = vshll.u32 %v10843_v42, 16  ;;  %v7458_v24 = vshll.u32 %v10844_v19, 16  ;;  %v12875_v18 = vld [vmem:[%s13085_s12 + $0x80] sm:$0x1] }
 0x166   : > { %v7462_v23 = vshrl.u32 %v10844_v19, 16  ;;  %v7441_v14 = vor.u32 %v7440_v48, %v7436_v10  ;;  %v7468_v41 = vshll.u32 %v10845_v40, 16  ;;  %v10221_v43 = vrot.slane %v2906_v22, 9  ;;  %v12874_v19 = vld [vmem:[%s13085_s12 + $0x7c] sm:$0xf] }
 0x167   : > { %v7451_v49 = vrot.slane %v7449_v7, 4  ;;  %v7432_v34 = vrot.slane %v7431_v54, 4  ;;  %v7454_v5 = vrot.slane %v7452_v21, 5  ;;  %v7460_v47 = vrot.slane %v7458_v24, 5  ;;  %v14687_v54 = vld [vmem:[%s15945_s2 + $0x10] sm:$0x3] }
 0x168   : > { %v7464_v9 = vrot.slane %v7462_v23, 4  ;;  %v7442_v42 = vrot.slane %v7441_v14, 4  ;;  %v7470_v32 = vrot.slane %v7468_v41, 5  ;;  %v3032_v33 = vrot.slane %v12874_v19, 5  ;;  %v10847_v21 = vld [vmem:[%s13268_s19 + $0x7c] sm:$0xf] }
 0x169   : > { %v3035_v46 = vrot.slane %v12875_v18, 5  ;;  %11666 = vmatmul.mubr.msk.bf16.vlgmr.msra.gmra.mrb[0].mxu1 %vm454_vm2, %v10230_v58  ;;  %v7437_v39 = vsel %vm13125_vm7, %v7432_v34, %v7436_v10  ;;  %v7455_v40 = vor.u32 %v7454_v5, %v7451_v49  ;;  %v10222_v48 = vrot.slane %v2907_v51, 9  ;;  %v12876_v10 = vld [vmem:[%s13085_s12 + $0x88] sm:$0xf]  ;;  %v10848_v14 = vld [vmem:[%s13268_s19 + $0x80] sm:$0x1] }
 0x16a   : > { %v7465_v22 = vor.u32 %v7464_v9, %v7460_v47  ;;  %11669 = vmatprep.mubr.msk.bf16.mxu1 %vm454_vm2, %v10231_v37  ;;  %11698 = vmatpush3.bf16.msra.mxu1 %v14460_v15  ;;  %v7447_v63 = vsel %vm13125_vm7, %v7442_v42, %v7446_v50  ;;  %v14681_v45 = vsel %vm13173_vm8, %v10221_v43, %v3032_v33  ;;  %v3034_v58 = vrot.slane %v3032_v33, 4  ;;  %v12877_v15 = vld [vmem:[%s13085_s12 + $0x8c] sm:$0x1]  ;;  %v10849_v41 = vld [vmem:[%s13268_s19 + $0x84] sm:$0xf] }
 0x16b   : > { %v3039_v7 = vrot.slane %v12876_v10, 5  ;;  %11972 = vmatmul.mubr.msk.bf16.vlgmr.msra.gmra.mrb[0].mxu0 %vm748_vm9, %v14522_v8  ;;  %v14691_v35 = vcombine.low %v7437_v39, %v7447_v63  ;;  %v7456_v13 = vrot.slane %v7455_v40, 4  ;;  %v3042_v50 = vrot.slane %v12877_v15, 5  ;;  %12656 = vmatprep.subr.msk.bf16.mxu1 %vm503_vm0, %v14662_v62  ;;  %v10850_v34 = vld [vmem:[%s13268_s19 + $0x88] sm:$0xf] }
 0x16c   : > { %v7466_v37 = vrot.slane %v7465_v22, 4  ;;  %12004 = vmatpush3.bf16.msra.mxu0 %v14473_v56  ;;  %11975 = vmatprep.mubr.msk.bf16.mxu0 %vm748_vm9, %v14566_v59  ;;  %v14702_v8 = vsel %vm13173_vm8, %v3034_v58, %v3035_v46  ;;  %v7473_v49 = vshrl.u32 %v10846_v29, 16  ;;  %v7476_v51 = vshll.u32 %v10846_v29, 16  ;;  %v10851_v5 = vld [vmem:[%s13268_s19 + $0x8c] sm:$0x1] }
 0x16d   : > { %v14706_v24 = vsel %vm13173_vm8, %v10222_v48, %v3039_v7  ;;  %v3041_v23 = vrot.slane %v3039_v7, 4  ;;  %v7461_v43 = vsel %vm13125_vm7, %v7456_v13, %v7460_v47  ;;  %v10239_v59 = vcombine.low %v14681_v45, %v14702_v8  ;;  %12665 = vmatprep.subr.msk.bf16.mxu0 %vm797_vm1, %v14687_v54  ;;  %v2908_v33 = vld [vmem:[%s13085_s12 + $0x90] sm:$0xe] }
 0x16e   : > { %v7471_v56 = vsel %vm13125_vm7, %v7466_v37, %v7470_v32  ;;  %v7475_v19 = vrot.slane %v7473_v49, 4  ;;  %v7482_v47 = vshll.u32 %v10847_v21, 16  ;;  %v7478_v18 = vrot.slane %v7476_v51, 5  ;;  %v12879_v49 = vld [vmem:[%s13085_s12 + $0x98] sm:$0x1] }
 0x16f   : > { %v14720_v9 = vcombine.low %v7461_v43, %v7471_v56  ;;  %v14724_v42 = vsel %vm13173_vm8, %v3041_v23, %v3042_v50  ;;  %v7486_v46 = vshrl.u32 %v10847_v21, 16  ;;  %v7492_v29 = vshll.u32 %v10848_v14, 16  ;;  %v2909_v21 = vld [vmem:[%s13085_s12 + $0x9c] sm:$0xe]  ;;  %v10852_v43 = vld [vmem:[%s13268_s19 + $0x90] sm:$0xf] }
 0x170   : > { %v10240_v32 = vcombine.low %v14706_v24, %v14724_v42  ;;  %v7484_v39 = vrot.slane %v7482_v47, 5  ;;  %v7497_v40 = vshrl.u32 %v10849_v41, 16  ;;  %v7500_v22 = vshll.u32 %v10849_v41, 16 }
 0x171   : > { %v7506_v48 = vshll.u32 %v10850_v34, 16  ;;  %11670 = vmatmul.mubr.msk.bf16.gmra.mrb[4].mxu1 %vm454_vm2, %v10232_v3  ;;  %v7479_v63 = vor.u32 %v7478_v18, %v7475_v19  ;;  %v7488_v58 = vrot.slane %v7486_v46, 4  ;;  %v7494_v10 = vrot.slane %v7492_v29, 5  ;;  %v10854_v46 = vld [vmem:[%s13268_s19 + $0x98] sm:$0x1] }
 0x172   : > { %v7510_v7 = vshrl.u32 %v10850_v34, 16  ;;  %11673 = vmatprep.mubr.msk.bf16.mxu1 %vm454_vm2, %v10233_v11  ;;  %v7499_v13 = vrot.slane %v7497_v40, 4  ;;  %v7502_v37 = vrot.slane %v7500_v22, 5  ;;  %v7516_v50 = vshll.u32 %v10851_v5, 16  ;;  %v12878_v11 = vld [vmem:[%s13085_s12 + $0x94] sm:$0xf] }
 0x173   : > { %v7508_v15 = vrot.slane %v7506_v48, 5  ;;  %11976 = vmatmul.mubr.msk.bf16.gmra.mrb[4].mxu0 %vm748_vm9, %v14580_v44  ;;  %v7480_v4 = vrot.slane %v7479_v63, 4  ;;  %v7489_v55 = vor.u32 %v7488_v58, %v7484_v39  ;;  %v10223_v23 = vrot.slane %v2908_v33, 9  ;;  %v10853_v5 = vld [vmem:[%s13268_s19 + $0x94] sm:$0xf] }
 0x174   : > { %v7512_v3 = vrot.slane %v7510_v7, 4  ;;  %11979 = vmatprep.mubr.msk.bf16.mxu0 %vm748_vm9, %v14616_v30  ;;  %v7503_v6 = vor.u32 %v7502_v37, %v7499_v13  ;;  %v7518_v57 = vrot.slane %v7516_v50, 5  ;;  %v3046_v14 = vrot.slane %v12878_v11, 5  ;;  %v12880_v33 = vld [vmem:[%s13085_s12 + $0xa0] sm:$0xf] }
 0x175   : > { %v3049_v41 = vrot.slane %v12879_v49, 5  ;;  %v7485_v44 = vsel %vm13125_vm7, %v7480_v4, %v7484_v39  ;;  %v7490_v56 = vrot.slane %v7489_v55, 4  ;;  %v10224_v34 = vrot.slane %v2909_v21, 9  ;;  %v12881_v39 = vld [vmem:[%s13085_s12 + $0xa4] sm:$0x1] }
 0x176   : > { %v7513_v51 = vor.u32 %v7512_v3, %v7508_v15  ;;  %v7504_v19 = vrot.slane %v7503_v6, 4  ;;  %v14750_v30 = vsel %vm13173_vm8, %v10223_v23, %v3046_v14  ;;  %v3048_v47 = vrot.slane %v3046_v14, 4  ;;  %v10855_v37 = vld [vmem:[%s13268_s19 + $0x9c] sm:$0xf]  ;;  %v10856_v4 = vld [vmem:[%s13268_s19 + $0xa0] sm:$0xf] }
 0x177   : > { %v3053_v18 = vrot.slane %v12880_v33, 5  ;;  %v7495_v29 = vsel %vm13125_vm7, %v7490_v56, %v7494_v10  ;;  %v3056_v22 = vrot.slane %v12881_v39, 5  ;;  %v7521_v48 = vshrl.u32 %v10852_v43, 16  ;;  %v10857_v6 = vld [vmem:[%s13268_s19 + $0xa4] sm:$0x1] }
 0x178   : > { %v7514_v40 = vrot.slane %v7513_v51, 4  ;;  %v14757_v63 = vcombine.low %v7485_v44, %v7495_v29  ;;  %v7509_v58 = vsel %vm13125_vm7, %v7504_v19, %v7508_v15  ;;  %v14763_v7 = vsel %vm13173_vm8, %v3048_v47, %v3049_v41  ;;  %v2911_v56 = vld [vmem:[%s13085_s12 + $0xb4] sm:$0xe]  ;;  %v10858_v29 = vld [vmem:[%s13268_s19 + $0xa8] sm:$0xf] }
 0x179   : > { %v14767_v13 = vsel %vm13173_vm8, %v10224_v34, %v3053_v18  ;;  %11674 = vmatmul.mubr.msk.bf16.gmra.mrb[8].mxu1 %vm454_vm2, %v10234_v1  ;;  %v10241_v15 = vcombine.low %v14750_v30, %v14763_v7  ;;  %v3055_v50 = vrot.slane %v3053_v18, 4  ;;  %v7523_v21 = vrot.slane %v7521_v48, 4  ;;  %v12882_v18 = vld [vmem:[%s13085_s12 + $0xac] sm:$0xf] }
 0x17a   : > { %v7519_v10 = vsel %vm13125_vm7, %v7514_v40, %v7518_v57  ;;  %11677 = vmatprep.mubr.msk.bf16.mxu1 %vm454_vm2, %v10235_v36  ;;  %v7524_v60 = vshll.u32 %v10852_v43, 16  ;;  %v7530_v17 = vshll.u32 %v10853_v5, 16  ;;  %v7534_v1 = vshrl.u32 %v10853_v5, 16 }
 0x17b   : > { %v14783_v55 = vcombine.low %v7509_v58, %v7519_v10  ;;  %11980 = vmatmul.mubr.msk.bf16.gmra.mrb[8].mxu0 %vm748_vm9, %v14649_v52  ;;  %v14789_v3 = vsel %vm13173_vm8, %v3055_v50, %v3056_v22  ;;  %v7540_v23 = vshll.u32 %v10854_v46, 16  ;;  %v7545_v57 = vshrl.u32 %v10855_v37, 16  ;;  %v2910_v52 = vld [vmem:[%s13085_s12 + $0xa8] sm:$0xe]  ;;  %v10859_v58 = vld [vmem:[%s13268_s19 + $0xac] sm:$0xf] }
 0x17c   : > { %v7548_v53 = vshll.u32 %v10855_v37, 16  ;;  %11983 = vmatprep.mubr.msk.bf16.mxu0 %vm748_vm9, %v14691_v35  ;;  %v10242_v20 = vcombine.low %v14767_v13, %v14789_v3  ;;  %v7526_v36 = vrot.slane %v7524_v60, 5  ;;  %v7532_v11 = vrot.slane %v7530_v17, 5  ;;  %v10860_v60 = vld [vmem:[%s13268_s19 + $0xb0] sm:$0x1] }
 0x17d   : > { %v7536_v14 = vrot.slane %v7534_v1, 4  ;;  %v7542_v49 = vrot.slane %v7540_v23, 5  ;;  %v7547_v41 = vrot.slane %v7545_v57, 4  ;;  %v7554_v44 = vshll.u32 %v10856_v4, 16  ;;  %v10909_v13 = vld [vmem:[%s13085_s12 + $0x30] sm:$0xf] }
 0x17e   : > { %v7550_v43 = vrot.slane %v7548_v53, 5  ;;  %v7527_v51 = vor.u32 %v7526_v36, %v7523_v21  ;;  %v7558_v5 = vshrl.u32 %v10856_v4, 16  ;;  %v7564_v19 = vshll.u32 %v10857_v6, 16  ;;  %v12883_v21 = vld [vmem:[%s13085_s12 + $0xb0] sm:$0x1] }
 0x17f   : > { %v7537_v34 = vor.u32 %v7536_v14, %v7532_v11  ;;  %v7556_v47 = vrot.slane %v7554_v44, 5  ;;  %v10225_v33 = vrot.slane %v2910_v52, 9  ;;  %v3060_v46 = vrot.slane %v12882_v18, 5  ;;  %v10861_v6 = vld [vmem:[%s13268_s19 + $0xb4] sm:$0xf] }
 0x180   : > { %v7551_v35 = vor.u32 %v7550_v43, %v7547_v41  ;;  %v7528_v40 = vrot.slane %v7527_v51, 4  ;;  %v7560_v22 = vrot.slane %v7558_v5, 4  ;;  %v7566_v48 = vrot.slane %v7564_v19, 5  ;;  %v12885_v53 = vld [vmem:[%s13085_s12 + $0xbc] sm:$0x1] }
 0x181   : > { %v7538_v39 = vrot.slane %v7537_v34, 4  ;;  %11678 = vmatmul.mubr.msk.bf16.gmra.mrb[12].mxu1 %vm454_vm2, %v10236_v12  ;;  %v14807_v10 = vsel %vm13173_vm8, %v10225_v33, %v3060_v46  ;;  %v3062_v50 = vrot.slane %v3060_v46, 4  ;;  %v3063_v4 = vrot.slane %v12883_v21, 5  ;;  %v10862_v14 = vld [vmem:[%s13268_s19 + $0xb8] sm:$0xf] }
 0x182   : > { %v7552_v37 = vrot.slane %v7551_v35, 4  ;;  %11681 = vmatprep.mubr.msk.bf16.mxu1 %vm454_vm2, %v10237_v27  ;;  %v7533_v0 = vsel %vm13125_vm7, %v7528_v40, %v7532_v11  ;;  %v7561_v12 = vor.u32 %v7560_v22, %v7556_v47  ;;  %v10226_v17 = vrot.slane %v2911_v56, 9  ;;  %v10863_v44 = vld [vmem:[%s13268_s19 + $0xbc] sm:$0x1]  ;;  %v10864_v56 = vld [vmem:[%s13268_s19 + $0xc0] sm:$0xf] }
 0x183   : > { %v7543_v26 = vsel %vm13125_vm7, %v7538_v39, %v7542_v49  ;;  %11984 = vmatmul.mubr.msk.bf16.gmra.mrb[12].mxu0 %vm748_vm9, %v14720_v9  ;;  %v14825_v25 = vsel %vm13173_vm8, %v3062_v50, %v3063_v4  ;;  %v3067_v27 = vrot.slane %v12884_v2, 5  ;;  %v3070_v36 = vrot.slane %v12885_v53, 5 }
 0x184   : > { %v10881_v1 = vcombine.low %v7533_v0, %v7543_v26  ;;  %v7557_v23 = vsel %vm13125_vm7, %v7552_v37, %v7556_v47  ;;  %11987 = vmatprep.mubr.msk.bf16.mxu0 %vm748_vm9, %v14757_v63  ;;  %v7562_v57 = vrot.slane %v7561_v12, 4  ;;  %v10243_v9 = vcombine.low %v14807_v10, %v14825_v25  ;;  %v10865_v37 = vld [vmem:[%s13268_s19 + $0xc4] sm:$0xf]  ;;  %v10867_v12 = vld [vmem:[%s13268_s19 + $0xcc] sm:$0xf] }
 0x185   : > { %v7569_v11 = vshrl.u32 %v10858_v29, 16  ;;  %v14837_v52 = vsel %vm13173_vm8, %v10226_v17, %v3067_v27  ;;  %v3069_v49 = vrot.slane %v3067_v27, 4  ;;  %v7572_v41 = vshll.u32 %v10858_v29, 16 }
 0x186   : > { %v7578_v43 = vshll.u32 %v10859_v58, 16  ;;  %v7567_v63 = vsel %vm13125_vm7, %v7562_v57, %v7566_v48  ;;  %v7582_v34 = vshrl.u32 %v10859_v58, 16  ;;  %v7588_v5 = vshll.u32 %v10860_v60, 16  ;;  %v10866_v60 = vld [vmem:[%s13268_s19 + $0xc8] sm:$0x1] }
 0x187   : > { %v7571_v51 = vrot.slane %v7569_v11, 4  ;;  %v10882_v19 = vcombine.low %v7557_v23, %v7567_v63  ;;  %v14845_v35 = vsel %vm13173_vm8, %v3069_v49, %v3070_v36  ;;  %v7574_v47 = vrot.slane %v7572_v41, 5  ;;  %v10868_v23 = vld [vmem:[%s13268_s19 + $0xd0] sm:$0xf] }
 0x188   : > { %v7580_v33 = vrot.slane %v7578_v43, 5  ;;  %v10244_v18 = vcombine.low %v14837_v52, %v14845_v35  ;;  %v7584_v46 = vrot.slane %v7582_v34, 4  ;;  %v7590_v29 = vrot.slane %v7588_v5, 5 }
 0x189   : > { %v7593_v40 = vshrl.u32 %v10861_v6, 16  ;;  %11682 = vmatmul.mubr.msk.bf16.gmra.mrb[16].mxu1 %vm454_vm2, %v10238_v16  ;;  %v7575_v39 = vor.u32 %v7574_v47, %v7571_v51  ;;  %v7596_v22 = vshll.u32 %v10861_v6, 16  ;;  %v7602_v48 = vshll.u32 %v10862_v14, 16 }
 0x18a   : > { %v7606_v58 = vshrl.u32 %v10862_v14, 16  ;;  %11685 = vmatprep.mubr.msk.bf16.mxu1 %vm454_vm2, %v10239_v59  ;;  %v7585_v50 = vor.u32 %v7584_v46, %v7580_v33  ;;  %v7612_v4 = vshll.u32 %v10863_v44, 16  ;;  %v7617_v0 = vshrl.u32 %v10864_v56, 16  ;;  %v10903_v44 = vld [vmem:[%s13085_s12 + $0x18] sm:$0xf] }
 0x18b   : > { %v7595_v21 = vrot.slane %v7593_v40, 4  ;;  %11988 = vmatmul.mubr.msk.bf16.gmra.mrb[16].mxu0 %vm748_vm9, %v14783_v55  ;;  %v7576_v31 = vrot.slane %v7575_v39, 4  ;;  %v7598_v61 = vrot.slane %v7596_v22, 5  ;;  %v7604_v16 = vrot.slane %v7602_v48, 5 }
 0x18c   : > { %v7608_v26 = vrot.slane %v7606_v58, 4  ;;  %11991 = vmatprep.mubr.msk.bf16.mxu0 %vm748_vm9, %v10881_v1  ;;  %v7586_v45 = vrot.slane %v7585_v50, 4  ;;  %v7614_v8 = vrot.slane %v7612_v4, 5  ;;  %v7619_v59 = vrot.slane %v7617_v0, 4  ;;  %v10869_v1 = vld [vmem:[%s13268_s19 + $0xd4] sm:$0x1] }
 0x18d   : > { %v7620_v17 = vshll.u32 %v10864_v56, 16  ;;  %v7581_v2 = vsel %vm13125_vm7, %v7576_v31, %v7580_v33  ;;  %v7599_v27 = vor.u32 %v7598_v61, %v7595_v21  ;;  %v7626_v55 = vshll.u32 %v10865_v37, 16  ;;  %v10906_v21 = vld [vmem:[%s13085_s12 + $0x24] sm:$0xf] }
 0x18e   : > { %v7609_v6 = vor.u32 %v7608_v26, %v7604_v16  ;;  %v7591_v57 = vsel %vm13125_vm7, %v7586_v45, %v7590_v29  ;;  %v7630_v36 = vshrl.u32 %v10865_v37, 16  ;;  %v7636_v11 = vshll.u32 %v10866_v60, 16  ;;  %v10904_v29 = vld [vmem:[%s13085_s12 + $0x1c] sm:$0xf]  ;;  %v10905_v37 = vld [vmem:[%s13085_s12 + $0x20] sm:$0x1] }
 0x18f   : > { %v7622_v53 = vrot.slane %v7620_v17, 5  ;;  %v10883_v14 = vcombine.low %v7581_v2, %v7591_v57  ;;  %v7600_v49 = vrot.slane %v7599_v27, 4  ;;  %v7628_v43 = vrot.slane %v7626_v55, 5 }
 0x190   : > { %v7610_v41 = vrot.slane %v7609_v6, 4  ;;  %v7632_v63 = vrot.slane %v7630_v36, 4  ;;  %v7638_v51 = vrot.slane %v7636_v11, 5  ;;  %v7641_v34 = vshrl.u32 %v10867_v12, 16 }
 0x191   : > { %v7623_v56 = vor.u32 %v7622_v53, %v7619_v59  ;;  %11686 = vmatmul.mubr.msk.bf16.gmra.mrb[20].mxu1 %vm454_vm2, %v10240_v32  ;;  %v7605_v5 = vsel %vm13125_vm7, %v7600_v49, %v7604_v16  ;;  %v7644_v33 = vshll.u32 %v10867_v12, 16  ;;  %v7650_v46 = vshll.u32 %v10868_v23, 16  ;;  %v10908_v53 = vld [vmem:[%s13085_s12 + $0x2c] sm:$0x1] }
 0x192   : > { %v7615_v47 = vsel %vm13125_vm7, %v7610_v41, %v7614_v8  ;;  %11689 = vmatprep.mubr.msk.bf16.mxu1 %vm454_vm2, %v10241_v15  ;;  %v7633_v42 = vor.u32 %v7632_v63, %v7628_v43  ;;  %v7643_v32 = vrot.slane %v7641_v34, 4  ;;  %v7654_v48 = vshrl.u32 %v10868_v23, 16 }
 0x193   : > { %v10884_v40 = vcombine.low %v7605_v5, %v7615_v47  ;;  %v7624_v24 = vrot.slane %v7623_v56, 4  ;;  %11992 = vmatmul.mubr.msk.bf16.gmra.mrb[20].mxu0 %vm748_vm9, %v10882_v19  ;;  %v7646_v39 = vrot.slane %v7644_v33, 5  ;;  %v7652_v22 = vrot.slane %v7650_v46, 5  ;;  %v10907_v19 = vld [vmem:[%s13085_s12 + $0x28] sm:$0xf]  ;;  %v12763_v33 = vld [vmem:[%s13268_s19 + $0xc] sm:$0xff]  }
 0x194   : > { %v7660_v58 = vshll.u32 %v10869_v1, 16  ;;  %11995 = vmatprep.mubr.msk.bf16.mxu0 %vm748_vm9, %v10883_v14  ;;  %v7634_v7 = vrot.slane %v7633_v42, 4  ;;  %v8007_v15 = vshrl.u32 %v10903_v44, 16  ;;  %v8010_v50 = vshll.u32 %v10903_v44, 16  ;;  %v10910_v44 = vld [vmem:[%s13085_s12 + $0x34] sm:$0xf] }
 0x195   : > { %v7629_v30 = vsel %vm13125_vm7, %v7624_v24, %v7628_v43  ;;  %v7647_v4 = vor.u32 %v7646_v39, %v7643_v32  ;;  %v7656_v60 = vrot.slane %v7654_v48, 4  ;;  %v8016_v31 = vshll.u32 %v10904_v29, 16  ;;  %v10911_v47 = vld [vmem:[%s13085_s12 + $0x38] sm:$0x1]  ;;  %v10912_v42 = vld [vmem:[%s13085_s12 + $0x3c] sm:$0xf] }
 0x196   : > { %v7662_v0 = vrot.slane %v7660_v58, 5  ;;  %v7639_v61 = vsel %vm13125_vm7, %v7634_v7, %v7638_v51  ;;  %v8009_v16 = vrot.slane %v8007_v15, 4  ;;  %v8012_v26 = vrot.slane %v8010_v50, 5  ;;  %v10913_v58 = vld [vmem:[%s13085_s12 + $0x40] sm:$0xf] }
 0x197   : > { %v8020_v12 = vshrl.u32 %v10904_v29, 16  ;;  %v10885_v45 = vcombine.low %v7629_v30, %v7639_v61  ;;  %v7648_v8 = vrot.slane %v7647_v4, 4  ;;  %v7657_v59 = vor.u32 %v7656_v60, %v7652_v22  ;;  %v10914_v4 = vld [vmem:[%s13085_s12 + $0x44] sm:$0x1] }
 0x198   : > { %v8018_v17 = vrot.slane %v8016_v31, 5  ;;  %v8013_v23 = vor.u32 %v8012_v26, %v8009_v16  ;;  %v8026_v27 = vshll.u32 %v10905_v37, 16  ;;  %v14894_v6 = vsel %vm503_vm0, %v14662_v62, 0  ;;  %v10915_v16 = vld [vmem:[%s13085_s12 + $0x48] sm:$0xf] }
 0x199   : > { %v8022_v2 = vrot.slane %v8020_v12, 4  ;;  %11690 = vmatmul.mubr.msk.bf16.gmra.mrb[24].mxu1 %vm454_vm2, %v10242_v20  ;;  %v7653_v55 = vsel %vm13125_vm7, %v7648_v8, %v7652_v22  ;;  %v7658_v57 = vrot.slane %v7657_v59, 4  ;;  %v8031_v36 = vshrl.u32 %v10906_v21, 16 }
 0x19a   : > { %v8034_v11 = vshll.u32 %v10906_v21, 16  ;;  %11693 = vmatprep.mubr.msk.bf16.mxu1 %vm454_vm2, %v10243_v9  ;;  %v8014_v62 = vrot.slane %v8013_v23, 4  ;;  %v8028_v14 = vrot.slane %v8026_v27, 5  ;;  %v8040_v49 = vshll.u32 %v10907_v19, 16  ;;  %v12764_v23 = vld [vmem:[%s13268_s19 + $0x18] sm:$0xff]  }
 0x19b   : > { %v8023_v1 = vor.u32 %v8022_v2, %v8018_v17  ;;  %11996 = vmatmul.mubr.msk.bf16.gmra.mrb[24].mxu0 %vm748_vm9, %v10884_v40  ;;  %v7663_v3 = vsel %vm13125_vm7, %v7658_v57, %v7662_v0  ;;  %v8033_v20 = vrot.slane %v8031_v36, 4  ;;  %v8044_v43 = vshrl.u32 %v10907_v19, 16  ;;  %v12765_v2 = vld [vmem:[%s13268_s19 + $0x24] sm:$0xff]  }
 0x19c   : > { %v8036_v41 = vrot.slane %v8034_v11, 5  ;;  %11999 = vmatprep.mubr.msk.bf16.mxu0 %vm748_vm9, %v10885_v45  ;;  %v10886_v10 = vcombine.low %v7653_v55, %v7663_v3  ;;  %v8019_v25 = vsel %vm13125_vm7, %v8014_v62, %v8018_v17  ;;  %v8042_v56 = vrot.slane %v8040_v49, 5  ;;  %v10916_v17 = vld [vmem:[%s13085_s12 + $0x4c] sm:$0xf]  ;;  %v10918_v49 = vld [vmem:[%s13085_s12 + $0x54] sm:$0xf] }
 0x19d   : > { %v8024_v9 = vrot.slane %v8023_v1, 4  ;;  %v8046_v51 = vrot.slane %v8044_v43, 4  ;;  %v8050_v34 = vshll.u32 %v10908_v53, 16  ;;  %v14917_v5 = vsel %vm797_vm1, %v14687_v54, 0  ;;  %v10917_v1 = vld [vmem:[%s13085_s12 + $0x50] sm:$0x1] }
 0x19e   : > { %v8037_v63 = vor.u32 %v8036_v41, %v8033_v20  ;;  %v8055_v29 = vshrl.u32 %v10909_v13, 16  ;;  %v8058_v40 = vshll.u32 %v10909_v13, 16  ;;  %v8064_v24 = vshll.u32 %v10910_v44, 16  ;;  %v10919_v43 = vld [vmem:[%s13085_s12 + $0x58] sm:$0xf] }
 0x19f   : > { %v8029_v46 = vsel %vm13125_vm7, %v8024_v9, %v8028_v14  ;;  %v8047_v22 = vor.u32 %v8046_v51, %v8042_v56  ;;  %v8052_v48 = vrot.slane %v8050_v34, 5  ;;  %v8068_v7 = vshrl.u32 %v10910_v44, 16 }
 0x1a0   : > { %v10953_v32 = vcombine.low %v8019_v25, %v8029_v46  ;;  %v8038_v39 = vrot.slane %v8037_v63, 4  ;;  %v8057_v37 = vrot.slane %v8055_v29, 4  ;;  %v8060_v30 = vrot.slane %v8058_v40, 5 }
 0x1a1   : > { %v8066_v54 = vrot.slane %v8064_v24, 5  ;;  %11694 = vmatmul.mubr.msk.bf16.gmra.mrb[28].mxu1 %vm454_vm2, %v10244_v18  ;;  %v8048_v50 = vrot.slane %v8047_v22, 4  ;;  %v8074_v21 = vshll.u32 %v10911_v47, 16  ;;  %v8079_v60 = vshrl.u32 %v10912_v42, 16  ;;  %v10920_v24 = vld [vmem:[%s13085_s12 + $0x5c] sm:$0x1] }
 0x1a2   : > { %v8043_v15 = vsel %vm13125_vm7, %v8038_v39, %v8042_v56  ;;  %11699 = vmatprep.mubr.msk.bf16.mxu1 %vm748_vm9, %v12763_v33  ;;  %v8061_v0 = vor.u32 %v8060_v30, %v8057_v37  ;;  %v8070_v31 = vrot.slane %v8068_v7, 4  ;;  %v8082_v19 = vshll.u32 %v10912_v42, 16  ;;  %v14951_v56 = vld [vmem:[%s15945_s2 + $0x8] sm:$0x3]  ;;  %v14957_v33 = vld [vmem:[%s15946_s3 + $0x40] sm:$0x3f]  }
 0x1a3   : > { %v8088_v61 = vshll.u32 %v10913_v58, 16  ;;  %12000 = vmatmul.mubr.msk.bf16.gmra.mrb[28].mxu0 %vm748_vm9, %v10886_v10  ;;  %v8053_v52 = vsel %vm13125_vm7, %v8048_v50, %v8052_v48  ;;  %v8076_v35 = vrot.slane %v8074_v21, 5  ;;  %v8081_v18 = vrot.slane %v8079_v60, 4  ;;  %v10922_v7 = vld [vmem:[%s13085_s12 + $0x64] sm:$0xf] }
 0x1a4   : > { %v8092_v26 = vshrl.u32 %v10913_v58, 16  ;;  %12005 = vmatprep.mubr.msk.bf16.mxu0 %vm454_vm2, %v10953_v32  ;;  %v10954_v12 = vcombine.low %v8043_v15, %v8053_v52  ;;  %v8062_v45 = vrot.slane %v8061_v0, 4  ;;  %v8071_v8 = vor.u32 %v8070_v31, %v8066_v54  ;;  %v10921_v58 = vld [vmem:[%s13085_s12 + $0x60] sm:$0xf]  ;;  %v12766_v15 = vld [vmem:[%s13268_s19 + $0x30] sm:$0xff]  }
 0x1a5   : > { %v8084_v59 = vrot.slane %v8082_v19, 5  ;;  %v8090_v27 = vrot.slane %v8088_v61, 5  ;;  %v8098_v57 = vshll.u32 %v10914_v4, 16  ;;  %v8103_v53 = vshrl.u32 %v10915_v16, 16  ;;  %v12768_v0 = vld [vmem:[%s13268_s19 + $0x3c] sm:$0xff]  }
 0x1a6   : > { %v8094_v55 = vrot.slane %v8092_v26, 4  ;;  %v8067_v36 = vsel %vm13125_vm7, %v8062_v45, %v8066_v54  ;;  %v8072_v11 = vrot.slane %v8071_v8, 4  ;;  %v8106_v14 = vshll.u32 %v10915_v16, 16  ;;  %v10923_v19 = vld [vmem:[%s13085_s12 + $0x68] sm:$0x1] }
 0x1a7   : > { %v8085_v62 = vor.u32 %v8084_v59, %v8081_v18  ;;  %v8100_v3 = vrot.slane %v8098_v57, 5  ;;  %v8105_v20 = vrot.slane %v8103_v53, 4  ;;  %v8112_v41 = vshll.u32 %v10916_v17, 16 }
 0x1a8   : > { %v8095_v13 = vor.u32 %v8094_v55, %v8090_v27  ;;  %v8077_v44 = vsel %vm13125_vm7, %v8072_v11, %v8076_v35  ;;  %v8108_v25 = vrot.slane %v8106_v14, 5  ;;  %v8116_v9 = vshrl.u32 %v10916_v17, 16 }
 0x1a9   : > { %v8086_v10 = vrot.slane %v8085_v62, 4  ;;  %11700 = vmatmul.mubr.msk.bf16.vlgmr.msra.gmra.mrb[0].mxu1 %vm748_vm9, %v12764_v23  ;;  %v10955_v63 = vcombine.low %v8067_v36, %v8077_v44  ;;  %v8114_v34 = vrot.slane %v8112_v41, 5  ;;  %v8122_v47 = vshll.u32 %v10917_v1, 16  ;;  %v10925_v23 = vld [vmem:[%s13085_s12 + $0x70] sm:$0xf] }
 0x1aa   : > { %v8096_v51 = vrot.slane %v8095_v13, 4  ;;  %11703 = vmatprep.mubr.msk.bf16.mxu1 %vm748_vm9, %v12765_v2  ;;  %11732 = vmatpush3.bf16.msra.mxu1 %v14894_v6  ;;  %v8109_v29 = vor.u32 %v8108_v25, %v8105_v20  ;;  %v8118_v40 = vrot.slane %v8116_v9, 4  ;;  %v8127_v42 = vshrl.u32 %v10918_v49, 16  ;;  %v12769_v25 = vld [vmem:[%s13268_s19 + $0x48] sm:$0xff]  }
 0x1ab   : > { %v8091_v46 = vsel %vm13125_vm7, %v8086_v10, %v8090_v27  ;;  %12006 = vmatmul.mubr.msk.bf16.vlgmr.msra.gmra.mrb[0].mxu0 %vm454_vm2, %v10954_v12  ;;  %v8124_v39 = vrot.slane %v8122_v47, 5  ;;  %v8130_v22 = vshll.u32 %v10918_v49, 16  ;;  %v8136_v48 = vshll.u32 %v10919_v43, 16  ;;  %12657 = vmatprep.subr.msk.bf16.mxu1 %vm797_vm1, %v14951_v56  ;;  %v10924_v12 = vld [vmem:[%s13085_s12 + $0x6c] sm:$0xf] }
 0x1ac   : > { %v8101_v32 = vsel %vm13125_vm7, %v8096_v51, %v8100_v3  ;;  %12038 = vmatpush3.bf16.msra.mxu0 %v14917_v5  ;;  %12009 = vmatprep.mubr.msk.bf16.mxu0 %vm454_vm2, %v10955_v63  ;;  %v8110_v37 = vrot.slane %v8109_v29, 4  ;;  %v8119_v30 = vor.u32 %v8118_v40, %v8114_v34  ;;  %v8129_v54 = vrot.slane %v8127_v42, 4  ;;  %v10926_v49 = vld [vmem:[%s13085_s12 + $0x74] sm:$0x1]  ;;  %v10927_v10 = vld [vmem:[%s13085_s12 + $0x78] sm:$0xf] }
 0x1ad   : > { %v10956_v6 = vcombine.low %v8091_v46, %v8101_v32  ;;  %v8132_v50 = vrot.slane %v8130_v22, 5  ;;  %v8138_v21 = vrot.slane %v8136_v48, 5  ;;  %v8140_v4 = vshrl.u32 %v10919_v43, 16  ;;  %12666 = vmatprep.subr.msk.bf16.mxu0 %vm503_vm0, %v14957_v33  ;;  %v10928_v47 = vld [vmem:[%s13085_s12 + $0x7c] sm:$0xf]  ;;  %v12770_v46 = vld [vmem:[%s13268_s19 + $0x54] sm:$0xff]  }
 0x1ae   : > { %v8146_v60 = vshll.u32 %v10920_v24, 16  ;;  %v8115_v5 = vsel %vm13125_vm7, %v8110_v37, %v8114_v34  ;;  %v8120_v31 = vrot.slane %v8119_v30, 4  ;;  %v8151_v61 = vshrl.u32 %v10921_v58, 16  ;;  %v10929_v22 = vld [vmem:[%s13085_s12 + $0x80] sm:$0x1] }
 0x1af   : > { %v8154_v16 = vshll.u32 %v10921_v58, 16  ;;  %v8133_v52 = vor.u32 %v8132_v50, %v8129_v54  ;;  %v8142_v35 = vrot.slane %v8140_v4, 4  ;;  %v8160_v26 = vshll.u32 %v10922_v7, 16 }
 0x1b0   : > { %v8148_v18 = vrot.slane %v8146_v60, 5  ;;  %v8125_v45 = vsel %vm13125_vm7, %v8120_v31, %v8124_v39  ;;  %v8153_v8 = vrot.slane %v8151_v61, 4  ;;  %v8164_v17 = vshrl.u32 %v10922_v7, 16  ;;  %v10930_v7 = vld [vmem:[%s13085_s12 + $0x84] sm:$0xf] }
 0x1b1   : > { %v8156_v59 = vrot.slane %v8154_v16, 5  ;;  %11704 = vmatmul.mubr.msk.bf16.gmra.mrb[4].mxu1 %vm748_vm9, %v12766_v15  ;;  %v10957_v2 = vcombine.low %v8115_v5, %v8125_v45  ;;  %v8134_v27 = vrot.slane %v8133_v52, 4  ;;  %v8143_v55 = vor.u32 %v8142_v35, %v8138_v21  ;;  %v10931_v60 = vld [vmem:[%s13085_s12 + $0x88] sm:$0xf]  ;;  %v10932_v45 = vld [vmem:[%s13085_s12 + $0x8c] sm:$0x1] }
 0x1b2   : > { %v8162_v57 = vrot.slane %v8160_v26, 5  ;;  %11707 = vmatprep.mubr.msk.bf16.mxu1 %vm748_vm9, %v12768_v0  ;;  %v8166_v36 = vrot.slane %v8164_v17, 4  ;;  %v8170_v11 = vshll.u32 %v10923_v19, 16  ;;  %v8175_v62 = vshrl.u32 %v10924_v12, 16  ;;  %v12771_v17 = vld [vmem:[%s13268_s19 + $0x60] sm:$0xff]  }
 0x1b3   : > { %v8157_v53 = vor.u32 %v8156_v59, %v8153_v8  ;;  %12010 = vmatmul.mubr.msk.bf16.gmra.mrb[4].mxu0 %vm454_vm2, %v10956_v6  ;;  %v8139_v1 = vsel %vm13125_vm7, %v8134_v27, %v8138_v21  ;;  %v8144_v14 = vrot.slane %v8143_v55, 4  ;;  %v8178_v13 = vshll.u32 %v10924_v12, 16  ;;  %v10933_v59 = vld [vmem:[%s13085_s12 + $0x90] sm:$0xf] }
 0x1b4   : > { %v8184_v3 = vshll.u32 %v10925_v23, 16  ;;  %12013 = vmatprep.mubr.msk.bf16.mxu0 %vm454_vm2, %v10957_v2  ;;  %v8167_v41 = vor.u32 %v8166_v36, %v8162_v57  ;;  %v8172_v43 = vrot.slane %v8170_v11, 5  ;;  %v8177_v44 = vrot.slane %v8175_v62, 4 }
 0x1b5   : > { %v8158_v20 = vrot.slane %v8157_v53, 4  ;;  %v8149_v9 = vsel %vm13125_vm7, %v8144_v14, %v8148_v18  ;;  %v8180_v63 = vrot.slane %v8178_v13, 5  ;;  %v8188_v34 = vshrl.u32 %v10925_v23, 16  ;;  %v12772_v53 = vld [vmem:[%s13268_s19 + $0x6c] sm:$0xff]  }
 0x1b6   : > { %v8186_v51 = vrot.slane %v8184_v3, 5  ;;  %v10958_v29 = vcombine.low %v8139_v1, %v8149_v9  ;;  %v8168_v24 = vrot.slane %v8167_v41, 4  ;;  %v8194_v42 = vshll.u32 %v10926_v49, 16 }
 0x1b7   : > { %v8163_v40 = vsel %vm13125_vm7, %v8158_v20, %v8162_v57  ;;  %v8181_v32 = vor.u32 %v8180_v63, %v8177_v44  ;;  %v8190_v39 = vrot.slane %v8188_v34, 4  ;;  %v8199_v48 = vshrl.u32 %v10927_v10, 16  ;;  %v10934_v57 = vld [vmem:[%s13085_s12 + $0x94] sm:$0xf] }
 0x1b8   : > { %v8202_v58 = vshll.u32 %v10927_v10, 16  ;;  %v8173_v6 = vsel %vm13125_vm7, %v8168_v24, %v8172_v43  ;;  %v8196_v37 = vrot.slane %v8194_v42, 5  ;;  %v8208_v30 = vshll.u32 %v10928_v47, 16  ;;  %v10935_v43 = vld [vmem:[%s13085_s12 + $0x98] sm:$0x1] }
 0x1b9   : > { %v8212_v54 = vshrl.u32 %v10928_v47, 16  ;;  %11708 = vmatmul.mubr.msk.bf16.gmra.mrb[8].mxu1 %vm748_vm9, %v12769_v25  ;;  %v10959_v15 = vcombine.low %v8163_v40, %v8173_v6  ;;  %v8182_v50 = vrot.slane %v8181_v32, 4  ;;  %v8191_v21 = vor.u32 %v8190_v39, %v8186_v51  ;;  %v10936_v25 = vld [vmem:[%s13085_s12 + $0x9c] sm:$0xf]  ;;  %v10937_v47 = vld [vmem:[%s13085_s12 + $0xa0] sm:$0xf] }
 0x1ba   : > { %v8201_v4 = vrot.slane %v8199_v48, 4  ;;  %11711 = vmatprep.mubr.msk.bf16.mxu1 %vm748_vm9, %v12770_v46  ;;  %v8204_v0 = vrot.slane %v8202_v58, 5  ;;  %v8210_v5 = vrot.slane %v8208_v30, 5  ;;  %v8218_v19 = vshll.u32 %v10929_v22, 16  ;;  %v10938_v22 = vld [vmem:[%s13085_s12 + $0xa4] sm:$0x1] }
 0x1bb   : > { %v8214_v31 = vrot.slane %v8212_v54, 4  ;;  %12014 = vmatmul.mubr.msk.bf16.gmra.mrb[8].mxu0 %vm454_vm2, %v10958_v29  ;;  %v8187_v61 = vsel %vm13125_vm7, %v8182_v50, %v8186_v51  ;;  %v8192_v16 = vrot.slane %v8191_v21, 4  ;;  %v8223_v52 = vshrl.u32 %v10930_v7, 16  ;;  %v10939_v54 = vld [vmem:[%s13085_s12 + $0xa8] sm:$0xf] }
 0x1bc   : > { %v8226_v35 = vshll.u32 %v10930_v7, 16  ;;  %12017 = vmatprep.mubr.msk.bf16.mxu0 %vm454_vm2, %v10959_v15  ;;  %v8205_v18 = vor.u32 %v8204_v0, %v8201_v4  ;;  %v8220_v12 = vrot.slane %v8218_v19, 5  ;;  %v8232_v8 = vshll.u32 %v10931_v60, 16  ;;  %v12773_v7 = vld [vmem:[%s13268_s19 + $0x78] sm:$0xff]  }
 0x1bd   : > { %v8215_v26 = vor.u32 %v8214_v31, %v8210_v5  ;;  %v8197_v23 = vsel %vm13125_vm7, %v8192_v16, %v8196_v37  ;;  %v8225_v2 = vrot.slane %v8223_v52, 4  ;;  %v8236_v55 = vshrl.u32 %v10931_v60, 16  ;;  %v12774_v60 = vld [vmem:[%s13268_s19 + $0x84] sm:$0xff]  }
 0x1be   : > { %v8228_v27 = vrot.slane %v8226_v35, 5  ;;  %v10960_v36 = vcombine.low %v8187_v61, %v8197_v23  ;;  %v8206_v11 = vrot.slane %v8205_v18, 4  ;;  %v8234_v1 = vrot.slane %v8232_v8, 5  ;;  %v10940_v61 = vld [vmem:[%s13085_s12 + $0xac] sm:$0xf] }
 0x1bf   : > { %v8216_v62 = vrot.slane %v8215_v26, 4  ;;  %v8238_v49 = vrot.slane %v8236_v55, 4  ;;  %v8242_v13 = vshll.u32 %v10932_v45, 16  ;;  %v8247_v3 = vshrl.u32 %v10933_v59, 16  ;;  %v10941_v8 = vld [vmem:[%s13085_s12 + $0xb0] sm:$0x1] }
 0x1c0   : > { %v8229_v14 = vor.u32 %v8228_v27, %v8225_v2  ;;  %v8211_v20 = vsel %vm13125_vm7, %v8206_v11, %v8210_v5  ;;  %v8250_v44 = vshll.u32 %v10933_v59, 16  ;;  %v8256_v10 = vshll.u32 %v10934_v57, 16  ;;  %v10942_v55 = vld [vmem:[%s13085_s12 + $0xb4] sm:$0xf] }
 0x1c1   : > { %v8221_v41 = vsel %vm13125_vm7, %v8216_v62, %v8220_v12  ;;  %11712 = vmatmul.mubr.msk.bf16.gmra.mrb[12].mxu1 %vm748_vm9, %v12771_v17  ;;  %v8239_v51 = vor.u32 %v8238_v49, %v8234_v1  ;;  %v8244_v34 = vrot.slane %v8242_v13, 5  ;;  %v8249_v46 = vrot.slane %v8247_v3, 4  ;;  %v10943_v62 = vld [vmem:[%s13085_s12 + $0xb8] sm:$0xf] }
 0x1c2   : > { %v10961_v9 = vcombine.low %v8211_v20, %v8221_v41  ;;  %v8230_v63 = vrot.slane %v8229_v14, 4  ;;  %11715 = vmatprep.mubr.msk.bf16.mxu1 %vm748_vm9, %v12772_v53  ;;  %v8252_v29 = vrot.slane %v8250_v44, 5  ;;  %v8258_v40 = vrot.slane %v8256_v10, 5  ;;  %v12775_v10 = vld [vmem:[%s13268_s19 + $0x90] sm:$0xff]  }
 0x1c3   : > { %v8260_v24 = vshrl.u32 %v10934_v57, 16  ;;  %12018 = vmatmul.mubr.msk.bf16.gmra.mrb[12].mxu0 %vm454_vm2, %v10960_v36  ;;  %v8240_v32 = vrot.slane %v8239_v51, 4  ;;  %v8266_v39 = vshll.u32 %v10935_v43, 16  ;;  %v8271_v48 = vshrl.u32 %v10936_v25, 16  ;;  %v10944_v43 = vld [vmem:[%s13085_s12 + $0xbc] sm:$0x1] }
 0x1c4   : > { %v8235_v42 = vsel %vm13125_vm7, %v8230_v63, %v8234_v1  ;;  %12021 = vmatprep.mubr.msk.bf16.mxu0 %vm454_vm2, %v10961_v9  ;;  %v8253_v58 = vor.u32 %v8252_v29, %v8249_v46  ;;  %v8274_v37 = vshll.u32 %v10936_v25, 16  ;;  %v8280_v30 = vshll.u32 %v10937_v47, 16 }
 0x1c5   : > { %v8262_v6 = vrot.slane %v8260_v24, 4  ;;  %v8245_v15 = vsel %vm13125_vm7, %v8240_v32, %v8244_v34  ;;  %v8268_v50 = vrot.slane %v8266_v39, 5  ;;  %v8273_v21 = vrot.slane %v8271_v48, 4  ;;  %v10945_v34 = vld [vmem:[%s13085_s12 + $0xc0] sm:$0xf] }
 0x1c6   : > { %v8284_v4 = vshrl.u32 %v10937_v47, 16  ;;  %v10962_v0 = vcombine.low %v8235_v42, %v8245_v15  ;;  %v8254_v5 = vrot.slane %v8253_v58, 4  ;;  %v8276_v19 = vrot.slane %v8274_v37, 5  ;;  %v12776_v47 = vld [vmem:[%s13268_s19 + $0x9c] sm:$0xff]   ;;  %v10946_v42 = vld [vmem:[%s13085_s12 + $0xc4] sm:$0xf] }
 0x1c7   : > { %v8263_v31 = vor.u32 %v8262_v6, %v8258_v40  ;;  %v8282_v16 = vrot.slane %v8280_v30, 5  ;;  %v8290_v35 = vshll.u32 %v10938_v22, 16  ;;  %v8295_v18 = vshrl.u32 %v10939_v54, 16  ;;  %v10947_v37 = vld [vmem:[%s13085_s12 + $0xc8] sm:$0x1] }
 0x1c8   : > { %v8286_v52 = vrot.slane %v8284_v4, 4  ;;  %v8259_v26 = vsel %vm13125_vm7, %v8254_v5, %v8258_v40  ;;  %v8277_v45 = vor.u32 %v8276_v19, %v8273_v21  ;;  %v8298_v59 = vshll.u32 %v10939_v54, 16  ;;  %v10948_v4 = vld [vmem:[%s13085_s12 + $0xcc] sm:$0xf]  ;;  %v10949_v19 = vld [vmem:[%s13085_s12 + $0xd0] sm:$0xf] }
 0x1c9   : > { %v8264_v12 = vrot.slane %v8263_v31, 4  ;;  %11716 = vmatmul.mubr.msk.bf16.gmra.mrb[16].mxu1 %vm748_vm9, %v12773_v7  ;;  %v8292_v23 = vrot.slane %v8290_v35, 5  ;;  %v8297_v2 = vrot.slane %v8295_v18, 4  ;;  %v8304_v27 = vshll.u32 %v10940_v61, 16 }
 0x1ca   : > { %v8287_v17 = vor.u32 %v8286_v52, %v8282_v16  ;;  %11719 = vmatprep.mubr.msk.bf16.mxu1 %vm748_vm9, %v12774_v60  ;;  %v8278_v53 = vrot.slane %v8277_v45, 4  ;;  %v8300_v36 = vrot.slane %v8298_v59, 5  ;;  %v8308_v11 = vshrl.u32 %v10940_v61, 16 }
 0x1cb   : > { %v8269_v57 = vsel %vm13125_vm7, %v8264_v12, %v8268_v50  ;;  %12022 = vmatmul.mubr.msk.bf16.gmra.mrb[16].mxu0 %vm454_vm2, %v10962_v0  ;;  %v8306_v49 = vrot.slane %v8304_v27, 5  ;;  %v8314_v13 = vshll.u32 %v10941_v8, 16  ;;  %v8319_v44 = vshrl.u32 %v10942_v55, 16  ;;  %v12777_v8 = vld [vmem:[%s13268_s19 + $0xa8] sm:$0xff]  }
 0x1cc   : > { %v10963_v1 = vcombine.low %v8259_v26, %v8269_v57  ;;  %v8288_v14 = vrot.slane %v8287_v17, 4  ;;  %v8283_v3 = vsel %vm13125_vm7, %v8278_v53, %v8282_v16  ;;  %v8301_v20 = vor.u32 %v8300_v36, %v8297_v2 }
 0x1cd   : > { %v8310_v41 = vrot.slane %v8308_v11, 4  ;;  %v8316_v9 = vrot.slane %v8314_v13, 5  ;;  %v8322_v63 = vshll.u32 %v10942_v55, 16  ;;  %v8328_v51 = vshll.u32 %v10943_v62, 16  ;;  %v12778_v55 = vld [vmem:[%s13268_s19 + $0xb4] sm:$0xff]  }
 0x1ce   : > { %12025 = vmatprep.mubr.msk.bf16.mxu0 %vm454_vm2, %v10963_v1  ;;  %v8293_v25 = vsel %vm13125_vm7, %v8288_v14, %v8292_v23  ;;  %v8302_v29 = vrot.slane %v8301_v20, 4  ;;  %v8321_v24 = vrot.slane %v8319_v44, 4  ;;  %v8332_v22 = vshrl.u32 %v10943_v62, 16  ;;  %v10950_v23 = vld [vmem:[%s13085_s12 + $0xd4] sm:$0x1] }
 0x1cf   : > { %v10964_v46 = vcombine.low %v8283_v3, %v8293_v25  ;;  %v8311_v40 = vor.u32 %v8310_v41, %v8306_v49  ;;  %v8324_v32 = vrot.slane %v8322_v63, 5  ;;  %v8330_v39 = vrot.slane %v8328_v51, 5  ;;  %v10986_v62 = vld [vmem:[%s13268_s19 + $0x18] sm:$0xe] }
 0x1d0   : > { %v8338_v48 = vshll.u32 %v10944_v43, 16  ;;  %v8307_v58 = vsel %vm13125_vm7, %v8302_v29, %v8306_v49  ;;  %v8343_v30 = vshrl.u32 %v10945_v34, 16  ;;  %v8346_v54 = vshll.u32 %v10945_v34, 16  ;;  %v12887_v34 = vld [vmem:[%s13268_s19 + $0x20] sm:$0x1] }
 0x1d1   : > { %v8312_v6 = vrot.slane %v8311_v40, 4  ;;  %11720 = vmatmul.mubr.msk.bf16.gmra.mrb[20].mxu1 %vm748_vm9, %v12775_v10  ;;  %v8325_v7 = vor.u32 %v8324_v32, %v8321_v24  ;;  %v8334_v15 = vrot.slane %v8332_v22, 4  ;;  %v8352_v21 = vshll.u32 %v10946_v42, 16  ;;  %v10988_v32 = vld [vmem:[%s13268_s19 + $0x30] sm:$0xe] }
 0x1d2   : > { %v8340_v50 = vrot.slane %v8338_v48, 5  ;;  %11723 = vmatprep.mubr.msk.bf16.mxu1 %vm748_vm9, %v12776_v47  ;;  %v8345_v0 = vrot.slane %v8343_v30, 4  ;;  %v8348_v5 = vrot.slane %v8346_v54, 5  ;;  %v8356_v31 = vshrl.u32 %v10946_v42, 16  ;;  %v12888_v48 = vld [vmem:[%s13268_s19 + $0x28] sm:$0xf] }
 0x1d3   : > { %v8317_v60 = vsel %vm13125_vm7, %v8312_v6, %v8316_v9  ;;  %12026 = vmatmul.mubr.msk.bf16.gmra.mrb[20].mxu0 %vm454_vm2, %v10964_v46  ;;  %v8326_v16 = vrot.slane %v8325_v7, 4  ;;  %v8335_v52 = vor.u32 %v8334_v15, %v8330_v39  ;;  %v8354_v35 = vrot.slane %v8352_v21, 5  ;;  %v12886_v9 = vld [vmem:[%s13268_s19 + $0x1c] sm:$0xf]  ;;  %v10987_v46 = vld [vmem:[%s13268_s19 + $0x24] sm:$0xe] }
 0x1d4   : > { %v10965_v61 = vcombine.low %v8307_v58, %v8317_v60  ;;  %v8349_v18 = vor.u32 %v8348_v5, %v8345_v0  ;;  %v8358_v26 = vrot.slane %v8356_v31, 4  ;;  %v8362_v12 = vshll.u32 %v10947_v37, 16  ;;  %v12779_v6 = vld [vmem:[%s13268_s19 + $0xc0] sm:$0xff]   ;;  %v12889_v7 = vld [vmem:[%s13268_s19 + $0x2c] sm:$0x1] }
 0x1d5   : > { %v8367_v45 = vshrl.u32 %v10948_v4, 16  ;;  %v8331_v59 = vsel %vm13125_vm7, %v8326_v16, %v8330_v39  ;;  %v8336_v17 = vrot.slane %v8335_v52, 4  ;;  %v8370_v2 = vshll.u32 %v10948_v4, 16  ;;  %v12890_v0 = vld [vmem:[%s13268_s19 + $0x34] sm:$0xf] }
 0x1d6   : > { %12029 = vmatprep.mubr.msk.bf16.mxu0 %vm454_vm2, %v10965_v61  ;;  %v8376_v27 = vshll.u32 %v10949_v19, 16  ;;  %v8350_v57 = vrot.slane %v8349_v18, 4  ;;  %v8359_v53 = vor.u32 %v8358_v26, %v8354_v35  ;;  %v8364_v36 = vrot.slane %v8362_v12, 5  ;;  %v10989_v31 = vld [vmem:[%s13268_s19 + $0x3c] sm:$0xe] }
 0x1d7   : > { %v8369_v11 = vrot.slane %v8367_v45, 4  ;;  %v8341_v1 = vsel %vm13125_vm7, %v8336_v17, %v8340_v50  ;;  %v8372_v14 = vrot.slane %v8370_v2, 5  ;;  %v8380_v13 = vshrl.u32 %v10949_v19, 16  ;;  %v12780_v50 = vld [vmem:[%s13085_s12 + $0xc] sm:$0xff]   ;;  %v12891_v61 = vld [vmem:[%s13268_s19 + $0x38] sm:$0x1] }
 0x1d8   : > { %v8378_v49 = vrot.slane %v8376_v27, 5  ;;  %v10966_v3 = vcombine.low %v8331_v59, %v8341_v1  ;;  %v8355_v20 = vsel %vm13125_vm7, %v8350_v57, %v8354_v35  ;;  %v8360_v41 = vrot.slane %v8359_v53, 4  ;;  %v10990_v52 = vld [vmem:[%s13268_s19 + $0x48] sm:$0xe]  ;;  %v10991_v12 = vld [vmem:[%s13268_s19 + $0x54] sm:$0xe] }
 0x1d9   : > { %v8386_v43 = vshll.u32 %v10950_v23, 16  ;;  %11724 = vmatmul.mubr.msk.bf16.gmra.mrb[24].mxu1 %vm748_vm9, %v12777_v8  ;;  %v8373_v44 = vor.u32 %v8372_v14, %v8369_v11  ;;  %v8382_v10 = vrot.slane %v8380_v13, 4  ;;  %v11002_v25 = vrot.slane %v10986_v62, 9  ;;  %v12892_v17 = vld [vmem:[%s13268_s19 + $0x40] sm:$0xf] }
 0x1da   : > { %v8756_v63 = vrot.slane %v12886_v9, 5  ;;  %11727 = vmatprep.mubr.msk.bf16.mxu1 %vm748_vm9, %v12778_v55  ;;  %v8365_v51 = vsel %vm13125_vm7, %v8360_v41, %v8364_v36  ;;  %v8759_v47 = vrot.slane %v12887_v34, 5  ;;  %v8763_v58 = vrot.slane %v12888_v48, 5  ;;  %v12893_v27 = vld [vmem:[%s13268_s19 + $0x44] sm:$0x1] }
 0x1db   : > { %12030 = vmatmul.mubr.msk.bf16.gmra.mrb[24].mxu0 %vm454_vm2, %v10966_v3  ;;  %v10967_v29 = vcombine.low %v8355_v20, %v8365_v51  ;;  %v8374_v40 = vrot.slane %v8373_v44, 4  ;;  %v8383_v24 = vor.u32 %v8382_v10, %v8378_v49  ;;  %v8388_v42 = vrot.slane %v8386_v43, 5  ;;  %v12894_v53 = vld [vmem:[%s13268_s19 + $0x4c] sm:$0xf]  ;;  %v10992_v11 = vld [vmem:[%s13268_s19 + $0x60] sm:$0xe] }
 0x1dc   : > { %v8757_v39 = vsel %vm13173_vm8, %v11002_v25, %v8756_v63  ;;  %v8758_v22 = vrot.slane %v8756_v63, 4  ;;  %v11003_v54 = vrot.slane %v10987_v46, 9  ;;  %v8766_v15 = vrot.slane %v12889_v7, 5  ;;  %v12781_v3 = vld [vmem:[%s13085_s12 + $0x18] sm:$0xff]   ;;  %v12896_v43 = vld [vmem:[%s13268_s19 + $0x50] sm:$0x1] }
 0x1dd   : > { %12033 = vmatprep.mubr.msk.bf16.mxu0 %vm454_vm2, %v10967_v29  ;;  %v8379_v37 = vsel %vm13125_vm7, %v8374_v40, %v8378_v49  ;;  %v8384_v30 = vrot.slane %v8383_v24, 4  ;;  %v8765_v4 = vrot.slane %v8763_v58, 4  ;;  %v11004_v60 = vrot.slane %v10988_v32, 9  ;;  %v12895_v49 = vld [vmem:[%s13268_s19 + $0x58] sm:$0xf]  ;;  %v12782_v29 = vld [vmem:[%s13085_s12 + $0x24] sm:$0xff]  }
 0x1de   : > { %v8760_v21 = vsel %vm13173_vm8, %v8758_v22, %v8759_v47  ;;  %v8770_v5 = vrot.slane %v12890_v0, 5  ;;  %v8773_v16 = vrot.slane %v12891_v61, 5  ;;  %v15108_v45 = vsel %vm13173_vm8, %v11003_v54, %v8763_v58  ;;  %v12897_v10 = vld [vmem:[%s13268_s19 + $0x5c] sm:$0x1]  ;;  %v12898_v34 = vld [vmem:[%s13268_s19 + $0x64] sm:$0xf] }
 0x1df   : > { %v8389_v19 = vsel %vm13125_vm7, %v8384_v30, %v8388_v42  ;;  %v11019_v18 = vcombine.low %v8757_v39, %v8760_v21  ;;  %v15112_v8 = vsel %vm13173_vm8, %v8765_v4, %v8766_v15  ;;  %v11005_v59 = vrot.slane %v10989_v31, 9  ;;  %v10993_v46 = vld [vmem:[%s13268_s19 + $0x6c] sm:$0xe]  ;;  %v12899_v42 = vld [vmem:[%s13268_s19 + $0x68] sm:$0x1] }
 0x1e0   : > { %v10968_v35 = vcombine.low %v8379_v37, %v8389_v19  ;;  %v8772_v26 = vrot.slane %v8770_v5, 4  ;;  %v8777_v23 = vrot.slane %v12892_v17, 5  ;;  %v15118_v2 = vsel %vm13173_vm8, %v11004_v60, %v8770_v5  ;;  %v10994_v32 = vld [vmem:[%s13268_s19 + $0x78] sm:$0xe]  ;;  %v12900_v54 = vld [vmem:[%s13268_s19 + $0x70] sm:$0xf] }
 0x1e1   : > { %11728 = vmatmul.mubr.msk.bf16.gmra.mrb[28].mxu1 %vm748_vm9, %v12779_v6  ;;  %v8780_v55 = vrot.slane %v12893_v27, 5  ;;  %v11006_v57 = vrot.slane %v10990_v52, 9  ;;  %v8784_v36 = vrot.slane %v12894_v53, 5  ;;  %v11007_v14 = vrot.slane %v10991_v12, 9  ;;  %v10995_v15 = vld [vmem:[%s13268_s19 + $0x84] sm:$0xe] }
 0x1e2   : > { %11733 = vmatprep.mubr.msk.bf16.mxu1 %vm454_vm2, %v12780_v50  ;;  %v8774_v62 = vsel %vm13173_vm8, %v8772_v26, %v8773_v16  ;;  %v8779_v1 = vrot.slane %v8777_v23, 4  ;;  %v8791_v13 = vrot.slane %v12895_v49, 5  ;;  %v4631_v20 = vsel %vm797_vm1, %v14951_v56, 0  ;;  %v12901_v21 = vld [vmem:[%s13268_s19 + $0x74] sm:$0x1] }
 0x1e3   : > { %12034 = vmatmul.mubr.msk.bf16.gmra.mrb[28].mxu0 %vm454_vm2, %v10968_v35  ;;  %v8786_v41 = vrot.slane %v8784_v36, 4  ;;  %v8787_v44 = vrot.slane %v12896_v43, 5  ;;  %v8794_v25 = vrot.slane %v12897_v10, 5  ;;  %v9441_v9 = vsel %vm503_vm0, %v14957_v33, 0  ;;  %v12902_v0 = vld [vmem:[%s13268_s19 + $0x7c] sm:$0xf] }
 0x1e4   : > { %12039 = vmatprep.mubr.msk.bf16.mxu0 %vm748_vm9, %v11019_v18  ;;  %v8793_v63 = vrot.slane %v8791_v13, 4  ;;  %v11008_v51 = vrot.slane %v10992_v11, 9  ;;  %v8798_v47 = vrot.slane %v12898_v34, 5  ;;  %v11020_v56 = vcombine.low %v15108_v45, %v15112_v8  ;;  %v10996_v31 = vld [vmem:[%s13268_s19 + $0x90] sm:$0xe] }
 0x1e5   : > { %v11021_v40 = vcombine.low %v15118_v2, %v8774_v62  ;;  %v15143_v24 = vsel %vm13173_vm8, %v11005_v59, %v8777_v23  ;;  %v8801_v33 = vrot.slane %v12899_v42, 5  ;;  %v15149_v39 = vsel %vm13173_vm8, %v8779_v1, %v8780_v55  ;;  %v12903_v16 = vld [vmem:[%s13268_s19 + $0x80] sm:$0x1]  ;;  %v12904_v35 = vld [vmem:[%s13268_s19 + $0x88] sm:$0xf]  ;;  %v12783_v53 = vld [vmem:[%s13085_s12 + $0x30] sm:$0xff]  }
 0x1e6   : > { %v15153_v22 = vsel %vm13173_vm8, %v11006_v57, %v8784_v36  ;;  %v15157_v48 = vsel %vm13173_vm8, %v11007_v14, %v8791_v13  ;;  %v8800_v58 = vrot.slane %v8798_v47, 4  ;;  %v15161_v6 = vsel %vm13173_vm8, %v8786_v41, %v8787_v44  ;;  %v12905_v8 = vld [vmem:[%s13268_s19 + $0x8c] sm:$0x1]  ;;  %v12906_v27 = vld [vmem:[%s13268_s19 + $0x94] sm:$0xf]  ;;  %v12785_v13 = vld [vmem:[%s13085_s12 + $0x3c] sm:$0xff]  }
 0x1e7   : > { %v15165_v37 = vsel %vm13173_vm8, %v8793_v63, %v8794_v25  ;;  %v11009_v30 = vrot.slane %v10993_v46, 9  ;;  %v8805_v7 = vrot.slane %v12900_v54, 5  ;;  %v15172_v50 = vsel %vm13173_vm8, %v11008_v51, %v8798_v47  ;;  %v10997_v57 = vld [vmem:[%s13268_s19 + $0x9c] sm:$0xe]  ;;  %v12907_v1 = vld [vmem:[%s13268_s19 + $0x98] sm:$0x1] }
 0x1e8   : > { %v8808_v4 = vrot.slane %v12901_v21, 5  ;;  %v11010_v60 = vrot.slane %v10994_v32, 9  ;;  %v8812_v5 = vrot.slane %v12902_v0, 5  ;;  %v15180_v19 = vsel %vm13173_vm8, %v8800_v58, %v8801_v33  ;;  %v10998_v49 = vld [vmem:[%s13268_s19 + $0xa8] sm:$0xe] }
 0x1e9   : > { %11734 = vmatmul.mubr.msk.bf16.vlgmr.msra.gmra.mrb[0].mxu1 %vm454_vm2, %v12781_v3  ;;  %v8807_v61 = vrot.slane %v8805_v7, 4  ;;  %v8815_v52 = vrot.slane %v12903_v16, 5  ;;  %v8819_v18 = vrot.slane %v12904_v35, 5  ;;  %v11022_v26 = vcombine.low %v15143_v24, %v15149_v39  ;;  %v10394_v51 = vld [vmem:[%s13268_s19 + $0xc] sm:$0xf] }
 0x1ea   : > { %11737 = vmatprep.mubr.msk.bf16.mxu1 %vm454_vm2, %v12782_v29  ;;  %11766 = vmatpush3.bf16.msra.mxu1 %v4631_v20  ;;  %v8814_v12 = vrot.slane %v8812_v5, 4  ;;  %v11011_v45 = vrot.slane %v10995_v15, 9  ;;  %v8822_v59 = vrot.slane %v12905_v8, 5  ;;  %v11023_v17 = vcombine.low %v15153_v22, %v15161_v6  ;;  %v12909_v29 = vld [vmem:[%s13268_s19 + $0xac] sm:$0xf] }
 0x1eb   : > { %12040 = vmatmul.mubr.msk.bf16.vlgmr.msra.gmra.mrb[0].mxu0 %vm748_vm9, %v11020_v56  ;;  %v8821_v23 = vrot.slane %v8819_v18, 4  ;;  %v11012_v2 = vrot.slane %v10996_v31, 9  ;;  %v8826_v55 = vrot.slane %v12906_v27, 5  ;;  %v11024_v36 = vcombine.low %v15157_v48, %v15165_v37  ;;  %v12910_v32 = vld [vmem:[%s13268_s19 + $0xa4] sm:$0x1]  ;;  %v12786_v35 = vld [vmem:[%s13085_s12 + $0x48] sm:$0xff]  }
 0x1ec   : > { %12072 = vmatpush3.bf16.msra.mxu0 %v9441_v9  ;;  %12043 = vmatprep.mubr.msk.bf16.mxu0 %vm748_vm9, %v11021_v40  ;;  %v11025_v11 = vcombine.low %v15172_v50, %v15180_v19  ;;  %v15200_v62 = vsel %vm13173_vm8, %v11009_v30, %v8805_v7  ;;  %v8829_v14 = vrot.slane %v12907_v1, 5  ;;  %v15207_v3 = vsel %vm13173_vm8, %v8807_v61, %v8808_v4  ;;  %v12908_v9 = vld [vmem:[%s13268_s19 + $0xa0] sm:$0xf]  ;;  %v10999_v40 = vld [vmem:[%s13268_s19 + $0xb4] sm:$0xe] }
 0x1ed   : > { %v15211_v20 = vsel %vm13173_vm8, %v11010_v60, %v8812_v5  ;;  %v15215_v41 = vsel %vm13173_vm8, %v8814_v12, %v8815_v52  ;;  %v8828_v43 = vrot.slane %v8826_v55, 4  ;;  %v15219_v44 = vsel %vm13173_vm8, %v11011_v45, %v8819_v18  ;;  %v12911_v58 = vld [vmem:[%s13268_s19 + $0xb0] sm:$0x1]  ;;  %v12912_v30 = vld [vmem:[%s13268_s19 + $0xb8] sm:$0xf] }
 0x1ee   : > { %v15223_v10 = vsel %vm13173_vm8, %v8821_v23, %v8822_v59  ;;  %v11013_v25 = vrot.slane %v10997_v57, 9  ;;  %v8833_v63 = vrot.slane %v12908_v9, 5  ;;  %v15229_v34 = vsel %vm13173_vm8, %v11012_v2, %v8826_v55  ;;  %v10397_v0 = vld [vmem:[%s13268_s19 + $0x18] sm:$0xf]  ;;  %v12913_v16 = vld [vmem:[%s13268_s19 + $0x10] sm:$0xf] }
 0x1ef   : > { %v15233_v47 = vsel %vm13173_vm8, %v8828_v43, %v8829_v14  ;;  %v11014_v46 = vrot.slane %v10998_v49, 9  ;;  %v8840_v56 = vrot.slane %v12909_v29, 5  ;;  %v11026_v24 = vcombine.low %v15200_v62, %v15207_v3  ;;  %v12787_v59 = vld [vmem:[%s13085_s12 + $0x54] sm:$0xff]   ;;  %v12916_v14 = vld [vmem:[%s13268_s19 + $0x1c] sm:$0xf] }
 0x1f0   : > { %v11027_v42 = vcombine.low %v15211_v20, %v15215_v41  ;;  %v8835_v33 = vrot.slane %v8833_v63, 4  ;;  %v8836_v39 = vrot.slane %v12910_v32, 5  ;;  %v11028_v22 = vcombine.low %v15219_v44, %v15223_v10  ;;  %v12915_v2 = vld [vmem:[%s13268_s19 + $0x14] sm:$0x1]  ;;  %v12917_v32 = vld [vmem:[%s13268_s19 + $0x20] sm:$0x1] }
 0x1f1   : > { %11738 = vmatmul.mubr.msk.bf16.gmra.mrb[4].mxu1 %vm454_vm2, %v12783_v53  ;;  %v8843_v6 = vrot.slane %v12911_v58, 5  ;;  %v8847_v54 = vrot.slane %v12912_v30, 5  ;;  %v4149_v7 = vshrl.u32 %v10394_v51, 16  ;;  %v11029_v15 = vcombine.low %v15229_v34, %v15233_v47  ;;  %v12918_v58 = vld [vmem:[%s13268_s19 + $0xc4] sm:$0xf] }
 0x1f2   : > { %11741 = vmatprep.mubr.msk.bf16.mxu1 %vm454_vm2, %v12785_v13  ;;  %v15253_v21 = vsel %vm13173_vm8, %v11013_v25, %v8833_v63  ;;  %v11015_v4 = vrot.slane %v10999_v40, 9  ;;  %v4152_v60 = vshll.u32 %v10394_v51, 16  ;;  %v15259_v5 = vsel %vm13173_vm8, %v11014_v46, %v8840_v56  ;;  %v11000_v63 = vld [vmem:[%s13268_s19 + $0xc0] sm:$0xe]  ;;  %v12931_v34 = vld [vmem:[%s13268_s19 + $0x44] sm:$0x1] }
 0x1f3   : > { %12044 = vmatmul.mubr.msk.bf16.gmra.mrb[4].mxu0 %vm748_vm9, %v11022_v26  ;;  %v8842_v31 = vrot.slane %v8840_v56, 4  ;;  %v4151_v61 = vrot.slane %v4149_v7, 4  ;;  %v4158_v52 = vshll.u32 %v12913_v16, 16  ;;  %v15265_v18 = vsel %vm13173_vm8, %v8835_v33, %v8836_v39  ;;  %v12914_v26 = vld [vmem:[%s13268_s19 + $0xbc] sm:$0x1] }
 0x1f4   : > { %12047 = vmatprep.mubr.msk.bf16.mxu0 %vm748_vm9, %v11023_v17  ;;  %v8850_v12 = vrot.slane %v12914_v26, 5  ;;  %v4154_v45 = vrot.slane %v4152_v60, 5  ;;  %v4162_v8 = vshrl.u32 %v12913_v16, 16  ;;  %v8849_v17 = vrot.slane %v8847_v54, 4  ;;  %v11001_v60 = vld [vmem:[%s13268_s19 + $0xcc] sm:$0xe] }
 0x1f5   : > { %v4160_v23 = vrot.slane %v4158_v52, 5  ;;  %v4168_v27 = vshll.u32 %v12915_v2, 16  ;;  %v4173_v55 = vshrl.u32 %v10397_v0, 16  ;;  %v4176_v1 = vshll.u32 %v10397_v0, 16  ;;  %v10400_v0 = vld [vmem:[%s13268_s19 + $0x24] sm:$0xf] }
 0x1f6   : > { %v4155_v57 = vor.u32 %v4154_v45, %v4151_v61  ;;  %v4164_v53 = vrot.slane %v4162_v8, 4  ;;  %v4182_v49 = vshll.u32 %v12916_v14, 16  ;;  %v15273_v13 = vsel %vm13173_vm8, %v8842_v31, %v8843_v6  ;;  %v12788_v61 = vld [vmem:[%s13085_s12 + $0x60] sm:$0xff]  }
 0x1f7   : > { %v4170_v43 = vrot.slane %v4168_v27, 5  ;;  %v4175_v25 = vrot.slane %v4173_v55, 4  ;;  %v4186_v9 = vshrl.u32 %v12916_v14, 16  ;;  %v4178_v29 = vrot.slane %v4176_v1, 5  ;;  %v12921_v27 = vld [vmem:[%s13268_s19 + $0xd4] sm:$0x1] }
 0x1f8   : > { %v4156_v51 = vrot.slane %v4155_v57, 4  ;;  %v4165_v46 = vor.u32 %v4164_v53, %v4160_v23  ;;  %v15277_v56 = vrot.slane %v4182_v49, 5  ;;  %v15282_v40 = vsel %vm13173_vm8, %v11015_v4, %v8847_v54  ;;  %v10403_v57 = vld [vmem:[%s13268_s19 + $0x30] sm:$0xf]  ;;  %v12922_v49 = vld [vmem:[%s13268_s19 + $0x28] sm:$0xf] }
 0x1f9   : > { %11742 = vmatmul.mubr.msk.bf16.gmra.mrb[8].mxu1 %vm454_vm2, %v12786_v35  ;;  %v4188_v33 = vrot.slane %v4186_v9, 4  ;;  %v4192_v39 = vshll.u32 %v12917_v32, 16  ;;  %v8854_v6 = vrot.slane %v12918_v58, 5  ;;  %v15292_v30 = vsel %vm13173_vm8, %v8849_v17, %v8850_v12  ;;  %v12789_v35 = vld [vmem:[%s13085_s12 + $0x6c] sm:$0xff]  }
 0x1fa   : > { %11745 = vmatprep.mubr.msk.bf16.mxu1 %vm454_vm2, %v12787_v59  ;;  %v4166_v7 = vrot.slane %v4165_v46, 4  ;;  %v4179_v54 = vor.u32 %v4178_v29, %v4175_v25  ;;  %v11016_v4 = vrot.slane %v11000_v63, 9  ;;  %v11030_v48 = vcombine.low %v15253_v21, %v15265_v18 }
 0x1fb   : > { %12048 = vmatmul.mubr.msk.bf16.gmra.mrb[8].mxu0 %vm748_vm9, %v11024_v36  ;;  %v11031_v37 = vcombine.low %v15259_v5, %v15273_v13  ;;  %v4161_v36 = vsel %vm13125_vm7, %v4156_v51, %v4160_v23  ;;  %v4189_v31 = vor.u32 %v4188_v33, %v15277_v56  ;;  %v8856_v19 = vrot.slane %v8854_v6, 4  ;;  %v12920_v23 = vld [vmem:[%s13268_s19 + $0xd0] sm:$0xf]  ;;  %v12923_v51 = vld [vmem:[%s13268_s19 + $0x2c] sm:$0x1] }
 0x1fc   : > { %12051 = vmatprep.mubr.msk.bf16.mxu0 %vm748_vm9, %v11025_v11  ;;  %v4171_v16 = vsel %vm13125_vm7, %v4166_v7, %v4170_v43  ;;  %v15310_v50 = vrot.slane %v4179_v54, 4  ;;  %v12919_v11 = vld [vmem:[%s13268_s19 + $0xc8] sm:$0x1]  ;;  %v11032_v26 = vcombine.low %v15282_v40, %v15292_v30  ;;  %v4194_v12 = vrot.slane %v4192_v39, 5  ;;  %v12924_v7 = vld [vmem:[%s13268_s19 + $0x34] sm:$0xf] }
 0x1fd   : > { %v8857_v52 = vrot.slane %v12919_v11, 5  ;;  %v11017_v45 = vrot.slane %v11001_v60, 9  ;;  %v4197_v8 = vshrl.u32 %v10400_v0, 16  ;;  %v15316_v59 = vcombine.low %v4161_v36, %v4171_v16  ;;  %v12926_v11 = vld [vmem:[%s13085_s12 + $0x1c] sm:$0xf] }
 0x1fe   : > { %v15320_v17 = vsel %vm13173_vm8, %v11016_v4, %v8854_v6  ;;  %v8861_v2 = vrot.slane %v12920_v23, 5  ;;  %v8864_v55 = vrot.slane %v12921_v27, 5  ;;  %v4190_v53 = vrot.slane %v4189_v31, 4  ;;  %v11052_v23 = vld [vmem:[%s13085_s12 + $0x24] sm:$0xe] }
 0x1ff   : > { %v4199_v1 = vrot.slane %v4197_v8, 4  ;;  %v4200_v14 = vshll.u32 %v10400_v0, 16  ;;  %v4206_v43 = vshll.u32 %v12922_v49, 16  ;;  %v4185_v25 = vsel %vm13125_vm7, %v15310_v50, %v15277_v56  ;;  %v12790_v0 = vld [vmem:[%s13085_s12 + $0x78] sm:$0xff]   ;;  %v12791_v50 = vld [vmem:[%s13085_s12 + $0x84] sm:$0xff]  }
 0x200   : > { %v15333_v9 = vsel %vm13173_vm8, %v8856_v19, %v8857_v52  ;;  %v4210_v63 = vshrl.u32 %v12922_v49, 16  ;;  %v4216_v46 = vshll.u32 %v12923_v51, 16  ;;  %v15339_v29 = vsel %vm13173_vm8, %v11017_v45, %v8861_v2 }
 0x201   : > { %11746 = vmatmul.mubr.msk.bf16.gmra.mrb[12].mxu1 %vm454_vm2, %v12788_v61  ;;  %v4202_v33 = vrot.slane %v4200_v14, 5  ;;  %v4208_v32 = vrot.slane %v4206_v43, 5  ;;  %v4221_v39 = vshrl.u32 %v10403_v57, 16  ;;  %v8863_v56 = vrot.slane %v8861_v2, 4  ;;  %v10406_v2 = vld [vmem:[%s13268_s19 + $0x3c] sm:$0xf] }
 0x202   : > { %11749 = vmatprep.mubr.msk.bf16.mxu1 %vm454_vm2, %v12789_v35  ;;  %v4212_v58 = vrot.slane %v4210_v63, 4  ;;  %v4224_v6 = vshll.u32 %v10403_v57, 16  ;;  %v4230_v54 = vshll.u32 %v12924_v7, 16  ;;  %v4195_v4 = vsel %vm13125_vm7, %v4190_v53, %v4194_v12  ;;  %v12927_v43 = vld [vmem:[%s13085_s12 + $0x20] sm:$0x1] }
 0x203   : > { %12052 = vmatmul.mubr.msk.bf16.gmra.mrb[12].mxu0 %vm748_vm9, %v11026_v24  ;;  %v4203_v60 = vor.u32 %v4202_v33, %v4199_v1  ;;  %v4223_v62 = vrot.slane %v4221_v39, 4  ;;  %v4234_v3 = vshrl.u32 %v12924_v7, 16  ;;  %v11051_v24 = vld [vmem:[%s13085_s12 + $0x18] sm:$0xe]  ;;  %v4218_v31 = vrot.slane %v4216_v46, 5 }
 0x204   : > { %12055 = vmatprep.mubr.msk.bf16.mxu0 %vm748_vm9, %v11027_v42  ;;  %v4213_v36 = vor.u32 %v4212_v58, %v4208_v32  ;;  %v4226_v61 = vrot.slane %v4224_v6, 5  ;;  %v15354_v16 = vrot.slane %v4230_v54, 5  ;;  %v12925_v42 = vld [vmem:[%s13268_s19 + $0x38] sm:$0x1]  ;;  %v9226_v52 = vrot.slane %v12926_v11, 5 }
 0x205   : > { %v4204_v20 = vrot.slane %v4203_v60, 4  ;;  %v4236_v41 = vrot.slane %v4234_v3, 4  ;;  %v4240_v19 = vshll.u32 %v12925_v42, 16  ;;  %v15361_v35 = vsel %vm13173_vm8, %v8863_v56, %v8864_v55  ;;  %v12928_v56 = vld [vmem:[%s13085_s12 + $0x28] sm:$0xf] }
 0x206   : > { %v4214_v12 = vrot.slane %v4213_v36, 4  ;;  %v4227_v45 = vor.u32 %v4226_v61, %v4223_v62  ;;  %v11067_v8 = vrot.slane %v11051_v24, 9  ;;  %v15365_v27 = vcombine.low %v4185_v25, %v4195_v4  ;;  %v12929_v6 = vld [vmem:[%s13085_s12 + $0x2c] sm:$0x1]  ;;  %v10409_v54 = vld [vmem:[%s13268_s19 + $0x48] sm:$0xf] }
 0x207   : > { %v11033_v57 = vcombine.low %v15320_v17, %v15333_v9  ;;  %v4209_v53 = vsel %vm13125_vm7, %v4204_v20, %v4208_v32  ;;  %v4237_v1 = vor.u32 %v4236_v41, %v15354_v16  ;;  %v9228_v49 = vrot.slane %v9226_v52, 4  ;;  %v12930_v4 = vld [vmem:[%s13268_s19 + $0x40] sm:$0xf]  ;;  %v12792_v62 = vld [vmem:[%s13085_s12 + $0x90] sm:$0xff]  }
 0x208   : > { %v4219_v55 = vsel %vm13125_vm7, %v4214_v12, %v4218_v31  ;;  %v15375_v14 = vrot.slane %v4227_v45, 4  ;;  %v9229_v25 = vrot.slane %v12927_v43, 5  ;;  %v11034_v63 = vcombine.low %v15339_v29, %v15361_v35 }
 0x209   : > { %11750 = vmatmul.mubr.msk.bf16.gmra.mrb[16].mxu1 %vm454_vm2, %v12790_v0  ;;  %v4242_v51 = vrot.slane %v4240_v19, 5  ;;  %v11068_v46 = vrot.slane %v11052_v23, 9  ;;  %v4245_v33 = vshrl.u32 %v10406_v2, 16  ;;  %v15385_v32 = vcombine.low %v4209_v53, %v4219_v55 }
 0x20a   : > { %11753 = vmatprep.mubr.msk.bf16.mxu1 %vm454_vm2, %v12791_v50  ;;  %v15389_v39 = vsel %vm13173_vm8, %v11067_v8, %v9226_v52  ;;  %v9233_v58 = vrot.slane %v12928_v56, 5  ;;  %v9236_v7 = vrot.slane %v12929_v6, 5  ;;  %v4238_v44 = vrot.slane %v4237_v1, 4  ;;  %v11053_v8 = vld [vmem:[%s13085_s12 + $0x30] sm:$0xe] }
 0x20b   : > { %12056 = vmatmul.mubr.msk.bf16.gmra.mrb[16].mxu0 %vm748_vm9, %v11028_v22  ;;  %v4247_v10 = vrot.slane %v4245_v33, 4  ;;  %v4248_v22 = vshll.u32 %v10406_v2, 16  ;;  %v4254_v60 = vshll.u32 %v12930_v4, 16  ;;  %v4233_v3 = vsel %vm13125_vm7, %v15375_v14, %v15354_v16  ;;  %v12932_v16 = vld [vmem:[%s13268_s19 + $0x4c] sm:$0xf] }
 0x20c   : > { %12059 = vmatprep.mubr.msk.bf16.mxu0 %vm748_vm9, %v11029_v15  ;;  %v15406_v24 = vsel %vm13173_vm8, %v9228_v49, %v9229_v25  ;;  %v4258_v0 = vshrl.u32 %v12930_v4, 16  ;;  %v4264_v47 = vshll.u32 %v12931_v34, 16  ;;  %v12793_v15 = vld [vmem:[%s13085_s12 + $0x9c] sm:$0xff]   ;;  %v15412_v36 = vsel %vm13173_vm8, %v11068_v46, %v9233_v58  ;;  %v12933_v49 = vld [vmem:[%s13268_s19 + $0x50] sm:$0x1]  ;;  %v12795_v4 = vld [vmem:[%s13085_s12 + $0xb4] sm:$0xff]  }
 0x20d   : > { %v4250_v31 = vrot.slane %v4248_v22, 5  ;;  %v4256_v61 = vrot.slane %v4254_v60, 5  ;;  %v4269_v50 = vshrl.u32 %v10409_v54, 16  ;;  %v9235_v20 = vrot.slane %v9233_v58, 4  ;;  %v12934_v25 = vld [vmem:[%s13085_s12 + $0x34] sm:$0xf] }
 0x20e   : > { %v4260_v41 = vrot.slane %v4258_v0, 4  ;;  %v4272_v42 = vshll.u32 %v10409_v54, 16  ;;  %v4278_v19 = vshll.u32 %v12932_v16, 16  ;;  %v4243_v11 = vsel %vm13125_vm7, %v4238_v44, %v4242_v51  ;;  %v10412_v6 = vld [vmem:[%s13268_s19 + $0x54] sm:$0xf]  ;;  %v12794_v44 = vld [vmem:[%s13085_s12 + $0xa8] sm:$0xff]  }
 0x20f   : > { %v4251_v52 = vor.u32 %v4250_v31, %v4247_v10  ;;  %v4271_v12 = vrot.slane %v4269_v50, 4  ;;  %v4282_v45 = vshrl.u32 %v12932_v16, 16  ;;  %v4266_v2 = vrot.slane %v4264_v47, 5 }
 0x210   : > { %v4261_v23 = vor.u32 %v4260_v41, %v4256_v61  ;;  %v4274_v53 = vrot.slane %v4272_v42, 5  ;;  %v15419_v1 = vrot.slane %v4278_v19, 5  ;;  %v4288_v43 = vshll.u32 %v12933_v49, 16  ;;  %v12938_v19 = vld [vmem:[%s13268_s19 + $0x58] sm:$0xf] }
 0x211   : > { %11754 = vmatmul.mubr.msk.bf16.gmra.mrb[20].mxu1 %vm454_vm2, %v12792_v62  ;;  %v4252_v55 = vrot.slane %v4251_v52, 4  ;;  %v4284_v14 = vrot.slane %v4282_v45, 4  ;;  %v9240_v51 = vrot.slane %v12934_v25, 5  ;;  %v15430_v46 = vsel %vm13173_vm8, %v9235_v20, %v9236_v7  ;;  %v11054_v7 = vld [vmem:[%s13085_s12 + $0x3c] sm:$0xe] }
 0x212   : > { %11757 = vmatprep.mubr.msk.bf16.mxu1 %vm454_vm2, %v12793_v15  ;;  %v4262_v33 = vrot.slane %v4261_v23, 4  ;;  %v4275_v56 = vor.u32 %v4274_v53, %v4271_v12  ;;  %v11069_v58 = vrot.slane %v11053_v8, 9  ;;  %v15437_v54 = vcombine.low %v4233_v3, %v4243_v11  ;;  %v12936_v3 = vld [vmem:[%s13085_s12 + $0x40] sm:$0xf]  ;;  %v12939_v8 = vld [vmem:[%s13268_s19 + $0x5c] sm:$0x1] }
 0x213   : > { %12060 = vmatmul.mubr.msk.bf16.gmra.mrb[20].mxu0 %vm748_vm9, %v11030_v48  ;;  %v11085_v21 = vcombine.low %v15389_v39, %v15406_v24  ;;  %v4257_v18 = vsel %vm13125_vm7, %v4252_v55, %v4256_v61  ;;  %v4285_v48 = vor.u32 %v4284_v14, %v15419_v1  ;;  %v9242_v13 = vrot.slane %v9240_v51, 4  ;;  %v12937_v61 = vld [vmem:[%s13085_s12 + $0x44] sm:$0x1]  ;;  %v10415_v20 = vld [vmem:[%s13268_s19 + $0x60] sm:$0xf] }
 0x214   : > { %12063 = vmatprep.mubr.msk.bf16.mxu0 %vm748_vm9, %v11031_v37  ;;  %v4267_v10 = vsel %vm13125_vm7, %v4262_v33, %v4266_v2  ;;  %v15448_v5 = vrot.slane %v4275_v56, 4  ;;  %v12935_v37 = vld [vmem:[%s13085_s12 + $0x38] sm:$0x1]  ;;  %v11086_v60 = vcombine.low %v15412_v36, %v15430_v46  ;;  %v15454_v62 = vrot.slane %v4288_v43, 5  ;;  %v12940_v25 = vld [vmem:[%s13268_s19 + $0x64] sm:$0xf] }
 0x215   : > { %v9243_v22 = vrot.slane %v12935_v37, 5  ;;  %v9247_v0 = vrot.slane %v12936_v3, 5  ;;  %v4293_v34 = vshrl.u32 %v10412_v6, 16  ;;  %v15457_v47 = vcombine.low %v4257_v18, %v4267_v10  ;;  %v11055_v56 = vld [vmem:[%s13085_s12 + $0x48] sm:$0xe] }
 0x216   : > { %v15461_v15 = vsel %vm13173_vm8, %v11069_v58, %v9240_v51  ;;  %v11070_v31 = vrot.slane %v11054_v7, 9  ;;  %v9250_v50 = vrot.slane %v12937_v61, 5  ;;  %v4286_v41 = vrot.slane %v4285_v48, 4  ;;  %v12796_v58 = vld [vmem:[%s13085_s12 + $0xc0] sm:$0xff]   ;;  %v11056_v3 = vld [vmem:[%s13085_s12 + $0x54] sm:$0xe] }
 0x217   : > { %v4295_v42 = vrot.slane %v4293_v34, 4  ;;  %v4296_v16 = vshll.u32 %v10412_v6, 16  ;;  %v4302_v11 = vshll.u32 %v12938_v19, 16  ;;  %v4281_v52 = vsel %vm13125_vm7, %v15448_v5, %v15419_v1  ;;  %v10418_v5 = vld [vmem:[%s13268_s19 + $0x6c] sm:$0xf] }
 0x218   : > { %v15473_v12 = vsel %vm13173_vm8, %v9242_v13, %v9243_v22  ;;  %v4306_v45 = vshrl.u32 %v12938_v19, 16  ;;  %v4312_v23 = vshll.u32 %v12939_v8, 16  ;;  %v9249_v2 = vrot.slane %v9247_v0, 4  ;;  %v12942_v22 = vld [vmem:[%s13268_s19 + $0x68] sm:$0x1] }
 0x219   : > { %11758 = vmatmul.mubr.msk.bf16.gmra.mrb[24].mxu1 %vm454_vm2, %v12794_v44  ;;  %v4298_v53 = vrot.slane %v4296_v16, 5  ;;  %v4304_v55 = vrot.slane %v4302_v11, 5  ;;  %v4317_v14 = vshrl.u32 %v10415_v20, 16  ;;  %v15483_v1 = vsel %vm13173_vm8, %v11070_v31, %v9247_v0  ;;  %v12941_v44 = vld [vmem:[%s13085_s12 + $0x4c] sm:$0xf] }
 0x21a   : > { %11761 = vmatprep.mubr.msk.bf16.mxu1 %vm454_vm2, %v12795_v4  ;;  %v4308_v49 = vrot.slane %v4306_v45, 4  ;;  %v4320_v43 = vshll.u32 %v10415_v20, 16  ;;  %v4326_v51 = vshll.u32 %v12940_v25, 16  ;;  %v4291_v40 = vsel %vm13125_vm7, %v4286_v41, %v15454_v62  ;;  %v12943_v61 = vld [vmem:[%s13085_s12 + $0x50] sm:$0x1] }
 0x21b   : > { %12064 = vmatmul.mubr.msk.bf16.gmra.mrb[24].mxu0 %vm748_vm9, %v11032_v26  ;;  %v4299_v30 = vor.u32 %v4298_v53, %v4295_v42  ;;  %v4319_v26 = vrot.slane %v4317_v14, 4  ;;  %v4330_v33 = vshrl.u32 %v12940_v25, 16  ;;  %v4314_v18 = vrot.slane %v4312_v23, 5  ;;  %v12944_v16 = vld [vmem:[%s13085_s12 + $0x58] sm:$0xf] }
 0x21c   : > { %12067 = vmatprep.mubr.msk.bf16.mxu0 %vm748_vm9, %v11033_v57  ;;  %v4309_v6 = vor.u32 %v4308_v49, %v4304_v55  ;;  %v4322_v48 = vrot.slane %v4320_v43, 5  ;;  %v15495_v7 = vrot.slane %v4326_v51, 5  ;;  %v15499_v17 = vsel %vm13173_vm8, %v9249_v2, %v9250_v50  ;;  %v10421_v14 = vld [vmem:[%s13268_s19 + $0x78] sm:$0xf] }
 0x21d   : > { %v4300_v9 = vrot.slane %v4299_v30, 4  ;;  %v4332_v57 = vrot.slane %v4330_v33, 4  ;;  %v9254_v10 = vrot.slane %v12941_v44, 5  ;;  %v4336_v4 = vshll.u32 %v12942_v22, 16 }
 0x21e   : > { %v4310_v13 = vrot.slane %v4309_v6, 4  ;;  %v4323_v37 = vor.u32 %v4322_v48, %v4319_v26  ;;  %v11071_v62 = vrot.slane %v11055_v56, 9  ;;  %v11087_v0 = vcombine.low %v15461_v15, %v15473_v12  ;;  %v12947_v56 = vld [vmem:[%s13268_s19 + $0x74] sm:$0x1]  ;;  %v12952_v15 = vld [vmem:[%s13085_s12 + $0x70] sm:$0xf] }
 0x21f   : > { %v4305_v34 = vsel %vm13125_vm7, %v4300_v9, %v4304_v55  ;;  %v4333_v31 = vor.u32 %v4332_v57, %v15495_v7  ;;  %v9257_v50 = vrot.slane %v12943_v61, 5  ;;  %v9256_v42 = vrot.slane %v9254_v10, 4  ;;  %v11058_v61 = vld [vmem:[%s13085_s12 + $0x6c] sm:$0xe] }
 0x220   : > { %v4315_v20 = vsel %vm13125_vm7, %v4310_v13, %v4314_v18  ;;  %v4324_v41 = vrot.slane %v4323_v37, 4  ;;  %v9261_v19 = vrot.slane %v12944_v16, 5  ;;  %v15517_v11 = vcombine.low %v4281_v52, %v4291_v40  ;;  %v12948_v18 = vld [vmem:[%s13268_s19 + $0x7c] sm:$0xf] }
 0x221   : > { %11762 = vmatmul.mubr.msk.bf16.gmra.mrb[28].mxu1 %vm454_vm2, %v12796_v58  ;;  %v11088_v45 = vcombine.low %v15483_v1, %v15499_v17  ;;  %v11072_v8 = vrot.slane %v11056_v3, 9  ;;  %v4341_v23 = vshrl.u32 %v10418_v5, 16  ;;  %v15525_v2 = vcombine.low %v4305_v34, %v4315_v20  ;;  %v12949_v3 = vld [vmem:[%s13268_s19 + $0x80] sm:$0x1] }
 0x222   : > { %11767 = vmatprep.mubr.msk.bf16.mxu1 %vm748_vm9, %v15316_v59  ;;  %v4338_v53 = vrot.slane %v4336_v4, 5  ;;  %v15529_v55 = vsel %vm13173_vm8, %v11071_v62, %v9254_v10  ;;  %v12945_v59 = vld [vmem:[%s13085_s12 + $0x5c] sm:$0x1]  ;;  %v4334_v49 = vrot.slane %v4333_v31, 4  ;;  %v4344_v35 = vshll.u32 %v10418_v5, 16 }
 0x223   : > { %12068 = vmatmul.mubr.msk.bf16.gmra.mrb[28].mxu0 %vm748_vm9, %v11034_v63  ;;  %v9264_v52 = vrot.slane %v12945_v59, 5  ;;  %v4343_v29 = vrot.slane %v4341_v23, 4  ;;  %v12946_v63 = vld [vmem:[%s13268_s19 + $0x70] sm:$0xf]  ;;  %v4329_v25 = vsel %vm13125_vm7, %v4324_v41, %v15495_v7  ;;  %v15543_v51 = vsel %vm13173_vm8, %v9256_v42, %v9257_v50  ;;  %v11057_v10 = vld [vmem:[%s13085_s12 + $0x60] sm:$0xe] }
 0x224   : > { %12073 = vmatprep.mubr.msk.bf16.mxu0 %vm454_vm2, %v11085_v21  ;;  %v4350_v43 = vshll.u32 %v12946_v63, 16  ;;  %v9263_v40 = vrot.slane %v9261_v19, 4  ;;  %v4354_v39 = vshrl.u32 %v12946_v63, 16  ;;  %v15547_v24 = vsel %vm13173_vm8, %v11072_v8, %v9261_v19  ;;  %v12950_v31 = vld [vmem:[%s13085_s12 + $0x64] sm:$0xf] }
 0x225   : > { %v4346_v21 = vrot.slane %v4344_v35, 5  ;;  %v4365_v26 = vshrl.u32 %v10421_v14, 16  ;;  %v4360_v58 = vshll.u32 %v12947_v56, 16  ;;  %v4368_v6 = vshll.u32 %v10421_v14, 16  ;;  %v10424_v42 = vld [vmem:[%s13268_s19 + $0x84] sm:$0xf] }
 0x226   : > { %v15549_v30 = vrot.slane %v4350_v43, 5  ;;  %v4356_v33 = vrot.slane %v4354_v39, 4  ;;  %v4374_v48 = vshll.u32 %v12948_v18, 16  ;;  %v4339_v7 = vsel %vm13125_vm7, %v4334_v49, %v4338_v53  ;;  %v12951_v23 = vld [vmem:[%s13085_s12 + $0x68] sm:$0x1] }
 0x227   : > { %v4347_v9 = vor.u32 %v4346_v21, %v4343_v29  ;;  %v4367_v57 = vrot.slane %v4365_v26, 4  ;;  %v4378_v44 = vshrl.u32 %v12948_v18, 16  ;;  %v15560_v5 = vsel %vm13173_vm8, %v9263_v40, %v9264_v52  ;;  %v12953_v35 = vld [vmem:[%s13085_s12 + $0x74] sm:$0x1]  ;;  %v10427_v43 = vld [vmem:[%s13268_s19 + $0x90] sm:$0xf] }
 0x228   : > { %v4357_v13 = vor.u32 %v4356_v33, %v15549_v30  ;;  %v4370_v37 = vrot.slane %v4368_v6, 5  ;;  %v15563_v22 = vrot.slane %v4374_v48, 5  ;;  %v4384_v34 = vshll.u32 %v12949_v3, 16  ;;  %v12954_v39 = vld [vmem:[%s13268_s19 + $0x88] sm:$0xf] }
 0x229   : > { %11768 = vmatmul.mubr.msk.bf16.vlgmr.msra.gmra.mrb[0].mxu1 %vm748_vm9, %v15365_v27  ;;  %v15567_v4 = vrot.slane %v4347_v9, 4  ;;  %v4380_v62 = vrot.slane %v4378_v44, 4  ;;  %v9268_v27 = vrot.slane %v12950_v31, 5  ;;  %v15578_v20 = vrot.slane %v4360_v58, 5  ;;  %v12955_v56 = vld [vmem:[%s13268_s19 + $0x8c] sm:$0x1] }
 0x22a   : > { %11771 = vmatprep.mubr.msk.bf16.mxu1 %vm748_vm9, %v15385_v32  ;;  %v15576_v50 = vrot.slane %v4357_v13, 4  ;;  %v4371_v32 = vor.u32 %v4370_v37, %v4367_v57  ;;  %v11073_v41 = vrot.slane %v11057_v10, 9  ;;  %v15585_v16 = vcombine.low %v4329_v25, %v4339_v7  ;;  %v12956_v44 = vld [vmem:[%s13268_s19 + $0x94] sm:$0xf]  ;;  %v11059_v10 = vld [vmem:[%s13085_s12 + $0x78] sm:$0xe] }
 0x22b   : > { %12074 = vmatmul.mubr.msk.bf16.vlgmr.msra.gmra.mrb[0].mxu0 %vm454_vm2, %v11086_v60  ;;  %v11089_v36 = vcombine.low %v15529_v55, %v15543_v51  ;;  %v11090_v46 = vcombine.low %v15547_v24, %v15560_v5  ;;  %v4381_v60 = vor.u32 %v4380_v62, %v15563_v22  ;;  %v9270_v8 = vrot.slane %v9268_v27, 4 }
 0x22c   : > { %12077 = vmatprep.mubr.msk.bf16.mxu0 %vm454_vm2, %v11087_v0  ;;  %v4372_v19 = vrot.slane %v4371_v32, 4  ;;  %v9271_v53 = vrot.slane %v12951_v23, 5  ;;  %v9275_v12 = vrot.slane %v12952_v15, 5  ;;  %v4353_v0 = vsel %vm13125_vm7, %v15567_v4, %v15549_v30  ;;  %v12958_v32 = vld [vmem:[%s13268_s19 + $0x98] sm:$0x1] }
 0x22d   : > { %v4386_v55 = vrot.slane %v4384_v34, 5  ;;  %v11074_v59 = vrot.slane %v11058_v61, 9  ;;  %v4389_v52 = vshrl.u32 %v10424_v42, 16  ;;  %v4363_v14 = vsel %vm13125_vm7, %v15576_v50, %v15578_v20  ;;  %v11060_v15 = vld [vmem:[%s13085_s12 + $0x84] sm:$0xe] }
 0x22e   : > { %v4382_v49 = vrot.slane %v4381_v60, 4  ;;  %v15604_v29 = vsel %vm13173_vm8, %v11073_v41, %v9268_v27  ;;  %v9278_v63 = vrot.slane %v12953_v35, 5  ;;  %v9277_v25 = vrot.slane %v9275_v12, 4  ;;  %v12957_v27 = vld [vmem:[%s13085_s12 + $0x7c] sm:$0xf] }
 0x22f   : > { %v4391_v51 = vrot.slane %v4389_v52, 4  ;;  %v4392_v40 = vshll.u32 %v10424_v42, 16  ;;  %v4398_v21 = vshll.u32 %v12954_v39, 16  ;;  %v4377_v30 = vsel %vm13125_vm7, %v4372_v19, %v15563_v22  ;;  %v12959_v42 = vld [vmem:[%s13085_s12 + $0x80] sm:$0x1] }
 0x230   : > { %v9272_v26 = vsel %vm13173_vm8, %v9270_v8, %v9271_v53  ;;  %v4402_v33 = vshrl.u32 %v12954_v39, 16  ;;  %v4408_v58 = vshll.u32 %v12955_v56, 16  ;;  %v15621_v6 = vsel %vm13173_vm8, %v11074_v59, %v9275_v12  ;;  %v10430_v60 = vld [vmem:[%s13268_s19 + $0x9c] sm:$0xf] }
 0x231   : > { %11772 = vmatmul.mubr.msk.bf16.gmra.mrb[4].mxu1 %vm748_vm9, %v15437_v54  ;;  %v4394_v18 = vrot.slane %v4392_v40, 5  ;;  %v4400_v54 = vrot.slane %v4398_v21, 5  ;;  %v4413_v48 = vshrl.u32 %v10427_v43, 16  ;;  %v4387_v7 = vsel %vm13125_vm7, %v4382_v49, %v4386_v55 }
 0x232   : > { %11775 = vmatprep.mubr.msk.bf16.mxu1 %vm748_vm9, %v15457_v47  ;;  %v4404_v9 = vrot.slane %v4402_v33, 4  ;;  %v4416_v57 = vshll.u32 %v10427_v43, 16  ;;  %v4422_v47 = vshll.u32 %v12956_v44, 16  ;;  %v15634_v13 = vsel %vm13173_vm8, %v9277_v25, %v9278_v63  ;;  %v12960_v63 = vld [vmem:[%s13085_s12 + $0x88] sm:$0xf] }
 0x233   : > { %12078 = vmatmul.mubr.msk.bf16.gmra.mrb[4].mxu0 %vm454_vm2, %v11088_v45  ;;  %v4395_v37 = vor.u32 %v4394_v18, %v4391_v51  ;;  %v4415_v1 = vrot.slane %v4413_v48, 4  ;;  %v4426_v17 = vshrl.u32 %v12956_v44, 16  ;;  %v4410_v22 = vrot.slane %v4408_v58, 5  ;;  %v12961_v43 = vld [vmem:[%s13085_s12 + $0x8c] sm:$0x1] }
 0x234   : > { %12081 = vmatprep.mubr.msk.bf16.mxu0 %vm454_vm2, %v11089_v36  ;;  %v4405_v45 = vor.u32 %v4404_v9, %v4400_v54  ;;  %v4418_v4 = vrot.slane %v4416_v57, 5  ;;  %v15636_v62 = vrot.slane %v4422_v47, 5  ;;  %v11075_v31 = vrot.slane %v11059_v10, 9  ;;  %v10433_v51 = vld [vmem:[%s13268_s19 + $0xa8] sm:$0xf] }
 0x235   : > { %v4396_v3 = vrot.slane %v4395_v37, 4  ;;  %v4428_v34 = vrot.slane %v4426_v17, 4  ;;  %v9282_v61 = vrot.slane %v12957_v27, 5  ;;  %v4432_v41 = vshll.u32 %v12958_v32, 16  ;;  %v11061_v48 = vld [vmem:[%s13085_s12 + $0x90] sm:$0xe] }
 0x236   : > { %v4406_v50 = vrot.slane %v4405_v45, 4  ;;  %v4419_v20 = vor.u32 %v4418_v4, %v4415_v1  ;;  %v9285_v36 = vrot.slane %v12959_v42, 5  ;;  %v10451_v19 = vcombine.low %v4353_v0, %v4363_v14  ;;  %v12964_v44 = vld [vmem:[%s13268_s19 + $0xac] sm:$0xf]  ;;  %v12966_v32 = vld [vmem:[%s13085_s12 + $0x98] sm:$0x1] }
 0x237   : > { %v15642_v8 = vcombine.low %v4377_v30, %v4387_v7  ;;  %v11091_v23 = vcombine.low %v15604_v29, %v9272_v26  ;;  %v9284_v53 = vrot.slane %v9282_v61, 4  ;;  %v4401_v12 = vsel %vm13125_vm7, %v4396_v3, %v4400_v54  ;;  %v12962_v30 = vld [vmem:[%s13268_s19 + $0xa0] sm:$0xf]  ;;  %v10436_v42 = vld [vmem:[%s13268_s19 + $0xb4] sm:$0xf] }
 0x238   : > { %v4411_v55 = vsel %vm13125_vm7, %v4406_v50, %v4410_v22  ;;  %v4420_v59 = vrot.slane %v4419_v20, 4  ;;  %v4429_v0 = vor.u32 %v4428_v34, %v15636_v62  ;;  %v11092_v52 = vcombine.low %v15621_v6, %v15634_v13  ;;  %v12963_v6 = vld [vmem:[%s13268_s19 + $0xa4] sm:$0x1] }
 0x239   : > { %11776 = vmatmul.mubr.msk.bf16.gmra.mrb[8].mxu1 %vm748_vm9, %v15517_v11  ;;  %v9283_v11 = vsel %vm13173_vm8, %v11075_v31, %v9282_v61  ;;  %v9286_v14 = vsel %vm13173_vm8, %v9284_v53, %v9285_v36  ;;  %v4437_v49 = vshrl.u32 %v10430_v60, 16  ;;  %v4434_v29 = vrot.slane %v4432_v41, 5  ;;  %v12965_v31 = vld [vmem:[%s13085_s12 + $0x94] sm:$0xf]  ;;  %v11062_v61 = vld [vmem:[%s13085_s12 + $0x9c] sm:$0xe] }
 0x23a   : > { %11779 = vmatprep.mubr.msk.bf16.mxu1 %vm748_vm9, %v15525_v2  ;;  %v11076_v35 = vrot.slane %v11060_v15, 9  ;;  %v9289_v2 = vrot.slane %v12960_v63, 5  ;;  %v9292_v25 = vrot.slane %v12961_v43, 5  ;;  %v15669_v40 = vcombine.low %v4401_v12, %v4411_v55 }
 0x23b   : > { %12082 = vmatmul.mubr.msk.bf16.gmra.mrb[8].mxu0 %vm454_vm2, %v11090_v46  ;;  %v4439_v39 = vrot.slane %v4437_v49, 4  ;;  %v4440_v21 = vshll.u32 %v10430_v60, 16  ;;  %v4446_v24 = vshll.u32 %v12962_v30, 16  ;;  %v4425_v5 = vsel %vm13125_vm7, %v4420_v59, %v15636_v62  ;;  %v12968_v59 = vld [vmem:[%s13085_s12 + $0xa0] sm:$0xf] }
 0x23c   : > { %12085 = vmatprep.mubr.msk.bf16.mxu0 %vm454_vm2, %v11091_v23  ;;  %v4430_v46 = vrot.slane %v4429_v0, 4  ;;  %v11093_v26 = vcombine.low %v9283_v11, %v9286_v14  ;;  %v4450_v33 = vshrl.u32 %v12962_v30, 16  ;;  %v4456_v18 = vshll.u32 %v12963_v6, 16  ;;  %v12969_v14 = vld [vmem:[%s13085_s12 + $0xa4] sm:$0x1] }
 0x23d   : > { %v4442_v56 = vrot.slane %v4440_v21, 5  ;;  %v4448_v58 = vrot.slane %v4446_v24, 5  ;;  %v4461_v54 = vshrl.u32 %v10433_v51, 16  ;;  %v15679_v7 = vsel %vm13173_vm8, %v11076_v35, %v9289_v2  ;;  %v12970_v30 = vld [vmem:[%s13268_s19 + $0xb8] sm:$0xf] }
 0x23e   : > { %v4452_v9 = vrot.slane %v4450_v33, 4  ;;  %v4464_v57 = vshll.u32 %v10433_v51, 16  ;;  %v4470_v47 = vshll.u32 %v12964_v44, 16  ;;  %v9291_v10 = vrot.slane %v9289_v2, 4 }
 0x23f   : > { %v4443_v13 = vor.u32 %v4442_v56, %v4439_v39  ;;  %v4463_v37 = vrot.slane %v4461_v54, 4  ;;  %v4474_v1 = vshrl.u32 %v12964_v44, 16  ;;  %v4435_v17 = vsel %vm13125_vm7, %v4430_v46, %v4434_v29  ;;  %v11063_v54 = vld [vmem:[%s13085_s12 + $0xa8] sm:$0xe] }
 0x240   : > { %v4453_v45 = vor.u32 %v4452_v9, %v4448_v58  ;;  %v4466_v22 = vrot.slane %v4464_v57, 5  ;;  %v11077_v4 = vrot.slane %v11061_v48, 9  ;;  %v4458_v3 = vrot.slane %v4456_v18, 5  ;;  %v12971_v48 = vld [vmem:[%s13268_s19 + $0xbc] sm:$0x1] }
 0x241   : > { %11780 = vmatmul.mubr.msk.bf16.gmra.mrb[12].mxu1 %vm748_vm9, %v15585_v16  ;;  %v4444_v62 = vrot.slane %v4443_v13, 4  ;;  %v15687_v34 = vrot.slane %v4470_v47, 5  ;;  %v9296_v27 = vrot.slane %v12965_v31, 5  ;;  %v4476_v20 = vrot.slane %v4474_v1, 4  ;;  %v12972_v57 = vld [vmem:[%s13268_s19 + $0xc4] sm:$0xf] }
 0x242   : > { %11783 = vmatprep.mubr.msk.bf16.mxu1 %vm748_vm9, %v10451_v19  ;;  %v4454_v16 = vrot.slane %v4453_v45, 4  ;;  %v4467_v50 = vor.u32 %v4466_v22, %v4463_v37  ;;  %v9299_v41 = vrot.slane %v12966_v32, 5  ;;  %v15694_v36 = vcombine.low %v4425_v5, %v4435_v17  ;;  %v12967_v19 = vld [vmem:[%s13268_s19 + $0xb0] sm:$0x1]  ;;  %v11064_v22 = vld [vmem:[%s13085_s12 + $0xb4] sm:$0xe] }
 0x243   : > { %12086 = vmatmul.mubr.msk.bf16.gmra.mrb[12].mxu0 %vm454_vm2, %v11092_v52  ;;  %v9293_v60 = vsel %vm13173_vm8, %v9291_v10, %v9292_v25  ;;  %v4480_v23 = vshll.u32 %v12967_v19, 16  ;;  %v9298_v53 = vrot.slane %v9296_v27, 4  ;;  %v4449_v15 = vsel %vm13125_vm7, %v4444_v62, %v4448_v58  ;;  %v10439_v25 = vld [vmem:[%s13268_s19 + $0xc0] sm:$0xf]  ;;  %v12973_v31 = vld [vmem:[%s13085_s12 + $0xac] sm:$0xf] }
 0x244   : > { %12089 = vmatprep.mubr.msk.bf16.mxu0 %vm454_vm2, %v11093_v26  ;;  %v9297_v12 = vsel %vm13173_vm8, %v11077_v4, %v9296_v27  ;;  %v11078_v55 = vrot.slane %v11062_v61, 9  ;;  %v9303_v0 = vrot.slane %v12968_v59, 5  ;;  %v4459_v52 = vsel %vm13125_vm7, %v4454_v16, %v4458_v3  ;;  %v11065_v32 = vld [vmem:[%s13085_s12 + $0xc0] sm:$0xe]  ;;  %v12977_v59 = vld [vmem:[%s13085_s12 + $0xbc] sm:$0x1] }
 0x245   : > { %v9300_v11 = vsel %vm13173_vm8, %v9298_v53, %v9299_v41  ;;  %v9306_v49 = vrot.slane %v12969_v14, 5  ;;  %v4485_v29 = vshrl.u32 %v10436_v42, 16  ;;  %v11094_v35 = vcombine.low %v15679_v7, %v9293_v60  ;;  %v12975_v53 = vld [vmem:[%s13268_s19 + $0xc8] sm:$0x1] }
 0x246   : > { %v15711_v63 = vrot.slane %v4467_v50, 4  ;;  %v4477_v2 = vor.u32 %v4476_v20, %v15687_v34  ;;  %v9305_v43 = vrot.slane %v9303_v0, 4  ;;  %v11095_v51 = vcombine.low %v9297_v12, %v9300_v11  ;;  %v12974_v50 = vld [vmem:[%s13085_s12 + $0xb0] sm:$0x1]  ;;  %v12976_v12 = vld [vmem:[%s13085_s12 + $0xb8] sm:$0xf] }
 0x247   : > { %v4487_v39 = vrot.slane %v4485_v29, 4  ;;  %v4488_v21 = vshll.u32 %v10436_v42, 16  ;;  %v4494_v24 = vshll.u32 %v12970_v30, 16  ;;  %v10455_v5 = vcombine.low %v4449_v15, %v4459_v52 }
 0x248   : > { %v4482_v46 = vrot.slane %v4480_v23, 5  ;;  %v9304_v26 = vsel %vm13173_vm8, %v11078_v55, %v9303_v0  ;;  %v4498_v33 = vshrl.u32 %v12970_v30, 16  ;;  %v9307_v56 = vsel %vm13173_vm8, %v9305_v43, %v9306_v49  ;;  %v12978_v43 = vld [vmem:[%s13085_s12 + $0xc4] sm:$0xf] }
 0x249   : > { %11784 = vmatmul.mubr.msk.bf16.gmra.mrb[16].mxu1 %vm748_vm9, %v15642_v8  ;;  %v4490_v58 = vrot.slane %v4488_v21, 5  ;;  %v15724_v6 = vrot.slane %v4494_v24, 5  ;;  %v4509_v18 = vshrl.u32 %v10439_v25, 16  ;;  %v4504_v7 = vshll.u32 %v12971_v48, 16 }
 0x24a   : > { %11787 = vmatprep.mubr.msk.bf16.mxu1 %vm748_vm9, %v15669_v40  ;;  %v4500_v8 = vrot.slane %v4498_v33, 4  ;;  %v4512_v9 = vshll.u32 %v10439_v25, 16  ;;  %v4518_v44 = vshll.u32 %v12972_v57, 16  ;;  %v4473_v40 = vsel %vm13125_vm7, %v15711_v63, %v15687_v34 }
 0x24b   : > { %12090 = vmatmul.mubr.msk.bf16.gmra.mrb[16].mxu0 %vm454_vm2, %v11094_v35  ;;  %v4478_v47 = vrot.slane %v4477_v2, 4  ;;  %v4491_v10 = vor.u32 %v4490_v58, %v4487_v39  ;;  %v4522_v13 = vshrl.u32 %v12972_v57, 16  ;;  %v4511_v1 = vrot.slane %v4509_v18, 4 }
 0x24c   : > { %12093 = vmatprep.mubr.msk.bf16.mxu0 %vm454_vm2, %v11095_v51  ;;  %v4501_v37 = vor.u32 %v4500_v8, %v15724_v6  ;;  %v4514_v17 = vrot.slane %v4512_v9, 5  ;;  %v11079_v45 = vrot.slane %v11063_v54, 9  ;;  %v11096_v4 = vcombine.low %v9304_v26, %v9307_v56  ;;  %v12979_v51 = vld [vmem:[%s13085_s12 + $0xc8] sm:$0x1] }
 0x24d   : > { %v15737_v62 = vrot.slane %v4518_v44, 5  ;;  %v4524_v3 = vrot.slane %v4522_v13, 4  ;;  %v9310_v34 = vrot.slane %v12973_v31, 5  ;;  %v4492_v27 = vrot.slane %v4491_v10, 4 }
 0x24e   : > { %v4502_v61 = vrot.slane %v4501_v37, 4  ;;  %v4506_v16 = vrot.slane %v4504_v7, 5  ;;  %v9313_v20 = vrot.slane %v12974_v50, 5  ;;  %v4483_v41 = vsel %vm13125_vm7, %v4478_v47, %v4482_v46  ;;  %v12980_v46 = vld [vmem:[%s13085_s12 + $0xd0] sm:$0xf] }
 0x24f   : > { %v9311_v42 = vsel %vm13173_vm8, %v11079_v45, %v9310_v34  ;;  %v9312_v60 = vrot.slane %v9310_v34, 4  ;;  %v11080_v19 = vrot.slane %v11064_v22, 9  ;;  %v4515_v23 = vor.u32 %v4514_v17, %v4511_v1  ;;  %v12981_v7 = vld [vmem:[%s13085_s12 + $0xd4] sm:$0x1]  ;;  %v15793_v22 = vld [vmem:[%s15947_s4] ss:$0 sm:$0xff] }
 0x250   : > { %v4528_v15 = vshll.u32 %v12975_v53, 16  ;;  %v9317_v55 = vrot.slane %v12976_v12, 5  ;;  %v9320_v0 = vrot.slane %v12977_v59, 5  ;;  %v4525_v52 = vor.u32 %v4524_v3, %v15737_v62  ;;  %v15798_v3 = vld [vmem:[%s15948_s5] ss:$0 sm:$0xff] }
 0x251   : > { %11788 = vmatmul.mubr.msk.bf16.gmra.mrb[20].mxu1 %vm748_vm9, %v15694_v36  ;;  %v9314_v11 = vsel %vm13173_vm8, %v9312_v60, %v9313_v20  ;;  %v11081_v14 = vrot.slane %v11065_v32, 9  ;;  %v4497_v36 = vsel %vm13125_vm7, %v4492_v27, %v15724_v6  ;;  %v4507_v49 = vsel %vm13125_vm7, %v4502_v61, %v4506_v16 }
 0x252   : > { %11791 = vmatprep.mubr.msk.bf16.mxu1 %vm748_vm9, %v10455_v5  ;;  %v11097_v29 = vcombine.low %v9311_v42, %v9314_v11  ;;  %v9319_v35 = vrot.slane %v9317_v55, 4  ;;  %v10456_v63 = vcombine.low %v4473_v40, %v4483_v41  ;;  %v9318_v2 = vsel %vm13173_vm8, %v11080_v19, %v9317_v55  ;;  %v11066_v5 = vld [vmem:[%s13085_s12 + $0xcc] sm:$0xe] }
 0x253   : > { %12094 = vmatmul.mubr.msk.bf16.gmra.mrb[20].mxu0 %vm454_vm2, %v11096_v4  ;;  %v9324_v25 = vrot.slane %v12978_v43, 5  ;;  %v9327_v39 = vrot.slane %v12979_v51, 5  ;;  %v4516_v21 = vrot.slane %v4515_v23, 4  ;;  %v4530_v30 = vrot.slane %v4528_v15, 5 }
 0x254   : > { %12097 = vmatprep.mubr.msk.bf16.mxu0 %vm454_vm2, %v11097_v29  ;;  %v9321_v24 = vsel %vm13173_vm8, %v9319_v35, %v9320_v0  ;;  %v9331_v26 = vrot.slane %v12980_v46, 5  ;;  %v10457_v33 = vcombine.low %v4497_v36, %v4507_v49  ;;  %v4526_v56 = vrot.slane %v4525_v52, 4 }
 0x255   : > { %v9325_v58 = vsel %vm13173_vm8, %v11081_v14, %v9324_v25  ;;  %v9326_v6 = vrot.slane %v9324_v25, 4  ;;  %v11098_v18 = vcombine.low %v9318_v2, %v9321_v24  ;;  %v11082_v8 = vrot.slane %v11066_v5, 9 }
 0x256   : > { %v9333_v48 = vrot.slane %v9331_v26, 4  ;;  %v9334_v9 = vrot.slane %v12981_v7, 5  ;;  %v4521_v44 = vsel %vm13125_vm7, %v4516_v21, %v15737_v62  ;;  %v4531_v40 = vsel %vm13125_vm7, %v4526_v56, %v4530_v30 }
 0x257   : > { %v9328_v54 = vsel %vm13173_vm8, %v9326_v6, %v9327_v39  ;;  %v9332_v47 = vsel %vm13173_vm8, %v11082_v8, %v9331_v26  ;;  %v10458_v13 = vcombine.low %v4521_v44, %v4531_v40 }
 0x258   : > { %v11099_v57 = vcombine.low %v9325_v58, %v9328_v54  ;;  %v9335_v10 = vsel %vm13173_vm8, %v9333_v48, %v9334_v9 }
 0x259   : > { %11792 = vmatmul.mubr.msk.bf16.gmra.mrb[24].mxu1 %vm748_vm9, %v10456_v63  ;;  %v11100_v37 = vcombine.low %v9332_v47, %v9335_v10 }
 0x25a   : > { %11795 = vmatprep.mubr.msk.bf16.mxu1 %vm748_vm9, %v10457_v33 }
 0x25b   : > { %12098 = vmatmul.mubr.msk.bf16.gmra.mrb[24].mxu0 %vm454_vm2, %v11098_v18 }
 0x25c   : > { %12101 = vmatprep.mubr.msk.bf16.mxu0 %vm454_vm2, %v11099_v57 }
 0x261   : > { %11796 = vmatmul.mubr.msk.bf16.gmra.mrb[28].mxu1 %vm748_vm9, %v10458_v13 }
 0x263   : > { %12102 = vmatmul.mubr.msk.bf16.gmra.mrb[28].mxu0 %vm454_vm2, %v11100_v37 }
 0x2fc   : > { %v11769_v1 = vpop.f32.mrb[0].mxu1 }
 0x2fd   : > { %v4667_v38 = vpop.f32.mrb[1].mxu1 }
 0x2fe   : > { %v11770_v17 = vpop.f32.mrb[2].mxu1  ;;  %v12075_v45 = vpop.f32.mrb[0].mxu0 }
 0x2ff   : > { %v4670_v4 = vpop.f32.mrb[3].mxu1  ;;  %v12105_v62 = vadd.f32 %v12075_v45, %v11769_v1  ;;  %v9477_v28 = vpop.f32.mrb[1].mxu0 }
 0x300   : > { %v12106_v31 = vadd.f32 %v9477_v28, %v4667_v38  ;;  %v12076_v34 = vpop.f32.mrb[2].mxu0 }
 0x301   : > { %v9645_v27 = vmul.f32 %v12105_v62, %v15793_v22  ;;  %v12107_v61 = vadd.f32 %v12076_v34, %v11770_v17  ;;  %v9480_v16 = vpop.f32.mrb[3].mxu0 }
 0x302   : > { %v9643_v50 = vmul.f32 %v12106_v31, %v15793_v22  ;;  %v12108_v20 = vadd.f32 %v9480_v16, %v4670_v4 }
 0x303   : > { %v9684_v32 = vadd.f32 %v15798_v3, %v9645_v27  ;;  %v9646_v41 = vmul.f32 %v12107_v61, %v15793_v22 }
 0x304   : > { %v11773_v42 = vpop.f32.mrb[4].mxu1  ;;  %v9682_v60 = vadd.f32 %v15798_v3, %v9643_v50  ;;  %v9644_v19 = vmul.f32 %v12108_v20, %v15793_v22 }
 0x305   : > { %v4683_v23 = vpop.f32.mrb[5].mxu1  ;;  %v9716_v53 = vmax.f32 %v9684_v32, 0.0  ;;  %v9685_v15 = vadd.f32 %v15798_v3, %v9646_v41 }
 0x306   : > { %v11774_v12 = vpop.f32.mrb[6].mxu1  ;;  %v9714_v55 = vmax.f32 %v9682_v60, 0.0  ;;  %v9683_v59 = vadd.f32 %v15798_v3, %v9644_v19  ;;  %v12079_v0 = vpop.f32.mrb[4].mxu0 }
 0x307   : > { %v11157_v52 = vpack.c.bf16 %v9716_v53, %v9716_v53  ;;  %v4686_v11 = vpop.f32.mrb[7].mxu1  ;;  %v9717_v14 = vmax.f32 %v9685_v15, 0.0  ;;  %v12109_v36 = vadd.f32 %v12079_v0, %v11773_v42  ;;  %v9493_v49 = vpop.f32.mrb[5].mxu0 }
 0x308   : > { %v11155_v29 = vpack.c.bf16 %v9714_v55, %v9714_v55  ;;  %v9715_v35 = vmax.f32 %v9683_v59, 0.0  ;;  %v12110_v63 = vadd.f32 %v9493_v49, %v4683_v23  ;;  %v12080_v2 = vpop.f32.mrb[6].mxu0 }
 0x309   : > { %9877 = vst.msk [vmem:[%s15811_s11 + $0x8] sm:$0xf] %vm9874_vm10, %v11157_v52  ;;  %v11158_v43 = vpack.c.bf16 %v9717_v14, %v9717_v14  ;;  %v9649_v25 = vmul.f32 %v12109_v36, %v15793_v22  ;;  %v12111_v51 = vadd.f32 %v12080_v2, %v11774_v12  ;;  %v9496_v39 = vpop.f32.mrb[7].mxu0 }
 0x30a   : > { %9875 = vst.msk [vmem:[%s15811_s11] sm:$0xf] %vm9874_vm10, %v11155_v29  ;;  %v11156_v21 = vpack.c.bf16 %v9715_v35, %v9715_v35  ;;  %v9647_v30 = vmul.f32 %v12110_v63, %v15793_v22  ;;  %v12112_v24 = vadd.f32 %v9496_v39, %v4686_v11 }
 0x30b   : > { %9878 = vst.msk [vmem:[%s15811_s11 + $0xc] sm:$0xf] %vm9874_vm10, %v11158_v43  ;;  %v9688_v5 = vadd.f32 %v15798_v3, %v9649_v25  ;;  %v9650_v46 = vmul.f32 %v12111_v51, %v15793_v22 }
 0x30c   : > { %9876 = vst.msk [vmem:[%s15811_s11 + $0x4] sm:$0xf] %vm9874_vm10, %v11156_v21  ;;  %v11777_v26 = vpop.f32.mrb[8].mxu1  ;;  %v9686_v33 = vadd.f32 %v15798_v3, %v9647_v30  ;;  %v9648_v56 = vmul.f32 %v12112_v24, %v15793_v22 }
 0x30d   : > { %v4699_v58 = vpop.f32.mrb[9].mxu1  ;;  %v9720_v6 = vmax.f32 %v9688_v5, 0.0  ;;  %v9689_v18 = vadd.f32 %v15798_v3, %v9650_v46 }
 0x30e   : > { %v11778_v54 = vpop.f32.mrb[10].mxu1  ;;  %v9718_v8 = vmax.f32 %v9686_v33, 0.0  ;;  %v9687_v48 = vadd.f32 %v15798_v3, %v9648_v56  ;;  %v12083_v7 = vpop.f32.mrb[8].mxu0 }
 0x30f   : > { %v11161_v9 = vpack.c.bf16 %v9720_v6, %v9720_v6  ;;  %v4702_v57 = vpop.f32.mrb[11].mxu1  ;;  %v9721_v44 = vmax.f32 %v9689_v18, 0.0  ;;  %v12113_v40 = vadd.f32 %v12083_v7, %v11777_v26  ;;  %v9509_v47 = vpop.f32.mrb[9].mxu0 }
 0x310   : > { %v11159_v10 = vpack.c.bf16 %v9718_v8, %v9718_v8  ;;  %v9719_v13 = vmax.f32 %v9687_v48, 0.0  ;;  %v12114_v37 = vadd.f32 %v9509_v47, %v4699_v58  ;;  %v12084_v1 = vpop.f32.mrb[10].mxu0 }
 0x311   : > { %9881 = vst.msk [vmem:[%s15811_s11 + $0x18] sm:$0xf] %vm9874_vm10, %v11161_v9  ;;  %v11162_v38 = vpack.c.bf16 %v9721_v44, %v9721_v44  ;;  %v9653_v17 = vmul.f32 %v12113_v40, %v15793_v22  ;;  %v12115_v45 = vadd.f32 %v12084_v1, %v11778_v54  ;;  %v9512_v4 = vpop.f32.mrb[11].mxu0 }
 0x312   : > { %9879 = vst.msk [vmem:[%s15811_s11 + $0x10] sm:$0xf] %vm9874_vm10, %v11159_v10  ;;  %v11160_v62 = vpack.c.bf16 %v9719_v13, %v9719_v13  ;;  %v9651_v28 = vmul.f32 %v12114_v37, %v15793_v22  ;;  %v12116_v31 = vadd.f32 %v9512_v4, %v4702_v57 }
 0x313   : > { %9882 = vst.msk [vmem:[%s15811_s11 + $0x1c] sm:$0xf] %vm9874_vm10, %v11162_v38  ;;  %v9692_v34 = vadd.f32 %v15798_v3, %v9653_v17  ;;  %v9654_v27 = vmul.f32 %v12115_v45, %v15793_v22 }
 0x314   : > { %9880 = vst.msk [vmem:[%s15811_s11 + $0x14] sm:$0xf] %vm9874_vm10, %v11160_v62  ;;  %v11781_v61 = vpop.f32.mrb[12].mxu1  ;;  %v9690_v16 = vadd.f32 %v15798_v3, %v9651_v28  ;;  %v9652_v50 = vmul.f32 %v12116_v31, %v15793_v22 }
 0x315   : > { %v4715_v20 = vpop.f32.mrb[13].mxu1  ;;  %v9724_v32 = vmax.f32 %v9692_v34, 0.0  ;;  %v9693_v41 = vadd.f32 %v15798_v3, %v9654_v27 }
 0x316   : > { %v11782_v42 = vpop.f32.mrb[14].mxu1  ;;  %v9722_v60 = vmax.f32 %v9690_v16, 0.0  ;;  %v9691_v19 = vadd.f32 %v15798_v3, %v9652_v50  ;;  %v12087_v23 = vpop.f32.mrb[12].mxu0 }
 0x317   : > { %v11165_v53 = vpack.c.bf16 %v9724_v32, %v9724_v32  ;;  %v4718_v15 = vpop.f32.mrb[15].mxu1  ;;  %v9725_v12 = vmax.f32 %v9693_v41, 0.0  ;;  %v12117_v55 = vadd.f32 %v12087_v23, %v11781_v61  ;;  %v9525_v59 = vpop.f32.mrb[13].mxu0 }
 0x318   : > { %v11163_v0 = vpack.c.bf16 %v9722_v60, %v9722_v60  ;;  %v9723_v52 = vmax.f32 %v9691_v19, 0.0  ;;  %v12118_v11 = vadd.f32 %v9525_v59, %v4715_v20  ;;  %v12088_v14 = vpop.f32.mrb[14].mxu0 }
 0x319   : > { %9885 = vst.msk [vmem:[%s15811_s11 + $0x28] sm:$0xf] %vm9874_vm10, %v11165_v53  ;;  %v11166_v36 = vpack.c.bf16 %v9725_v12, %v9725_v12  ;;  %v9657_v49 = vmul.f32 %v12117_v55, %v15793_v22  ;;  %v12119_v29 = vadd.f32 %v12088_v14, %v11782_v42  ;;  %v9528_v35 = vpop.f32.mrb[15].mxu0 }
 0x31a   : > { %9883 = vst.msk [vmem:[%s15811_s11 + $0x20] sm:$0xf] %vm9874_vm10, %v11163_v0  ;;  %v11164_v63 = vpack.c.bf16 %v9723_v52, %v9723_v52  ;;  %v9655_v2 = vmul.f32 %v12118_v11, %v15793_v22  ;;  %v12120_v43 = vadd.f32 %v9528_v35, %v4718_v15 }
 0x31b   : > { %9886 = vst.msk [vmem:[%s15811_s11 + $0x2c] sm:$0xf] %vm9874_vm10, %v11166_v36  ;;  %v9696_v25 = vadd.f32 %v15798_v3, %v9657_v49  ;;  %v9658_v51 = vmul.f32 %v12119_v29, %v15793_v22 }
 0x31c   : > { %9884 = vst.msk [vmem:[%s15811_s11 + $0x24] sm:$0xf] %vm9874_vm10, %v11164_v63  ;;  %v11785_v39 = vpop.f32.mrb[16].mxu1  ;;  %v9694_v21 = vadd.f32 %v15798_v3, %v9655_v2  ;;  %v9656_v30 = vmul.f32 %v12120_v43, %v15793_v22 }
 0x31d   : > { %v4731_v24 = vpop.f32.mrb[17].mxu1  ;;  %v9728_v5 = vmax.f32 %v9696_v25, 0.0  ;;  %v9697_v46 = vadd.f32 %v15798_v3, %v9658_v51 }
 0x31e   : > { %v11786_v26 = vpop.f32.mrb[18].mxu1  ;;  %v9726_v33 = vmax.f32 %v9694_v21, 0.0  ;;  %v9695_v56 = vadd.f32 %v15798_v3, %v9656_v30  ;;  %v12091_v58 = vpop.f32.mrb[16].mxu0 }
 0x31f   : > { %v11169_v6 = vpack.c.bf16 %v9728_v5, %v9728_v5  ;;  %v4734_v18 = vpop.f32.mrb[19].mxu1  ;;  %v9729_v54 = vmax.f32 %v9697_v46, 0.0  ;;  %v12121_v8 = vadd.f32 %v12091_v58, %v11785_v39  ;;  %v9541_v48 = vpop.f32.mrb[17].mxu0 }
 0x320   : > { %v11167_v7 = vpack.c.bf16 %v9726_v33, %v9726_v33  ;;  %v9727_v9 = vmax.f32 %v9695_v56, 0.0  ;;  %v12122_v57 = vadd.f32 %v9541_v48, %v4731_v24  ;;  %v12092_v44 = vpop.f32.mrb[18].mxu0 }
 0x321   : > { %9889 = vst.msk [vmem:[%s15811_s11 + $0x38] sm:$0xf] %vm9874_vm10, %v11169_v6  ;;  %v11170_v40 = vpack.c.bf16 %v9729_v54, %v9729_v54  ;;  %v9661_v47 = vmul.f32 %v12121_v8, %v15793_v22  ;;  %v12123_v10 = vadd.f32 %v12092_v44, %v11786_v26  ;;  %v9544_v13 = vpop.f32.mrb[19].mxu0 }
 0x322   : > { %9887 = vst.msk [vmem:[%s15811_s11 + $0x30] sm:$0xf] %vm9874_vm10, %v11167_v7  ;;  %v11168_v37 = vpack.c.bf16 %v9727_v9, %v9727_v9  ;;  %v9659_v1 = vmul.f32 %v12122_v57, %v15793_v22  ;;  %v12124_v38 = vadd.f32 %v9544_v13, %v4734_v18 }
 0x323   : > { %9890 = vst.msk [vmem:[%s15811_s11 + $0x3c] sm:$0xf] %vm9874_vm10, %v11170_v40  ;;  %v9700_v17 = vadd.f32 %v15798_v3, %v9661_v47  ;;  %v9662_v45 = vmul.f32 %v12123_v10, %v15793_v22 }
 0x324   : > { %9888 = vst.msk [vmem:[%s15811_s11 + $0x34] sm:$0xf] %vm9874_vm10, %v11168_v37  ;;  %v11789_v4 = vpop.f32.mrb[20].mxu1  ;;  %v9698_v62 = vadd.f32 %v15798_v3, %v9659_v1  ;;  %v9660_v28 = vmul.f32 %v12124_v38, %v15793_v22 }
 0x325   : > { %v4747_v31 = vpop.f32.mrb[21].mxu1  ;;  %v9732_v34 = vmax.f32 %v9700_v17, 0.0  ;;  %v9701_v27 = vadd.f32 %v15798_v3, %v9662_v45 }
 0x326   : > { %v11790_v61 = vpop.f32.mrb[22].mxu1  ;;  %v9730_v16 = vmax.f32 %v9698_v62, 0.0  ;;  %v9699_v50 = vadd.f32 %v15798_v3, %v9660_v28  ;;  %v12095_v20 = vpop.f32.mrb[20].mxu0 }
 0x327   : > { %v11173_v32 = vpack.c.bf16 %v9732_v34, %v9732_v34  ;;  %v4750_v41 = vpop.f32.mrb[23].mxu1  ;;  %v9733_v42 = vmax.f32 %v9701_v27, 0.0  ;;  %v12125_v60 = vadd.f32 %v12095_v20, %v11789_v4  ;;  %v9557_v19 = vpop.f32.mrb[21].mxu0 }
 0x328   : > { %v11171_v23 = vpack.c.bf16 %v9730_v16, %v9730_v16  ;;  %v9731_v53 = vmax.f32 %v9699_v50, 0.0  ;;  %v12126_v15 = vadd.f32 %v9557_v19, %v4747_v31  ;;  %v12096_v12 = vpop.f32.mrb[22].mxu0 }
 0x329   : > { %9893 = vst.msk [vmem:[%s15811_s11 + $0x48] sm:$0xf] %vm9874_vm10, %v11173_v32  ;;  %v11174_v55 = vpack.c.bf16 %v9733_v42, %v9733_v42  ;;  %v9665_v59 = vmul.f32 %v12125_v60, %v15793_v22  ;;  %v12127_v0 = vadd.f32 %v12096_v12, %v11790_v61  ;;  %v9560_v52 = vpop.f32.mrb[23].mxu0 }
 0x32a   : > { %9891 = vst.msk [vmem:[%s15811_s11 + $0x40] sm:$0xf] %vm9874_vm10, %v11171_v23  ;;  %v11172_v11 = vpack.c.bf16 %v9731_v53, %v9731_v53  ;;  %v9663_v14 = vmul.f32 %v12126_v15, %v15793_v22  ;;  %v12128_v36 = vadd.f32 %v9560_v52, %v4750_v41 }
 0x32b   : > { %9894 = vst.msk [vmem:[%s15811_s11 + $0x4c] sm:$0xf] %vm9874_vm10, %v11174_v55  ;;  %v9704_v49 = vadd.f32 %v15798_v3, %v9665_v59  ;;  %v9666_v29 = vmul.f32 %v12127_v0, %v15793_v22 }
 0x32c   : > { %9892 = vst.msk [vmem:[%s15811_s11 + $0x44] sm:$0xf] %vm9874_vm10, %v11172_v11  ;;  %v11793_v35 = vpop.f32.mrb[24].mxu1  ;;  %v9702_v63 = vadd.f32 %v15798_v3, %v9663_v14  ;;  %v9664_v2 = vmul.f32 %v12128_v36, %v15793_v22 }
 0x32d   : > { %v4763_v43 = vpop.f32.mrb[25].mxu1  ;;  %v9736_v25 = vmax.f32 %v9704_v49, 0.0  ;;  %v9705_v51 = vadd.f32 %v15798_v3, %v9666_v29 }
 0x32e   : > { %v11794_v39 = vpop.f32.mrb[26].mxu1  ;;  %v9734_v21 = vmax.f32 %v9702_v63, 0.0  ;;  %v9703_v30 = vadd.f32 %v15798_v3, %v9664_v2  ;;  %v12099_v24 = vpop.f32.mrb[24].mxu0 }
 0x32f   : > { %v11177_v5 = vpack.c.bf16 %v9736_v25, %v9736_v25  ;;  %v4766_v46 = vpop.f32.mrb[27].mxu1  ;;  %v9737_v26 = vmax.f32 %v9705_v51, 0.0  ;;  %v12129_v33 = vadd.f32 %v12099_v24, %v11793_v35  ;;  %v9573_v56 = vpop.f32.mrb[25].mxu0 }
 0x330   : > { %v11175_v58 = vpack.c.bf16 %v9734_v21, %v9734_v21  ;;  %v9735_v6 = vmax.f32 %v9703_v30, 0.0  ;;  %v12130_v18 = vadd.f32 %v9573_v56, %v4763_v43  ;;  %v12100_v54 = vpop.f32.mrb[26].mxu0 }
 0x331   : > { %9897 = vst.msk [vmem:[%s15811_s11 + $0x58] sm:$0xf] %vm9874_vm10, %v11177_v5  ;;  %v11178_v8 = vpack.c.bf16 %v9737_v26, %v9737_v26  ;;  %v9669_v48 = vmul.f32 %v12129_v33, %v15793_v22  ;;  %v12131_v7 = vadd.f32 %v12100_v54, %v11794_v39  ;;  %v9576_v9 = vpop.f32.mrb[27].mxu0 }
 0x332   : > { %9895 = vst.msk [vmem:[%s15811_s11 + $0x50] sm:$0xf] %vm9874_vm10, %v11175_v58  ;;  %v11176_v57 = vpack.c.bf16 %v9735_v6, %v9735_v6  ;;  %v9667_v44 = vmul.f32 %v12130_v18, %v15793_v22  ;;  %v12132_v40 = vadd.f32 %v9576_v9, %v4766_v46 }
 0x333   : > { %9898 = vst.msk [vmem:[%s15811_s11 + $0x5c] sm:$0xf] %vm9874_vm10, %v11178_v8  ;;  %v9708_v47 = vadd.f32 %v15798_v3, %v9669_v48  ;;  %v9670_v10 = vmul.f32 %v12131_v7, %v15793_v22 }
 0x334   : > { %9896 = vst.msk [vmem:[%s15811_s11 + $0x54] sm:$0xf] %vm9874_vm10, %v11176_v57  ;;  %v11797_v13 = vpop.f32.mrb[28].mxu1  ;;  %v9706_v37 = vadd.f32 %v15798_v3, %v9667_v44  ;;  %v9668_v1 = vmul.f32 %v12132_v40, %v15793_v22 }
 0x335   : > { %v4779_v38 = vpop.f32.mrb[29].mxu1  ;;  %v9740_v17 = vmax.f32 %v9708_v47, 0.0  ;;  %v9709_v45 = vadd.f32 %v15798_v3, %v9670_v10 }
 0x336   : > { %v11798_v4 = vpop.f32.mrb[30].mxu1  ;;  %v9738_v62 = vmax.f32 %v9706_v37, 0.0  ;;  %v9707_v28 = vadd.f32 %v15798_v3, %v9668_v1  ;;  %v12103_v31 = vpop.f32.mrb[28].mxu0 }
 0x337   : > { %v11181_v34 = vpack.c.bf16 %v9740_v17, %v9740_v17  ;;  %v4782_v27 = vpop.f32.mrb[31].mxu1  ;;  %v9741_v61 = vmax.f32 %v9709_v45, 0.0  ;;  %v12133_v16 = vadd.f32 %v12103_v31, %v11797_v13  ;;  %v9589_v50 = vpop.f32.mrb[29].mxu0 }
 0x338   : > { %v11179_v20 = vpack.c.bf16 %v9738_v62, %v9738_v62  ;;  %v9739_v32 = vmax.f32 %v9707_v28, 0.0  ;;  %v12134_v41 = vadd.f32 %v9589_v50, %v4779_v38  ;;  %v12104_v42 = vpop.f32.mrb[30].mxu0 }
 0x339   : > { %9901 = vst.msk [vmem:[%s15811_s11 + $0x68] sm:$0xf] %vm9874_vm10, %v11181_v34  ;;  %v11182_v60 = vpack.c.bf16 %v9741_v61, %v9741_v61  ;;  %v9673_v19 = vmul.f32 %v12133_v16, %v15793_v22  ;;  %v12135_v23 = vadd.f32 %v12104_v42, %v11798_v4  ;;  %v9592_v53 = vpop.f32.mrb[31].mxu0 }
 0x33a   : > { %9899 = vst.msk [vmem:[%s15811_s11 + $0x60] sm:$0xf] %vm9874_vm10, %v11179_v20  ;;  %v11180_v15 = vpack.c.bf16 %v9739_v32, %v9739_v32  ;;  %v9671_v12 = vmul.f32 %v12134_v41, %v15793_v22  ;;  %v12136_v55 = vadd.f32 %v9592_v53, %v4782_v27 }
 0x33b   : > { %9902 = vst.msk [vmem:[%s15811_s11 + $0x6c] sm:$0xf] %vm9874_vm10, %v11182_v60  ;;  %v9712_v59 = vadd.f32 %v15798_v3, %v9673_v19  ;;  %v9674_v0 = vmul.f32 %v12135_v23, %v15793_v22 }
 0x33c   : > { %9900 = vst.msk [vmem:[%s15811_s11 + $0x64] sm:$0xf] %vm9874_vm10, %v11180_v15  ;;  %v9710_v52 = vadd.f32 %v15798_v3, %v9671_v12  ;;  %v9672_v11 = vmul.f32 %v12136_v55, %v15793_v22 }
 0x33d   : > { %v9744_v14 = vmax.f32 %v9712_v59, 0.0  ;;  %v9713_v36 = vadd.f32 %v15798_v3, %v9674_v0 }
 0x33e   : > { %v9742_v49 = vmax.f32 %v9710_v52, 0.0  ;;  %v9711_v29 = vadd.f32 %v15798_v3, %v9672_v11 }
 0x33f   : > { %v11185_v35 = vpack.c.bf16 %v9744_v14, %v9744_v14  ;;  %v9745_v63 = vmax.f32 %v9713_v36, 0.0 }
 0x340   : > { %v11183_v2 = vpack.c.bf16 %v9742_v49, %v9742_v49  ;;  %v9743_v43 = vmax.f32 %v9711_v29, 0.0 }
 0x341   : > { %9905 = vst.msk [vmem:[%s15811_s11 + $0x78] sm:$0xf] %vm9874_vm10, %v11185_v35  ;;  %v11186_v25 = vpack.c.bf16 %v9745_v63, %v9745_v63 }
 0x342   : > { %9903 = vst.msk [vmem:[%s15811_s11 + $0x70] sm:$0xf] %vm9874_vm10, %v11183_v2  ;;  %v11184_v51 = vpack.c.bf16 %v9743_v43, %v9743_v43 }
 0x343   : > { %9906 = vst.msk [vmem:[%s15811_s11 + $0x7c] sm:$0xf] %vm9874_vm10, %v11186_v25 }
 0x344   : > { %9904 = vst.msk [vmem:[%s15811_s11 + $0x74] sm:$0xf] %vm9874_vm10, %v11184_v51 }
 0x345 PF: > { %s16_s23 = sadd.s32 1, %s13004_s23   ;;  %s15957_s21 = smov %s13000_s22 }
 0x346   : > { %p13_p5 = scmp.ge.s32.totalorder %s16_s23, 4   ;;  %s15958_s22 = smov %s15960_s24 }
 0x348   :  { %15 = sbr.rel (!%p13_p5) target bundleno = 2 (0x2), region = 99 }

</bundles_post_ra>
